<compile_context>
chip_gen: v7x
topology: tpu7x:2x2x1
jax: 0.10.0
libtpu: 0.0.40
codegen_flags: <defaults>
</compile_context>

<pallas_src>
import functools

import jax
import jax.numpy as jnp
from jax import lax
from jax.experimental import pallas as pl
from jax.experimental.pallas import tpu as pltpu


def _lrelu(x):
    return jnp.where(x >= 0.0, x, 0.1 * x)


def _chunked(total, chunk, body, max_static_chunks=8):
    """Run body(row0, rows) over [0, total) in `chunk`-row steps.

    Small chunk counts use a static Python loop (best scheduling); large
    counts use lax.fori_loop so trace/code size stays bounded.  A remainder
    chunk (if any) is handled statically.
    """
    chunk = int(max(1, min(chunk, total)))
    n_full = total // chunk
    rem = total - n_full * chunk
    if n_full <= max_static_chunks:
        for c in range(n_full):
            body(c * chunk, chunk)
    else:
        def loop_body(c, carry):
            body(pl.multiple_of(c * chunk, chunk), chunk)
            return carry
        lax.fori_loop(0, n_full, loop_body, 0)
    if rem:
        body(n_full * chunk, rem)


def _pwc_level_kernel(xe_ref, xo_ref, w1_ref, w2_ref, w3_ref,
                      b1_ref, b2_ref, b3_ref, o_ref,
                      a_scr, b_scr, p1a, p1b, y2p,
                      *, H, W, Cin, Cm, Cout, rc1, rc23):
    """One full pyramid level: conv(s1) -> conv(s2) -> conv(s1), LeakyReLU(0.1).

    Column-polyphase layout (every access below is a contiguous slice):
      a_scr[m, t] = xpad[m, 2t]       (xpad = zero-padded level input)
      b_scr[m, t] = xpad[m, 2t + 1]
      p1a[m, t]   = y1pad[m, 2t]      (y1pad = zero-padded conv1 output)
      p1b[m, t]   = y1pad[m, 2t + 1]
      y2p         = conv2 output, zero-padded by 1 on each side.
    """
    Ho, Wo = H // 2, W // 2
    cdt = a_scr.dtype

    # ---- zero the pad borders (cheap narrow stores, redone per grid step so
    #      the kernel stays correct if the batch axis is split across cores).
    zr_in = jnp.zeros((1, Wo + 1, Cin), cdt)
    zc_in = jnp.zeros((H, 1, Cin), cdt)
    a_scr[0:1] = zr_in
    a_scr[H + 1:H + 2] = zr_in
    b_scr[0:1] = zr_in
    b_scr[H + 1:H + 2] = zr_in
    a_scr[1:H + 1, 0:1, :] = zc_in            # xpad col 0   (left pad)
    b_scr[1:H + 1, Wo:Wo + 1, :] = zc_in      # xpad col W+1 (right pad)

    p1a[0:1] = jnp.zeros((1, Wo + 1, Cm), cdt)        # y1pad row 0
    p1b[0:1] = jnp.zeros((1, Wo, Cm), cdt)
    p1a[1:H + 1, 0:1, :] = jnp.zeros((H, 1, Cm), cdt)  # y1pad col 0

    zr_y2 = jnp.zeros((1, Wo + 2, Cm), cdt)
    zc_y2 = jnp.zeros((Ho, 1, Cm), cdt)
    y2p[0:1] = zr_y2
    y2p[Ho + 1:Ho + 2] = zr_y2
    y2p[1:Ho + 1, 0:1, :] = zc_y2
    y2p[1:Ho + 1, Wo + 1:Wo + 2, :] = zc_y2

    # ---- stage the level input into the column-polyphase pads ---------------
    a_scr[1:H + 1, 1:Wo + 1, :] = xo_ref[0]   # odd  input columns
    b_scr[1:H + 1, 0:Wo, :] = xe_ref[0]       # even input columns

    w1 = w1_ref[...]                           # (9*Cin, Cm)
    w2 = w2_ref[...]                           # (9*Cm,  Cm)
    w3 = w3_ref[...]                           # (9*Cm,  Cout)
    bias1 = b1_ref[...].astype(jnp.float32)
    bias2 = b2_ref[...].astype(jnp.float32)
    bias3 = b3_ref[...].astype(jnp.float32)

    # ---- conv1: 3x3 / stride 1 / Cin -> Cm.  Even & odd output columns are
    #      stacked on M and all 9 taps fused on K: one MXU matmul per chunk. --
    def conv1_chunk(r0, rc):
        pe, po = [], []
        for ki in range(3):
            ra = a_scr[pl.ds(r0 + ki, rc)]     # (rc, Wo+1, Cin)
            rb = b_scr[pl.ds(r0 + ki, rc)]
            a0 = ra[:, 0:Wo, :]
            a1 = ra[:, 1:Wo + 1, :]
            bb0 = rb[:, 0:Wo, :]
            bb1 = rb[:, 1:Wo + 1, :]
            pe += [a0, bb0, a1]    # even out col 2t   <- xpad cols 2t,2t+1,2t+2
            po += [bb0, a1, bb1]   # odd  out col 2t+1 <- xpad cols 2t+1,2t+2,2t+3
        patch = jnp.concatenate(
            [jnp.concatenate(pe, axis=-1), jnp.concatenate(po, axis=-1)],
            axis=0)                                        # (2*rc, Wo, 9*Cin)
        y = jnp.dot(patch.reshape(2 * rc * Wo, 9 * Cin), w1,
                    preferred_element_type=jnp.float32) + bias1
        y = _lrelu(y).astype(cdt).reshape(2, rc, Wo, Cm)
        p1b[pl.ds(r0 + 1, rc), :, :] = y[0]                # even -> y1pad odd phase
        p1a[pl.ds(r0 + 1, rc), 1:Wo + 1, :] = y[1]         # odd  -> y1pad even phase

    _chunked(H, rc1, conv1_chunk)

    # ---- conv2: 3x3 / stride 2 / Cm -> Cm.  A chunk of rc output rows loads
    #      the 2*rc+1 needed y1pad rows once and restacks them per row tap on
    #      the leading axis: one (rc*Wo, 9*Cm) x (9*Cm, Cm) matmul per chunk. -
    def conv2_chunk(r0, rc):
        slab_a = p1a[pl.ds(2 * r0, 2 * rc + 1)]            # (2rc+1, Wo+1, Cm)
        slab_b = p1b[pl.ds(2 * r0, 2 * rc + 1)]            # (2rc+1, Wo,   Cm)
        pieces = []
        for ki in range(3):
            ra = jnp.concatenate(
                [slab_a[2 * m + ki:2 * m + ki + 1] for m in range(rc)], axis=0)
            rb = jnp.concatenate(
                [slab_b[2 * m + ki:2 * m + ki + 1] for m in range(rc)], axis=0)
            pieces += [ra[:, 0:Wo, :], rb, ra[:, 1:Wo + 1, :]]
        patch = jnp.concatenate(pieces, axis=-1)           # (rc, Wo, 9*Cm)
        y = jnp.dot(patch.reshape(rc * Wo, 9 * Cm), w2,
                    preferred_element_type=jnp.float32) + bias2
        y2p[pl.ds(r0 + 1, rc), 1:Wo + 1, :] = (
            _lrelu(y).astype(cdt).reshape(rc, Wo, Cm))

    _chunked(Ho, rc23, conv2_chunk)

    # ---- conv3: 3x3 / stride 1 / Cm -> Cout, K = 9*Cm fused ------------------
    def conv3_chunk(r0, rc):
        pieces = []
        for ki in range(3):
            rows = y2p[pl.ds(r0 + ki, rc)]                 # (rc, Wo+2, Cm)
            for kj in range(3):
                pieces.append(rows[:, kj:kj + Wo, :])
        patch = jnp.concatenate(pieces, axis=-1)           # (rc, Wo, 9*Cm)
        y = jnp.dot(patch.reshape(rc * Wo, 9 * Cm), w3,
                    preferred_element_type=jnp.float32) + bias3
        o_ref[0, pl.ds(r0, rc), :, :] = (
            _lrelu(y).astype(o_ref.dtype).reshape(rc, Wo, Cout))

    _chunked(Ho, rc23, conv3_chunk)


def pwc_level(x_nhwc, params, *, compute_dtype=jnp.bfloat16):
    """One fused pyramid level. x_nhwc: (N, H, W, Cin) -> (N, H//2, W//2, Cout)."""
    (w1, b1), (w2, b2), (w3, b3) = params
    N, H, W, Cin = x_nhwc.shape
    Cm = w1.shape[-1]
    Cout = w3.shape[-1]
    assert H % 2 == 0 and W % 2 == 0, "PWC level needs even spatial dims"
    assert w1.shape[:3] == (3, 3, Cin) and w2.shape == (3, 3, Cm, Cm)
    assert w3.shape[:3] == (3, 3, Cm)
    Ho, Wo = H // 2, W // 2

    xc = x_nhwc.astype(compute_dtype)
    xe = xc[:, :, 0::2, :]        # even input columns (N, H, Wo, Cin)
    xo = xc[:, :, 1::2, :]        # odd  input columns (N, H, Wo, Cin)

    w1k = w1.reshape(9 * Cin, Cm).astype(compute_dtype)
    w2k = w2.reshape(9 * Cm, Cm).astype(compute_dtype)
    w3k = w3.reshape(9 * Cm, Cout).astype(compute_dtype)
    b1r = b1.reshape(1, Cm).astype(jnp.float32)
    b2r = b2.reshape(1, Cm).astype(jnp.float32)
    b3r = b3.reshape(1, Cout).astype(jnp.float32)

    # Row-chunk sizes: bound each matmul's M (and its f32 result tile) to
    # ~256 rows to keep vreg pressure well inside the register file.
    rc1 = int(max(1, min(H, 128 // max(1, Wo))))    # conv1 stacks even+odd on M
    rc23 = int(max(1, min(Ho, 256 // max(1, Wo))))

    # ---- padded-aware VMEM footprint -> vmem_limit_bytes ---------------------
    def rup(x, m):
        return -(-x // m) * m

    def padded_bytes(shape, dtype):
        it = jnp.dtype(dtype).itemsize
        s = list(shape)
        s[-1] = rup(s[-1], 128)                       # lane padding
        if len(s) >= 2:
            s[-2] = rup(s[-2], 8 * max(1, 4 // it))   # sublane padding (8/16)
        n = 1
        for d in s:
            n *= d
        return n * it

    cdt = compute_dtype
    scratch_bytes = (2 * padded_bytes((H + 2, Wo + 1, Cin), cdt)
                     + padded_bytes((H + 1, Wo + 1, Cm), cdt)
                     + padded_bytes((H + 1, Wo, Cm), cdt)
                     + padded_bytes((Ho + 2, Wo + 2, Cm), cdt))
    block_bytes = 2 * (2 * padded_bytes((1, H, Wo, Cin), cdt)
                       + padded_bytes((1, Ho, Wo, Cout), cdt))
    weight_bytes = 2 * (padded_bytes((9 * Cin, Cm), cdt)
                        + padded_bytes((9 * Cm, Cm), cdt)
                        + padded_bytes((9 * Cm, Cout), cdt)
                        + 3 * padded_bytes((1, max(Cm, Cout)), jnp.float32))
    est_bytes = scratch_bytes + block_bytes + weight_bytes

    try:
        vmem_cap = int(pltpu.get_tpu_info().vmem_capacity_bytes)
    except Exception:
        vmem_cap = 64 * 2 ** 20
    usable = min(int(vmem_cap * 0.8), vmem_cap - 12 * 2 ** 20)
    vmem_limit = int(min(usable,
                         max(32 * 2 ** 20, int(est_bytes * 1.5) + 8 * 2 ** 20)))

    kernel = functools.partial(
        _pwc_level_kernel, H=H, W=W, Cin=Cin, Cm=Cm, Cout=Cout,
        rc1=rc1, rc23=rc23)

    return pl.pallas_call(
        kernel,
        out_shape=jax.ShapeDtypeStruct((N, Ho, Wo, Cout), compute_dtype),
        grid_spec=pltpu.PrefetchScalarGridSpec(
            num_scalar_prefetch=0,
            grid=(N,),
            in_specs=[
                pl.BlockSpec((1, H, Wo, Cin), lambda n: (n, 0, 0, 0)),
                pl.BlockSpec((1, H, Wo, Cin), lambda n: (n, 0, 0, 0)),
                pl.BlockSpec((9 * Cin, Cm), lambda n: (0, 0)),
                pl.BlockSpec((9 * Cm, Cm), lambda n: (0, 0)),
                pl.BlockSpec((9 * Cm, Cout), lambda n: (0, 0)),
                pl.BlockSpec((1, Cm), lambda n: (0, 0)),
                pl.BlockSpec((1, Cm), lambda n: (0, 0)),
                pl.BlockSpec((1, Cout), lambda n: (0, 0)),
            ],
            out_specs=pl.BlockSpec((1, Ho, Wo, Cout), lambda n: (n, 0, 0, 0)),
            scratch_shapes=[
                pltpu.VMEM((H + 2, Wo + 1, Cin), compute_dtype),   # A phase
                pltpu.VMEM((H + 2, Wo + 1, Cin), compute_dtype),   # B phase
                pltpu.VMEM((H + 1, Wo + 1, Cm), compute_dtype),    # y1pad even cols
                pltpu.VMEM((H + 1, Wo, Cm), compute_dtype),        # y1pad odd cols
                pltpu.VMEM((Ho + 2, Wo + 2, Cm), compute_dtype),   # y2 padded
            ],
        ),
        compiler_params=pltpu.CompilerParams(
            dimension_semantics=("parallel",),
            vmem_limit_bytes=vmem_limit,
        ),
    )(xe, xo, w1k, w2k, w3k, b1r, b2r, b3r)


class PWCEncoderPallas:
    """JAX/Pallas equivalent of PWCEncoder(num_chs, use_bn=False)."""

    def __init__(self, num_chs, key, use_bn=False):
        assert not use_bn  # TODO(synk): use_bn path not implemented
        self.num_chs = num_chs
        self.layers = []   # list of ((w,b), (w,b), (w,b)) per level
        for ch_in, ch_out in zip(num_chs[:-1], num_chs[1:]):
            specs = [(ch_in, ch_out), (ch_out, ch_out), (ch_out, ch_out)]
            layer = []
            for ci, co in specs:
                key, wk, bk = jax.random.split(key, 3)
                fan_in = 9 * ci
                w = jax.random.normal(wk, (3, 3, ci, co), jnp.float32) * (
                    2.0 / fan_in) ** 0.5
                b = 0.01 * jax.random.normal(bk, (co,), jnp.float32)
                layer.append((w, b))
            self.layers.append(tuple(layer))

    def __call__(self, x_nchw, compute_dtype=jnp.bfloat16):
        x = jnp.transpose(x_nchw, (0, 2, 3, 1))      # NCHW -> NHWC
        pyramid = []
        for layer in self.layers:
            x = pwc_level(x, layer, compute_dtype=compute_dtype)
            pyramid.append(jnp.transpose(x, (0, 3, 1, 2)).astype(jnp.float32))
        return pyramid


# ---------------- pure-JAX reference (for correctness check) ----------------
def _ref_forward(enc, x_nchw, compute_dtype=jnp.bfloat16):
    x = jnp.transpose(x_nchw, (0, 2, 3, 1))
    strides = (1, 2, 1)
    pyr = []
    for layer in enc.layers:
        for (w, b), s in zip(layer, strides):
            y = lax.conv_general_dilated(
                x.astype(compute_dtype), w.astype(compute_dtype),
                window_strides=(s, s), padding=((1, 1), (1, 1)),
                dimension_numbers=("NHWC", "HWIO", "NHWC"),
                preferred_element_type=jnp.float32)
            y = y + b.reshape(1, 1, 1, -1).astype(jnp.float32)
            y = jnp.where(y >= 0.0, y, 0.1 * y)
            x = y.astype(compute_dtype)
        pyr.append(jnp.transpose(x, (0, 3, 1, 2)).astype(jnp.float32))
    return pyr


if __name__ == "__main__":
    key = jax.random.PRNGKey(0)
    key, xkey = jax.random.split(key)

    num_chs = [4, 8, 16]                                       # two levels
    x = jax.random.normal(xkey, (2, 4, 16, 16), jnp.float32)   # NCHW

    enc = PWCEncoderPallas(num_chs, key)
    pyramid = enc(x)
    pyramid = jax.block_until_ready(pyramid)

    expected_shapes = [(2, 8, 8, 8), (2, 16, 4, 4)]
    got_shapes = [tuple(p.shape) for p in pyramid]
    assert got_shapes == expected_shapes, got_shapes

    ref_pyr = _ref_forward(enc, x)
    for got, ref in zip(pyramid, ref_pyr):
        err = float(jnp.max(jnp.abs(got - ref)))
        scale = float(jnp.max(jnp.abs(ref))) + 1e-6
        assert err <= 2e-2 * scale + 1e-3, f"max abs err {err} vs scale {scale}"

    print("KERNEL_OK")
</pallas_src>

<mosaic_0001>
module attributes {stable_mosaic.version = 11 : i64} {
  func.func @_pwc_level_kernel(%arg0: i32, %arg1: memref<1x16x8x4xbf16, #tpu.memory_space<vmem>>, %arg2: memref<1x16x8x4xbf16, #tpu.memory_space<vmem>>, %arg3: memref<36x8xbf16, #tpu.memory_space<vmem>>, %arg4: memref<72x8xbf16, #tpu.memory_space<vmem>>, %arg5: memref<72x8xbf16, #tpu.memory_space<vmem>>, %arg6: memref<1x8xf32, #tpu.memory_space<vmem>>, %arg7: memref<1x8xf32, #tpu.memory_space<vmem>>, %arg8: memref<1x8xf32, #tpu.memory_space<vmem>>, %arg9: memref<1x8x8x8xbf16, #tpu.memory_space<vmem>>, %arg10: memref<18x9x4xbf16, #tpu.memory_space<vmem>>, %arg11: memref<18x9x4xbf16, #tpu.memory_space<vmem>>, %arg12: memref<17x9x8xbf16, #tpu.memory_space<vmem>>, %arg13: memref<17x8x8xbf16, #tpu.memory_space<vmem>>, %arg14: memref<10x10x8xbf16, #tpu.memory_space<vmem>>) attributes {dimension_semantics = [#tpu.dimension_semantics<parallel>], iteration_bounds = array<i64: 2>, scalar_prefetch = 0 : i64, scratch_operands = 5 : i64, tpu.core_type = #tpu.core_type<tc>, window_params = [{transform_indices = @transform_0, window_bounds = array<i64: 1, 16, 8, 4>}, {transform_indices = @transform_1, window_bounds = array<i64: 1, 16, 8, 4>}, {pipeline_mode = #tpu.pipeline_mode<synchronous>, transform_indices = @transform_2, window_bounds = array<i64: 36, 8>}, {pipeline_mode = #tpu.pipeline_mode<synchronous>, transform_indices = @transform_3, window_bounds = array<i64: 72, 8>}, {pipeline_mode = #tpu.pipeline_mode<synchronous>, transform_indices = @transform_4, window_bounds = array<i64: 72, 8>}, {pipeline_mode = #tpu.pipeline_mode<synchronous>, transform_indices = @transform_5, window_bounds = array<i64: 1, 8>}, {pipeline_mode = #tpu.pipeline_mode<synchronous>, transform_indices = @transform_6, window_bounds = array<i64: 1, 8>}, {pipeline_mode = #tpu.pipeline_mode<synchronous>, transform_indices = @transform_7, window_bounds = array<i64: 1, 8>}, {transform_indices = @transform_8, window_bounds = array<i64: 1, 8, 8, 8>}]} {
    %cst = arith.constant 0.000000e+00 : bf16
    %0 = vector.broadcast %cst : bf16 to vector<1x9x4xbf16>
    %cst_0 = arith.constant 0.000000e+00 : bf16
    %1 = vector.broadcast %cst_0 : bf16 to vector<16x1x4xbf16>
    %c0 = arith.constant 0 : index
    %c0_1 = arith.constant 0 : index
    %c0_2 = arith.constant 0 : index
    %2 = vector.load %arg10[%c0, %c0_1, %c0_2] : memref<18x9x4xbf16, #tpu.memory_space<vmem>>, vector<1x9x4xbf16>
    tpu.vector_store %arg10[%c0, %c0_1, %c0_2], %0 {strides = array<i32>} : memref<18x9x4xbf16, #tpu.memory_space<vmem>>, vector<1x9x4xbf16>,
    %c17 = arith.constant 17 : index
    %c0_3 = arith.constant 0 : index
    %c0_4 = arith.constant 0 : index
    %3 = vector.load %arg10[%c17, %c0_3, %c0_4] : memref<18x9x4xbf16, #tpu.memory_space<vmem>>, vector<1x9x4xbf16>
    tpu.vector_store %arg10[%c17, %c0_3, %c0_4], %0 {strides = array<i32>} : memref<18x9x4xbf16, #tpu.memory_space<vmem>>, vector<1x9x4xbf16>,
    %c0_5 = arith.constant 0 : index
    %c0_6 = arith.constant 0 : index
    %c0_7 = arith.constant 0 : index
    %4 = vector.load %arg11[%c0_5, %c0_6, %c0_7] : memref<18x9x4xbf16, #tpu.memory_space<vmem>>, vector<1x9x4xbf16>
    tpu.vector_store %arg11[%c0_5, %c0_6, %c0_7], %0 {strides = array<i32>} : memref<18x9x4xbf16, #tpu.memory_space<vmem>>, vector<1x9x4xbf16>,
    %c17_8 = arith.constant 17 : index
    %c0_9 = arith.constant 0 : index
    %c0_10 = arith.constant 0 : index
    %5 = vector.load %arg11[%c17_8, %c0_9, %c0_10] : memref<18x9x4xbf16, #tpu.memory_space<vmem>>, vector<1x9x4xbf16>
    tpu.vector_store %arg11[%c17_8, %c0_9, %c0_10], %0 {strides = array<i32>} : memref<18x9x4xbf16, #tpu.memory_space<vmem>>, vector<1x9x4xbf16>,
    %c1 = arith.constant 1 : index
    %c0_11 = arith.constant 0 : index
    %c0_12 = arith.constant 0 : index
    %6 = vector.load %arg10[%c1, %c0_11, %c0_12] : memref<18x9x4xbf16, #tpu.memory_space<vmem>>, vector<16x1x4xbf16>
    tpu.vector_store %arg10[%c1, %c0_11, %c0_12], %1 {strides = array<i32>} : memref<18x9x4xbf16, #tpu.memory_space<vmem>>, vector<16x1x4xbf16>,
    %c1_13 = arith.constant 1 : index
    %c8 = arith.constant 8 : index
    %c0_14 = arith.constant 0 : index
    %7 = vector.load %arg11[%c1_13, %c8, %c0_14] : memref<18x9x4xbf16, #tpu.memory_space<vmem>>, vector<16x1x4xbf16>
    tpu.vector_store %arg11[%c1_13, %c8, %c0_14], %1 {strides = array<i32>} : memref<18x9x4xbf16, #tpu.memory_space<vmem>>, vector<16x1x4xbf16>,
    %cst_15 = arith.constant 0.000000e+00 : bf16
    %8 = vector.broadcast %cst_15 : bf16 to vector<1x9x8xbf16>
    %c0_16 = arith.constant 0 : index
    %c0_17 = arith.constant 0 : index
    %c0_18 = arith.constant 0 : index
    %9 = vector.load %arg12[%c0_16, %c0_17, %c0_18] : memref<17x9x8xbf16, #tpu.memory_space<vmem>>, vector<1x9x8xbf16>
    tpu.vector_store %arg12[%c0_16, %c0_17, %c0_18], %8 {strides = array<i32>} : memref<17x9x8xbf16, #tpu.memory_space<vmem>>, vector<1x9x8xbf16>,
    %cst_19 = arith.constant 0.000000e+00 : bf16
    %10 = vector.broadcast %cst_19 : bf16 to vector<1x8x8xbf16>
    %c0_20 = arith.constant 0 : index
    %c0_21 = arith.constant 0 : index
    %c0_22 = arith.constant 0 : index
    %11 = vector.load %arg13[%c0_20, %c0_21, %c0_22] : memref<17x8x8xbf16, #tpu.memory_space<vmem>>, vector<1x8x8xbf16>
    tpu.vector_store %arg13[%c0_20, %c0_21, %c0_22], %10 {strides = array<i32>} : memref<17x8x8xbf16, #tpu.memory_space<vmem>>, vector<1x8x8xbf16>,
    %cst_23 = arith.constant 0.000000e+00 : bf16
    %12 = vector.broadcast %cst_23 : bf16 to vector<16x1x8xbf16>
    %c1_24 = arith.constant 1 : index
    %c0_25 = arith.constant 0 : index
    %c0_26 = arith.constant 0 : index
    %13 = vector.load %arg12[%c1_24, %c0_25, %c0_26] : memref<17x9x8xbf16, #tpu.memory_space<vmem>>, vector<16x1x8xbf16>
    tpu.vector_store %arg12[%c1_24, %c0_25, %c0_26], %12 {strides = array<i32>} : memref<17x9x8xbf16, #tpu.memory_space<vmem>>, vector<16x1x8xbf16>,
    %cst_27 = arith.constant 0.000000e+00 : bf16
    %14 = vector.broadcast %cst_27 : bf16 to vector<1x10x8xbf16>
    %cst_28 = arith.constant 0.000000e+00 : bf16
    %15 = vector.broadcast %cst_28 : bf16 to vector<8x1x8xbf16>
    %c0_29 = arith.constant 0 : index
    %c0_30 = arith.constant 0 : index
    %c0_31 = arith.constant 0 : index
    %16 = vector.load %arg14[%c0_29, %c0_30, %c0_31] : memref<10x10x8xbf16, #tpu.memory_space<vmem>>, vector<1x10x8xbf16>
    tpu.vector_store %arg14[%c0_29, %c0_30, %c0_31], %14 {strides = array<i32>} : memref<10x10x8xbf16, #tpu.memory_space<vmem>>, vector<1x10x8xbf16>,
    %c9 = arith.constant 9 : index
    %c0_32 = arith.constant 0 : index
    %c0_33 = arith.constant 0 : index
    %17 = vector.load %arg14[%c9, %c0_32, %c0_33] : memref<10x10x8xbf16, #tpu.memory_space<vmem>>, vector<1x10x8xbf16>
    tpu.vector_store %arg14[%c9, %c0_32, %c0_33], %14 {strides = array<i32>} : memref<10x10x8xbf16, #tpu.memory_space<vmem>>, vector<1x10x8xbf16>,
    %c1_34 = arith.constant 1 : index
    %c0_35 = arith.constant 0 : index
    %c0_36 = arith.constant 0 : index
    %18 = vector.load %arg14[%c1_34, %c0_35, %c0_36] : memref<10x10x8xbf16, #tpu.memory_space<vmem>>, vector<8x1x8xbf16>
    tpu.vector_store %arg14[%c1_34, %c0_35, %c0_36], %15 {strides = array<i32>} : memref<10x10x8xbf16, #tpu.memory_space<vmem>>, vector<8x1x8xbf16>,
    %c1_37 = arith.constant 1 : index
    %c9_38 = arith.constant 9 : index
    %c0_39 = arith.constant 0 : index
    %19 = vector.load %arg14[%c1_37, %c9_38, %c0_39] : memref<10x10x8xbf16, #tpu.memory_space<vmem>>, vector<8x1x8xbf16>
    tpu.vector_store %arg14[%c1_37, %c9_38, %c0_39], %15 {strides = array<i32>} : memref<10x10x8xbf16, #tpu.memory_space<vmem>>, vector<8x1x8xbf16>,
    %c0_40 = arith.constant 0 : index
    %c0_41 = arith.constant 0 : index
    %c0_42 = arith.constant 0 : index
    %c0_43 = arith.constant 0 : index
    %20 = vector.load %arg2[%c0_40, %c0_41, %c0_42, %c0_43] : memref<1x16x8x4xbf16, #tpu.memory_space<vmem>>, vector<1x16x8x4xbf16>
    %21 = vector.shape_cast %20 : vector<1x16x8x4xbf16> to vector<16x8x4xbf16>
    %c1_44 = arith.constant 1 : index
    %c1_45 = arith.constant 1 : index
    %c0_46 = arith.constant 0 : index
    %22 = vector.load %arg10[%c1_44, %c1_45, %c0_46] : memref<18x9x4xbf16, #tpu.memory_space<vmem>>, vector<16x8x4xbf16>
    tpu.vector_store %arg10[%c1_44, %c1_45, %c0_46], %21 {strides = array<i32>} : memref<18x9x4xbf16, #tpu.memory_space<vmem>>, vector<16x8x4xbf16>,
    %c0_47 = arith.constant 0 : index
    %c0_48 = arith.constant 0 : index
    %c0_49 = arith.constant 0 : index
    %c0_50 = arith.constant 0 : index
    %23 = vector.load %arg1[%c0_47, %c0_48, %c0_49, %c0_50] : memref<1x16x8x4xbf16, #tpu.memory_space<vmem>>, vector<1x16x8x4xbf16>
    %24 = vector.shape_cast %23 : vector<1x16x8x4xbf16> to vector<16x8x4xbf16>
    %c1_51 = arith.constant 1 : index
    %c0_52 = arith.constant 0 : index
    %c0_53 = arith.constant 0 : index
    %25 = vector.load %arg11[%c1_51, %c0_52, %c0_53] : memref<18x9x4xbf16, #tpu.memory_space<vmem>>, vector<16x8x4xbf16>
    tpu.vector_store %arg11[%c1_51, %c0_52, %c0_53], %24 {strides = array<i32>} : memref<18x9x4xbf16, #tpu.memory_space<vmem>>, vector<16x8x4xbf16>,
    %c0_54 = arith.constant 0 : index
    %c0_55 = arith.constant 0 : index
    %26 = vector.load %arg3[%c0_54, %c0_55] : memref<36x8xbf16, #tpu.memory_space<vmem>>, vector<36x8xbf16>
    %c0_56 = arith.constant 0 : index
    %c0_57 = arith.constant 0 : index
    %27 = vector.load %arg4[%c0_56, %c0_57] : memref<72x8xbf16, #tpu.memory_space<vmem>>, vector<72x8xbf16>
    %c0_58 = arith.constant 0 : index
    %c0_59 = arith.constant 0 : index
    %28 = vector.load %arg5[%c0_58, %c0_59] : memref<72x8xbf16, #tpu.memory_space<vmem>>, vector<72x8xbf16>
    %c0_60 = arith.constant 0 : index
    %c0_61 = arith.constant 0 : index
    %29 = vector.load %arg6[%c0_60, %c0_61] : memref<1x8xf32, #tpu.memory_space<vmem>>, vector<1x8xf32>
    %c0_62 = arith.constant 0 : index
    %c0_63 = arith.constant 0 : index
    %30 = vector.load %arg7[%c0_62, %c0_63] : memref<1x8xf32, #tpu.memory_space<vmem>>, vector<1x8xf32>
    %c0_64 = arith.constant 0 : index
    %c0_65 = arith.constant 0 : index
    %31 = vector.load %arg8[%c0_64, %c0_65] : memref<1x8xf32, #tpu.memory_space<vmem>>, vector<1x8xf32>
    %c0_66 = arith.constant 0 : index
    %c0_67 = arith.constant 0 : index
    %c0_68 = arith.constant 0 : index
    %32 = vector.load %arg10[%c0_66, %c0_67, %c0_68] : memref<18x9x4xbf16, #tpu.memory_space<vmem>>, vector<16x9x4xbf16>
    %c0_69 = arith.constant 0 : index
    %c0_70 = arith.constant 0 : index
    %c0_71 = arith.constant 0 : index
    %33 = vector.load %arg11[%c0_69, %c0_70, %c0_71] : memref<18x9x4xbf16, #tpu.memory_space<vmem>>, vector<16x9x4xbf16>
    %34 = vector.extract_strided_slice %32 {offsets = [0, 0, 0], sizes = [16, 8, 4], strides = [1, 1, 1]} : vector<16x9x4xbf16> to vector<16x8x4xbf16>
    %35 = vector.extract_strided_slice %32 {offsets = [0, 1, 0], sizes = [16, 8, 4], strides = [1, 1, 1]} : vector<16x9x4xbf16> to vector<16x8x4xbf16>
    %36 = vector.extract_strided_slice %33 {offsets = [0, 0, 0], sizes = [16, 8, 4], strides = [1, 1, 1]} : vector<16x9x4xbf16> to vector<16x8x4xbf16>
    %37 = vector.extract_strided_slice %33 {offsets = [0, 1, 0], sizes = [16, 8, 4], strides = [1, 1, 1]} : vector<16x9x4xbf16> to vector<16x8x4xbf16>
    %c1_72 = arith.constant 1 : index
    %c0_73 = arith.constant 0 : index
    %c0_74 = arith.constant 0 : index
    %38 = vector.load %arg10[%c1_72, %c0_73, %c0_74] : memref<18x9x4xbf16, #tpu.memory_space<vmem>>, vector<16x9x4xbf16>
    %c1_75 = arith.constant 1 : index
    %c0_76 = arith.constant 0 : index
    %c0_77 = arith.constant 0 : index
    %39 = vector.load %arg11[%c1_75, %c0_76, %c0_77] : memref<18x9x4xbf16, #tpu.memory_space<vmem>>, vector<16x9x4xbf16>
    %40 = vector.extract_strided_slice %38 {offsets = [0, 0, 0], sizes = [16, 8, 4], strides = [1, 1, 1]} : vector<16x9x4xbf16> to vector<16x8x4xbf16>
    %41 = vector.extract_strided_slice %38 {offsets = [0, 1, 0], sizes = [16, 8, 4], strides = [1, 1, 1]} : vector<16x9x4xbf16> to vector<16x8x4xbf16>
    %42 = vector.extract_strided_slice %39 {offsets = [0, 0, 0], sizes = [16, 8, 4], strides = [1, 1, 1]} : vector<16x9x4xbf16> to vector<16x8x4xbf16>
    %43 = vector.extract_strided_slice %39 {offsets = [0, 1, 0], sizes = [16, 8, 4], strides = [1, 1, 1]} : vector<16x9x4xbf16> to vector<16x8x4xbf16>
    %c2 = arith.constant 2 : index
    %c0_78 = arith.constant 0 : index
    %c0_79 = arith.constant 0 : index
    %44 = vector.load %arg10[%c2, %c0_78, %c0_79] : memref<18x9x4xbf16, #tpu.memory_space<vmem>>, vector<16x9x4xbf16>
    %c2_80 = arith.constant 2 : index
    %c0_81 = arith.constant 0 : index
    %c0_82 = arith.constant 0 : index
    %45 = vector.load %arg11[%c2_80, %c0_81, %c0_82] : memref<18x9x4xbf16, #tpu.memory_space<vmem>>, vector<16x9x4xbf16>
    %46 = vector.extract_strided_slice %44 {offsets = [0, 0, 0], sizes = [16, 8, 4], strides = [1, 1, 1]} : vector<16x9x4xbf16> to vector<16x8x4xbf16>
    %47 = vector.extract_strided_slice %44 {offsets = [0, 1, 0], sizes = [16, 8, 4], strides = [1, 1, 1]} : vector<16x9x4xbf16> to vector<16x8x4xbf16>
    %48 = vector.extract_strided_slice %45 {offsets = [0, 0, 0], sizes = [16, 8, 4], strides = [1, 1, 1]} : vector<16x9x4xbf16> to vector<16x8x4xbf16>
    %49 = vector.extract_strided_slice %45 {offsets = [0, 1, 0], sizes = [16, 8, 4], strides = [1, 1, 1]} : vector<16x9x4xbf16> to vector<16x8x4xbf16>
    %50 = tpu.concatenate %34, %36, %35, %40, %42, %41, %46, %48, %47 in 2 : vector<16x8x4xbf16>, vector<16x8x4xbf16>, vector<16x8x4xbf16>, vector<16x8x4xbf16>, vector<16x8x4xbf16>, vector<16x8x4xbf16>, vector<16x8x4xbf16>, vector<16x8x4xbf16>, vector<16x8x4xbf16> -> vector<16x8x36xbf16>
    %51 = tpu.concatenate %36, %35, %37, %42, %41, %43, %48, %47, %49 in 2 : vector<16x8x4xbf16>, vector<16x8x4xbf16>, vector<16x8x4xbf16>, vector<16x8x4xbf16>, vector<16x8x4xbf16>, vector<16x8x4xbf16>, vector<16x8x4xbf16>, vector<16x8x4xbf16>, vector<16x8x4xbf16> -> vector<16x8x36xbf16>
    %52 = tpu.concatenate %50, %51 in 0 : vector<16x8x36xbf16>, vector<16x8x36xbf16> -> vector<32x8x36xbf16>
    %53 = vector.shape_cast %52 : vector<32x8x36xbf16> to vector<256x36xbf16>
    %cst_83 = arith.constant dense<0.000000e+00> : vector<256x8xf32>
    %54 = tpu.matmul %53, %26, %cst_83 {dimension_numbers = #tpu.dot_dimension_numbers<[1], [0], [0], [1], [0, 0, 1, 1], [], []>} : vector<256x36xbf16>, vector<36x8xbf16>, vector<256x8xf32> -> vector<256x8xf32>
    %55 = vector.broadcast %29 : vector<1x8xf32> to vector<256x8xf32>
    %56 = arith.addf %54, %55 : vector<256x8xf32>
    %cst_84 = arith.constant 0.000000e+00 : f32
    %57 = vector.broadcast %cst_84 : f32 to vector<256x8xf32>
    %58 = arith.cmpf oge, %56, %57 : vector<256x8xf32>
    %cst_85 = arith.constant 1.000000e-01 : f32
    %59 = vector.broadcast %cst_85 : f32 to vector<256x8xf32>
    %60 = arith.mulf %59, %56 : vector<256x8xf32>
    %61 = arith.select %58, %56, %60 : vector<256x8xi1>, vector<256x8xf32>
    %62 = arith.truncf %61 : vector<256x8xf32> to vector<256x8xbf16>
    %63 = vector.shape_cast %62 : vector<256x8xbf16> to vector<2x16x8x8xbf16>
    %64 = vector.extract_strided_slice %63 {offsets = [0, 0, 0, 0], sizes = [1, 16, 8, 8], strides = [1, 1, 1, 1]} : vector<2x16x8x8xbf16> to vector<1x16x8x8xbf16>
    %65 = vector.shape_cast %64 : vector<1x16x8x8xbf16> to vector<16x8x8xbf16>
    %c1_86 = arith.constant 1 : index
    %c0_87 = arith.constant 0 : index
    %c0_88 = arith.constant 0 : index
    %66 = vector.load %arg13[%c1_86, %c0_87, %c0_88] : memref<17x8x8xbf16, #tpu.memory_space<vmem>>, vector<16x8x8xbf16>
    tpu.vector_store %arg13[%c1_86, %c0_87, %c0_88], %65 {strides = array<i32>} : memref<17x8x8xbf16, #tpu.memory_space<vmem>>, vector<16x8x8xbf16>,
    %67 = vector.extract_strided_slice %63 {offsets = [1, 0, 0, 0], sizes = [1, 16, 8, 8], strides = [1, 1, 1, 1]} : vector<2x16x8x8xbf16> to vector<1x16x8x8xbf16>
    %68 = vector.shape_cast %67 : vector<1x16x8x8xbf16> to vector<16x8x8xbf16>
    %c1_89 = arith.constant 1 : index
    %c1_90 = arith.constant 1 : index
    %c0_91 = arith.constant 0 : index
    %69 = vector.load %arg12[%c1_89, %c1_90, %c0_91] : memref<17x9x8xbf16, #tpu.memory_space<vmem>>, vector<16x8x8xbf16>
    tpu.vector_store %arg12[%c1_89, %c1_90, %c0_91], %68 {strides = array<i32>} : memref<17x9x8xbf16, #tpu.memory_space<vmem>>, vector<16x8x8xbf16>,
    %c0_92 = arith.constant 0 : index
    %c0_93 = arith.constant 0 : index
    %c0_94 = arith.constant 0 : index
    %70 = vector.load %arg12[%c0_92, %c0_93, %c0_94] : memref<17x9x8xbf16, #tpu.memory_space<vmem>>, vector<17x9x8xbf16>
    %c0_95 = arith.constant 0 : index
    %c0_96 = arith.constant 0 : index
    %c0_97 = arith.constant 0 : index
    %71 = vector.load %arg13[%c0_95, %c0_96, %c0_97] : memref<17x8x8xbf16, #tpu.memory_space<vmem>>, vector<17x8x8xbf16>
    %72 = vector.extract_strided_slice %70 {offsets = [0, 0, 0], sizes = [1, 9, 8], strides = [1, 1, 1]} : vector<17x9x8xbf16> to vector<1x9x8xbf16>
    %73 = vector.extract_strided_slice %70 {offsets = [2, 0, 0], sizes = [1, 9, 8], strides = [1, 1, 1]} : vector<17x9x8xbf16> to vector<1x9x8xbf16>
    %74 = vector.extract_strided_slice %70 {offsets = [4, 0, 0], sizes = [1, 9, 8], strides = [1, 1, 1]} : vector<17x9x8xbf16> to vector<1x9x8xbf16>
    %75 = vector.extract_strided_slice %70 {offsets = [6, 0, 0], sizes = [1, 9, 8], strides = [1, 1, 1]} : vector<17x9x8xbf16> to vector<1x9x8xbf16>
    %76 = vector.extract_strided_slice %70 {offsets = [8, 0, 0], sizes = [1, 9, 8], strides = [1, 1, 1]} : vector<17x9x8xbf16> to vector<1x9x8xbf16>
    %77 = vector.extract_strided_slice %70 {offsets = [10, 0, 0], sizes = [1, 9, 8], strides = [1, 1, 1]} : vector<17x9x8xbf16> to vector<1x9x8xbf16>
    %78 = vector.extract_strided_slice %70 {offsets = [12, 0, 0], sizes = [1, 9, 8], strides = [1, 1, 1]} : vector<17x9x8xbf16> to vector<1x9x8xbf16>
    %79 = vector.extract_strided_slice %70 {offsets = [14, 0, 0], sizes = [1, 9, 8], strides = [1, 1, 1]} : vector<17x9x8xbf16> to vector<1x9x8xbf16>
    %80 = tpu.concatenate %72, %73, %74, %75, %76, %77, %78, %79 in 0 : vector<1x9x8xbf16>, vector<1x9x8xbf16>, vector<1x9x8xbf16>, vector<1x9x8xbf16>, vector<1x9x8xbf16>, vector<1x9x8xbf16>, vector<1x9x8xbf16>, vector<1x9x8xbf16> -> vector<8x9x8xbf16>
    %81 = vector.extract_strided_slice %71 {offsets = [0, 0, 0], sizes = [1, 8, 8], strides = [1, 1, 1]} : vector<17x8x8xbf16> to vector<1x8x8xbf16>
    %82 = vector.extract_strided_slice %71 {offsets = [2, 0, 0], sizes = [1, 8, 8], strides = [1, 1, 1]} : vector<17x8x8xbf16> to vector<1x8x8xbf16>
    %83 = vector.extract_strided_slice %71 {offsets = [4, 0, 0], sizes = [1, 8, 8], strides = [1, 1, 1]} : vector<17x8x8xbf16> to vector<1x8x8xbf16>
    %84 = vector.extract_strided_slice %71 {offsets = [6, 0, 0], sizes = [1, 8, 8], strides = [1, 1, 1]} : vector<17x8x8xbf16> to vector<1x8x8xbf16>
    %85 = vector.extract_strided_slice %71 {offsets = [8, 0, 0], sizes = [1, 8, 8], strides = [1, 1, 1]} : vector<17x8x8xbf16> to vector<1x8x8xbf16>
    %86 = vector.extract_strided_slice %71 {offsets = [10, 0, 0], sizes = [1, 8, 8], strides = [1, 1, 1]} : vector<17x8x8xbf16> to vector<1x8x8xbf16>
    %87 = vector.extract_strided_slice %71 {offsets = [12, 0, 0], sizes = [1, 8, 8], strides = [1, 1, 1]} : vector<17x8x8xbf16> to vector<1x8x8xbf16>
    %88 = vector.extract_strided_slice %71 {offsets = [14, 0, 0], sizes = [1, 8, 8], strides = [1, 1, 1]} : vector<17x8x8xbf16> to vector<1x8x8xbf16>
    %89 = tpu.concatenate %81, %82, %83, %84, %85, %86, %87, %88 in 0 : vector<1x8x8xbf16>, vector<1x8x8xbf16>, vector<1x8x8xbf16>, vector<1x8x8xbf16>, vector<1x8x8xbf16>, vector<1x8x8xbf16>, vector<1x8x8xbf16>, vector<1x8x8xbf16> -> vector<8x8x8xbf16>
    %90 = vector.extract_strided_slice %80 {offsets = [0, 0, 0], sizes = [8, 8, 8], strides = [1, 1, 1]} : vector<8x9x8xbf16> to vector<8x8x8xbf16>
    %91 = vector.extract_strided_slice %80 {offsets = [0, 1, 0], sizes = [8, 8, 8], strides = [1, 1, 1]} : vector<8x9x8xbf16> to vector<8x8x8xbf16>
    %92 = vector.extract_strided_slice %70 {offsets = [1, 0, 0], sizes = [1, 9, 8], strides = [1, 1, 1]} : vector<17x9x8xbf16> to vector<1x9x8xbf16>
    %93 = vector.extract_strided_slice %70 {offsets = [3, 0, 0], sizes = [1, 9, 8], strides = [1, 1, 1]} : vector<17x9x8xbf16> to vector<1x9x8xbf16>
    %94 = vector.extract_strided_slice %70 {offsets = [5, 0, 0], sizes = [1, 9, 8], strides = [1, 1, 1]} : vector<17x9x8xbf16> to vector<1x9x8xbf16>
    %95 = vector.extract_strided_slice %70 {offsets = [7, 0, 0], sizes = [1, 9, 8], strides = [1, 1, 1]} : vector<17x9x8xbf16> to vector<1x9x8xbf16>
    %96 = vector.extract_strided_slice %70 {offsets = [9, 0, 0], sizes = [1, 9, 8], strides = [1, 1, 1]} : vector<17x9x8xbf16> to vector<1x9x8xbf16>
    %97 = vector.extract_strided_slice %70 {offsets = [11, 0, 0], sizes = [1, 9, 8], strides = [1, 1, 1]} : vector<17x9x8xbf16> to vector<1x9x8xbf16>
    %98 = vector.extract_strided_slice %70 {offsets = [13, 0, 0], sizes = [1, 9, 8], strides = [1, 1, 1]} : vector<17x9x8xbf16> to vector<1x9x8xbf16>
    %99 = vector.extract_strided_slice %70 {offsets = [15, 0, 0], sizes = [1, 9, 8], strides = [1, 1, 1]} : vector<17x9x8xbf16> to vector<1x9x8xbf16>
    %100 = tpu.concatenate %92, %93, %94, %95, %96, %97, %98, %99 in 0 : vector<1x9x8xbf16>, vector<1x9x8xbf16>, vector<1x9x8xbf16>, vector<1x9x8xbf16>, vector<1x9x8xbf16>, vector<1x9x8xbf16>, vector<1x9x8xbf16>, vector<1x9x8xbf16> -> vector<8x9x8xbf16>
    %101 = vector.extract_strided_slice %71 {offsets = [1, 0, 0], sizes = [1, 8, 8], strides = [1, 1, 1]} : vector<17x8x8xbf16> to vector<1x8x8xbf16>
    %102 = vector.extract_strided_slice %71 {offsets = [3, 0, 0], sizes = [1, 8, 8], strides = [1, 1, 1]} : vector<17x8x8xbf16> to vector<1x8x8xbf16>
    %103 = vector.extract_strided_slice %71 {offsets = [5, 0, 0], sizes = [1, 8, 8], strides = [1, 1, 1]} : vector<17x8x8xbf16> to vector<1x8x8xbf16>
    %104 = vector.extract_strided_slice %71 {offsets = [7, 0, 0], sizes = [1, 8, 8], strides = [1, 1, 1]} : vector<17x8x8xbf16> to vector<1x8x8xbf16>
    %105 = vector.extract_strided_slice %71 {offsets = [9, 0, 0], sizes = [1, 8, 8], strides = [1, 1, 1]} : vector<17x8x8xbf16> to vector<1x8x8xbf16>
    %106 = vector.extract_strided_slice %71 {offsets = [11, 0, 0], sizes = [1, 8, 8], strides = [1, 1, 1]} : vector<17x8x8xbf16> to vector<1x8x8xbf16>
    %107 = vector.extract_strided_slice %71 {offsets = [13, 0, 0], sizes = [1, 8, 8], strides = [1, 1, 1]} : vector<17x8x8xbf16> to vector<1x8x8xbf16>
    %108 = vector.extract_strided_slice %71 {offsets = [15, 0, 0], sizes = [1, 8, 8], strides = [1, 1, 1]} : vector<17x8x8xbf16> to vector<1x8x8xbf16>
    %109 = tpu.concatenate %101, %102, %103, %104, %105, %106, %107, %108 in 0 : vector<1x8x8xbf16>, vector<1x8x8xbf16>, vector<1x8x8xbf16>, vector<1x8x8xbf16>, vector<1x8x8xbf16>, vector<1x8x8xbf16>, vector<1x8x8xbf16>, vector<1x8x8xbf16> -> vector<8x8x8xbf16>
    %110 = vector.extract_strided_slice %100 {offsets = [0, 0, 0], sizes = [8, 8, 8], strides = [1, 1, 1]} : vector<8x9x8xbf16> to vector<8x8x8xbf16>
    %111 = vector.extract_strided_slice %100 {offsets = [0, 1, 0], sizes = [8, 8, 8], strides = [1, 1, 1]} : vector<8x9x8xbf16> to vector<8x8x8xbf16>
    %112 = vector.extract_strided_slice %70 {offsets = [2, 0, 0], sizes = [1, 9, 8], strides = [1, 1, 1]} : vector<17x9x8xbf16> to vector<1x9x8xbf16>
    %113 = vector.extract_strided_slice %70 {offsets = [4, 0, 0], sizes = [1, 9, 8], strides = [1, 1, 1]} : vector<17x9x8xbf16> to vector<1x9x8xbf16>
    %114 = vector.extract_strided_slice %70 {offsets = [6, 0, 0], sizes = [1, 9, 8], strides = [1, 1, 1]} : vector<17x9x8xbf16> to vector<1x9x8xbf16>
    %115 = vector.extract_strided_slice %70 {offsets = [8, 0, 0], sizes = [1, 9, 8], strides = [1, 1, 1]} : vector<17x9x8xbf16> to vector<1x9x8xbf16>
    %116 = vector.extract_strided_slice %70 {offsets = [10, 0, 0], sizes = [1, 9, 8], strides = [1, 1, 1]} : vector<17x9x8xbf16> to vector<1x9x8xbf16>
    %117 = vector.extract_strided_slice %70 {offsets = [12, 0, 0], sizes = [1, 9, 8], strides = [1, 1, 1]} : vector<17x9x8xbf16> to vector<1x9x8xbf16>
    %118 = vector.extract_strided_slice %70 {offsets = [14, 0, 0], sizes = [1, 9, 8], strides = [1, 1, 1]} : vector<17x9x8xbf16> to vector<1x9x8xbf16>
    %119 = vector.extract_strided_slice %70 {offsets = [16, 0, 0], sizes = [1, 9, 8], strides = [1, 1, 1]} : vector<17x9x8xbf16> to vector<1x9x8xbf16>
    %120 = tpu.concatenate %112, %113, %114, %115, %116, %117, %118, %119 in 0 : vector<1x9x8xbf16>, vector<1x9x8xbf16>, vector<1x9x8xbf16>, vector<1x9x8xbf16>, vector<1x9x8xbf16>, vector<1x9x8xbf16>, vector<1x9x8xbf16>, vector<1x9x8xbf16> -> vector<8x9x8xbf16>
    %121 = vector.extract_strided_slice %71 {offsets = [2, 0, 0], sizes = [1, 8, 8], strides = [1, 1, 1]} : vector<17x8x8xbf16> to vector<1x8x8xbf16>
    %122 = vector.extract_strided_slice %71 {offsets = [4, 0, 0], sizes = [1, 8, 8], strides = [1, 1, 1]} : vector<17x8x8xbf16> to vector<1x8x8xbf16>
    %123 = vector.extract_strided_slice %71 {offsets = [6, 0, 0], sizes = [1, 8, 8], strides = [1, 1, 1]} : vector<17x8x8xbf16> to vector<1x8x8xbf16>
    %124 = vector.extract_strided_slice %71 {offsets = [8, 0, 0], sizes = [1, 8, 8], strides = [1, 1, 1]} : vector<17x8x8xbf16> to vector<1x8x8xbf16>
    %125 = vector.extract_strided_slice %71 {offsets = [10, 0, 0], sizes = [1, 8, 8], strides = [1, 1, 1]} : vector<17x8x8xbf16> to vector<1x8x8xbf16>
    %126 = vector.extract_strided_slice %71 {offsets = [12, 0, 0], sizes = [1, 8, 8], strides = [1, 1, 1]} : vector<17x8x8xbf16> to vector<1x8x8xbf16>
    %127 = vector.extract_strided_slice %71 {offsets = [14, 0, 0], sizes = [1, 8, 8], strides = [1, 1, 1]} : vector<17x8x8xbf16> to vector<1x8x8xbf16>
    %128 = vector.extract_strided_slice %71 {offsets = [16, 0, 0], sizes = [1, 8, 8], strides = [1, 1, 1]} : vector<17x8x8xbf16> to vector<1x8x8xbf16>
    %129 = tpu.concatenate %121, %122, %123, %124, %125, %126, %127, %128 in 0 : vector<1x8x8xbf16>, vector<1x8x8xbf16>, vector<1x8x8xbf16>, vector<1x8x8xbf16>, vector<1x8x8xbf16>, vector<1x8x8xbf16>, vector<1x8x8xbf16>, vector<1x8x8xbf16> -> vector<8x8x8xbf16>
    %130 = vector.extract_strided_slice %120 {offsets = [0, 0, 0], sizes = [8, 8, 8], strides = [1, 1, 1]} : vector<8x9x8xbf16> to vector<8x8x8xbf16>
    %131 = vector.extract_strided_slice %120 {offsets = [0, 1, 0], sizes = [8, 8, 8], strides = [1, 1, 1]} : vector<8x9x8xbf16> to vector<8x8x8xbf16>
    %132 = tpu.concatenate %90, %89, %91, %110, %109, %111, %130, %129, %131 in 2 : vector<8x8x8xbf16>, vector<8x8x8xbf16>, vector<8x8x8xbf16>, vector<8x8x8xbf16>, vector<8x8x8xbf16>, vector<8x8x8xbf16>, vector<8x8x8xbf16>, vector<8x8x8xbf16>, vector<8x8x8xbf16> -> vector<8x8x72xbf16>
    %133 = vector.shape_cast %132 : vector<8x8x72xbf16> to vector<64x72xbf16>
    %cst_98 = arith.constant dense<0.000000e+00> : vector<64x8xf32>
    %134 = tpu.matmul %133, %27, %cst_98 {dimension_numbers = #tpu.dot_dimension_numbers<[1], [0], [0], [1], [0, 0, 1, 1], [], []>} : vector<64x72xbf16>, vector<72x8xbf16>, vector<64x8xf32> -> vector<64x8xf32>
    %135 = vector.broadcast %30 : vector<1x8xf32> to vector<64x8xf32>
    %136 = arith.addf %134, %135 : vector<64x8xf32>
    %cst_99 = arith.constant 0.000000e+00 : f32
    %137 = vector.broadcast %cst_99 : f32 to vector<64x8xf32>
    %138 = arith.cmpf oge, %136, %137 : vector<64x8xf32>
    %cst_100 = arith.constant 1.000000e-01 : f32
    %139 = vector.broadcast %cst_100 : f32 to vector<64x8xf32>
    %140 = arith.mulf %139, %136 : vector<64x8xf32>
    %141 = arith.select %138, %136, %140 : vector<64x8xi1>, vector<64x8xf32>
    %142 = arith.truncf %141 : vector<64x8xf32> to vector<64x8xbf16>
    %143 = vector.shape_cast %142 : vector<64x8xbf16> to vector<8x8x8xbf16>
    %c1_101 = arith.constant 1 : index
    %c1_102 = arith.constant 1 : index
    %c0_103 = arith.constant 0 : index
    %144 = vector.load %arg14[%c1_101, %c1_102, %c0_103] : memref<10x10x8xbf16, #tpu.memory_space<vmem>>, vector<8x8x8xbf16>
    tpu.vector_store %arg14[%c1_101, %c1_102, %c0_103], %143 {strides = array<i32>} : memref<10x10x8xbf16, #tpu.memory_space<vmem>>, vector<8x8x8xbf16>,
    %c0_104 = arith.constant 0 : index
    %c0_105 = arith.constant 0 : index
    %c0_106 = arith.constant 0 : index
    %145 = vector.load %arg14[%c0_104, %c0_105, %c0_106] : memref<10x10x8xbf16, #tpu.memory_space<vmem>>, vector<8x10x8xbf16>
    %146 = vector.extract_strided_slice %145 {offsets = [0, 0, 0], sizes = [8, 8, 8], strides = [1, 1, 1]} : vector<8x10x8xbf16> to vector<8x8x8xbf16>
    %147 = vector.extract_strided_slice %145 {offsets = [0, 1, 0], sizes = [8, 8, 8], strides = [1, 1, 1]} : vector<8x10x8xbf16> to vector<8x8x8xbf16>
    %148 = vector.extract_strided_slice %145 {offsets = [0, 2, 0], sizes = [8, 8, 8], strides = [1, 1, 1]} : vector<8x10x8xbf16> to vector<8x8x8xbf16>
    %c1_107 = arith.constant 1 : index
    %c0_108 = arith.constant 0 : index
    %c0_109 = arith.constant 0 : index
    %149 = vector.load %arg14[%c1_107, %c0_108, %c0_109] : memref<10x10x8xbf16, #tpu.memory_space<vmem>>, vector<8x10x8xbf16>
    %150 = vector.extract_strided_slice %149 {offsets = [0, 0, 0], sizes = [8, 8, 8], strides = [1, 1, 1]} : vector<8x10x8xbf16> to vector<8x8x8xbf16>
    %151 = vector.extract_strided_slice %149 {offsets = [0, 1, 0], sizes = [8, 8, 8], strides = [1, 1, 1]} : vector<8x10x8xbf16> to vector<8x8x8xbf16>
    %152 = vector.extract_strided_slice %149 {offsets = [0, 2, 0], sizes = [8, 8, 8], strides = [1, 1, 1]} : vector<8x10x8xbf16> to vector<8x8x8xbf16>
    %c2_110 = arith.constant 2 : index
    %c0_111 = arith.constant 0 : index
    %c0_112 = arith.constant 0 : index
    %153 = vector.load %arg14[%c2_110, %c0_111, %c0_112] : memref<10x10x8xbf16, #tpu.memory_space<vmem>>, vector<8x10x8xbf16>
    %154 = vector.extract_strided_slice %153 {offsets = [0, 0, 0], sizes = [8, 8, 8], strides = [1, 1, 1]} : vector<8x10x8xbf16> to vector<8x8x8xbf16>
    %155 = vector.extract_strided_slice %153 {offsets = [0, 1, 0], sizes = [8, 8, 8], strides = [1, 1, 1]} : vector<8x10x8xbf16> to vector<8x8x8xbf16>
    %156 = vector.extract_strided_slice %153 {offsets = [0, 2, 0], sizes = [8, 8, 8], strides = [1, 1, 1]} : vector<8x10x8xbf16> to vector<8x8x8xbf16>
    %157 = tpu.concatenate %146, %147, %148, %150, %151, %152, %154, %155, %156 in 2 : vector<8x8x8xbf16>, vector<8x8x8xbf16>, vector<8x8x8xbf16>, vector<8x8x8xbf16>, vector<8x8x8xbf16>, vector<8x8x8xbf16>, vector<8x8x8xbf16>, vector<8x8x8xbf16>, vector<8x8x8xbf16> -> vector<8x8x72xbf16>
    %158 = vector.shape_cast %157 : vector<8x8x72xbf16> to vector<64x72xbf16>
    %cst_113 = arith.constant dense<0.000000e+00> : vector<64x8xf32>
    %159 = tpu.matmul %158, %28, %cst_113 {dimension_numbers = #tpu.dot_dimension_numbers<[1], [0], [0], [1], [0, 0, 1, 1], [], []>} : vector<64x72xbf16>, vector<72x8xbf16>, vector<64x8xf32> -> vector<64x8xf32>
    %160 = vector.broadcast %31 : vector<1x8xf32> to vector<64x8xf32>
    %161 = arith.addf %159, %160 : vector<64x8xf32>
    %cst_114 = arith.constant 0.000000e+00 : f32
    %162 = vector.broadcast %cst_114 : f32 to vector<64x8xf32>
    %163 = arith.cmpf oge, %161, %162 : vector<64x8xf32>
    %cst_115 = arith.constant 1.000000e-01 : f32
    %164 = vector.broadcast %cst_115 : f32 to vector<64x8xf32>
    %165 = arith.mulf %164, %161 : vector<64x8xf32>
    %166 = arith.select %163, %161, %165 : vector<64x8xi1>, vector<64x8xf32>
    %167 = arith.truncf %166 : vector<64x8xf32> to vector<64x8xbf16>
    %168 = vector.shape_cast %167 : vector<64x8xbf16> to vector<8x8x8xbf16>
    %c0_116 = arith.constant 0 : index
    %c0_117 = arith.constant 0 : index
    %c0_118 = arith.constant 0 : index
    %c0_119 = arith.constant 0 : index
    %169 = vector.load %arg9[%c0_116, %c0_117, %c0_118, %c0_119] : memref<1x8x8x8xbf16, #tpu.memory_space<vmem>>, vector<1x8x8x8xbf16>
    %170 = vector.shape_cast %169 : vector<1x8x8x8xbf16> to vector<8x8x8xbf16>
    %171 = vector.shape_cast %168 : vector<8x8x8xbf16> to vector<1x8x8x8xbf16>
    tpu.vector_store %arg9[%c0_116, %c0_117, %c0_118, %c0_119], %171 {strides = array<i32>} : memref<1x8x8x8xbf16, #tpu.memory_space<vmem>>, vector<1x8x8x8xbf16>,
    return
  }
  func.func @transform_0(%arg0: i32) -> (i32, i32, i32, i32) {
    %c0_i32 = arith.constant 0 : i32
    %c0_i32_0 = arith.constant 0 : i32
    %c0_i32_1 = arith.constant 0 : i32
    %c0_i32_2 = arith.constant 0 : i32
    return %arg0, %c0_i32, %c0_i32_0, %c0_i32_1 : i32, i32, i32, i32
  }
  func.func @transform_1(%arg0: i32) -> (i32, i32, i32, i32) {
    %c0_i32 = arith.constant 0 : i32
    %c0_i32_0 = arith.constant 0 : i32
    %c0_i32_1 = arith.constant 0 : i32
    %c0_i32_2 = arith.constant 0 : i32
    return %arg0, %c0_i32, %c0_i32_0, %c0_i32_1 : i32, i32, i32, i32
  }
  func.func @transform_2(%arg0: i32) -> (i32, i32) {
    %c0_i32 = arith.constant 0 : i32
    %c0_i32_0 = arith.constant 0 : i32
    %c0_i32_1 = arith.constant 0 : i32
    return %c0_i32, %c0_i32_0 : i32, i32
  }
  func.func @transform_3(%arg0: i32) -> (i32, i32) {
    %c0_i32 = arith.constant 0 : i32
    %c0_i32_0 = arith.constant 0 : i32
    %c0_i32_1 = arith.constant 0 : i32
    return %c0_i32, %c0_i32_0 : i32, i32
  }
  func.func @transform_4(%arg0: i32) -> (i32, i32) {
    %c0_i32 = arith.constant 0 : i32
    %c0_i32_0 = arith.constant 0 : i32
    %c0_i32_1 = arith.constant 0 : i32
    return %c0_i32, %c0_i32_0 : i32, i32
  }
  func.func @transform_5(%arg0: i32) -> (i32, i32) {
    %c0_i32 = arith.constant 0 : i32
    %c0_i32_0 = arith.constant 0 : i32
    %c0_i32_1 = arith.constant 0 : i32
    return %c0_i32, %c0_i32_0 : i32, i32
  }
  func.func @transform_6(%arg0: i32) -> (i32, i32) {
    %c0_i32 = arith.constant 0 : i32
    %c0_i32_0 = arith.constant 0 : i32
    %c0_i32_1 = arith.constant 0 : i32
    return %c0_i32, %c0_i32_0 : i32, i32
  }
  func.func @transform_7(%arg0: i32) -> (i32, i32) {
    %c0_i32 = arith.constant 0 : i32
    %c0_i32_0 = arith.constant 0 : i32
    %c0_i32_1 = arith.constant 0 : i32
    return %c0_i32, %c0_i32_0 : i32, i32
  }
  func.func @transform_8(%arg0: i32) -> (i32, i32, i32, i32) {
    %c0_i32 = arith.constant 0 : i32
    %c0_i32_0 = arith.constant 0 : i32
    %c0_i32_1 = arith.constant 0 : i32
    %c0_i32_2 = arith.constant 0 : i32
    return %arg0, %c0_i32, %c0_i32_0, %c0_i32_1 : i32, i32, i32, i32
  }
}

</mosaic_0001>

<bundles_post_ra>
// kernel: tpu_custom_call.1
= control target key start
LH: loop header
LB: loop body
LE: loop exit
PB: predicated region body
PF: predicated region fallthrough
CT: control target
= control target key end

     0   :  { %13 = vsyncpa [#allocation8], 0  ;;  %s9900_s0 = inlined_call_operand.vmem [shape: bf16[2,16,8,4], index: 0, kind: input, shape index: {}]   ;;  %s9901_s1 = inlined_call_operand.vmem [shape: bf16[2,16,8,4], index: 1, kind: input, shape index: {}]   ;;  %s9902_s2 = inlined_call_operand.vmem [shape: bf16[36,8], index: 2, kind: input, shape index: {}]   ;;  %s9903_s3 = inlined_call_operand.vmem [shape: bf16[72,8], index: 3, kind: input, shape index: {}]   ;;  %s9904_s4 = inlined_call_operand.vmem [shape: bf16[72,8], index: 4, kind: input, shape index: {}]   ;;  %s9905_s5 = inlined_call_operand.vmem [shape: f32[1,8], index: 5, kind: input, shape index: {}]   ;;  %s9906_s6 = inlined_call_operand.vmem [shape: f32[1,8], index: 6, kind: input, shape index: {}]   ;;  %s9907_s7 = inlined_call_operand.vmem [shape: f32[1,8], index: 7, kind: input, shape index: {}]   ;;  %s9908_s8 = inlined_call_operand.hbm [shape: bf16[2,8,8,8], index: 8, kind: output, shape index: {}]  }
   0x1   :  { %15 = vsyncpa [#allocation8 + $0x1], 0  ;;  %s7080_s27 = smov 0   ;;  %s7082_s28 = smov 0  }
   0x2   :  { %s7084_s29 = smov 0   ;;  %s7086_s30 = smov 0  }
   0x3 LB: > { %s7101_s9 = sadd.s32 4294967295, %s7019_s30   ;;  %s6006_s10 = sadd.s32 4294967294, %s7019_s30   ;;  %s7019_s30 = sphi %s7086_s30, %s10109_s30   ;;  %s7015_s29 = sphi %s7084_s29, %s10108_s29   ;;  %s7011_s28 = sphi %s7082_s28, %s10107_s28   ;;  %s7007_s27 = sphi %s7080_s27, %s10106_s27  }
   0x4   : > { %s7105_s11 = sadd.s32 1, %s7019_s30   ;;  %s206_s12 = sadd.s32 1, %s7015_s29 }
   0x5   : > { %s203_s13 = ssub.s32 %s7019_s30, %s7105_s11  ;;  %p216_p0 = scmp.ne.s32.totalorder %s7015_s29, %s7011_s28 }
   0x6   : > { %p204_p1 = scmp.eq.s32.totalorder %s203_s13, 0  ;;  %p217_p2 = scmp.eq.s32.totalorder %s7101_s9, 1 }
   0x7   : > { %p222_p3 = scmp.ne.s32.totalorder %s7011_s28, %s7007_s27  ;;  %p223_p4 = scmp.eq.s32.totalorder %s6006_s10, 1 }
   0x8   : > { %s7116_s14 = scalar_select %p204_p1, %s7015_s29, %s206_s12  }
   0x9   : > { %p7118_p5 = por %p217_p2, %p216_p0  ;;  %p7122_p6 = por %p223_p4, %p222_p3 }
   0xa   : > { %p6009_p7 = scmp.ge.s32.totalorder %s7019_s30, 1  ;;  %p275_p8 = scmp.lt.s32.totalorder %s7019_s30, 3 }
   0xc   : > { %p276_p9 = pnand %p6009_p7, %p275_p8 }
   0xe   : > { %279 = sbr.rel (%p276_p9) target bundleno = 1735 (0x6c7), region = 52 }
  0x15   : > { %vm325_vm0 = vcmask 27648   ;;  %vm327_vm1 = vcmask 24576   ;;  %vm328_vm2 = vsmask.f32 256  ;;  %v9909_v1 = vmov 0   ;;  %p314_p10 = scmp.lt.s32.totalorder %s7101_s9, 1 }
  0x16   : > { %vm7129_vm3 = vmand %vm327_vm1, %vm328_vm2  ;;  %338 = vst.msk [vmem:[#allocation3] sm:$0xf] %vm325_vm0, %v9909_v1  ;;  %v339_v2 = vld [vmem:[#allocation3 + $0x4] sm:$0x1]  ;;  %v400_v3 = vld [vmem:[#allocation3 + $0x14] sm:$0x1] }
  0x17   : > { %326 = vst.msk [vmem:[#allocation2] sm:$0xf] %vm325_vm0, %v9909_v1  ;;  %334 = vst.msk [vmem:[#allocation2 + $0x88] sm:$0xf] %vm325_vm0, %v9909_v1  ;;  %v340_v4 = vsel %vm7129_vm3, 0, %v339_v2  ;;  %v401_v5 = vsel %vm7129_vm3, 0, %v400_v3 }
  0x18   : > { %343 = vst.msk [vmem:[#allocation3 + $0x88] sm:$0xf] %vm325_vm0, %v9909_v1  ;;  %v397_v6 = vld [vmem:[#allocation3 + $0xc] sm:$0x1]  ;;  %v403_v7 = vld [vmem:[#allocation3 + $0x1c] sm:$0x1] }
  0x19   : > { %341 = vst [vmem:[#allocation3 + $0x4] sm:$0x1] %v340_v4  ;;  %s315_s17 = scalar_select %p314_p10, %s7101_s9, 1  ;;  %402 = vst [vmem:[#allocation3 + $0x14] sm:$0x1] %v401_v5  ;;  %v398_v8 = vsel %vm7129_vm3, 0, %v397_v6 }
  0x1a   : > { %v404_v9 = vsel %vm7129_vm3, 0, %v403_v7  ;;  %v406_v10 = vld [vmem:[#allocation3 + $0x24] sm:$0x1]  ;;  %vm9967_vm4 = vcmask 60416   ;;  %399 = vst [vmem:[#allocation3 + $0xc] sm:$0x1] %v398_v8 }
  0x1b   : > { %405 = vst [vmem:[#allocation3 + $0x1c] sm:$0x1] %v404_v9  ;;  %v407_v11 = vsel %vm7129_vm3, 0, %v406_v10  ;;  %v330_v12 = vld [vmem:[#allocation2 + $0x4] sm:$0x1]  ;;  %s6398_s18 = sshll.u32 %s315_s17, 6 }
  0x1c   : > { %v351_v13 = vld [vmem:[#allocation2 + $0x10] sm:$0x1]  ;;  %446 = vst.msk [vmem:[#allocation4] sm:$0xf] %vm9967_vm4, %v9909_v1  ;;  %452 = vst.msk [vmem:[#allocation5] sm:$0xf] %vm9967_vm4, %v9909_v1  ;;  %s7168_s21 = scalar_lea.vmem %s9900_s0, %s6398_s18  ;;  %s7176_s24 = scalar_lea.vmem %s9901_s1, %s6398_s18 }
  0x1d   : > { %502 = vst.msk [vmem:[#allocation6] sm:$0xf] %vm9967_vm4, %v9909_v1  ;;  %506 = vst.msk [vmem:[#allocation6 + $0x48] sm:$0xf] %vm9967_vm4, %v9909_v1  ;;  %v331_v14 = vsel %vm7129_vm3, 0, %v330_v12  ;;  %v352_v15 = vsel %vm7129_vm3, 0, %v351_v13 }
  0x1e   : > { %408 = vst [vmem:[#allocation3 + $0x24] sm:$0x1] %v407_v11  ;;  %332 = vst [vmem:[#allocation2 + $0x4] sm:$0x1] %v331_v14  ;;  %v348_v16 = vld [vmem:[#allocation2 + $0x8] sm:$0x1] }
  0x1f   : > { %353 = vst [vmem:[#allocation2 + $0x10] sm:$0x1] %v352_v15  ;;  %v834_v17 = vld [vmem:[%s7168_s21 + $0x4] sm:$0xf]  ;;  %v833_v18 = vld [vmem:[%s7168_s21] sm:$0xf] }
  0x20   : > { %v835_v19 = vld [vmem:[%s7168_s21 + $0x8] sm:$0xf]  ;;  %v923_v20 = vld [vmem:[#allocation3] sm:$0xf]  ;;  %850 = vst.msk [vmem:[#allocation3 + $0x10] sm:$0xf] %vm325_vm0, %v834_v17 }
  0x21   : > { %849 = vst.msk [vmem:[#allocation3 + $0x8] sm:$0xf] %vm325_vm0, %v833_v18  ;;  %851 = vst.msk [vmem:[#allocation3 + $0x18] sm:$0xf] %vm325_vm0, %v835_v19  ;;  %v836_v21 = vld [vmem:[%s7168_s21 + $0xc] sm:$0xf]  ;;  %v6015_v22 = vcombine.low %v923_v20, %v923_v20 }
  0x22   : > { %852 = vst.msk [vmem:[#allocation3 + $0x20] sm:$0xf] %vm325_vm0, %v836_v21  ;;  %v349_v23 = vsel %vm7129_vm3, 0, %v348_v16  ;;  %s7022_s25 = smov 4   ;;  %v560_v24 = vld [vmem:[%s7176_s24 + $0x4] sm:$0xf] }
  0x23   : > { %350 = vst [vmem:[#allocation2 + $0x8] sm:$0x1] %v349_v23  ;;  %1133 = vrot.lane.b32.xlu0 %v6015_v22, %s7022_s25  ;;  %v891_v25 = vld [vmem:[#allocation2] sm:$0xf]  ;;  %v584_v26 = vshrl.u32 %v560_v24, 16  ;;  %v587_v34 = vshll.u32 %v560_v24, 16 }
  0x24   : > { %vm533_vm5 = vsmask.f32 7938  ;;  %v559_v35 = vld [vmem:[%s7176_s24] sm:$0xf]  ;;  %v746_v42 = vld [vmem:[#allocation2 + $0x14] sm:$0x1] }
  0x25   : > { %v892_v29 = vld [vmem:[#allocation2 + $0x4] sm:$0x1]  ;;  %v586_v40 = vrot.slane %v584_v26, 7  ;;  %v576_v43 = vshrl.u32 %v559_v35, 16  ;;  %vm7196_vm6 = vmand %vm325_vm0, %vm533_vm5  ;;  %v579_v47 = vshll.u32 %v559_v35, 16  ;;  %s7023_s26 = smov 16  }
  0x26   : > { %v6031_v39 = vcombine.low %v891_v25, %v892_v29  ;;  %v743_v46 = vld [vmem:[#allocation2 + $0x10] sm:$0xf]  ;;  %v357_v48 = vld [vmem:[#allocation2 + $0x20] sm:$0x1]  ;;  %v562_v54 = vld [vmem:[%s7176_s24 + $0xc] sm:$0xf] }
  0x27   : > { %v927_v27 = vld [vmem:[#allocation3 + $0x10] sm:$0xf]  ;;  %v589_v53 = vor.u32 %v587_v34, %v586_v40  ;;  %v590_v55 = vrot.slane %v586_v40, 4  ;;  %v740_v56 = vld [vmem:[#allocation2 + $0xc] sm:$0x1]  ;;  %v578_v61 = vrot.slane %v576_v43, 7 }
  0x28   : > { %v925_v28 = vld [vmem:[#allocation3 + $0x8] sm:$0xf]  ;;  %v6017_v30 = vcombine.low %v927_v27, %v927_v27  ;;  %v929_v32 = vld [vmem:[#allocation3 + $0x18] sm:$0xf]  ;;  %v989_v38 = vld [vmem:[#allocation3 + $0x10] sm:$0xf] }
  0x29   : > { %v6016_v31 = vcombine.low %v925_v28, %v925_v28  ;;  %v987_v33 = vld [vmem:[#allocation3 + $0x8] sm:$0xf]  ;;  %v6018_v36 = vcombine.low %v929_v32, %v929_v32  ;;  %v991_v41 = vld [vmem:[#allocation3 + $0x18] sm:$0xf]  ;;  %v7192_v44 = vcombine.low %v989_v38, %v989_v38  ;;  %v993_v50 = vld [vmem:[#allocation3 + $0x20] sm:$0xf]  ;;  %v744_v60 = vsel %vm7196_vm6, %v589_v53, %v743_v46 }
  0x2a   : > { %1137 = vrot.lane.b32.xlu1 %v6017_v30, %s7022_s25  ;;  %v7190_v37 = vcombine.low %v987_v33, %v987_v33  ;;  %v7203_v49 = vcombine.low %v991_v41, %v991_v41  ;;  %v1246_v51 = vshrl.u32 %v6031_v39, 16  ;;  %v1248_v52 = vshll.u32 %v6031_v39, 16  ;;  %v354_v57 = vld [vmem:[#allocation2 + $0x18] sm:$0x1]  ;;  %v561_v58 = vld [vmem:[%s7176_s24 + $0x8] sm:$0xf] }
  0x2b   : > { %1135 = vrot.lane.b32.xlu0 %v6016_v31, %s7022_s25  ;;  %v358_v62 = vsel %vm7129_vm3, 0, %v357_v48  ;;  %v360_v63 = vld [vmem:[#allocation2 + $0x28] sm:$0x1]  ;;  %v7211_v2 = vcombine.low %v993_v50, %v993_v50  ;;  %745 = vst [vmem:[#allocation2 + $0x10] sm:$0xf] %v744_v60  ;;  %v747_v3 = vsel %vm7129_vm3, %v590_v55, %v746_v42  ;;  %v600_v5 = vshrl.u32 %v562_v54, 16 }
  0x2c   : > { %v1250_v59 = vrot.slane %v1248_v52, 1  ;;  %v737_v4 = vld [vmem:[#allocation2 + $0x8] sm:$0xf]  ;;  %359 = vst [vmem:[#allocation2 + $0x20] sm:$0x1] %v358_v62  ;;  %v603_v6 = vshll.u32 %v562_v54, 16  ;;  %v581_v9 = vor.u32 %v579_v47, %v578_v61 }
  0x2d   : > { %v563_v7 = vld [vmem:[%s7176_s24 + $0x10] sm:$0xf]  ;;  %748 = vst [vmem:[#allocation2 + $0x14] sm:$0x1] %v747_v3  ;;  %v582_v10 = vrot.slane %v578_v61, 4  ;;  %v355_v11 = vsel %vm7129_vm3, 0, %v354_v57 }
  0x2e   : > { %1139 = vrot.lane.b32.xlu1 %v6018_v36, %s7022_s25  ;;  %v7220_v8 = vor.u32 %v1250_v59, %v1246_v51  ;;  %v602_v12 = vrot.slane %v600_v5, 7  ;;  %356 = vst [vmem:[#allocation2 + $0x18] sm:$0x1] %v355_v11  ;;  %v592_v13 = vshrl.u32 %v561_v58, 16  ;;  %v595_v14 = vshll.u32 %v561_v58, 16  ;;  %s7024_s10 = smov 8  }
  0x2f   : > { %1517 = vrot.lane.b32.xlu0 %v7190_v37, %s7023_s26  ;;  %v361_v15 = vsel %vm7129_vm3, 0, %v360_v63  ;;  %v738_v16 = vsel %vm7196_vm6, %v581_v9, %v737_v4  ;;  %v741_v17 = vsel %vm7129_vm3, %v582_v10, %v740_v56  ;;  %v758_v18 = vld [vmem:[#allocation2 + $0x24] sm:$0x1]  ;;  %v608_v19 = vshrl.u32 %v563_v7, 16  ;;  %v837_v24 = vld [vmem:[%s7168_s21 + $0x10] sm:$0xf] }
  0x30   : > { %362 = vst [vmem:[#allocation2 + $0x28] sm:$0x1] %v361_v15  ;;  %v611_v20 = vshll.u32 %v563_v7, 16  ;;  %739 = vst [vmem:[#allocation2 + $0x8] sm:$0xf] %v738_v16  ;;  %v605_v21 = vor.u32 %v603_v6, %v602_v12  ;;  %v606_v22 = vrot.slane %v602_v12, 4 }
  0x31   : > { %742 = vst [vmem:[#allocation2 + $0xc] sm:$0x1] %v741_v17  ;;  %v594_v23 = vrot.slane %v592_v13, 7  ;;  %v752_v25 = vld [vmem:[#allocation2 + $0x1c] sm:$0x1]  ;;  %v610_v26 = vrot.slane %v608_v19, 7 }
  0x32   : > { %1519 = vrot.lane.b32.xlu1 %v7192_v44, %s7023_s26  ;;  %853 = vst.msk [vmem:[#allocation3 + $0x28] sm:$0xf] %vm325_vm0, %v837_v24  ;;  %v759_v27 = vsel %vm7129_vm3, %v606_v22, %v758_v18  ;;  %v838_v30 = vld [vmem:[%s7168_s21 + $0x14] sm:$0xf]  ;;  %v957_v31 = vld [vmem:[#allocation2 + $0x10] sm:$0xf] }
  0x33   : > { %1521 = vrot.lane.b32.xlu0 %v7203_v49, %s7023_s26  ;;  %v597_v28 = vor.u32 %v595_v14, %v594_v23  ;;  %v598_v29 = vrot.slane %v594_v23, 4  ;;  %v755_v32 = vld [vmem:[#allocation2 + $0x20] sm:$0xf]  ;;  %760 = vst [vmem:[#allocation2 + $0x24] sm:$0x1] %v759_v27  ;;  %v613_v34 = vor.u32 %v611_v20, %v610_v26  ;;  %v6048_v35 = vcombine.low %v957_v31, %v957_v31  ;;  %s7025_s12 = smov 12  }
  0x34   : > { %v895_v33 = vld [vmem:[#allocation2 + $0x10] sm:$0xf]  ;;  %854 = vst.msk [vmem:[#allocation3 + $0x30] sm:$0xf] %vm325_vm0, %v838_v30  ;;  %v756_v36 = vsel %vm7196_vm6, %v605_v21, %v755_v32  ;;  %v896_v39 = vld [vmem:[#allocation2 + $0x14] sm:$0x1] }
  0x35   : > { %v753_v38 = vsel %vm7129_vm3, %v598_v29, %v752_v25  ;;  %v764_v40 = vld [vmem:[#allocation2 + $0x2c] sm:$0x1]  ;;  %757 = vst [vmem:[#allocation2 + $0x20] sm:$0xf] %v756_v36  ;;  %v749_v41 = vld [vmem:[#allocation2 + $0x18] sm:$0xf]  ;;  %v6033_v42 = vcombine.low %v895_v33, %v896_v39 }
  0x36   : > { %1523 = vrot.lane.b32.xlu1 %v7211_v2, %s7023_s26  ;;  %754 = vst [vmem:[#allocation2 + $0x1c] sm:$0x1] %v753_v38  ;;  %v614_v43 = vrot.slane %v610_v26, 4  ;;  %v958_v46 = vld [vmem:[#allocation2 + $0x14] sm:$0x1]  ;;  %v750_v47 = vsel %vm7196_vm6, %v597_v28, %v749_v41  ;;  %s7026_s13 = smov 20  }
  0x37   : > { %1357 = vrot.lane.b32.xlu0 %v7220_v8, %s7024_s10  ;;  %v761_v48 = vld [vmem:[#allocation2 + $0x28] sm:$0xf]  ;;  %751 = vst [vmem:[#allocation2 + $0x18] sm:$0xf] %v750_v47  ;;  %v1262_v57 = vshll.u32 %v6033_v42, 16  ;;  %v6080_v60 = vcombine.low %v957_v31, %v958_v46  ;;  %v1260_v3 = vshrl.u32 %v6033_v42, 16 }
  0x38   : > { %v955_v50 = vld [vmem:[#allocation2 + $0x8] sm:$0xf]  ;;  %v956_v51 = vld [vmem:[#allocation2 + $0xc] sm:$0x1]  ;;  %v762_v53 = vsel %vm7196_vm6, %v613_v34, %v761_v48  ;;  %v765_v54 = vsel %vm7129_vm3, %v614_v43, %v764_v40  ;;  %v839_v22 = vld [vmem:[%s7168_s21 + $0x18] sm:$0xf] }
  0x39   : > { %v893_v52 = vld [vmem:[#allocation2 + $0x8] sm:$0xf]  ;;  %v6047_v55 = vcombine.low %v955_v50, %v955_v50  ;;  %v894_v56 = vld [vmem:[#allocation2 + $0xc] sm:$0x1]  ;;  %763 = vst [vmem:[#allocation2 + $0x28] sm:$0xf] %v762_v53  ;;  %v6079_v58 = vcombine.low %v955_v50, %v956_v51 }
  0x3a   : > { %1439 = vrot.lane.b32.xlu1 %v6048_v35, %s7025_s12  ;;  %766 = vst [vmem:[#allocation2 + $0x2c] sm:$0x1] %v765_v54  ;;  %v6032_v59 = vcombine.low %v893_v52, %v894_v56  ;;  %v962_v61 = vld [vmem:[#allocation2 + $0x24] sm:$0x1]  ;;  %v1264_v4 = vrot.slane %v1262_v57, 1  ;;  %v1607_v15 = vshll.u32 %v6080_v60, 16 }
  0x3b   : > { %1437 = vrot.lane.b32.xlu0 %v6047_v55, %s7025_s12  ;;  %v1600_v11 = vshll.u32 %v6079_v58, 16  ;;  %v1598_v21 = vshrl.u32 %v6079_v58, 16  ;;  %v409_v27 = vld [vmem:[#allocation3 + $0x2c] sm:$0x1]  ;;  %855 = vst.msk [vmem:[#allocation3 + $0x38] sm:$0xf] %vm325_vm0, %v839_v22 }
  0x3c   : > { %v1253_v62 = vshrl.u32 %v6032_v59, 16  ;;  %v1255_v63 = vshll.u32 %v6032_v59, 16  ;;  %v961_v5 = vld [vmem:[#allocation2 + $0x20] sm:$0xf]  ;;  %v7255_v20 = vor.u32 %v1264_v4, %v1260_v3  ;;  %v1605_v29 = vshrl.u32 %v6080_v60, 16  ;;  %s7027_s17 = smov 24  }
  0x3d   : > { %v960_v6 = vld [vmem:[#allocation2 + $0x1c] sm:$0x1]  ;;  %v6050_v9 = vcombine.low %v961_v5, %v961_v5  ;;  %v6082_v12 = vcombine.low %v961_v5, %v962_v61  ;;  %v1602_v25 = vrot.slane %v1600_v11, 1  ;;  %v1609_v30 = vrot.slane %v1607_v15, 1  ;;  %v412_v33 = vld [vmem:[#allocation3 + $0x34] sm:$0x1] }
  0x3e   : > { %v898_v7 = vld [vmem:[#allocation2 + $0x1c] sm:$0x1]  ;;  %v1257_v10 = vrot.slane %v1255_v63, 1  ;;  %v959_v13 = vld [vmem:[#allocation2 + $0x18] sm:$0xf]  ;;  %v410_v32 = vsel %vm7129_vm3, 0, %v409_v27 }
  0x3f   : > { %v897_v14 = vld [vmem:[#allocation2 + $0x18] sm:$0xf]  ;;  %1443 = vrot.lane.b32.xlu1 %v6050_v9, %s7025_s12  ;;  %v6049_v16 = vcombine.low %v959_v13, %v959_v13  ;;  %v6081_v17 = vcombine.low %v959_v13, %v960_v6  ;;  %v1621_v31 = vshll.u32 %v6082_v12, 16  ;;  %v7268_v35 = vor.u32 %v1602_v25, %v1598_v21  ;;  %411 = vst [vmem:[#allocation3 + $0x2c] sm:$0x1] %v410_v32  ;;  %s7028_s20 = smov 28  }
  0x40   : > { %v7253_v18 = vor.u32 %v1257_v10, %v1253_v62  ;;  %v6034_v19 = vcombine.low %v897_v14, %v898_v7  ;;  %v415_v39 = vld [vmem:[#allocation3 + $0x3c] sm:$0x1]  ;;  %v7272_v40 = vor.u32 %v1609_v30, %v1605_v29  ;;  %v1619_v41 = vshrl.u32 %v6082_v12, 16  ;;  %v363_v46 = vld [vmem:[#allocation2 + $0x30] sm:$0x1]  ;;  %s7029_s18 = smov 32  }
  0x41   : > { %1441 = vrot.lane.b32.xlu0 %v6049_v16, %s7025_s12  ;;  %v1614_v26 = vshll.u32 %v6081_v17, 16  ;;  %v1612_v36 = vshrl.u32 %v6081_v17, 16  ;;  %v1623_v42 = vrot.slane %v1621_v31, 1  ;;  %v413_v43 = vsel %vm7129_vm3, 0, %v412_v33  ;;  %v564_v48 = vld [vmem:[%s7176_s24 + $0x14] sm:$0xf] }
  0x42   : > { %v1267_v23 = vshrl.u32 %v6034_v19, 16  ;;  %v1269_v24 = vshll.u32 %v6034_v19, 16  ;;  %414 = vst [vmem:[#allocation3 + $0x34] sm:$0x1] %v413_v43  ;;  %v416_v47 = vsel %vm7129_vm3, 0, %v415_v39  ;;  %v364_v52 = vsel %vm7129_vm3, 0, %v363_v46 }
  0x43   : > { %1359 = vrot.lane.b32.xlu1 %v7253_v18, %s7024_s10  ;;  %v1616_v38 = vrot.slane %v1614_v26, 1  ;;  %417 = vst [vmem:[#allocation3 + $0x3c] sm:$0x1] %v416_v47  ;;  %v1020_v51 = vld [vmem:[#allocation2 + $0x10] sm:$0xf]  ;;  %v7287_v53 = vor.u32 %v1623_v42, %v1619_v41  ;;  %v616_v54 = vshrl.u32 %v564_v48, 16 }
  0x44   : > { %v1271_v28 = vrot.slane %v1269_v24, 1  ;;  %365 = vst [vmem:[#allocation2 + $0x30] sm:$0x1] %v364_v52  ;;  %v366_v55 = vld [vmem:[#allocation2 + $0x38] sm:$0x1]  ;;  %v6095_v59 = vcombine.low %v1020_v51, %v1020_v51  ;;  %v619_v63 = vshll.u32 %v564_v48, 16 }
  0x45   : > { %1361 = vrot.lane.b32.xlu0 %v7255_v20, %s7024_s10  ;;  %v7281_v50 = vor.u32 %v1616_v38, %v1612_v36  ;;  %v565_v56 = vld [vmem:[%s7176_s24 + $0x18] sm:$0xf]  ;;  %v1021_v57 = vld [vmem:[#allocation2 + $0x14] sm:$0x1]  ;;  %v1023_v60 = vld [vmem:[#allocation2 + $0x1c] sm:$0x1] }
  0x46   : > { %v7266_v34 = vor.u32 %v1271_v28, %v1267_v23  ;;  %v1022_v58 = vld [vmem:[#allocation2 + $0x18] sm:$0xf]  ;;  %v7292_v61 = vld [vmem:[#allocation2 + $0x20] sm:$0xf]  ;;  %v618_v62 = vrot.slane %v616_v54, 7  ;;  %v367_v4 = vsel %vm7129_vm3, 0, %v366_v55  ;;  %v7301_v14 = vcombine.low %v1020_v51, %v1021_v57 }
  0x47   : > { %v770_v3 = vld [vmem:[#allocation2 + $0x34] sm:$0x1]  ;;  %v624_v5 = vshrl.u32 %v565_v56, 16  ;;  %v6096_v6 = vcombine.low %v1022_v58, %v1022_v58  ;;  %368 = vst [vmem:[#allocation2 + $0x38] sm:$0x1] %v367_v4  ;;  %v6097_v15 = vcombine.low %v7292_v61, %v7292_v61  ;;  %v627_v19 = vshll.u32 %v565_v56, 16 }
  0x48   : > { %1363 = vrot.lane.b32.xlu1 %v7266_v34, %s7024_s10  ;;  %v622_v7 = vrot.slane %v618_v62, 4  ;;  %v369_v9 = vld [vmem:[#allocation2 + $0x40] sm:$0x1]  ;;  %v566_v10 = vld [vmem:[%s7176_s24 + $0x1c] sm:$0xf]  ;;  %v621_v12 = vor.u32 %v619_v63, %v618_v62  ;;  %v7308_v22 = vcombine.low %v1022_v58, %v1023_v60  ;;  %v1952_v41 = vshll.u32 %v7301_v14, 16 }
  0x49   : > { %1709 = vrot.lane.b32.xlu0 %v7268_v35, %s7026_s13  ;;  %v7299_v11 = vld [vmem:[#allocation2 + $0x28] sm:$0xf]  ;;  %v626_v13 = vrot.slane %v624_v5, 7  ;;  %v1053_v16 = vld [vmem:[#allocation3 + $0x10] sm:$0xf]  ;;  %v370_v25 = vsel %vm7129_vm3, 0, %v369_v9 }
  0x4a   : > { %v771_v17 = vsel %vm7129_vm3, %v622_v7, %v770_v3  ;;  %v776_v21 = vld [vmem:[#allocation2 + $0x3c] sm:$0x1]  ;;  %v632_v26 = vshrl.u32 %v566_v10, 16  ;;  %v6098_v27 = vcombine.low %v7299_v11, %v7299_v11  ;;  %371 = vst [vmem:[#allocation2 + $0x40] sm:$0x1] %v370_v25  ;;  %v635_v30 = vshll.u32 %v566_v10, 16 }
  0x4b   : > { %v767_v23 = vld [vmem:[#allocation2 + $0x30] sm:$0xf]  ;;  %772 = vst [vmem:[#allocation2 + $0x34] sm:$0x1] %v771_v17  ;;  %v630_v24 = vrot.slane %v626_v13, 4  ;;  %v629_v29 = vor.u32 %v627_v19, %v626_v13  ;;  %v7322_v39 = vcombine.low %v1053_v16, %v1053_v16  ;;  %v6737_v51 = vld [vmem:[%s9902_s2] sm:$0xff]  }
  0x4c   : > { %1711 = vrot.lane.b32.xlu1 %v7272_v40, %s7026_s13  ;;  %v768_v28 = vsel %vm7196_vm6, %v621_v12, %v767_v23  ;;  %v840_v31 = vld [vmem:[%s7168_s21 + $0x1c] sm:$0xf]  ;;  %v1055_v32 = vld [vmem:[#allocation3 + $0x18] sm:$0xf]  ;;  %v1057_v33 = vld [vmem:[#allocation3 + $0x20] sm:$0xf]  ;;  %6486 = vmatprep.subr.bf16.mxu0 %v6737_v51 }
  0x4d   : > { %1713 = vrot.lane.b32.xlu0 %v7281_v50, %s7026_s13  ;;  %769 = vst [vmem:[#allocation2 + $0x30] sm:$0xf] %v768_v28  ;;  %v777_v36 = vsel %vm7129_vm3, %v630_v24, %v776_v21  ;;  %v634_v38 = vrot.slane %v632_v26, 7  ;;  %856 = vst.msk [vmem:[#allocation3 + $0x40] sm:$0xf] %vm325_vm0, %v840_v31  ;;  %v7329_v52 = vcombine.low %v1055_v32, %v1055_v32  ;;  %v1959_v55 = vshll.u32 %v7308_v22, 16 }
  0x4e   : > { %778 = vst [vmem:[#allocation2 + $0x3c] sm:$0x1] %v777_v36  ;;  %v782_v42 = vld [vmem:[#allocation2 + $0x44] sm:$0x1]  ;;  %v418_v43 = vld [vmem:[#allocation3 + $0x44] sm:$0x1]  ;;  %v7341_v3 = vcombine.low %v1057_v33, %v1057_v33  ;;  %6487 = vmatpush3.bf16.msra.mxu0 %v6737_v51 }
  0x4f   : > { %v1025_v46 = vld [vmem:[#allocation2 + $0x24] sm:$0x1]  ;;  %v773_v47 = vld [vmem:[#allocation2 + $0x38] sm:$0xf]  ;;  %v638_v48 = vrot.slane %v634_v38, 4  ;;  %v637_v57 = vor.u32 %v635_v30, %v634_v38  ;;  %v419_v62 = vsel %vm7129_vm3, 0, %v418_v43 }
  0x50   : > { %1715 = vrot.lane.b32.xlu1 %v7287_v53, %s7026_s13  ;;  %v1059_v54 = vld [vmem:[#allocation3 + $0x28] sm:$0xf]  ;;  %v774_v56 = vsel %vm7196_vm6, %v629_v29, %v773_v47  ;;  %v372_v58 = vld [vmem:[#allocation2 + $0x48] sm:$0x1]  ;;  %v6129_v63 = vcombine.low %v7292_v61, %v1025_v46  ;;  %v1950_v4 = vshrl.u32 %v7301_v14, 16  ;;  %v1954_v5 = vrot.slane %v1952_v41, 1 }
  0x51   : > { %1789 = vrot.lane.b32.xlu0 %v6095_v59, %s7027_s17  ;;  %v1027_v59 = vld [vmem:[#allocation2 + $0x2c] sm:$0x1]  ;;  %775 = vst [vmem:[#allocation2 + $0x38] sm:$0xf] %v774_v56  ;;  %v783_v60 = vsel %vm7129_vm3, %v638_v48, %v782_v42  ;;  %420 = vst [vmem:[#allocation3 + $0x44] sm:$0x1] %v419_v62 }
  0x52   : > { %784 = vst [vmem:[#allocation2 + $0x44] sm:$0x1] %v783_v60  ;;  %v779_v7 = vld [vmem:[#allocation2 + $0x40] sm:$0xf]  ;;  %v373_v9 = vsel %vm7129_vm3, 0, %v372_v58  ;;  %v6130_v61 = vcombine.low %v7299_v11, %v1027_v59  ;;  %v1957_v10 = vshrl.u32 %v7308_v22, 16 }
  0x53   : > { %v1961_v12 = vrot.slane %v1959_v55, 1  ;;  %v780_v13 = vsel %vm7196_vm6, %v637_v57, %v779_v7  ;;  %374 = vst [vmem:[#allocation2 + $0x48] sm:$0x1] %v373_v9  ;;  %v567_v14 = vld [vmem:[%s7176_s24 + $0x20] sm:$0xf]  ;;  %v1966_v17 = vshll.u32 %v6129_v63, 16 }
  0x54   : > { %1791 = vrot.lane.b32.xlu1 %v6096_v6, %s7027_s17  ;;  %v7344_v6 = vcombine.low %v1059_v54, %v1059_v54  ;;  %781 = vst [vmem:[#allocation2 + $0x40] sm:$0xf] %v780_v13  ;;  %v931_v16 = vld [vmem:[#allocation3 + $0x20] sm:$0xf]  ;;  %v899_v11 = vld [vmem:[#allocation2 + $0x20] sm:$0xf] }
  0x55   : > { %1793 = vrot.lane.b32.xlu0 %v6097_v15, %s7027_s17  ;;  %v7357_v15 = vor.u32 %v1954_v5, %v1950_v4  ;;  %v900_v19 = vld [vmem:[#allocation2 + $0x24] sm:$0x1]  ;;  %v640_v21 = vshrl.u32 %v567_v14, 16  ;;  %v7361_v22 = vor.u32 %v1961_v12, %v1957_v10  ;;  %v933_v23 = vld [vmem:[#allocation3 + $0x28] sm:$0xf]  ;;  %v1973_v24 = vshll.u32 %v6130_v61, 16 }
  0x56   : > { %v901_v25 = vld [vmem:[#allocation2 + $0x28] sm:$0xf]  ;;  %v902_v26 = vld [vmem:[#allocation2 + $0x2c] sm:$0x1]  ;;  %v6019_v28 = vcombine.low %v931_v16, %v931_v16  ;;  %v1964_v29 = vshrl.u32 %v6129_v63, 16  ;;  %v1968_v30 = vrot.slane %v1966_v17, 1  ;;  %v6035_v31 = vcombine.low %v899_v11, %v900_v19 }
  0x57   : > { %v903_v32 = vld [vmem:[#allocation2 + $0x30] sm:$0xf]  ;;  %v904_v33 = vld [vmem:[#allocation2 + $0x34] sm:$0x1]  ;;  %v642_v36 = vrot.slane %v640_v21, 7  ;;  %v6020_v38 = vcombine.low %v933_v23, %v933_v23  ;;  %v1971_v41 = vshrl.u32 %v6130_v61, 16  ;;  %v6036_v43 = vcombine.low %v901_v25, %v902_v26 }
  0x58   : > { %1795 = vrot.lane.b32.xlu1 %v6098_v27, %s7027_s17  ;;  %v6742_v27 = vld [vmem:[%s9902_s2 + $0x8] sm:$0xff]   ;;  %v1975_v42 = vrot.slane %v1973_v24, 1  ;;  %v906_v46 = vld [vmem:[#allocation2 + $0x3c] sm:$0x1]  ;;  %v905_v47 = vld [vmem:[#allocation2 + $0x38] sm:$0xf]  ;;  %v7372_v54 = vor.u32 %v1968_v30, %v1964_v29  ;;  %v6037_v57 = vcombine.low %v903_v32, %v904_v33 }
  0x59   : > { %1869 = vrot.lane.b32.xlu0 %v7322_v39, %s7028_s20  ;;  %6488 = vmatprep.subr.bf16.mxu0 %v6742_v27  ;;  %v643_v48 = vshll.u32 %v567_v14, 16  ;;  %v841_v51 = vld [vmem:[%s7168_s21 + $0x20] sm:$0xf]  ;;  %v1276_v56 = vshll.u32 %v6035_v31, 16  ;;  %v788_v60 = vld [vmem:[#allocation2 + $0x4c] sm:$0x1]  ;;  %v6038_v7 = vcombine.low %v905_v47, %v906_v46 }
  0x5a   : > { %6489 = vmatpush3.bf16.msra.mxu0 %v6742_v27  ;;  %v935_v55 = vld [vmem:[#allocation3 + $0x30] sm:$0xf]  ;;  %v785_v58 = vld [vmem:[#allocation2 + $0x48] sm:$0xf]  ;;  %857 = vst.msk [vmem:[#allocation3 + $0x48] sm:$0xf] %vm325_vm0, %v841_v51  ;;  %v7377_v4 = vor.u32 %v1975_v42, %v1971_v41 }
  0x5b   : > { %v645_v59 = vor.u32 %v643_v48, %v642_v36  ;;  %v421_v62 = vld [vmem:[#allocation3 + $0x4c] sm:$0x1]  ;;  %v842_v63 = vld [vmem:[%s7168_s21 + $0x24] sm:$0xf]  ;;  %v1283_v5 = vshll.u32 %v6036_v43, 16  ;;  %v646_v9 = vrot.slane %v642_v36, 4  ;;  %v6021_v61 = vcombine.low %v935_v55, %v935_v55 }
  0x5c   : > { %1871 = vrot.lane.b32.xlu1 %v7329_v52, %s7028_s20  ;;  %858 = vst.msk [vmem:[#allocation3 + $0x50] sm:$0xf] %vm325_vm0, %v842_v63  ;;  %v937_v10 = vld [vmem:[#allocation3 + $0x38] sm:$0xf]  ;;  %v1274_v12 = vshrl.u32 %v6035_v31, 16  ;;  %v1278_v16 = vrot.slane %v1276_v56, 1 }
  0x5d   : > { %1873 = vrot.lane.b32.xlu0 %v7341_v3, %s7028_s20  ;;  %v786_v13 = vsel %vm7196_vm6, %v645_v59, %v785_v58  ;;  %v843_v14 = vld [vmem:[%s7168_s21 + $0x28] sm:$0xf]  ;;  %v1290_v17 = vshll.u32 %v6037_v57, 16  ;;  %v789_v11 = vsel %vm7129_vm3, %v646_v9, %v788_v60  ;;  %v422_v19 = vsel %vm7129_vm3, 0, %v421_v62  ;;  %v424_v26 = vld [vmem:[#allocation3 + $0x54] sm:$0x1] }
  0x5e   : > { %787 = vst [vmem:[#allocation2 + $0x48] sm:$0xf] %v786_v13  ;;  %859 = vst.msk [vmem:[#allocation3 + $0x58] sm:$0xf] %vm325_vm0, %v843_v14  ;;  %v6022_v21 = vcombine.low %v937_v10, %v937_v10  ;;  %v1281_v23 = vshrl.u32 %v6036_v43, 16  ;;  %v1285_v24 = vrot.slane %v1283_v5, 1 }
  0x5f   : > { %790 = vst [vmem:[#allocation2 + $0x4c] sm:$0x1] %v789_v11  ;;  %423 = vst [vmem:[#allocation3 + $0x4c] sm:$0x1] %v422_v19  ;;  %v1297_v25 = vshll.u32 %v6038_v7, 16  ;;  %v1288_v29 = vshrl.u32 %v6037_v57, 16 }
  0x60   : > { %1875 = vrot.lane.b32.xlu1 %v7344_v6, %s7028_s20  ;;  %v427_v27 = vld [vmem:[#allocation3 + $0x5c] sm:$0x1]  ;;  %v1292_v30 = vrot.slane %v1290_v17, 1  ;;  %v375_v31 = vld [vmem:[#allocation2 + $0x50] sm:$0x1]  ;;  %v425_v32 = vsel %vm7129_vm3, 0, %v424_v26  ;;  %v7398_v33 = vor.u32 %v1285_v24, %v1281_v23 }
  0x61   : > { %2061 = vrot.lane.b32.xlu0 %v7357_v15, %s7029_s18  ;;  %v1295_v36 = vshrl.u32 %v6038_v7, 16  ;;  %426 = vst [vmem:[#allocation3 + $0x54] sm:$0x1] %v425_v32  ;;  %v428_v41 = vsel %vm7129_vm3, 0, %v427_v27  ;;  %v376_v42 = vsel %vm7129_vm3, 0, %v375_v31  ;;  %vm3531_vm7 = vcmask 1041408  }
  0x62   : > { %9975 = vst [vmem:[#allocation10_spill] sm:$0xff] %v7398_v33  ;;  %429 = vst [vmem:[#allocation3 + $0x5c] sm:$0x1] %v428_v41  ;;  %v568_v43 = vld [vmem:[%s7176_s24 + $0x24] sm:$0xf]  ;;  %v7407_v46 = vor.u32 %v1292_v30, %v1288_v29  ;;  %vm2093_vm8 = vcmask 31744  }
  0x63   : > { %377 = vst [vmem:[#allocation2 + $0x50] sm:$0x1] %v376_v42  ;;  %v963_v47 = vld [vmem:[#allocation2 + $0x28] sm:$0xf]  ;;  %v648_v51 = vshrl.u32 %v568_v43, 16  ;;  %v651_v5 = vshll.u32 %v568_v43, 16 }
  0x64   : > { %2063 = vrot.lane.b32.xlu1 %v7361_v22, %s7029_s18  ;;  %9976 = vst [vmem:[#allocation11_spill] sm:$0xff] %v7407_v46  ;;  %v378_v55 = vld [vmem:[#allocation2 + $0x58] sm:$0x1]  ;;  %v965_v56 = vld [vmem:[#allocation2 + $0x30] sm:$0xf]  ;;  %v6051_v58 = vcombine.low %v963_v47, %v963_v47  ;;  %vm2142_vm9 = vcmask 64512  }
  0x65   : > { %1141 = vrot.lane.b32.xlu0 %v6019_v28, %s7022_s25  ;;  %v7393_v28 = vor.u32 %v1278_v16, %v1274_v12  ;;  %v964_v57 = vld [vmem:[#allocation2 + $0x2c] sm:$0x1]  ;;  %v650_v59 = vrot.slane %v648_v51, 7  ;;  %v569_v60 = vld [vmem:[%s7176_s24 + $0x28] sm:$0xf]  ;;  %v379_v9 = vsel %vm7129_vm3, 0, %v378_v55 }
  0x66   : > { %v966_v62 = vld [vmem:[#allocation2 + $0x34] sm:$0x1]  ;;  %v967_v63 = vld [vmem:[#allocation2 + $0x38] sm:$0xf]  ;;  %v969_v10 = vld [vmem:[#allocation2 + $0x40] sm:$0xf]  ;;  %v7421_v19 = vcombine.low %v963_v47, %v964_v57 }
  0x67   : > { %v794_v7 = vld [vmem:[#allocation2 + $0x54] sm:$0x1]  ;;  %v654_v12 = vrot.slane %v650_v59, 4  ;;  %380 = vst [vmem:[#allocation2 + $0x58] sm:$0x1] %v379_v9  ;;  %v653_v14 = vor.u32 %v651_v5, %v650_v59  ;;  %v656_v17 = vshrl.u32 %v569_v60, 16  ;;  %v6084_v31 = vcombine.low %v965_v56, %v966_v62 }
  0x68   : > { %1143 = vrot.lane.b32.xlu1 %v6020_v38, %s7022_s25  ;;  %v1299_v38 = vrot.slane %v1297_v25, 1  ;;  %v381_v13 = vld [vmem:[#allocation2 + $0x60] sm:$0x1]  ;;  %v570_v11 = vld [vmem:[%s7176_s24 + $0x2c] sm:$0xf]  ;;  %v659_v25 = vshll.u32 %v569_v60, 16 }
  0x69   : > { %2065 = vrot.lane.b32.xlu0 %v7372_v54, %s7029_s18  ;;  %v995_v23 = vld [vmem:[#allocation3 + $0x28] sm:$0xf]  ;;  %v795_v24 = vsel %vm7129_vm3, %v654_v12, %v794_v7  ;;  %v968_v26 = vld [vmem:[#allocation2 + $0x3c] sm:$0x1]  ;;  %v997_v27 = vld [vmem:[#allocation3 + $0x30] sm:$0xf] }
  0x6a   : > { %v7411_v48 = vor.u32 %v1299_v38, %v1295_v36  ;;  %v791_v16 = vld [vmem:[#allocation2 + $0x50] sm:$0xf]  ;;  %796 = vst [vmem:[#allocation2 + $0x54] sm:$0x1] %v795_v24  ;;  %v658_v30 = vrot.slane %v656_v17, 7  ;;  %v6054_v36 = vcombine.low %v969_v10, %v969_v10  ;;  %v382_v42 = vsel %vm7129_vm3, 0, %v381_v13 }
  0x6b   : > { %v792_v29 = vsel %vm7196_vm6, %v653_v14, %v791_v16  ;;  %v970_v32 = vld [vmem:[#allocation2 + $0x44] sm:$0x1]  ;;  %v999_v38 = vld [vmem:[#allocation3 + $0x38] sm:$0xf]  ;;  %v800_v41 = vld [vmem:[#allocation2 + $0x5c] sm:$0x1]  ;;  %v6085_v59 = vcombine.low %v967_v63, %v968_v26  ;;  %v7437_v5 = vcombine.low %v997_v27, %v997_v27 }
  0x6c   : > { %2067 = vrot.lane.b32.xlu1 %v7377_v4, %s7029_s18  ;;  %9977 = vst [vmem:[#allocation12_spill] sm:$0xff] %v7411_v48  ;;  %793 = vst [vmem:[#allocation2 + $0x50] sm:$0xf] %v792_v29  ;;  %v664_v43 = vshrl.u32 %v570_v11, 16  ;;  %v661_v47 = vor.u32 %v659_v25, %v658_v30  ;;  %v662_v51 = vrot.slane %v658_v30, 4  ;;  %v667_v55 = vshll.u32 %v570_v11, 16 }
  0x6d   : > { %1145 = vrot.lane.b32.xlu0 %v6021_v61, %s7022_s25  ;;  %v6052_v61 = vcombine.low %v965_v56, %v965_v56  ;;  %383 = vst [vmem:[#allocation2 + $0x60] sm:$0x1] %v382_v42  ;;  %v430_v57 = vld [vmem:[#allocation3 + $0x64] sm:$0x1]  ;;  %v7433_v56 = vcombine.low %v995_v23, %v995_v23  ;;  %v1628_v60 = vshll.u32 %v7421_v19, 16  ;;  %9979 = vst [vmem:[#allocation14_spill] sm:$0xff] %v7437_v5 }
  0x6e   : > { %v666_v62 = vrot.slane %v664_v43, 7  ;;  %v797_v7 = vld [vmem:[#allocation2 + $0x58] sm:$0xf]  ;;  %v801_v9 = vsel %vm7129_vm3, %v662_v51, %v800_v41  ;;  %v6086_v12 = vcombine.low %v969_v10, %v970_v32  ;;  %v7444_v16 = vcombine.low %v999_v38, %v999_v38  ;;  %v1001_v17 = vld [vmem:[#allocation3 + $0x40] sm:$0xf]  ;;  %s7031_s23 = smov 48  }
  0x6f   : > { %9978 = vst [vmem:[#allocation13_spill] sm:$0xff] %v7433_v56  ;;  %v798_v13 = vsel %vm7196_vm6, %v661_v47, %v797_v7  ;;  %802 = vst [vmem:[#allocation2 + $0x5c] sm:$0x1] %v801_v9  ;;  %v1626_v10 = vshrl.u32 %v7421_v19, 16  ;;  %v1630_v23 = vrot.slane %v1628_v60, 1  ;;  %v1642_v24 = vshll.u32 %v6085_v59, 16 }
  0x70   : > { %1147 = vrot.lane.b32.xlu1 %v6022_v21, %s7022_s25  ;;  %v6053_v21 = vcombine.low %v967_v63, %v967_v63  ;;  %v1635_v63 = vshll.u32 %v6084_v31, 16  ;;  %v670_v14 = vrot.slane %v666_v62, 4  ;;  %9980 = vst [vmem:[#allocation15_spill] sm:$0xff] %v7444_v16  ;;  %799 = vst [vmem:[#allocation2 + $0x58] sm:$0xf] %v798_v13  ;;  %v669_v11 = vor.u32 %v667_v55, %v666_v62  ;;  %s7032_s19 = smov 56  }
  0x71   : > { %1365 = vrot.lane.b32.xlu0 %v7393_v28, %s7024_s10  ;;  %v7455_v26 = vcombine.low %v1001_v17, %v1001_v17  ;;  %v1633_v27 = vshrl.u32 %v6084_v31, 16  ;;  %v1649_v30 = vshll.u32 %v6086_v12, 16  ;;  %v7461_v19 = vor.u32 %v1630_v23, %v1626_v10  ;;  %v384_v51 = vld [vmem:[#allocation2 + $0x68] sm:$0x1]  ;;  %v1028_v55 = vld [vmem:[#allocation2 + $0x30] sm:$0xf] }
  0x72   : > { %v1637_v29 = vrot.slane %v1635_v63, 1  ;;  %v1640_v38 = vshrl.u32 %v6085_v59, 16  ;;  %v1644_v41 = vrot.slane %v1642_v24, 1  ;;  %v1647_v31 = vshrl.u32 %v6086_v12, 16  ;;  %v1030_v59 = vld [vmem:[#allocation2 + $0x38] sm:$0xf] }
  0x73   : > { %9981 = vst [vmem:[#allocation16_spill] sm:$0xff] %v7455_v26  ;;  %9982 = vst [vmem:[#allocation17_spill] sm:$0xff] %v7461_v19  ;;  %v1651_v43 = vrot.slane %v1649_v30, 1  ;;  %v385_v60 = vsel %vm7129_vm3, 0, %v384_v51  ;;  %v1029_v62 = vld [vmem:[#allocation2 + $0x34] sm:$0x1]  ;;  %v6099_v7 = vcombine.low %v1028_v55, %v1028_v55  ;;  %v6100_v63 = vcombine.low %v1030_v59, %v1030_v59 }
  0x74   : > { %1367 = vrot.lane.b32.xlu1 %v7398_v33, %s7024_s10  ;;  %v803_v32 = vld [vmem:[#allocation2 + $0x60] sm:$0xf]  ;;  %v7465_v42 = vor.u32 %v1637_v29, %v1633_v27  ;;  %v7469_v47 = vor.u32 %v1644_v41, %v1640_v38  ;;  %386 = vst [vmem:[#allocation2 + $0x68] sm:$0x1] %v385_v60  ;;  %v1031_v9 = vld [vmem:[#allocation2 + $0x3c] sm:$0x1]  ;;  %v7482_v10 = vcombine.low %v1028_v55, %v1029_v62 }
  0x75   : > { %1369 = vrot.lane.b32.xlu0 %v7407_v46, %s7024_s10  ;;  %v1034_v13 = vld [vmem:[#allocation2 + $0x48] sm:$0xf]  ;;  %v845_v27 = vld [vmem:[%s7168_s21 + $0x30] sm:$0xf]  ;;  %v1061_v29 = vld [vmem:[#allocation3 + $0x30] sm:$0xf] }
  0x76   : > { %9983 = vst [vmem:[#allocation18_spill] sm:$0xff] %v7465_v42  ;;  %9984 = vst [vmem:[#allocation19_spill] sm:$0xff] %v7469_v47  ;;  %v6102_v38 = vcombine.low %v1034_v13, %v1034_v13  ;;  %v1063_v41 = vld [vmem:[#allocation3 + $0x38] sm:$0xf]  ;;  %v1033_v51 = vld [vmem:[#allocation2 + $0x44] sm:$0x1]  ;;  %v7504_v62 = vcombine.low %v1061_v29, %v1061_v29 }
  0x77   : > { %861 = vst.msk [vmem:[#allocation3 + $0x68] sm:$0xf] %vm325_vm0, %v845_v27  ;;  %v387_v27 = vld [vmem:[#allocation2 + $0x70] sm:$0x1]  ;;  %v941_v1 = vld [vmem:[#allocation3 + $0x48] sm:$0xf] }
  0x78   : > { %1371 = vrot.lane.b32.xlu1 %v7411_v48, %s7024_s10  ;;  %9986 = vst [vmem:[#allocation21_spill] sm:$0xff] %v7504_v62  ;;  %v848_v48 = vld [vmem:[%s7168_s21 + $0x3c] sm:$0xf]  ;;  %vm2175_vm10 = vcmask 97280   ;;  %vm2208_vm11 = vcmask 130048   ;;  %vm2241_vm12 = vcmask 162816  }
  0x79   : > { %1445 = vrot.lane.b32.xlu0 %v6051_v58, %s7025_s12  ;;  %v844_v58 = vld [vmem:[%s7168_s21 + $0x2c] sm:$0xf]  ;;  %864 = vst.msk [vmem:[#allocation3 + $0x80] sm:$0xf] %vm325_vm0, %v848_v48  ;;  %vm2274_vm13 = vcmask 195584   ;;  %vm2307_vm14 = vcmask 228352  }
  0x7a   : > { %860 = vst.msk [vmem:[#allocation3 + $0x60] sm:$0xf] %vm325_vm0, %v844_v58  ;;  %v571_v58 = vld [vmem:[%s7176_s24 + $0x30] sm:$0xf]  ;;  %vm2340_vm15 = vcmask 261120  }
  0x7b   : > { %v672_v12 = vshrl.u32 %v571_v58, 16  ;;  %v809_v55 = vld [vmem:[#allocation2 + $0x68] sm:$0xf] }
  0x7c   : > { %1447 = vrot.lane.b32.xlu1 %v6052_v61, %s7025_s12  ;;  %v806_v61 = vld [vmem:[#allocation2 + $0x64] sm:$0x1]  ;;  %v1050_v46 = vld [vmem:[#allocation2 + $0x88] sm:$0xf] }
  0x7d   : > { %1449 = vrot.lane.b32.xlu0 %v6053_v21, %s7025_s12  ;;  %v431_v21 = vsel %vm7129_vm3, 0, %v430_v57  ;;  %v807_v25 = vsel %vm7129_vm3, %v670_v14, %v806_v61  ;;  %v7473_v57 = vor.u32 %v1651_v43, %v1647_v31  ;;  %v1032_v61 = vld [vmem:[#allocation2 + $0x40] sm:$0xf]  ;;  %v675_v14 = vshll.u32 %v571_v58, 16  ;;  %v846_v31 = vld [vmem:[%s7168_s21 + $0x34] sm:$0xf] }
  0x7e   : > { %432 = vst [vmem:[#allocation3 + $0x64] sm:$0x1] %v431_v21  ;;  %808 = vst [vmem:[#allocation2 + $0x64] sm:$0x1] %v807_v25  ;;  %v674_v17 = vrot.slane %v672_v12, 7  ;;  %v6101_v23 = vcombine.low %v1032_v61, %v1032_v61 }
  0x7f   : > { %9985 = vst [vmem:[#allocation20_spill] sm:$0xff] %v7473_v57  ;;  %v433_v21 = vld [vmem:[#allocation3 + $0x6c] sm:$0x1]  ;;  %v6747_v25 = vld [vmem:[%s9902_s2 + $0x10] ss:$0 sps:$4 sm:$0x33]  }
  0x80   : > { %1451 = vrot.lane.b32.xlu1 %v6054_v36, %s7025_s12  ;;  %v804_v36 = vsel %vm7196_vm6, %v669_v11, %v803_v32  ;;  %v812_v11 = vld [vmem:[#allocation2 + $0x6c] sm:$0x1]  ;;  %v677_v30 = vor.u32 %v675_v14, %v674_v17  ;;  %v678_v32 = vrot.slane %v674_v17, 4  ;;  %v847_v43 = vld [vmem:[%s7168_s21 + $0x38] sm:$0xf]  ;;  %v434_v60 = vsel %vm7129_vm3, 0, %v433_v21  ;;  %6560 = vmatprep.subr.msk.bf16.mxu0 %vm3531_vm7, %v6747_v25 }
  0x81   : > { %1525 = vrot.lane.b32.xlu0 %v7433_v56, %s7023_s26  ;;  %805 = vst [vmem:[#allocation2 + $0x60] sm:$0xf] %v804_v36  ;;  %v7492_v36 = vcombine.low %v1030_v59, %v1031_v9  ;;  %862 = vst.msk [vmem:[#allocation3 + $0x70] sm:$0xf] %vm325_vm0, %v846_v31  ;;  %v1035_v59 = vld [vmem:[#allocation2 + $0x4c] sm:$0x1]  ;;  %v7509_v14 = vcombine.low %v1032_v61, %v1033_v51  ;;  %v7512_v17 = vcombine.low %v1063_v41, %v1063_v41 }
  0x82   : > { %v813_v58 = vsel %vm7129_vm3, %v678_v32, %v812_v11  ;;  %863 = vst.msk [vmem:[#allocation3 + $0x78] sm:$0xf] %vm325_vm0, %v847_v43  ;;  %v810_v9 = vsel %vm7196_vm6, %v677_v30, %v809_v55  ;;  %435 = vst [vmem:[#allocation3 + $0x6c] sm:$0x1] %v434_v60  ;;  %v1065_v12 = vld [vmem:[#allocation3 + $0x40] sm:$0xf]  ;;  %v7519_v29 = vcombine.low %v1034_v13, %v1035_v59 }
  0x83   : > { %814 = vst [vmem:[#allocation2 + $0x6c] sm:$0x1] %v813_v58  ;;  %811 = vst [vmem:[#allocation2 + $0x68] sm:$0xf] %v810_v9  ;;  %v1067_v30 = vld [vmem:[#allocation3 + $0x48] sm:$0xf]  ;;  %v7523_v61 = vcombine.low %v1065_v12, %v1065_v12 }
  0x84   : > { %1527 = vrot.lane.b32.xlu1 %v7437_v5, %s7023_s26  ;;  %9987 = vst [vmem:[#allocation22_spill] sm:$0xff] %v7512_v17  ;;  %v907_v32 = vld [vmem:[#allocation2 + $0x40] sm:$0xf]  ;;  %v388_v31 = vsel %vm7129_vm3, 0, %v387_v27  ;;  %v1985_v43 = vshrl.u32 %v7492_v36, 16  ;;  %v7531_v13 = vcombine.low %v1067_v30, %v1067_v30  ;;  %v1994_v60 = vshll.u32 %v7509_v14, 16 }
  0x85   : > { %1529 = vrot.lane.b32.xlu0 %v7444_v16, %s7023_s26  ;;  %9988 = vst [vmem:[#allocation23_spill] sm:$0xff] %v7523_v61  ;;  %389 = vst [vmem:[#allocation2 + $0x70] sm:$0x1] %v388_v31  ;;  %v572_v59 = vld [vmem:[%s7176_s24 + $0x34] sm:$0xf]  ;;  %v1992_v30 = vshrl.u32 %v7509_v14, 16 }
  0x86   : > { %9989 = vst [vmem:[#allocation24_spill] sm:$0xff] %v7531_v13  ;;  %v909_v9 = vld [vmem:[#allocation2 + $0x48] sm:$0xf]  ;;  %v939_v27 = vld [vmem:[#allocation3 + $0x40] sm:$0xf]  ;;  %v683_v31 = vshll.u32 %v572_v59, 16 }
  0x87   : > { %v912_v14 = vld [vmem:[#allocation2 + $0x54] sm:$0x1]  ;;  %v914_v16 = vld [vmem:[#allocation2 + $0x5c] sm:$0x1]  ;;  %v436_v56 = vld [vmem:[#allocation3 + $0x74] sm:$0x1] }
  0x88   : > { %1531 = vrot.lane.b32.xlu1 %v7455_v26, %s7023_s26  ;;  %v574_v26 = vld [vmem:[%s7176_s24 + $0x3c] sm:$0xf]  ;;  %vm3482_vm0 = vcmask 293888   ;;  %v1077_v33 = vld [vmem:[#allocation3 + $0x70] sm:$0xf] }
  0x89   : > { %1717 = vrot.lane.b32.xlu0 %v7461_v19, %s7026_s13  ;;  %v393_v19 = vld [vmem:[#allocation2 + $0x80] sm:$0x1] }
  0x8c   : > { %1719 = vrot.lane.b32.xlu1 %v7465_v42, %s7026_s13 }
  0x8d   : > { %1721 = vrot.lane.b32.xlu0 %v7469_v47, %s7026_s13  ;;  %v815_v47 = vld [vmem:[#allocation2 + $0x70] sm:$0xf] }
  0x90   : > { %1723 = vrot.lane.b32.xlu1 %v7473_v57, %s7026_s13 }
  0x91   : > { %1797 = vrot.lane.b32.xlu0 %v6099_v7, %s7027_s17  ;;  %v1980_v7 = vshll.u32 %v7482_v10, 16 }
  0x93   : > { %v1982_v41 = vrot.slane %v1980_v7, 1  ;;  %v2001_v7 = vshll.u32 %v7519_v29, 16 }
  0x94   : > { %1799 = vrot.lane.b32.xlu1 %v6100_v63, %s7027_s17  ;;  %v3533_v63 = vsel %vm3531_vm7, %v6747_v25, 0  ;;  %v908_v25 = vld [vmem:[#allocation2 + $0x44] sm:$0x1] }
  0x95   : > { %v7485_v24 = vpop.permute.xlu0 %1133  ;;  %1801 = vrot.lane.b32.xlu0 %v6101_v23, %s7027_s17  ;;  %v1987_v23 = vshll.u32 %v7492_v36, 16  ;;  %6491 = vmatpush3.bf16.msra.mxu0 %v3533_v63  ;;  %v910_v36 = vld [vmem:[#allocation2 + $0x4c] sm:$0x1]  ;;  %v390_v63 = vld [vmem:[#allocation2 + $0x78] sm:$0x1]  ;;  %v2003_v57 = vrot.slane %v2001_v7, 1 }
  0x97   : > { %v1989_v58 = vrot.slane %v1987_v23, 1  ;;  %v680_v23 = vshrl.u32 %v572_v59, 16 }
  0x98   : > { %1803 = vrot.lane.b32.xlu1 %v6102_v38, %s7027_s17  ;;  %v1978_v38 = vshrl.u32 %v7482_v10, 16  ;;  %v7538_v10 = vcombine.low %v907_v32, %v908_v25 }
  0x99   : > { %1877 = vrot.lane.b32.xlu0 %v7504_v62, %s7028_s20  ;;  %v7549_v32 = vor.u32 %v1989_v58, %v1985_v43  ;;  %v682_v59 = vrot.slane %v680_v23, 7  ;;  %v6023_v43 = vcombine.low %v939_v27, %v939_v27 }
  0x9a   : > { %v7544_v12 = vor.u32 %v1982_v41, %v1978_v38  ;;  %v1304_v62 = vshll.u32 %v7538_v10, 16  ;;  %v573_v38 = vld [vmem:[%s7176_s24 + $0x38] sm:$0xf]  ;;  %v1999_v41 = vshrl.u32 %v7519_v29, 16 }
  0x9b   : > { %9991 = vst [vmem:[#allocation26_spill] sm:$0xff] %v7549_v32  ;;  %v685_v42 = vor.u32 %v683_v31, %v682_v59  ;;  %v686_v29 = vrot.slane %v682_v59, 4  ;;  %v688_v7 = vshrl.u32 %v573_v38, 16  ;;  %v691_v5 = vshll.u32 %v573_v38, 16 }
  0x9c   : > { %v7514_v11 = vpop.permute.xlu1 %1137  ;;  %1879 = vrot.lane.b32.xlu1 %v7512_v17, %s7028_s20  ;;  %9990 = vst [vmem:[#allocation25_spill] sm:$0xff] %v7544_v12  ;;  %v1996_v17 = vrot.slane %v1994_v60, 1  ;;  %v911_v60 = vld [vmem:[#allocation2 + $0x50] sm:$0xf]  ;;  %v7570_v27 = vrot.slane %v1304_v62, 1  ;;  %v696_v38 = vshrl.u32 %v574_v26, 16 }
  0x9d   : > { %v7516_v21 = vpop.permute.xlu0 %1135  ;;  %1881 = vrot.lane.b32.xlu0 %v7523_v61, %s7028_s20  ;;  %v7554_v61 = vcombine.low %v909_v9, %v910_v36  ;;  %v818_v9 = vld [vmem:[#allocation2 + $0x74] sm:$0x1]  ;;  %v6024_v36 = vcombine.low %v941_v1, %v941_v1  ;;  %v913_v1 = vld [vmem:[#allocation2 + $0x58] sm:$0xf]  ;;  %v816_v31 = vsel %vm7196_vm6, %v685_v42, %v815_v47  ;;  %v7582_v23 = vcombine.low %v911_v60, %v912_v14  ;;  %v439_v42 = vld [vmem:[#allocation3 + $0x7c] sm:$0x1] }
  0x9e   : > { %v819_v59 = vsel %vm7129_vm3, %v686_v29, %v818_v9  ;;  %817 = vst [vmem:[#allocation2 + $0x70] sm:$0xf] %v816_v31  ;;  %v7586_v47 = vor.u32 %v2003_v57, %v1999_v41  ;;  %v699_v9 = vshll.u32 %v574_v26, 16  ;;  %v437_v29 = vsel %vm7129_vm3, 0, %v436_v56  ;;  %v945_v60 = vld [vmem:[#allocation3 + $0x58] sm:$0xf] }
  0x9f   : > { %820 = vst [vmem:[#allocation2 + $0x74] sm:$0x1] %v819_v59  ;;  %438 = vst [vmem:[#allocation3 + $0x74] sm:$0x1] %v437_v29  ;;  %v335_v57 = vld [vmem:[#allocation2 + $0x8c] sm:$0x1] }
  0xa0   : > { %v7533_v51 = vpop.permute.xlu1 %1139  ;;  %1883 = vrot.lane.b32.xlu1 %v7531_v13, %s7028_s20  ;;  %v391_v13 = vsel %vm7129_vm3, 0, %v390_v63  ;;  %v7567_v63 = vld [vmem:[#allocation3 + $0x50] sm:$0xf]  ;;  %9993 = vst [vmem:[#allocation28_spill] sm:$0xff] %v7586_v47  ;;  %v830_v56 = vld [vmem:[#allocation2 + $0x84] sm:$0x1] }
  0xa1   : > { %v7535_v55 = vpop.permute.xlu0 %1517  ;;  %2069 = vrot.lane.b32.xlu0 %v7544_v12, %s7029_s18  ;;  %392 = vst [vmem:[#allocation2 + $0x78] sm:$0x1] %v391_v13  ;;  %v1311_v12 = vshll.u32 %v7554_v61, 16  ;;  %v7573_v13 = vor.u32 %v1996_v17, %v1992_v30  ;;  %v690_v17 = vrot.slane %v688_v7, 7  ;;  %v394_v30 = vsel %vm7129_vm3, 0, %v393_v19 }
  0xa2   : > { %395 = vst [vmem:[#allocation2 + $0x80] sm:$0x1] %v394_v30  ;;  %v6042_v7 = vcombine.low %v913_v1, %v914_v16  ;;  %v698_v19 = vrot.slane %v696_v38, 7  ;;  %v6025_v26 = vcombine.low %v7567_v63, %v7567_v63  ;;  %v440_v30 = vsel %vm7129_vm3, 0, %v439_v42  ;;  %v344_v29 = vld [vmem:[#allocation3 + $0x8c] sm:$0x1] }
  0xa3   : > { %9992 = vst [vmem:[#allocation27_spill] sm:$0xff] %v7573_v13  ;;  %v693_v31 = vor.u32 %v691_v5, %v690_v17  ;;  %v694_v59 = vrot.slane %v690_v17, 4  ;;  %v1318_v5 = vshll.u32 %v7582_v23, 16  ;;  %441 = vst [vmem:[#allocation3 + $0x7c] sm:$0x1] %v440_v30  ;;  %v1309_v1 = vshrl.u32 %v7554_v61, 16 }
  0xa4   : > { %v7551_v25 = vpop.permute.xlu1 %1519  ;;  %2071 = vrot.lane.b32.xlu1 %v7549_v32, %s7029_s18  ;;  %v824_v32 = vld [vmem:[#allocation2 + $0x7c] sm:$0x1]  ;;  %v702_v63 = vrot.slane %v698_v19, 4  ;;  %v1313_v17 = vrot.slane %v1311_v12, 1  ;;  %v701_v38 = vor.u32 %v699_v9, %v698_v19  ;;  %v336_v42 = vsel %vm7129_vm3, 0, %v335_v57 }
  0xa5   : > { %v7562_v58 = vpop.permute.xlu0 %1521  ;;  %1149 = vrot.lane.b32.xlu0 %v6023_v43, %s7022_s25  ;;  %v442_v43 = vld [vmem:[#allocation3 + $0x84] sm:$0x1]  ;;  %v825_v16 = vsel %vm7129_vm3, %v694_v59, %v824_v32  ;;  %v1325_v32 = vshll.u32 %v6042_v7, 16  ;;  %337 = vst [vmem:[#allocation2 + $0x8c] sm:$0x1] %v336_v42  ;;  %v345_v61 = vsel %vm7129_vm3, 0, %v344_v29 }
  0xa6   : > { %826 = vst [vmem:[#allocation2 + $0x7c] sm:$0x1] %v825_v16  ;;  %v831_v59 = vsel %vm7129_vm3, %v702_v63, %v830_v56  ;;  %346 = vst [vmem:[#allocation3 + $0x8c] sm:$0x1] %v345_v61  ;;  %v9994_v9 = vshrl.u32 %v7538_v10, 16  ;;  %v1320_v57 = vrot.slane %v1318_v5, 1  ;;  %v7631_v0 = vor.u32 %v1313_v17, %v1309_v1 }
  0xa7   : > { %832 = vst [vmem:[#allocation2 + $0x84] sm:$0x1] %v831_v59  ;;  %v1323_v30 = vshrl.u32 %v6042_v7, 16  ;;  %v973_v5 = vld [vmem:[#allocation2 + $0x50] sm:$0xf] }
  0xa8   : > { %v7580_v62 = vpop.permute.xlu1 %1523  ;;  %1151 = vrot.lane.b32.xlu1 %v6024_v36, %s7022_s25  ;;  %v821_v41 = vld [vmem:[#allocation2 + $0x78] sm:$0xf]  ;;  %v443_v36 = vsel %vm7129_vm3, 0, %v442_v43  ;;  %v7625_v19 = vor.u32 %v7570_v27, %v9994_v9  ;;  %9996 = vst [vmem:[#allocation30_spill] sm:$0xff] %v7631_v0  ;;  %v972_v16 = vld [vmem:[#allocation2 + $0x4c] sm:$0x1] }
  0xa9   : > { %v7592_v14 = vpop.permute.xlu0 %1357  ;;  %2073 = vrot.lane.b32.xlu0 %v7573_v13, %s7029_s18  ;;  %v822_v48 = vsel %vm7196_vm6, %v693_v31, %v821_v41  ;;  %444 = vst [vmem:[#allocation3 + $0x84] sm:$0x1] %v443_v36  ;;  %v6026_v31 = vcombine.low %v945_v60, %v945_v60  ;;  %v1316_v60 = vshrl.u32 %v7582_v23, 16  ;;  %v827_v41 = vld [vmem:[#allocation2 + $0x80] sm:$0xf] }
  0xaa   : > { %823 = vst [vmem:[#allocation2 + $0x78] sm:$0xf] %v822_v48  ;;  %9995 = vst [vmem:[#allocation29_spill] sm:$0xff] %v7625_v19  ;;  %v828_v56 = vsel %vm7196_vm6, %v701_v38, %v827_v41  ;;  %v971_v23 = vld [vmem:[#allocation2 + $0x48] sm:$0xf]  ;;  %v6056_v38 = vcombine.low %v973_v5, %v973_v5 }
  0xab   : > { %829 = vst [vmem:[#allocation2 + $0x80] sm:$0xf] %v828_v56  ;;  %v7637_v27 = vor.u32 %v1320_v57, %v1316_v60  ;;  %v6055_v48 = vcombine.low %v971_v23, %v971_v23  ;;  %v975_v63 = vld [vmem:[#allocation2 + $0x58] sm:$0xf]  ;;  %v974_v17 = vld [vmem:[#allocation2 + $0x54] sm:$0x1] }
  0xac   : > { %2075 = vrot.lane.b32.xlu1 %v7586_v47, %s7029_s18  ;;  %v7613_v43 = vpop.permute.xlu1 %1439  ;;  %v977_v42 = vld [vmem:[#allocation2 + $0x60] sm:$0xf]  ;;  %v1003_v29 = vld [vmem:[#allocation3 + $0x48] sm:$0xf]  ;;  %v976_v59 = vld [vmem:[#allocation2 + $0x5c] sm:$0x1]  ;;  %v6057_v61 = vcombine.low %v975_v63, %v975_v63  ;;  %v6088_v60 = vcombine.low %v973_v5, %v974_v17 }
  0xad   : > { %1153 = vrot.lane.b32.xlu0 %v6025_v26, %s7022_s25  ;;  %v7620_v12 = vpop.permute.xlu0 %1437  ;;  %v1327_v26 = vrot.slane %v1325_v32, 1  ;;  %9997 = vst [vmem:[#allocation31_spill] sm:$0xff] %v7637_v27  ;;  %v6058_v57 = vcombine.low %v977_v42, %v977_v42  ;;  %v1005_v41 = vld [vmem:[#allocation3 + $0x50] sm:$0xf]  ;;  %v978_v56 = vld [vmem:[#allocation2 + $0x64] sm:$0x1] }
  0xae   : > { %v7667_v5 = vcombine.low %v1005_v41, %v1005_v41  ;;  %v1663_v17 = vshll.u32 %v6088_v60, 16 }
  0xaf   : > { %v7643_v45 = vor.u32 %v1327_v26, %v1323_v30  ;;  %v6089_v30 = vcombine.low %v975_v63, %v976_v59 }
  0xb0   : > { %1155 = vrot.lane.b32.xlu1 %v6026_v31, %s7022_s25  ;;  %v6087_v31 = vcombine.low %v971_v23, %v972_v16  ;;  %v7662_v23 = vcombine.low %v1003_v29, %v1003_v29  ;;  %v1007_v16 = vld [vmem:[#allocation3 + $0x58] sm:$0xf]  ;;  %10000 = vst [vmem:[#allocation34_spill] sm:$0xff] %v7667_v5  ;;  %v1665_v41 = vrot.slane %v1663_v17, 1 }
  0xb1   : > { %1373 = vrot.lane.b32.xlu0 %v7625_v19, %s7024_s10  ;;  %v7635_v10 = vpop.permute.xlu1 %1443  ;;  %9998 = vst [vmem:[#allocation32_spill] sm:$0xff] %v7643_v45  ;;  %v7673_v59 = vcombine.low %v1007_v16, %v1007_v16 }
  0xb2   : > { %9999 = vst [vmem:[#allocation33_spill] sm:$0xff] %v7662_v23  ;;  %v1654_v29 = vshrl.u32 %v6087_v31, 16 }
  0xb3   : > { %v7639_v36 = vpop.permute.xlu0 %1441  ;;  %10001 = vst [vmem:[#allocation35_spill] sm:$0xff] %v7673_v59 }
  0xb4   : > { %1375 = vrot.lane.b32.xlu1 %v7631_v0, %s7024_s10  ;;  %v1670_v0 = vshll.u32 %v6089_v30, 16 }
  0xb5   : > { %1377 = vrot.lane.b32.xlu0 %v7637_v27, %s7024_s10  ;;  %v7647_v7 = vpop.permute.xlu1 %1359  ;;  %v6090_v27 = vcombine.low %v977_v42, %v978_v56 }
  0xb7   : > { %v7649_v1 = vpop.permute.xlu0 %1361  ;;  %v1677_v56 = vshll.u32 %v6090_v27, 16 }
  0xb8   : > { %1379 = vrot.lane.b32.xlu1 %v7643_v45, %s7024_s10 }
  0xb9   : > { %1453 = vrot.lane.b32.xlu0 %v6055_v48, %s7025_s12  ;;  %v1656_v48 = vshll.u32 %v6087_v31, 16  ;;  %v1668_v31 = vshrl.u32 %v6089_v30, 16  ;;  %v6892_v30 = vld [vmem:[#allocation2 + $0x8] sm:$0xf] }
  0xba   : > { %v7654_v32 = vpop.permute.xlu1 %1363 }
  0xbb   : > { %v7656_v9 = vpop.permute.xlu0 %1709 }
  0xbc   : > { %1455 = vrot.lane.b32.xlu1 %v6056_v38, %s7025_s12  ;;  %v1009_v38 = vld [vmem:[#allocation3 + $0x60] sm:$0xf] }
  0xbd   : > { %1457 = vrot.lane.b32.xlu0 %v6057_v61, %s7025_s12  ;;  %v1658_v61 = vrot.slane %v1656_v48, 1  ;;  %v7679_v42 = vcombine.low %v1009_v38, %v1009_v38  ;;  %v1672_v48 = vrot.slane %v1670_v0, 1  ;;  %v1675_v38 = vshrl.u32 %v6090_v27, 16 }
  0xbe   : > { %v7660_v26 = vpop.permute.xlu1 %1711  ;;  %v2099_v0 = vsel %vm2093_vm8, %v6892_v30, %v7516_v21 }
  0xbf   : > { %v7664_v45 = vpop.permute.xlu0 %1713  ;;  %10002 = vst [vmem:[#allocation36_spill] sm:$0xff] %v7679_v42  ;;  %v7685_v16 = vor.u32 %v1658_v61, %v1654_v29  ;;  %v1036_v29 = vld [vmem:[#allocation2 + $0x50] sm:$0xf] }
  0xc0   : > { %1459 = vrot.lane.b32.xlu1 %v6058_v57, %s7025_s12  ;;  %v1661_v57 = vshrl.u32 %v6088_v60, 16  ;;  %v1679_v60 = vrot.slane %v1677_v56, 1  ;;  %v6893_v56 = vld [vmem:[#allocation2] sm:$0xf] }
  0xc1   : > { %1533 = vrot.lane.b32.xlu0 %v7662_v23, %s7023_s26  ;;  %10003 = vst [vmem:[#allocation37_spill] sm:$0xff] %v7685_v16 }
  0xc2   : > { %v7671_v63 = vpop.permute.xlu1 %1715  ;;  %v7703_v27 = vor.u32 %v1679_v60, %v1675_v38  ;;  %v1040_v38 = vld [vmem:[#allocation2 + $0x60] sm:$0xf] }
  0xc3   : > { %v7675_v19 = vpop.permute.xlu0 %1789 }
  0xc4   : > { %1535 = vrot.lane.b32.xlu1 %v7667_v5, %s7023_s26  ;;  %v7691_v5 = vor.u32 %v1665_v41, %v1661_v57  ;;  %10006 = vst [vmem:[#allocation40_spill] sm:$0xff] %v7703_v27  ;;  %v2146_v57 = vsel %vm2142_vm9, %v2099_v0, %v7647_v7  ;;  %v1038_v41 = vld [vmem:[#allocation2 + $0x58] sm:$0xf] }
  0xc5   : > { %1537 = vrot.lane.b32.xlu0 %v7673_v59, %s7023_s26  ;;  %v7697_v59 = vor.u32 %v1672_v48, %v1668_v31  ;;  %v2096_v31 = vsel %vm2093_vm8, %v6893_v56, %v7485_v24  ;;  %v6103_v48 = vcombine.low %v1036_v29, %v1036_v29  ;;  %v2179_v7 = vsel %vm2175_vm10, %v2146_v57, %v7613_v43  ;;  %v1039_v24 = vld [vmem:[#allocation2 + $0x5c] sm:$0x1]  ;;  %v6894_v43 = vld [vmem:[#allocation2 + $0x10] sm:$0xf] }
  0xc6   : > { %v7683_v23 = vpop.permute.xlu1 %1791  ;;  %10004 = vst [vmem:[#allocation38_spill] sm:$0xff] %v7691_v5  ;;  %v2144_v30 = vsel %vm2142_vm9, %v2096_v31, %v7592_v14  ;;  %v6104_v56 = vcombine.low %v1038_v41, %v1038_v41  ;;  %v6105_v31 = vcombine.low %v1040_v38, %v1040_v38  ;;  %v2102_v57 = vsel %vm2093_vm8, %v6894_v43, %v7514_v11  ;;  %v1073_v43 = vld [vmem:[#allocation3 + $0x60] sm:$0xf] }
  0xc7   : > { %v7687_v47 = vpop.permute.xlu0 %1793  ;;  %10005 = vst [vmem:[#allocation39_spill] sm:$0xff] %v7697_v59  ;;  %v2177_v60 = vsel %vm2175_vm10, %v2144_v30, %v7620_v12 }
  0xc8   : > { %1539 = vrot.lane.b32.xlu1 %v7679_v42, %s7023_s26  ;;  %v2210_v30 = vsel %vm2208_vm11, %v2177_v60, %v7535_v55  ;;  %v1069_v42 = vld [vmem:[#allocation3 + $0x50] sm:$0xf] }
  0xc9   : > { %1725 = vrot.lane.b32.xlu0 %v7685_v16, %s7026_s13  ;;  %v7730_v16 = vcombine.low %v1038_v41, %v1039_v24  ;;  %v7750_v24 = vcombine.low %v1069_v42, %v1069_v42 }
  0xca   : > { %v7695_v17 = vpop.permute.xlu1 %1795 }
  0xcb   : > { %v1870_v61 = vpop.permute.xlu0 %1869  ;;  %10007 = vst [vmem:[#allocation41_spill] sm:$0xff] %v7750_v24 }
  0xcc   : > { %1727 = vrot.lane.b32.xlu1 %v7691_v5, %s7026_s13  ;;  %v1037_v5 = vld [vmem:[#allocation2 + $0x54] sm:$0x1] }
  0xcd   : > { %1729 = vrot.lane.b32.xlu0 %v7697_v59, %s7026_s13  ;;  %v1042_v59 = vld [vmem:[#allocation2 + $0x68] sm:$0xf]  ;;  %v7721_v14 = vcombine.low %v1036_v29, %v1037_v5  ;;  %v6895_v5 = vld [vmem:[#allocation2 + $0x18] sm:$0xf] }
  0xce   : > { %v1872_v21 = vpop.permute.xlu1 %1871  ;;  %v2105_v29 = vsel %vm2093_vm8, %v6895_v5, %v7533_v51  ;;  %v6106_v55 = vcombine.low %v1042_v59, %v1042_v59 }
  0xcf   : > { %v7717_v0 = vpop.permute.xlu0 %1873  ;;  %v2150_v41 = vsel %vm2142_vm9, %v2105_v29, %v7654_v32 }
  0xd0   : > { %1731 = vrot.lane.b32.xlu1 %v7703_v27, %s7026_s13  ;;  %v2212_v27 = vsel %vm2208_vm11, %v2179_v7, %v7551_v25  ;;  %v2148_v25 = vsel %vm2142_vm9, %v2102_v57, %v7649_v1  ;;  %v2008_v1 = vshll.u32 %v7721_v14, 16  ;;  %v1043_v57 = vld [vmem:[#allocation2 + $0x6c] sm:$0x1] }
  0xd1   : > { %1805 = vrot.lane.b32.xlu0 %v6103_v48, %s7027_s17  ;;  %v2243_v48 = vsel %vm2241_vm12, %v2210_v30, %v7656_v9  ;;  %v2245_v13 = vsel %vm2241_vm12, %v2212_v27, %v7660_v26  ;;  %v1071_v9 = vld [vmem:[#allocation3 + $0x58] sm:$0xf]  ;;  %v1075_v30 = vld [vmem:[#allocation3 + $0x68] sm:$0xf] }
  0xd2   : > { %v1876_v12 = vpop.permute.xlu1 %1875  ;;  %v2276_v60 = vsel %vm2274_vm13, %v2243_v48, %v7675_v19  ;;  %v2278_v51 = vsel %vm2274_vm13, %v2245_v13, %v7683_v23  ;;  %v2015_v13 = vshll.u32 %v7730_v16, 16  ;;  %v2181_v23 = vsel %vm2175_vm10, %v2148_v25, %v7639_v36 }
  0xd3   : > { %v2062_v11 = vpop.permute.xlu0 %2061  ;;  %v2309_v7 = vsel %vm2307_vm14, %v2276_v60, %v1870_v61  ;;  %v2311_v26 = vsel %vm2307_vm14, %v2278_v51, %v1872_v21  ;;  %v2183_v61 = vsel %vm2175_vm10, %v2150_v41, %v7635_v10  ;;  %v7770_v36 = vcombine.low %v1073_v43, %v1073_v43  ;;  %v7807_v43 = vld [vmem:[#allocation2 + $0x68] sm:$0xf] }
  0xd4   : > { %1807 = vrot.lane.b32.xlu1 %v6104_v56, %s7027_s17  ;;  %v2342_v32 = vsel %vm2340_vm15, %v2309_v7, %v2062_v11  ;;  %v1041_v56 = vld [vmem:[#allocation2 + $0x64] sm:$0x1]  ;;  %v2006_v10 = vshrl.u32 %v7721_v14, 16  ;;  %v2010_v48 = vrot.slane %v2008_v1, 1  ;;  %v2214_v11 = vsel %vm2208_vm11, %v2181_v23, %v7562_v58  ;;  %v7799_v1 = vld [vmem:[#allocation2 + $0x60] sm:$0xf] }
  0xd5   : > { %1809 = vrot.lane.b32.xlu0 %v6105_v31, %s7027_s17  ;;  %v7763_v31 = vcombine.low %v1071_v9, %v1071_v9  ;;  %v6137_v5 = vcombine.low %v1040_v38, %v1041_v56  ;;  %10009 = vst [vmem:[#allocation43_spill] sm:$0xff] %v7770_v36  ;;  %v2013_v38 = vshrl.u32 %v7730_v16, 16  ;;  %v2017_v25 = vrot.slane %v2015_v13, 1  ;;  %10012 = vst [vmem:[#allocation46_spill] sm:$0xff] %v7799_v1  ;;  %v918_v13 = vld [vmem:[#allocation2 + $0x6c] sm:$0x1] }
  0xd6   : > { %v2064_v27 = vpop.permute.xlu1 %2063  ;;  %v2247_v41 = vsel %vm2241_vm12, %v2214_v11, %v7664_v45  ;;  %v6138_v51 = vcombine.low %v1042_v59, %v1043_v57  ;;  %v7784_v14 = vcombine.low %v1075_v30, %v1075_v30  ;;  %v7795_v59 = vor.u32 %v2010_v48, %v2006_v10  ;;  %10014 = vst [vmem:[#allocation48_spill] sm:$0xff] %v7807_v43  ;;  %v7815_v10 = vld [vmem:[#allocation2 + $0x70] sm:$0xf]  ;;  %v920_v48 = vld [vmem:[#allocation2 + $0x74] sm:$0x1] }
  0xd7   : > { %v2344_v19 = vsel %vm2340_vm15, %v2311_v26, %v2064_v27  ;;  %v7760_v21 = vpop.permute.xlu0 %1141  ;;  %10008 = vst [vmem:[#allocation42_spill] sm:$0xff] %v7763_v31  ;;  %v2280_v58 = vsel %vm2274_vm13, %v2247_v41, %v7687_v47  ;;  %v2022_v7 = vshll.u32 %v6137_v5, 16  ;;  %v947_v47 = vld [vmem:[#allocation3 + $0x60] sm:$0xf]  ;;  %10015 = vst [vmem:[#allocation49_spill] sm:$0xff] %v7815_v10  ;;  %v6044_v41 = vcombine.low %v7807_v43, %v918_v13 }
  0xd8   : > { %1811 = vrot.lane.b32.xlu1 %v6106_v55, %s7027_s17  ;;  %v6192_v42 = vcombine.low %v2342_v32, %v2344_v19  ;;  %v2216_v55 = vsel %vm2208_vm11, %v2183_v61, %v7580_v62  ;;  %10010 = vst [vmem:[#allocation44_spill] sm:$0xff] %v7784_v14  ;;  %v2313_v16 = vsel %vm2307_vm14, %v2280_v58, %v7717_v0  ;;  %10011 = vst [vmem:[#allocation45_spill] sm:$0xff] %v7795_v59  ;;  %v949_v19 = vld [vmem:[#allocation3 + $0x68] sm:$0xf] }
  0xd9   : > { %1885 = vrot.lane.b32.xlu0 %v7750_v24, %s7028_s20  ;;  %v2249_v60 = vsel %vm2241_vm12, %v2216_v55, %v7671_v63  ;;  %v7805_v0 = vor.u32 %v2017_v25, %v2013_v38  ;;  %v6027_v61 = vcombine.low %v947_v47, %v947_v47  ;;  %v2024_v57 = vrot.slane %v2022_v7, 1 }
  0xda   : > { %v7767_v29 = vpop.permute.xlu1 %1143  ;;  %6492 = vmatprep.mubr.msk.bf16.mxu0 %vm3482_vm0, %v6192_v42  ;;  %v2282_v62 = vsel %vm2274_vm13, %v2249_v60, %v7695_v17  ;;  %v916_v17 = vld [vmem:[#allocation2 + $0x64] sm:$0x1]  ;;  %v2020_v42 = vshrl.u32 %v6137_v5, 16  ;;  %v6028_v55 = vcombine.low %v949_v19, %v949_v19  ;;  %v2027_v38 = vshrl.u32 %v6138_v51, 16  ;;  %v7822_v60 = vld [vmem:[#allocation2 + $0x78] sm:$0xf] }
  0xdb   : > { %v2066_v9 = vpop.permute.xlu0 %2065  ;;  %v2315_v45 = vsel %vm2307_vm14, %v2282_v62, %v1876_v12  ;;  %10013 = vst [vmem:[#allocation47_spill] sm:$0xff] %v7805_v0  ;;  %v2029_v12 = vshll.u32 %v6138_v51, 16  ;;  %v6043_v30 = vcombine.low %v7799_v1, %v916_v17  ;;  %10016 = vst [vmem:[#allocation50_spill] sm:$0xff] %v7822_v60  ;;  %v1339_v7 = vshll.u32 %v6044_v41, 16 }
  0xdc   : > { %1887 = vrot.lane.b32.xlu1 %v7763_v31, %s7028_s20  ;;  %v2346_v26 = vsel %vm2340_vm15, %v2313_v16, %v2066_v9  ;;  %v922_v9 = vld [vmem:[#allocation2 + $0x7c] sm:$0x1]  ;;  %v7827_v58 = vor.u32 %v2024_v57, %v2020_v42  ;;  %v6045_v16 = vcombine.low %v7815_v10, %v920_v48  ;;  %v1337_v42 = vshrl.u32 %v6044_v41, 16 }
  0xdd   : > { %1889 = vrot.lane.b32.xlu0 %v7770_v36, %s7028_s20  ;;  %v2031_v25 = vrot.slane %v2029_v12, 1  ;;  %v1332_v62 = vshll.u32 %v6043_v30, 16  ;;  %v1341_v57 = vrot.slane %v1339_v7, 1 }
  0xde   : > { %v2068_v63 = vpop.permute.xlu1 %2067  ;;  %10017 = vst [vmem:[#allocation51_spill] sm:$0xff] %v7827_v58  ;;  %v1346_v19 = vshll.u32 %v6045_v16, 16 }
  0xdf   : > { %v2348_v27 = vsel %vm2340_vm15, %v2315_v45, %v2068_v63  ;;  %v7801_v56 = vpop.permute.xlu0 %1145  ;;  %v951_v45 = vld [vmem:[#allocation3 + $0x70] sm:$0xf]  ;;  %v7833_v51 = vor.u32 %v2031_v25, %v2027_v38  ;;  %v1334_v12 = vrot.slane %v1332_v62, 1  ;;  %v1344_v25 = vshrl.u32 %v6045_v16, 16 }
  0xe0   : > { %v6193_v32 = vcombine.low %v2346_v26, %v2348_v27  ;;  %1891 = vrot.lane.b32.xlu1 %v7784_v14, %s7028_s20  ;;  %v6046_v26 = vcombine.low %v7822_v60, %v922_v9  ;;  %v953_v27 = vld [vmem:[#allocation3 + $0x78] sm:$0xf]  ;;  %v6029_v17 = vcombine.low %v951_v45, %v951_v45  ;;  %v1348_v9 = vrot.slane %v1346_v19, 1  ;;  %v980_v19 = vld [vmem:[#allocation2 + $0x6c] sm:$0x1] }
  0xe1   : > { %2077 = vrot.lane.b32.xlu0 %v7795_v59, %s7029_s18  ;;  %10018 = vst [vmem:[#allocation52_spill] sm:$0xff] %v7833_v51  ;;  %v7852_v62 = vor.u32 %v1341_v57, %v1337_v42  ;;  %v986_v59 = vld [vmem:[#allocation2 + $0x84] sm:$0x1]  ;;  %v1013_v14 = vld [vmem:[#allocation3 + $0x70] sm:$0xf] }
  0xe2   : > { %v7811_v23 = vpop.permute.xlu1 %1147  ;;  %6493 = vmatmul.mubr.msk.bf16.vlgmr.msra.gmra.mrb[0].mxu0 %vm3482_vm0, %v6193_v32  ;;  %v1330_v32 = vshrl.u32 %v6043_v30, 16  ;;  %v1353_v48 = vshll.u32 %v6046_v26, 16  ;;  %v1351_v45 = vshrl.u32 %v6046_v26, 16  ;;  %v7858_v7 = vor.u32 %v1348_v9, %v1344_v25  ;;  %v985_v25 = vld [vmem:[#allocation2 + $0x80] sm:$0xf] }
  0xe3   : > { %v7817_v11 = vpop.permute.xlu0 %1365  ;;  %10020 = vst [vmem:[#allocation54_spill] sm:$0xff] %v7852_v62  ;;  %v6094_v24 = vcombine.low %v985_v25, %v986_v59 }
  0xe4   : > { %2079 = vrot.lane.b32.xlu1 %v7805_v0, %s7029_s18  ;;  %v7847_v38 = vor.u32 %v1334_v12, %v1330_v32  ;;  %10021 = vst [vmem:[#allocation55_spill] sm:$0xff] %v7858_v7  ;;  %v981_v32 = vld [vmem:[#allocation2 + $0x70] sm:$0xf]  ;;  %v6062_v0 = vcombine.low %v985_v25, %v985_v25 }
  0xe5   : > { %1157 = vrot.lane.b32.xlu0 %v6027_v61, %s7022_s25  ;;  %v6030_v61 = vcombine.low %v953_v27, %v953_v27  ;;  %v979_v27 = vld [vmem:[#allocation2 + $0x68] sm:$0xf]  ;;  %v6060_v57 = vcombine.low %v981_v32, %v981_v32  ;;  %v1705_v25 = vshll.u32 %v6094_v24, 16 }
  0xe6   : > { %v7825_v5 = vpop.permute.xlu1 %1367  ;;  %10019 = vst [vmem:[#allocation53_spill] sm:$0xff] %v7847_v38  ;;  %v6059_v12 = vcombine.low %v979_v27, %v979_v27  ;;  %v6091_v9 = vcombine.low %v979_v27, %v980_v19  ;;  %v1015_v19 = vld [vmem:[#allocation3 + $0x78] sm:$0xf] }
  0xe7   : > { %v7830_v63 = vpop.permute.xlu0 %1369 }
  0xe8   : > { %1159 = vrot.lane.b32.xlu1 %v6028_v55, %s7022_s25 }
  0xe9   : > { %2081 = vrot.lane.b32.xlu0 %v7827_v58, %s7029_s18 }
  0xea   : > { %v7838_v47 = vpop.permute.xlu1 %1371 }
  0xeb   : > { %v7840_v13 = vpop.permute.xlu0 %1445 }
  0xec   : > { %2083 = vrot.lane.b32.xlu1 %v7833_v51, %s7029_s18  ;;  %v1355_v51 = vrot.slane %v1353_v48, 1  ;;  %v982_v48 = vld [vmem:[#allocation2 + $0x74] sm:$0x1] }
  0xed   : > { %1161 = vrot.lane.b32.xlu0 %v6029_v17, %s7022_s25  ;;  %v6092_v58 = vcombine.low %v981_v32, %v982_v48  ;;  %v7888_v32 = vcombine.low %v1013_v14, %v1013_v14  ;;  %v1017_v48 = vld [vmem:[#allocation3 + $0x80] sm:$0xf] }
  0xee   : > { %v7845_v55 = vpop.permute.xlu1 %1447  ;;  %v7864_v16 = vor.u32 %v1355_v51, %v1351_v45  ;;  %v7898_v59 = vcombine.low %v1017_v48, %v1017_v48  ;;  %v1703_v48 = vshrl.u32 %v6094_v24, 16 }
  0xef   : > { %v7849_v30 = vpop.permute.xlu0 %1449  ;;  %10024 = vst [vmem:[#allocation58_spill] sm:$0xff] %v7888_v32  ;;  %v1689_v14 = vshrl.u32 %v6092_v58, 16 }
  0xf0   : > { %1163 = vrot.lane.b32.xlu1 %v6030_v61, %s7022_s25  ;;  %10022 = vst [vmem:[#allocation56_spill] sm:$0xff] %v7864_v16  ;;  %v983_v61 = vld [vmem:[#allocation2 + $0x78] sm:$0xf]  ;;  %10026 = vst [vmem:[#allocation60_spill] sm:$0xff] %v7898_v59 }
  0xf1   : > { %1381 = vrot.lane.b32.xlu0 %v7847_v38, %s7024_s10  ;;  %v6061_v45 = vcombine.low %v983_v61, %v983_v61 }
  0xf2   : > { %v7856_v41 = vpop.permute.xlu1 %1451 }
  0xf3   : > { %v7860_v17 = vpop.permute.xlu0 %1525 }
  0xf4   : > { %1383 = vrot.lane.b32.xlu1 %v7852_v62, %s7024_s10  ;;  %v1011_v62 = vld [vmem:[#allocation3 + $0x68] sm:$0xf] }
  0xf5   : > { %1385 = vrot.lane.b32.xlu0 %v7858_v7, %s7024_s10  ;;  %v984_v7 = vld [vmem:[#allocation2 + $0x7c] sm:$0x1]  ;;  %v7883_v27 = vcombine.low %v1011_v62, %v1011_v62  ;;  %v1682_v62 = vshrl.u32 %v6091_v9, 16 }
  0xf6   : > { %v7868_v26 = vpop.permute.xlu1 %1527 }
  0xf7   : > { %v7870_v42 = vpop.permute.xlu0 %1529  ;;  %10023 = vst [vmem:[#allocation57_spill] sm:$0xff] %v7883_v27 }
  0xf8   : > { %1387 = vrot.lane.b32.xlu1 %v7864_v16, %s7024_s10  ;;  %v6093_v16 = vcombine.low %v983_v61, %v984_v7  ;;  %v7894_v61 = vcombine.low %v1015_v19, %v1015_v19 }
  0xf9   : > { %1461 = vrot.lane.b32.xlu0 %v6059_v12, %s7025_s12  ;;  %v1684_v12 = vshll.u32 %v6091_v9, 16 }
  0xfa   : > { %v7875_v51 = vpop.permute.xlu1 %1531  ;;  %10025 = vst [vmem:[#allocation59_spill] sm:$0xff] %v7894_v61  ;;  %v1698_v60 = vshll.u32 %v6093_v16, 16  ;;  %v1696_v19 = vshrl.u32 %v6093_v16, 16  ;;  %v1046_v16 = vld [vmem:[#allocation2 + $0x78] sm:$0xf] }
  0xfb   : > { %v7877_v38 = vpop.permute.xlu0 %1717 }
  0xfc   : > { %1463 = vrot.lane.b32.xlu1 %v6060_v57, %s7025_s12  ;;  %v1691_v57 = vshll.u32 %v6092_v58, 16  ;;  %v1700_v1 = vrot.slane %v1698_v60, 1 }
  0xfd   : > { %1465 = vrot.lane.b32.xlu0 %v6061_v45, %s7025_s12  ;;  %v1686_v45 = vrot.slane %v1684_v12, 1 }
  0xfe   : > { %v7881_v36 = vpop.permute.xlu1 %1719 }
  0xff   : > { %v7885_v31 = vpop.permute.xlu0 %1721  ;;  %v7902_v43 = vor.u32 %v1686_v45, %v1682_v62  ;;  %v1044_v62 = vld [vmem:[#allocation2 + $0x70] sm:$0xf] }
 0x100   : > { %1467 = vrot.lane.b32.xlu1 %v6062_v0, %s7025_s12  ;;  %v1693_v0 = vrot.slane %v1691_v57, 1  ;;  %v7914_v57 = vor.u32 %v1700_v1, %v1696_v19  ;;  %v6897_v19 = vld [vmem:[#allocation2 + $0x28] sm:$0xf] }
 0x101   : > { %1541 = vrot.lane.b32.xlu0 %v7883_v27, %s7023_s26  ;;  %10027 = vst [vmem:[#allocation61_spill] sm:$0xff] %v7902_v43 }
 0x102   : > { %v7892_v7 = vpop.permute.xlu1 %1723  ;;  %v7908_v12 = vor.u32 %v1693_v0, %v1689_v14  ;;  %10029 = vst [vmem:[#allocation63_spill] sm:$0xff] %v7914_v57  ;;  %v6107_v14 = vcombine.low %v1044_v62, %v1044_v62  ;;  %v1045_v0 = vld [vmem:[#allocation2 + $0x74] sm:$0x1] }
 0x103   : > { %v1798_v10 = vpop.permute.xlu0 %1797 }
 0x104   : > { %1543 = vrot.lane.b32.xlu1 %v7888_v32, %s7023_s26  ;;  %10028 = vst [vmem:[#allocation62_spill] sm:$0xff] %v7908_v12  ;;  %v1707_v32 = vrot.slane %v1705_v25, 1  ;;  %v1048_v25 = vld [vmem:[#allocation2 + $0x80] sm:$0xf] }
 0x105   : > { %1545 = vrot.lane.b32.xlu0 %v7894_v61, %s7023_s26 }
 0x106   : > { %v1800_v27 = vpop.permute.xlu1 %1799  ;;  %v7918_v60 = vor.u32 %v1707_v32, %v1703_v48  ;;  %v6108_v32 = vcombine.low %v1046_v16, %v1046_v16 }
 0x107   : > { %v7904_v9 = vpop.permute.xlu0 %1801 }
 0x108   : > { %1547 = vrot.lane.b32.xlu1 %v7898_v59, %s7023_s26  ;;  %10030 = vst [vmem:[#allocation64_spill] sm:$0xff] %v7918_v60  ;;  %v2111_v59 = vsel %vm2093_vm8, %v6897_v19, %v7767_v29 }
 0x109   : > { %1733 = vrot.lane.b32.xlu0 %v7902_v43, %s7026_s13  ;;  %v6896_v43 = vld [vmem:[#allocation2 + $0x20] sm:$0xf] }
 0x10a   : > { %v7912_v58 = vpop.permute.xlu1 %1803  ;;  %v2108_v1 = vsel %vm2093_vm8, %v6896_v43, %v7760_v21  ;;  %v7938_v43 = vcombine.low %v1044_v62, %v1045_v0  ;;  %v6110_v0 = vcombine.low %v1050_v46, %v1050_v46 }
 0x10b   : > { %v1878_v45 = vpop.permute.xlu0 %1877  ;;  %v2152_v48 = vsel %vm2142_vm9, %v2108_v1, %v7817_v11  ;;  %v1079_v1 = vld [vmem:[#allocation3 + $0x78] sm:$0xf] }
 0x10c   : > { %1735 = vrot.lane.b32.xlu1 %v7908_v12, %s7026_s13  ;;  %v1047_v12 = vld [vmem:[#allocation2 + $0x7c] sm:$0x1]  ;;  %v2185_v21 = vsel %vm2175_vm10, %v2152_v48, %v7840_v13 }
 0x10d   : > { %1737 = vrot.lane.b32.xlu0 %v7914_v57, %s7026_s13  ;;  %v2154_v57 = vsel %vm2142_vm9, %v2111_v59, %v7825_v5  ;;  %v2218_v11 = vsel %vm2208_vm11, %v2185_v21, %v7860_v17  ;;  %v1049_v59 = vld [vmem:[#allocation2 + $0x84] sm:$0x1]  ;;  %v7951_v62 = vcombine.low %v1046_v16, %v1047_v12  ;;  %v1081_v12 = vld [vmem:[#allocation3 + $0x80] sm:$0xf]  ;;  %v2036_v16 = vshll.u32 %v7938_v43, 16 }
 0x10e   : > { %v1880_v24 = vpop.permute.xlu1 %1879  ;;  %v2187_v29 = vsel %vm2175_vm10, %v2154_v57, %v7845_v55  ;;  %v2251_v13 = vsel %vm2241_vm12, %v2218_v11, %v7877_v38 }
 0x10f   : > { %v7926_v61 = vpop.permute.xlu0 %1881  ;;  %v2220_v5 = vsel %vm2208_vm11, %v2187_v29, %v7868_v26  ;;  %v2284_v17 = vsel %vm2274_vm13, %v2251_v13, %v1798_v10  ;;  %v7956_v26 = vcombine.low %v1077_v33, %v1077_v33  ;;  %v7960_v29 = vcombine.low %v1048_v25, %v1049_v59  ;;  %v1083_v59 = vld [vmem:[#allocation3 + $0x88] sm:$0xf] }
 0x110   : > { %1739 = vrot.lane.b32.xlu1 %v7918_v60, %s7026_s13  ;;  %v6109_v60 = vcombine.low %v1048_v25, %v1048_v25  ;;  %v2253_v55 = vsel %vm2241_vm12, %v2220_v5, %v7881_v36  ;;  %v2317_v21 = vsel %vm2307_vm14, %v2284_v17, %v1878_v45  ;;  %v7968_v33 = vcombine.low %v1079_v1, %v1079_v1 }
 0x111   : > { %1813 = vrot.lane.b32.xlu0 %v6107_v14, %s7027_s17  ;;  %v1051_v14 = vld [vmem:[#allocation2 + $0x8c] sm:$0x1]  ;;  %v2286_v48 = vsel %vm2274_vm13, %v2253_v55, %v1800_v27  ;;  %v6898_v27 = vld [vmem:[#allocation2 + $0x30] sm:$0xf]  ;;  %v2043_v13 = vshll.u32 %v7951_v62, 16 }
 0x112   : > { %v7941_v19 = vpop.permute.xlu1 %1883  ;;  %v2319_v38 = vsel %vm2307_vm14, %v2286_v48, %v1880_v24  ;;  %v7966_v11 = vcombine.low %v1050_v46, %v1051_v14  ;;  %v2114_v45 = vsel %vm2093_vm8, %v6898_v27, %v7801_v56  ;;  %v6899_v24 = vld [vmem:[#allocation2 + $0x38] sm:$0xf]  ;;  %v2034_v56 = vshrl.u32 %v7938_v43, 16 }
 0x113   : > { %v2070_v57 = vpop.permute.xlu0 %2069  ;;  %v2156_v46 = vsel %vm2142_vm9, %v2114_v45, %v7830_v63  ;;  %v2038_v63 = vrot.slane %v2036_v16, 1 }
 0x114   : > { %1815 = vrot.lane.b32.xlu1 %v6108_v32, %s7027_s17  ;;  %v2350_v32 = vsel %vm2340_vm15, %v2317_v21, %v2070_v57  ;;  %v7982_v57 = vcombine.low %v1081_v12, %v1081_v12 }
 0x115   : > { %1817 = vrot.lane.b32.xlu0 %v6109_v60, %s7027_s17  ;;  %v2117_v60 = vsel %vm2093_vm8, %v6899_v24, %v7811_v23  ;;  %v2189_v23 = vsel %vm2175_vm10, %v2156_v46, %v7849_v30  ;;  %v7999_v30 = vcombine.low %v1083_v59, %v1083_v59  ;;  %v8020_v16 = vor.u32 %v2038_v63, %v2034_v56  ;;  %v926_v24 = vld [vmem:[#allocation3 + $0xc] sm:$0x1]  ;;  %v928_v46 = vld [vmem:[#allocation3 + $0x14] sm:$0x1] }
 0x116   : > { %v2072_v36 = vpop.permute.xlu1 %2071  ;;  %v2158_v55 = vsel %vm2142_vm9, %v2117_v60, %v7838_v47  ;;  %v2050_v47 = vshll.u32 %v7960_v29, 16  ;;  %v2222_v1 = vsel %vm2208_vm11, %v2189_v23, %v7870_v42  ;;  %v2057_v42 = vshll.u32 %v7966_v11, 16  ;;  %v8031_v60 = vld [vmem:[#allocation3] sm:$0xf] }
 0x117   : > { %v2352_v10 = vsel %vm2340_vm15, %v2319_v38, %v2072_v36  ;;  %v7974_v5 = vpop.permute.xlu0 %1149  ;;  %v2191_v14 = vsel %vm2175_vm10, %v2158_v55, %v7856_v41  ;;  %v2041_v41 = vshrl.u32 %v7951_v62, 16  ;;  %v2255_v17 = vsel %vm2241_vm12, %v2222_v1, %v7885_v31  ;;  %v8041_v55 = vld [vmem:[#allocation3 + $0x8] sm:$0xf] }
 0x118   : > { %v6194_v25 = vcombine.low %v2350_v32, %v2352_v10  ;;  %1819 = vrot.lane.b32.xlu1 %v6110_v0, %s7027_s17  ;;  %v2224_v43 = vsel %vm2208_vm11, %v2191_v14, %v7875_v51  ;;  %v2045_v38 = vrot.slane %v2043_v13, 1  ;;  %v2288_v51 = vsel %vm2274_vm13, %v2255_v17, %v7904_v9  ;;  %v924_v10 = vld [vmem:[#allocation3 + $0x4] sm:$0x1]  ;;  %v930_v14 = vld [vmem:[#allocation3 + $0x1c] sm:$0x1] }
 0x119   : > { %1893 = vrot.lane.b32.xlu0 %v7956_v26, %s7028_s20  ;;  %v2257_v48 = vsel %vm2241_vm12, %v2224_v43, %v7892_v7  ;;  %v2048_v62 = vshrl.u32 %v7960_v29, 16  ;;  %v2321_v31 = vsel %vm2307_vm14, %v2288_v51, %v7926_v61  ;;  %v2052_v32 = vrot.slane %v2050_v47, 1  ;;  %v8050_v47 = vld [vmem:[#allocation3 + $0x10] sm:$0xf] }
 0x11a   : > { %v7991_v0 = vpop.permute.xlu1 %1151  ;;  %6496 = vmatprep.mubr.msk.bf16.mxu0 %vm3482_vm0, %v6194_v25  ;;  %v2290_v36 = vsel %vm2274_vm13, %v2257_v48, %v7912_v58  ;;  %v8028_v61 = vor.u32 %v2045_v38, %v2041_v41  ;;  %v2059_v45 = vrot.slane %v2057_v42, 1  ;;  %v6143_v25 = vcombine.low %v8031_v60, %v924_v10  ;;  %v8057_v41 = vld [vmem:[#allocation3 + $0x18] sm:$0xf] }
 0x11b   : > { %v2074_v21 = vpop.permute.xlu0 %2073  ;;  %v2323_v7 = vsel %vm2307_vm14, %v2290_v36, %v7941_v19  ;;  %v2055_v19 = vshrl.u32 %v7966_v11, 16  ;;  %v8039_v13 = vor.u32 %v2052_v32, %v2048_v62  ;;  %v6144_v11 = vcombine.low %v8041_v55, %v926_v24 }
 0x11c   : > { %1895 = vrot.lane.b32.xlu1 %v7968_v33, %s7028_s20  ;;  %v2354_v9 = vsel %vm2340_vm15, %v2321_v31, %v2074_v21  ;;  %v2456_v63 = vshll.u32 %v6143_v25, 16  ;;  %v6145_v1 = vcombine.low %v8050_v47, %v928_v46  ;;  %v6146_v17 = vcombine.low %v8057_v41, %v930_v14 }
 0x11d   : > { %1897 = vrot.lane.b32.xlu0 %v7982_v57, %s7028_s20  ;;  %v8048_v23 = vor.u32 %v2059_v45, %v2055_v19  ;;  %v2463_v21 = vshll.u32 %v6144_v11, 16  ;;  %v2454_v38 = vshrl.u32 %v6143_v25, 16  ;;  %v2461_v31 = vshrl.u32 %v6144_v11, 16  ;;  %v988_v11 = vld [vmem:[#allocation3 + $0xc] sm:$0x1] }
 0x11e   : > { %v2076_v12 = vpop.permute.xlu1 %2075  ;;  %v2458_v42 = vrot.slane %v2456_v63, 1  ;;  %v2470_v51 = vshll.u32 %v6145_v1, 16  ;;  %v2468_v32 = vshrl.u32 %v6145_v1, 16  ;;  %v2475_v19 = vshrl.u32 %v6146_v17, 16  ;;  %v6904_v63 = vld [vmem:[#allocation3 + $0x8] sm:$0xf] }
 0x11f   : > { %v2356_v58 = vsel %vm2340_vm15, %v2323_v7, %v2076_v12  ;;  %v8024_v29 = vpop.permute.xlu0 %1153  ;;  %v2465_v7 = vrot.slane %v2463_v21, 1  ;;  %v2477_v12 = vshll.u32 %v6146_v17, 16  ;;  %v6159_v1 = vcombine.low %v6904_v63, %v988_v11  ;;  %v992_v21 = vld [vmem:[#allocation3 + $0x1c] sm:$0x1] }
 0x120   : > { %v6195_v27 = vcombine.low %v2354_v9, %v2356_v58  ;;  %1899 = vrot.lane.b32.xlu1 %v7999_v30, %s7028_s20  ;;  %v2472_v10 = vrot.slane %v2470_v51, 1  ;;  %v2459_v58 = vor.u32 %v2458_v42, %v2454_v38  ;;  %v6905_v38 = vld [vmem:[#allocation3 + $0x10] sm:$0xf] }
 0x121   : > { %2085 = vrot.lane.b32.xlu0 %v8020_v16, %s7029_s18  ;;  %v2479_v45 = vrot.slane %v2477_v12, 1  ;;  %v6906_v12 = vld [vmem:[#allocation3 + $0x18] sm:$0xf] }
 0x122   : > { %v8036_v59 = vpop.permute.xlu1 %1155  ;;  %6497 = vmatmul.mubr.msk.bf16.gmra.mrb[4].mxu0 %vm3482_vm0, %v6195_v27  ;;  %v2473_v24 = vor.u32 %v2472_v10, %v2468_v32  ;;  %v6161_v32 = vcombine.low %v6906_v12, %v992_v21 }
 0x123   : > { %v8044_v56 = vpop.permute.xlu0 %1373 }
 0x124   : > { %2087 = vrot.lane.b32.xlu1 %v8028_v61, %s7029_s18  ;;  %v2724_v21 = vshrl.u32 %v6161_v32, 16 }
 0x125   : > { %2089 = vrot.lane.b32.xlu0 %v8039_v13, %s7029_s18 }
 0x126   : > { %v8055_v43 = vpop.permute.xlu1 %1375 }
 0x127   : > { %v8060_v48 = vpop.permute.xlu0 %1377 }
 0x128   : > { %2091 = vrot.lane.b32.xlu1 %v8048_v23, %s7029_s18 }
 0x129   : > { %2373 = vrot.lane.b32.xlu0 %v7220_v8, %s7022_s25  ;;  %v2466_v8 = vor.u32 %v2465_v7, %v2461_v31  ;;  %v994_v31 = vld [vmem:[#allocation3 + $0x24] sm:$0x1]  ;;  %v2712_v7 = vshll.u32 %v6159_v1, 16 }
 0x12a   : > { %v8066_v36 = vpop.permute.xlu1 %1379 }
 0x12b   : > { %v8068_v62 = vpop.permute.xlu0 %1453 }
 0x12c   : > { %2375 = vrot.lane.b32.xlu1 %v7253_v18, %s7022_s25 }
 0x12d   : > { %2377 = vrot.lane.b32.xlu0 %v7255_v20, %s7022_s25  ;;  %v2480_v20 = vor.u32 %v2479_v45, %v2475_v19  ;;  %v2710_v45 = vshrl.u32 %v6159_v1, 16 }
 0x12e   : > { %v8074_v9 = vpop.permute.xlu1 %1455 }
 0x12f   : > { %v8076_v27 = vpop.permute.xlu0 %1457 }
 0x130   : > { %2379 = vrot.lane.b32.xlu1 %v7266_v34, %s7022_s25  ;;  %v990_v34 = vld [vmem:[#allocation3 + $0x14] sm:$0x1] }
 0x131   : > { %2565 = vrot.lane.b32.xlu0 %v2459_v58, %s7024_s10  ;;  %v6160_v42 = vcombine.low %v6905_v38, %v990_v34 }
 0x132   : > { %v8081_v18 = vpop.permute.xlu1 %1459 }
 0x133   : > { %v8083_v25 = vpop.permute.xlu0 %1533  ;;  %v2719_v58 = vshll.u32 %v6160_v42, 16  ;;  %v2717_v11 = vshrl.u32 %v6160_v42, 16 }
 0x134   : > { %2567 = vrot.lane.b32.xlu1 %v2466_v8, %s7024_s10  ;;  %v6907_v8 = vld [vmem:[#allocation3 + $0x20] sm:$0xf] }
 0x135   : > { %2569 = vrot.lane.b32.xlu0 %v2473_v24, %s7024_s10  ;;  %v2714_v24 = vrot.slane %v2712_v7, 1  ;;  %v2721_v34 = vrot.slane %v2719_v58, 1 }
 0x136   : > { %v8087_v46 = vpop.permute.xlu1 %1535 }
 0x137   : > { %v8089_v14 = vpop.permute.xlu0 %1537  ;;  %v2715_v1 = vor.u32 %v2714_v24, %v2710_v45  ;;  %v6909_v24 = vld [vmem:[#allocation2 + $0x48] sm:$0xf] }
 0x138   : > { %2571 = vrot.lane.b32.xlu1 %v2480_v20, %s7024_s10  ;;  %v2726_v20 = vshll.u32 %v6161_v32, 16 }
 0x139   : > { %2597 = vrot.lane.b32.xlu0 %v7190_v37, %s7025_s12  ;;  %v6162_v37 = vcombine.low %v6907_v8, %v994_v31  ;;  %v1054_v8 = vld [vmem:[#allocation3 + $0x14] sm:$0x1] }
 0x13a   : > { %v8094_v17 = vpop.permute.xlu1 %1539  ;;  %v2728_v38 = vrot.slane %v2726_v20, 1 }
 0x13b   : > { %v1726_v51 = vpop.permute.xlu0 %1725  ;;  %v2731_v31 = vshrl.u32 %v6162_v37, 16 }
 0x13c   : > { %2599 = vrot.lane.b32.xlu1 %v7192_v44, %s7025_s12 }
 0x13d   : > { %2601 = vrot.lane.b32.xlu0 %v7203_v49, %s7025_s12  ;;  %v2733_v49 = vshll.u32 %v6162_v37, 16  ;;  %v6908_v37 = vld [vmem:[#allocation2 + $0x40] sm:$0xf] }
 0x13e   : > { %v1728_v10 = vpop.permute.xlu1 %1727  ;;  %v2120_v45 = vsel %vm2093_vm8, %v6908_v37, %v7974_v5 }
 0x13f   : > { %v8100_v19 = vpop.permute.xlu0 %1729  ;;  %v2735_v7 = vrot.slane %v2733_v49, 1 }
 0x140   : > { %2603 = vrot.lane.b32.xlu1 %v7211_v2, %s7025_s12 }
 0x141   : > { %2629 = vrot.lane.b32.xlu0 %v7268_v35, %s7023_s26  ;;  %v2722_v35 = vor.u32 %v2721_v34, %v2717_v11  ;;  %v2736_v58 = vor.u32 %v2735_v7, %v2731_v31  ;;  %v1056_v11 = vld [vmem:[#allocation3 + $0x1c] sm:$0x1]  ;;  %v2160_v34 = vsel %vm2142_vm9, %v2120_v45, %v8044_v56  ;;  %v6911_v7 = vld [vmem:[#allocation3 + $0x18] sm:$0xf] }
 0x142   : > { %v8106_v44 = vpop.permute.xlu1 %1731  ;;  %v2193_v5 = vsel %vm2175_vm10, %v2160_v34, %v8068_v62 }
 0x143   : > { %v1806_v63 = vpop.permute.xlu0 %1805  ;;  %v2226_v31 = vsel %vm2208_vm11, %v2193_v5, %v8083_v25 }
 0x144   : > { %2631 = vrot.lane.b32.xlu1 %v7272_v40, %s7023_s26  ;;  %v2729_v40 = vor.u32 %v2728_v38, %v2724_v21  ;;  %v6910_v21 = vld [vmem:[#allocation3 + $0x10] sm:$0xf] }
 0x145   : > { %2633 = vrot.lane.b32.xlu0 %v7281_v50, %s7023_s26  ;;  %v6175_v38 = vcombine.low %v6910_v21, %v1054_v8  ;;  %v1058_v8 = vld [vmem:[#allocation3 + $0x24] sm:$0x1] }
 0x146   : > { %v1808_v2 = vpop.permute.xlu1 %1807 }
 0x147   : > { %v8112_v12 = vpop.permute.xlu0 %1809 }
 0x148   : > { %2635 = vrot.lane.b32.xlu1 %v7287_v53, %s7023_s26  ;;  %v2123_v53 = vsel %vm2093_vm8, %v6909_v24, %v7991_v0 }
 0x149   : > { %2821 = vrot.lane.b32.xlu0 %v2715_v1, %s7026_s13  ;;  %v2162_v49 = vsel %vm2142_vm9, %v2123_v53, %v8055_v43  ;;  %v6176_v43 = vcombine.low %v6911_v7, %v1056_v11  ;;  %v1060_v11 = vld [vmem:[#allocation3 + $0x2c] sm:$0x1] }
 0x14a   : > { %v8117_v42 = vpop.permute.xlu1 %1811  ;;  %v2195_v1 = vsel %vm2175_vm10, %v2162_v49, %v8074_v9 }
 0x14b   : > { %v1886_v32 = vpop.permute.xlu0 %1885  ;;  %v2228_v56 = vsel %vm2208_vm11, %v2195_v1, %v8087_v46  ;;  %v2975_v45 = vshll.u32 %v6176_v43, 16  ;;  %v2973_v1 = vshrl.u32 %v6176_v43, 16 }
 0x14c   : > { %2823 = vrot.lane.b32.xlu1 %v2722_v35, %s7026_s13  ;;  %v2259_v35 = vsel %vm2241_vm12, %v2226_v31, %v1726_v51  ;;  %v6915_v31 = vld [vmem:[#allocation3 + $0x28] sm:$0xf] }
 0x14d   : > { %2825 = vrot.lane.b32.xlu0 %v2729_v40, %s7026_s13  ;;  %v2261_v40 = vsel %vm2241_vm12, %v2228_v56, %v1728_v10  ;;  %v2292_v9 = vsel %vm2274_vm13, %v2259_v35, %v1806_v63 }
 0x14e   : > { %v1888_v50 = vpop.permute.xlu1 %1887  ;;  %v2325_v25 = vsel %vm2307_vm14, %v2292_v9, %v1886_v32 }
 0x14f   : > { %v8125_v20 = vpop.permute.xlu0 %1889 }
 0x150   : > { %2827 = vrot.lane.b32.xlu1 %v2736_v58, %s7026_s13  ;;  %v2968_v58 = vshll.u32 %v6175_v38, 16 }
 0x151   : > { %2853 = vrot.lane.b32.xlu0 %v7322_v39, %s7027_s17  ;;  %v2294_v39 = vsel %vm2274_vm13, %v2261_v40, %v1808_v2  ;;  %v6913_v2 = vld [vmem:[#allocation2 + $0x58] sm:$0xf]  ;;  %v932_v40 = vld [vmem:[#allocation3 + $0x24] sm:$0x1] }
 0x152   : > { %v1892_v0 = vpop.permute.xlu1 %1891  ;;  %v2327_v46 = vsel %vm2307_vm14, %v2294_v39, %v1888_v50  ;;  %v2129_v24 = vsel %vm2093_vm8, %v6913_v2, %v8036_v59  ;;  %v2970_v21 = vrot.slane %v2968_v58, 1 }
 0x153   : > { %v2078_v62 = vpop.permute.xlu0 %2077  ;;  %v2166_v49 = vsel %vm2142_vm9, %v2129_v24, %v8066_v36 }
 0x154   : > { %2855 = vrot.lane.b32.xlu1 %v7329_v52, %s7027_s17  ;;  %v2358_v10 = vsel %vm2340_vm15, %v2325_v25, %v2078_v62  ;;  %v6912_v52 = vld [vmem:[#allocation2 + $0x50] sm:$0xf]  ;;  %v2199_v5 = vsel %vm2175_vm10, %v2166_v49, %v8081_v18  ;;  %v10031_v49 = vld [vmem:[#allocation10_spill] sm:$0xff] }
 0x155   : > { %2857 = vrot.lane.b32.xlu0 %v7341_v3, %s7027_s17  ;;  %v2126_v63 = vsel %vm2093_vm8, %v6912_v52, %v8024_v29  ;;  %v6914_v3 = vld [vmem:[#allocation3 + $0x20] sm:$0xf]  ;;  %v2966_v29 = vshrl.u32 %v6175_v38, 16  ;;  %v2232_v36 = vsel %vm2208_vm11, %v2199_v5, %v8094_v17  ;;  %v2977_v38 = vrot.slane %v2975_v45, 1  ;;  %v938_v52 = vld [vmem:[#allocation3 + $0x3c] sm:$0x1] }
 0x156   : > { %v2080_v51 = vpop.permute.xlu1 %2079  ;;  %v6177_v50 = vcombine.low %v6914_v3, %v1058_v8  ;;  %v2164_v34 = vsel %vm2142_vm9, %v2126_v63, %v8060_v48  ;;  %v8200_v8 = vld [vmem:[#allocation3 + $0x20] sm:$0xf]  ;;  %v6918_v63 = vld [vmem:[#allocation3 + $0x30] sm:$0xf] }
 0x157   : > { %v2360_v37 = vsel %vm2340_vm15, %v2327_v46, %v2080_v51  ;;  %v8158_v53 = vpop.permute.xlu0 %1157  ;;  %v2197_v59 = vsel %vm2175_vm10, %v2164_v34, %v8076_v27  ;;  %v6178_v27 = vcombine.low %v6915_v31, %v1060_v11  ;;  %v936_v46 = vld [vmem:[#allocation3 + $0x34] sm:$0x1] }
 0x158   : > { %v6196_v32 = vcombine.low %v2358_v10, %v2360_v37  ;;  %2859 = vrot.lane.b32.xlu1 %v7344_v6, %s7027_s17  ;;  %v2230_v48 = vsel %vm2208_vm11, %v2197_v59, %v8089_v14  ;;  %v2982_v17 = vshll.u32 %v6177_v50, 16  ;;  %v8207_v37 = vld [vmem:[#allocation3 + $0x28] sm:$0xf]  ;;  %v6149_v2 = vcombine.low %v6918_v63, %v936_v46  ;;  %v10035_v63 = vld [vmem:[#allocation14_spill] sm:$0xff] }
 0x159   : > { %2885 = vrot.lane.b32.xlu0 %v7357_v15, %s7028_s20  ;;  %v2263_v18 = vsel %vm2241_vm12, %v2230_v48, %v8100_v19  ;;  %v2265_v15 = vsel %vm2241_vm12, %v2232_v36, %v8106_v44  ;;  %v2971_v44 = vor.u32 %v2970_v21, %v2966_v29  ;;  %v2987_v51 = vshrl.u32 %v6178_v27, 16 }
 0x15a   : > { %v8172_v6 = vpop.permute.xlu1 %1159  ;;  %6500 = vmatprep.mubr.msk.bf16.mxu0 %vm3482_vm0, %v6196_v32  ;;  %v2296_v7 = vsel %vm2274_vm13, %v2263_v18, %v8112_v12  ;;  %v2298_v14 = vsel %vm2274_vm13, %v2265_v15, %v8117_v42  ;;  %v2989_v12 = vshll.u32 %v6178_v27, 16  ;;  %v2978_v42 = vor.u32 %v2977_v38, %v2973_v1  ;;  %v10032_v27 = vld [vmem:[#allocation11_spill] sm:$0xff] }
 0x15b   : > { %v2082_v56 = vpop.permute.xlu0 %2081  ;;  %v2329_v43 = vsel %vm2307_vm14, %v2296_v7, %v8125_v20  ;;  %v2331_v35 = vsel %vm2307_vm14, %v2298_v14, %v1892_v0  ;;  %v934_v20 = vld [vmem:[#allocation3 + $0x2c] sm:$0x1]  ;;  %v2980_v0 = vshrl.u32 %v6177_v50, 16  ;;  %v2984_v58 = vrot.slane %v2982_v17, 1  ;;  %v6919_v50 = vld [vmem:[#allocation3 + $0x38] sm:$0xf] }
 0x15c   : > { %2887 = vrot.lane.b32.xlu1 %v7361_v22, %s7028_s20  ;;  %v2362_v22 = vsel %vm2340_vm15, %v2329_v43, %v2082_v56  ;;  %v2991_v10 = vrot.slane %v2989_v12, 1  ;;  %v6150_v11 = vcombine.low %v6919_v50, %v938_v52  ;;  %v2496_v56 = vshrl.u32 %v6149_v2, 16  ;;  %v10033_v17 = vld [vmem:[#allocation12_spill] sm:$0xff] }
 0x15d   : > { %2889 = vrot.lane.b32.xlu0 %v7372_v54, %s7028_s20  ;;  %v6147_v54 = vcombine.low %v8200_v8, %v932_v40  ;;  %v2985_v32 = vor.u32 %v2984_v58, %v2980_v0  ;;  %v6920_v0 = vld [vmem:[#allocation3 + $0x28] sm:$0xf] }
 0x15e   : > { %v2084_v19 = vpop.permute.xlu1 %2083  ;;  %v2992_v29 = vor.u32 %v2991_v10, %v2987_v51  ;;  %v2505_v31 = vshll.u32 %v6150_v11, 16  ;;  %v1000_v51 = vld [vmem:[#allocation3 + $0x3c] sm:$0x1]  ;;  %v6921_v10 = vld [vmem:[#allocation3 + $0x30] sm:$0xf] }
 0x15f   : > { %v2364_v62 = vsel %vm2340_vm15, %v2331_v35, %v2084_v19  ;;  %v8196_v39 = vpop.permute.xlu0 %1161  ;;  %v2484_v3 = vshll.u32 %v6147_v54, 16  ;;  %v2482_v5 = vshrl.u32 %v6147_v54, 16  ;;  %v2503_v35 = vshrl.u32 %v6150_v11, 16  ;;  %v10034_v54 = vld [vmem:[#allocation13_spill] sm:$0xff]  ;;  %v10036_v11 = vld [vmem:[#allocation15_spill] sm:$0xff] }
 0x160   : > { %v6197_v9 = vcombine.low %v2362_v22, %v2364_v62  ;;  %2891 = vrot.lane.b32.xlu1 %v7377_v4, %s7028_s20  ;;  %v6148_v4 = vcombine.low %v8207_v37, %v934_v20  ;;  %v2507_v19 = vrot.slane %v2505_v31, 1  ;;  %v998_v20 = vld [vmem:[#allocation3 + $0x34] sm:$0x1] }
 0x161   : > { %3077 = vrot.lane.b32.xlu0 %v2971_v44, %s7029_s18  ;;  %v2486_v1 = vrot.slane %v2484_v3, 1  ;;  %v6922_v3 = vld [vmem:[#allocation3 + $0x38] sm:$0xf] }
 0x162   : > { %v8204_v25 = vpop.permute.xlu1 %1163  ;;  %6501 = vmatmul.mubr.msk.bf16.gmra.mrb[8].mxu0 %vm3482_vm0, %v6197_v9  ;;  %v2491_v21 = vshll.u32 %v6148_v4, 16  ;;  %v2489_v36 = vshrl.u32 %v6148_v4, 16  ;;  %v2508_v62 = vor.u32 %v2507_v19, %v2503_v35  ;;  %v996_v9 = vld [vmem:[#allocation3 + $0x2c] sm:$0x1]  ;;  %v6164_v4 = vcombine.low %v6921_v10, %v998_v20 }
 0x163   : > { %v8210_v45 = vpop.permute.xlu0 %1381  ;;  %v2487_v15 = vor.u32 %v2486_v1, %v2482_v5  ;;  %v6163_v58 = vcombine.low %v6920_v0, %v996_v9  ;;  %v6165_v50 = vcombine.low %v6922_v3, %v1000_v51  ;;  %v10039_v35 = vld [vmem:[#allocation18_spill] sm:$0xff]  ;;  %v10041_v51 = vld [vmem:[#allocation20_spill] sm:$0xff] }
 0x164   : > { %3079 = vrot.lane.b32.xlu1 %v2978_v42, %s7029_s18  ;;  %v2493_v38 = vrot.slane %v2491_v21, 1  ;;  %v6923_v21 = vld [vmem:[#allocation3 + $0x40] sm:$0xf] }
 0x165   : > { %2381 = vrot.lane.b32.xlu0 %v7393_v28, %s7022_s25  ;;  %v2498_v28 = vshll.u32 %v6149_v2, 16  ;;  %v1002_v2 = vld [vmem:[#allocation3 + $0x44] sm:$0x1]  ;;  %v2754_v31 = vshll.u32 %v6165_v50, 16  ;;  %v2752_v19 = vshrl.u32 %v6165_v50, 16 }
 0x166   : > { %v8215_v24 = vpop.permute.xlu1 %1383  ;;  %v2494_v43 = vor.u32 %v2493_v38, %v2489_v36  ;;  %v6166_v5 = vcombine.low %v6923_v21, %v1002_v2  ;;  %v2738_v36 = vshrl.u32 %v6163_v58, 16  ;;  %v1062_v2 = vld [vmem:[#allocation3 + $0x34] sm:$0x1]  ;;  %v1064_v21 = vld [vmem:[#allocation3 + $0x3c] sm:$0x1] }
 0x167   : > { %v8217_v34 = vpop.permute.xlu0 %1385  ;;  %v2500_v7 = vrot.slane %v2498_v28, 1  ;;  %v10037_v28 = vld [vmem:[#allocation16_spill] sm:$0xff] }
 0x168   : > { %2383 = vrot.lane.b32.xlu1 %v10031_v49, %s7022_s25  ;;  %v2759_v0 = vshrl.u32 %v6166_v5, 16 }
 0x169   : > { %3081 = vrot.lane.b32.xlu0 %v2985_v32, %s7029_s18  ;;  %v2501_v40 = vor.u32 %v2500_v7, %v2496_v56  ;;  %v2740_v32 = vshll.u32 %v6163_v58, 16  ;;  %v2745_v56 = vshrl.u32 %v6164_v4, 16 }
 0x16a   : > { %v8222_v59 = vpop.permute.xlu1 %1387 }
 0x16b   : > { %v8224_v48 = vpop.permute.xlu0 %1461  ;;  %v2742_v38 = vrot.slane %v2740_v32, 1 }
 0x16c   : > { %3083 = vrot.lane.b32.xlu1 %v2992_v29, %s7029_s18  ;;  %v2747_v29 = vshll.u32 %v6164_v4, 16 }
 0x16d   : > { %2385 = vrot.lane.b32.xlu0 %v10032_v27, %s7022_s25  ;;  %v10038_v27 = vld [vmem:[#allocation17_spill] sm:$0xff]  ;;  %v2743_v20 = vor.u32 %v2742_v38, %v2738_v36  ;;  %v10043_v36 = vld [vmem:[#allocation48_spill] sm:$0xff] }
 0x16e   : > { %v8229_v18 = vpop.permute.xlu1 %1463  ;;  %v2749_v7 = vrot.slane %v2747_v29, 1  ;;  %v2135_v38 = vsel %vm2093_vm8, %v10043_v36, %v8172_v6  ;;  %v1068_v36 = vld [vmem:[#allocation3 + $0x4c] sm:$0x1] }
 0x16f   : > { %v8231_v14 = vpop.permute.xlu0 %1465 }
 0x170   : > { %2387 = vrot.lane.b32.xlu1 %v10033_v17, %s7022_s25  ;;  %v2761_v17 = vshll.u32 %v6166_v5, 16  ;;  %v2750_v10 = vor.u32 %v2749_v7, %v2745_v56  ;;  %v10042_v5 = vld [vmem:[#allocation46_spill] sm:$0xff]  ;;  %v2170_v56 = vsel %vm2142_vm9, %v2135_v38, %v8215_v24 }
 0x171   : > { %2573 = vrot.lane.b32.xlu0 %v2487_v15, %s7024_s10 }
 0x172   : > { %v8236_v44 = vpop.permute.xlu1 %1467  ;;  %v2763_v58 = vrot.slane %v2761_v17, 1  ;;  %v2203_v17 = vsel %vm2175_vm10, %v2170_v56, %v8229_v18  ;;  %v10046_v18 = vld [vmem:[#allocation50_spill] sm:$0xff]  ;;  %v6926_v56 = vld [vmem:[#allocation3 + $0x40] sm:$0xf] }
 0x173   : > { %v8238_v22 = vpop.permute.xlu0 %1541 }
 0x174   : > { %2575 = vrot.lane.b32.xlu1 %v2494_v43, %s7024_s10  ;;  %v2764_v3 = vor.u32 %v2763_v58, %v2759_v0 }
 0x175   : > { %2577 = vrot.lane.b32.xlu0 %v2501_v40, %s7024_s10  ;;  %v2756_v40 = vrot.slane %v2754_v31, 1 }
 0x176   : > { %v8242_v12 = vpop.permute.xlu1 %1543 }
 0x177   : > { %v8244_v42 = vpop.permute.xlu0 %1545  ;;  %v2236_v24 = vsel %vm2208_vm11, %v2203_v17, %v8242_v12 }
 0x178   : > { %2579 = vrot.lane.b32.xlu1 %v2508_v62, %s7024_s10  ;;  %v10040_v62 = vld [vmem:[#allocation19_spill] sm:$0xff] }
 0x179   : > { %2605 = vrot.lane.b32.xlu0 %v10034_v54, %s7025_s12 }
 0x17a   : > { %v8249_v46 = vpop.permute.xlu1 %1547 }
 0x17b   : > { %v8251_v52 = vpop.permute.xlu0 %1733 }
 0x17c   : > { %2607 = vrot.lane.b32.xlu1 %v10035_v63, %s7025_s12  ;;  %v2757_v63 = vor.u32 %v2756_v40, %v2752_v19  ;;  %v6925_v19 = vld [vmem:[#allocation3 + $0x38] sm:$0xf] }
 0x17d   : > { %2609 = vrot.lane.b32.xlu0 %v10036_v11, %s7025_s12  ;;  %v6924_v11 = vld [vmem:[#allocation3 + $0x30] sm:$0xf]  ;;  %v6180_v40 = vcombine.low %v6925_v19, %v1064_v21 }
 0x17e   : > { %v1736_v49 = vpop.permute.xlu1 %1735  ;;  %v8274_v29 = vcombine.low %v6924_v11, %v1062_v2  ;;  %v1066_v11 = vld [vmem:[#allocation3 + $0x44] sm:$0x1] }
 0x17f   : > { %v8257_v1 = vpop.permute.xlu0 %1737  ;;  %v2269_v58 = vsel %vm2241_vm12, %v2236_v24, %v1736_v49 }
 0x180   : > { %2611 = vrot.lane.b32.xlu1 %v10037_v28, %s7025_s12  ;;  %v2132_v28 = vsel %vm2093_vm8, %v10042_v5, %v8158_v53  ;;  %v10044_v53 = vld [vmem:[#allocation21_spill] sm:$0xff]  ;;  %v2996_v6 = vshll.u32 %v8274_v29, 16 }
 0x181   : > { %2637 = vrot.lane.b32.xlu0 %v10038_v27, %s7023_s26  ;;  %v2168_v27 = vsel %vm2142_vm9, %v2132_v28, %v8210_v45  ;;  %v10049_v28 = vld [vmem:[#allocation24_spill] sm:$0xff] }
 0x182   : > { %v8263_v15 = vpop.permute.xlu1 %1739  ;;  %v2201_v7 = vsel %vm2175_vm10, %v2168_v27, %v8224_v48  ;;  %v2998_v27 = vrot.slane %v2996_v6, 1 }
 0x183   : > { %v1814_v43 = vpop.permute.xlu0 %1813  ;;  %v2234_v45 = vsel %vm2208_vm11, %v2201_v7, %v8238_v22  ;;  %v6181_v7 = vcombine.low %v6926_v56, %v1066_v11 }
 0x184   : > { %2639 = vrot.lane.b32.xlu1 %v10039_v35, %s7023_s26  ;;  %v2267_v0 = vsel %vm2241_vm12, %v2234_v45, %v8251_v52 }
 0x185   : > { %2641 = vrot.lane.b32.xlu0 %v10040_v62, %s7023_s26  ;;  %v10045_v62 = vld [vmem:[#allocation49_spill] sm:$0xff] }
 0x186   : > { %v1816_v9 = vpop.permute.xlu1 %1815  ;;  %v2138_v48 = vsel %vm2093_vm8, %v10045_v62, %v8196_v39  ;;  %v2300_v39 = vsel %vm2274_vm13, %v2267_v0, %v1814_v43  ;;  %v940_v0 = vld [vmem:[#allocation3 + $0x44] sm:$0x1] }
 0x187   : > { %v1818_v54 = vpop.permute.xlu0 %1817  ;;  %v2172_v22 = vsel %vm2142_vm9, %v2138_v48, %v8217_v34  ;;  %v10052_v48 = vld [vmem:[#allocation27_spill] sm:$0xff] }
 0x188   : > { %2643 = vrot.lane.b32.xlu1 %v10041_v51, %s7023_s26 }
 0x189   : > { %2829 = vrot.lane.b32.xlu0 %v2743_v20, %s7026_s13  ;;  %v2141_v20 = vsel %vm2093_vm8, %v10046_v18, %v8204_v25  ;;  %v2205_v25 = vsel %vm2175_vm10, %v2172_v22, %v8231_v14  ;;  %v942_v22 = vld [vmem:[#allocation3 + $0x4c] sm:$0x1] }
 0x18a   : > { %v1820_v4 = vpop.permute.xlu1 %1819  ;;  %v2174_v12 = vsel %vm2142_vm9, %v2141_v20, %v8222_v59  ;;  %v2238_v59 = vsel %vm2208_vm11, %v2205_v25, %v8244_v42  ;;  %v2994_v42 = vshrl.u32 %v8274_v29, 16 }
 0x18b   : > { %v1894_v32 = vpop.permute.xlu0 %1893  ;;  %v2207_v52 = vsel %vm2175_vm10, %v2174_v12, %v8236_v44  ;;  %v3003_v44 = vshll.u32 %v6180_v40, 16  ;;  %v3008_v12 = vshrl.u32 %v6181_v7, 16 }
 0x18c   : > { %2831 = vrot.lane.b32.xlu1 %v2750_v10, %s7026_s13  ;;  %v10047_v10 = vld [vmem:[#allocation22_spill] sm:$0xff]  ;;  %v2333_v49 = vsel %vm2307_vm14, %v2300_v39, %v1894_v32  ;;  %v2240_v43 = vsel %vm2208_vm11, %v2207_v52, %v8249_v46  ;;  %v2271_v32 = vsel %vm2241_vm12, %v2238_v59, %v8257_v1  ;;  %v2999_v20 = vor.u32 %v2998_v27, %v2994_v42 }
 0x18d   : > { %2833 = vrot.lane.b32.xlu0 %v2757_v63, %s7026_s13  ;;  %v2302_v63 = vsel %vm2274_vm13, %v2269_v58, %v1816_v9  ;;  %v2304_v46 = vsel %vm2274_vm13, %v2271_v32, %v1818_v54  ;;  %v3001_v54 = vshrl.u32 %v6180_v40, 16  ;;  %v3005_v45 = vrot.slane %v3003_v44, 1  ;;  %v10054_v44 = vld [vmem:[#allocation29_spill] sm:$0xff] }
 0x18e   : > { %v1896_v50 = vpop.permute.xlu1 %1895 }
 0x18f   : > { %v1898_v31 = vpop.permute.xlu0 %1897  ;;  %v2335_v2 = vsel %vm2307_vm14, %v2302_v63, %v1896_v50  ;;  %v2273_v50 = vsel %vm2241_vm12, %v2240_v43, %v8263_v15  ;;  %v10050_v15 = vld [vmem:[#allocation25_spill] sm:$0xff]  ;;  %v8358_v63 = vld [vmem:[#allocation3 + $0x40] sm:$0xf]  ;;  %v946_v43 = vld [vmem:[#allocation3 + $0x5c] sm:$0x1] }
 0x190   : > { %2835 = vrot.lane.b32.xlu1 %v2764_v3, %s7026_s13  ;;  %v10048_v3 = vld [vmem:[#allocation23_spill] sm:$0xff]  ;;  %v2306_v38 = vsel %vm2274_vm13, %v2273_v50, %v1820_v4  ;;  %v2337_v1 = vsel %vm2307_vm14, %v2304_v46, %v1898_v31  ;;  %v6927_v4 = vld [vmem:[#allocation3 + $0x48] sm:$0xf]  ;;  %v10051_v31 = vld [vmem:[#allocation26_spill] sm:$0xff]  ;;  %v6151_v25 = vcombine.low %v8358_v63, %v940_v0 }
 0x191   : > { %2861 = vrot.lane.b32.xlu0 %v10044_v53, %s7027_s17  ;;  %v6182_v6 = vcombine.low %v6927_v4, %v1068_v36  ;;  %v10055_v36 = vld [vmem:[#allocation30_spill] sm:$0xff] }
 0x192   : > { %v1900_v35 = vpop.permute.xlu1 %1899  ;;  %v2510_v56 = vshrl.u32 %v6151_v25, 16 }
 0x193   : > { %v2086_v51 = vpop.permute.xlu0 %2085  ;;  %v2339_v17 = vsel %vm2307_vm14, %v2306_v38, %v1900_v35  ;;  %v3010_v35 = vshll.u32 %v6181_v7, 16  ;;  %v3017_v40 = vshll.u32 %v6182_v6, 16 }
 0x194   : > { %2863 = vrot.lane.b32.xlu1 %v10047_v10, %s7027_s17  ;;  %v2366_v14 = vsel %vm2340_vm15, %v2333_v49, %v2086_v51  ;;  %v10053_v51 = vld [vmem:[#allocation28_spill] sm:$0xff]  ;;  %v3006_v10 = vor.u32 %v3005_v45, %v3001_v54  ;;  %v944_v49 = vld [vmem:[#allocation3 + $0x54] sm:$0x1] }
 0x195   : > { %2865 = vrot.lane.b32.xlu0 %v10048_v3, %s7027_s17  ;;  %v3012_v39 = vrot.slane %v3010_v35, 1  ;;  %v3019_v3 = vrot.slane %v3017_v40, 1 }
 0x196   : > { %v2088_v34 = vpop.permute.xlu1 %2087 }
 0x197   : > { %v2368_v9 = vsel %vm2340_vm15, %v2335_v2, %v2088_v34  ;;  %v2090_v5 = vpop.permute.xlu0 %2089  ;;  %v3015_v2 = vshrl.u32 %v6182_v6, 16  ;;  %v8364_v34 = vld [vmem:[#allocation3 + $0x48] sm:$0xf]  ;;  %v3013_v50 = vor.u32 %v3012_v39, %v3008_v12 }
 0x198   : > { %v6198_v21 = vcombine.low %v2366_v14, %v2368_v9  ;;  %2867 = vrot.lane.b32.xlu1 %v10049_v28, %s7027_s17  ;;  %v2370_v29 = vsel %vm2340_vm15, %v2337_v1, %v2090_v5  ;;  %v6152_v11 = vcombine.low %v8364_v34, %v942_v22  ;;  %v6930_v14 = vld [vmem:[#allocation3 + $0x50] sm:$0xf]  ;;  %v8374_v5 = vld [vmem:[#allocation3 + $0x58] sm:$0xf] }
 0x199   : > { %2893 = vrot.lane.b32.xlu0 %v10050_v15, %s7028_s20  ;;  %v6153_v9 = vcombine.low %v6930_v14, %v944_v49  ;;  %v6154_v28 = vcombine.low %v8374_v5, %v946_v43  ;;  %v3020_v46 = vor.u32 %v3019_v3, %v3015_v2  ;;  %v1004_v2 = vld [vmem:[#allocation3 + $0x4c] sm:$0x1] }
 0x19a   : > { %v2092_v53 = vpop.permute.xlu1 %2091  ;;  %6504 = vmatprep.mubr.msk.bf16.mxu0 %vm3482_vm0, %v6198_v21  ;;  %v2512_v21 = vshll.u32 %v6151_v25, 16  ;;  %v2519_v38 = vshll.u32 %v6152_v11, 16  ;;  %v2517_v15 = vshrl.u32 %v6152_v11, 16 }
 0x19b   : > { %v2372_v19 = vsel %vm2340_vm15, %v2339_v17, %v2092_v53  ;;  %v8345_v62 = vpop.permute.xlu0 %2373  ;;  %v2526_v1 = vshll.u32 %v6153_v9, 16  ;;  %v2524_v4 = vshrl.u32 %v6153_v9, 16 }
 0x19c   : > { %v6199_v24 = vcombine.low %v2370_v29, %v2372_v19  ;;  %2895 = vrot.lane.b32.xlu1 %v10051_v31, %s7028_s20  ;;  %v2514_v7 = vrot.slane %v2512_v21, 1  ;;  %v2521_v53 = vrot.slane %v2519_v38, 1  ;;  %v2533_v29 = vshll.u32 %v6154_v28, 16  ;;  %v10056_v19 = vld [vmem:[#allocation31_spill] sm:$0xff]  ;;  %v10057_v31 = vld [vmem:[#allocation32_spill] sm:$0xff] }
 0x19d   : > { %2897 = vrot.lane.b32.xlu0 %v10052_v48, %s7028_s20  ;;  %v2528_v6 = vrot.slane %v2526_v1, 1  ;;  %v2531_v48 = vshrl.u32 %v6154_v28, 16 }
 0x19e   : > { %v8351_v18 = vpop.permute.xlu1 %2375  ;;  %6505 = vmatmul.mubr.msk.bf16.gmra.mrb[12].mxu0 %vm3482_vm0, %v6199_v24  ;;  %v2515_v45 = vor.u32 %v2514_v7, %v2510_v56  ;;  %v2522_v35 = vor.u32 %v2521_v53, %v2517_v15  ;;  %v10058_v7 = vld [vmem:[#allocation33_spill] sm:$0xff]  ;;  %v1008_v15 = vld [vmem:[#allocation3 + $0x5c] sm:$0x1] }
 0x19f   : > { %v8354_v58 = vpop.permute.xlu0 %2377  ;;  %v2529_v40 = vor.u32 %v2528_v6, %v2524_v4 }
 0x1a0   : > { %2899 = vrot.lane.b32.xlu1 %v10053_v51, %s7028_s20  ;;  %v8401_v51 = vld [vmem:[%s9905_s5] ss:$0 sm:$0xff] }
 0x1a1   : > { %3085 = vrot.lane.b32.xlu0 %v2999_v20, %s7029_s18  ;;  %v2535_v20 = vrot.slane %v2533_v29, 1 }
 0x1a2   : > { %v8362_v52 = vpop.permute.xlu1 %2379 }
 0x1a3   : > { %v8367_v59 = vpop.permute.xlu0 %2565  ;;  %v2536_v22 = vor.u32 %v2535_v20, %v2531_v48  ;;  %v10059_v48 = vld [vmem:[#allocation34_spill] sm:$0xff]  ;;  %v1010_v20 = vld [vmem:[#allocation3 + $0x64] sm:$0x1] }
 0x1a4   : > { %3087 = vrot.lane.b32.xlu1 %v3006_v10, %s7029_s18 }
 0x1a5   : > { %2389 = vrot.lane.b32.xlu0 %v10054_v44, %s7022_s25 }
 0x1a6   : > { %v8372_v32 = vpop.permute.xlu1 %2567 }
 0x1a7   : > { %v8377_v42 = vpop.permute.xlu0 %2569 }
 0x1a8   : > { %2391 = vrot.lane.b32.xlu1 %v10055_v36, %s7022_s25  ;;  %v6932_v36 = vld [vmem:[#allocation3 + $0x48] sm:$0xf] }
 0x1a9   : > { %3089 = vrot.lane.b32.xlu0 %v3013_v50, %s7029_s18  ;;  %v1006_v50 = vld [vmem:[#allocation3 + $0x54] sm:$0x1] }
 0x1aa   : > { %v8382_v27 = vpop.permute.xlu1 %2571 }
 0x1ab   : > { %v8384_v17 = vpop.permute.xlu0 %2597 }
 0x1ac   : > { %3091 = vrot.lane.b32.xlu1 %v3020_v46, %s7029_s18  ;;  %v6167_v46 = vcombine.low %v6932_v36, %v1004_v2 }
 0x1ad   : > { %2393 = vrot.lane.b32.xlu0 %v10056_v19, %s7022_s25 }
 0x1ae   : > { %v8389_v54 = vpop.permute.xlu1 %2599 }
 0x1af   : > { %v8391_v24 = vpop.permute.xlu0 %2601 }
 0x1b0   : > { %2395 = vrot.lane.b32.xlu1 %v10057_v31, %s7022_s25 }
 0x1b1   : > { %2581 = vrot.lane.b32.xlu0 %v2515_v45, %s7024_s10  ;;  %v6933_v45 = vld [vmem:[#allocation3 + $0x50] sm:$0xf] }
 0x1b2   : > { %v8396_v0 = vpop.permute.xlu1 %2603  ;;  %v6168_v4 = vcombine.low %v6933_v45, %v1006_v50  ;;  %v10063_v45 = vld [vmem:[#allocation38_spill] sm:$0xff] }
 0x1b3   : > { %v8403_v10 = vpop.permute.xlu0 %2629 }
 0x1b4   : > { %2583 = vrot.lane.b32.xlu1 %v2522_v35, %s7024_s10 }
 0x1b5   : > { %v6494_v12 = vpop.f32.mrb[0].mxu0  ;;  %2585 = vrot.lane.b32.xlu0 %v2529_v40, %s7024_s10 }
 0x1b6   : > { %v3578_v39 = vadd.f32 %v6494_v12, %v8401_v51  ;;  %v8408_v25 = vpop.permute.xlu1 %2631  ;;  %v3569_v49 = vpop.f32.mrb[1].mxu0  ;;  %v2768_v12 = vshll.u32 %v6167_v46, 16 }
 0x1b7   : > { %v3570_v3 = vadd.f32 %v8401_v51, %v3569_v49  ;;  %v6495_v11 = vpop.f32.mrb[2].mxu0  ;;  %v8411_v14 = vpop.permute.xlu0 %2633 }
 0x1b8   : > { %vm3698_vm1 = vcmp.ge.f32.partialorder %v3578_v39, 0.0  ;;  %v3730_v43 = vmul.f32 0.1, %v3578_v39  ;;  %v3581_v9 = vadd.f32 %v6495_v11, %v8401_v51  ;;  %2587 = vrot.lane.b32.xlu1 %v2536_v22, %s7024_s10  ;;  %v3572_v44 = vpop.f32.mrb[3].mxu0  ;;  %v2770_v36 = vrot.slane %v2768_v12, 1 }
 0x1b9   : > { %vm3696_vm3 = vcmp.ge.f32.partialorder %v3570_v3, 0.0  ;;  %v3728_v21 = vmul.f32 0.1, %v3570_v3  ;;  %v3573_v28 = vadd.f32 %v8401_v51, %v3572_v44  ;;  %2613 = vrot.lane.b32.xlu0 %v10058_v7, %s7025_s12 }
 0x1ba   : > { %v3762_v38 = vsel %vm3698_vm1, %v3578_v39, %v3730_v43  ;;  %vm3699_vm6 = vcmp.ge.f32.partialorder %v3581_v9, 0.0  ;;  %v3731_v56 = vmul.f32 0.1, %v3581_v9  ;;  %v8418_v1 = vpop.permute.xlu1 %2635  ;;  %v6934_v39 = vld [vmem:[#allocation3 + $0x58] sm:$0xf]  ;;  %v2775_v43 = vshll.u32 %v6168_v4, 16 }
 0x1bb   : > { %v6402_v53 = vpack.c.bf16 %v3762_v38, %v3762_v38  ;;  %v3760_v29 = vsel %vm3696_vm3, %v3570_v3, %v3728_v21  ;;  %vm3697_vm7 = vcmp.ge.f32.partialorder %v3573_v28, 0.0  ;;  %v3729_v19 = vmul.f32 0.1, %v3573_v28  ;;  %v8420_v35 = vpop.permute.xlu0 %2821  ;;  %v10060_v3 = vld [vmem:[#allocation35_spill] sm:$0xff]  ;;  %v10061_v21 = vld [vmem:[#allocation36_spill] sm:$0xff] }
 0x1bc   : > { %v6400_v6 = vpack.c.bf16 %v3760_v29, %v3760_v29  ;;  %v3763_v31 = vsel %vm3699_vm6, %v3581_v9, %v3731_v56  ;;  %2615 = vrot.lane.b32.xlu1 %v10059_v48, %s7025_s12  ;;  %v6169_v49 = vcombine.low %v6934_v39, %v1008_v15  ;;  %v6935_v9 = vld [vmem:[#allocation3 + $0x60] sm:$0xf]  ;;  %v10062_v56 = vld [vmem:[#allocation37_spill] sm:$0xff]  ;;  %v2773_v15 = vshrl.u32 %v6168_v4, 16  ;;  %v10064_v48 = vld [vmem:[#allocation39_spill] sm:$0xff] }
 0x1bd   : > { %3907 = vst.msk [vmem:[#allocation5 + $0xc] sm:$0xf] %vm9967_vm4, %v6402_v53  ;;  %v6403_v40 = vpack.c.bf16 %v3763_v31, %v3763_v31  ;;  %v3761_v22 = vsel %vm3697_vm7, %v3573_v28, %v3729_v19  ;;  %2617 = vrot.lane.b32.xlu0 %v10060_v3, %s7025_s12  ;;  %v6170_v44 = vcombine.low %v6935_v9, %v1010_v20  ;;  %v2766_v28 = vshrl.u32 %v6167_v46, 16  ;;  %v10065_v39 = vld [vmem:[#allocation40_spill] sm:$0xff] }
 0x1be   : > { %3905 = vst.msk [vmem:[#allocation5 + $0x4] sm:$0xf] %vm9967_vm4, %v6400_v6  ;;  %v6401_v2 = vpack.c.bf16 %v3761_v22, %v3761_v22  ;;  %v2824_v11 = vpop.permute.xlu1 %2823  ;;  %v2782_v38 = vshll.u32 %v6169_v49, 16  ;;  %v2777_v53 = vrot.slane %v2775_v43, 1  ;;  %v2780_v6 = vshrl.u32 %v6169_v49, 16 }
 0x1bf   : > { %3908 = vst.msk [vmem:[#allocation5 + $0x10] sm:$0xf] %vm9967_vm4, %v6403_v40  ;;  %v8430_v50 = vpop.permute.xlu0 %2825  ;;  %v2789_v29 = vshll.u32 %v6170_v44, 16  ;;  %v2771_v20 = vor.u32 %v2770_v36, %v2766_v28  ;;  %v2787_v40 = vshrl.u32 %v6170_v44, 16  ;;  %v1070_v44 = vld [vmem:[#allocation3 + $0x54] sm:$0x1]  ;;  %v3114_v28 = vsel %vm2093_vm8, %v8041_v55, %v8351_v18 }
 0x1c0   : > { %3906 = vst.msk [vmem:[#allocation5 + $0x8] sm:$0xf] %vm9967_vm4, %v6401_v2  ;;  %2619 = vrot.lane.b32.xlu1 %v10061_v21, %s7025_s12  ;;  %v2784_v31 = vrot.slane %v2782_v38, 1  ;;  %v2778_v4 = vor.u32 %v2777_v53, %v2773_v15  ;;  %v3111_v21 = vsel %vm2093_vm8, %v8031_v60, %v8345_v62  ;;  %v1072_v38 = vld [vmem:[#allocation3 + $0x5c] sm:$0x1]  ;;  %v3160_v15 = vsel %vm2142_vm9, %v3114_v28, %v8372_v32  ;;  %v10066_v55 = vld [vmem:[#allocation41_spill] sm:$0xff] }
 0x1c1   : > { %2645 = vrot.lane.b32.xlu0 %v10062_v56, %s7023_s26  ;;  %v2791_v22 = vrot.slane %v2789_v29, 1  ;;  %v3158_v56 = vsel %vm2142_vm9, %v3111_v21, %v8367_v59  ;;  %v6936_v53 = vld [vmem:[#allocation3 + $0x50] sm:$0xf]  ;;  %v3192_v60 = vsel %vm2175_vm10, %v3160_v15, %v8389_v54  ;;  %v1076_v28 = vld [vmem:[#allocation3 + $0x6c] sm:$0x1] }
 0x1c2   : > { %v8436_v7 = vpop.permute.xlu1 %2827  ;;  %v2785_v3 = vor.u32 %v2784_v31, %v2780_v6  ;;  %v6183_v29 = vcombine.low %v6936_v53, %v1070_v44  ;;  %v3224_v59 = vsel %vm2208_vm11, %v3192_v60, %v8408_v25  ;;  %v6937_v6 = vld [vmem:[#allocation3 + $0x58] sm:$0xf]  ;;  %v10067_v54 = vld [vmem:[#allocation42_spill] sm:$0xff]  ;;  %v10069_v44 = vld [vmem:[#allocation44_spill] sm:$0xff] }
 0x1c3   : > { %v2854_v19 = vpop.permute.xlu0 %2853  ;;  %v2792_v43 = vor.u32 %v2791_v22, %v2787_v40  ;;  %v6184_v32 = vcombine.low %v6937_v6, %v1072_v38  ;;  %v10070_v53 = vld [vmem:[#allocation45_spill] sm:$0xff]  ;;  %v10071_v6 = vld [vmem:[#allocation47_spill] sm:$0xff] }
 0x1c4   : > { %2647 = vrot.lane.b32.xlu1 %v10063_v45, %s7023_s26  ;;  %v3190_v45 = vsel %vm2175_vm10, %v3158_v56, %v8384_v17  ;;  %v3256_v17 = vsel %vm2241_vm12, %v3224_v59, %v2824_v11  ;;  %v3024_v22 = vshll.u32 %v6183_v29, 16  ;;  %v3022_v21 = vshrl.u32 %v6183_v29, 16 }
 0x1c5   : > { %2649 = vrot.lane.b32.xlu0 %v10064_v48, %s7023_s26  ;;  %v3222_v18 = vsel %vm2208_vm11, %v3190_v45, %v8403_v10 }
 0x1c6   : > { %v2856_v46 = vpop.permute.xlu1 %2855  ;;  %v3254_v31 = vsel %vm2241_vm12, %v3222_v18, %v8420_v35  ;;  %v1074_v35 = vld [vmem:[#allocation3 + $0x64] sm:$0x1]  ;;  %v3026_v15 = vrot.slane %v3024_v22, 1 }
 0x1c7   : > { %v8442_v12 = vpop.permute.xlu0 %2857  ;;  %v3288_v40 = vsel %vm2274_vm13, %v3256_v17, %v2856_v46  ;;  %v3120_v46 = vsel %vm2093_vm8, %v8057_v41, %v8362_v52 }
 0x1c8   : > { %2651 = vrot.lane.b32.xlu1 %v10065_v39, %s7023_s26  ;;  %v10068_v39 = vld [vmem:[#allocation43_spill] sm:$0xff]  ;;  %v3164_v56 = vsel %vm2142_vm9, %v3120_v46, %v8382_v27  ;;  %v8539_v46 = vld [vmem:[#allocation3 + $0x68] sm:$0xf] }
 0x1c9   : > { %2837 = vrot.lane.b32.xlu0 %v2771_v20, %s7026_s13  ;;  %v3286_v20 = vsel %vm2274_vm13, %v3254_v31, %v2854_v19  ;;  %v3117_v19 = vsel %vm2093_vm8, %v8050_v47, %v8354_v58  ;;  %v6938_v47 = vld [vmem:[#allocation3 + $0x60] sm:$0xf]  ;;  %v3196_v52 = vsel %vm2175_vm10, %v3164_v56, %v8396_v0 }
 0x1ca   : > { %v8447_v2 = vpop.permute.xlu1 %2859  ;;  %v3162_v38 = vsel %vm2142_vm9, %v3117_v19, %v8377_v42  ;;  %v6185_v58 = vcombine.low %v6938_v47, %v1074_v35  ;;  %v3029_v42 = vshrl.u32 %v6184_v32, 16  ;;  %v3228_v45 = vsel %vm2208_vm11, %v3196_v52, %v8418_v1  ;;  %v8549_v47 = vld [vmem:[#allocation3 + $0x70] sm:$0xf] }
 0x1cb   : > { %v2886_v49 = vpop.permute.xlu0 %2885  ;;  %v3194_v41 = vsel %vm2175_vm10, %v3162_v38, %v8391_v24  ;;  %v3260_v18 = vsel %vm2241_vm12, %v3228_v45, %v8436_v7  ;;  %v3027_v7 = vor.u32 %v3026_v15, %v3022_v21  ;;  %v954_v21 = vld [vmem:[#allocation3 + $0x7c] sm:$0x1]  ;;  %v10075_v52 = vld [vmem:[#allocation54_spill] sm:$0xff] }
 0x1cc   : > { %2839 = vrot.lane.b32.xlu1 %v2778_v4, %s7026_s13  ;;  %v3318_v10 = vsel %vm2307_vm14, %v3286_v20, %v2886_v49  ;;  %v3226_v27 = vsel %vm2208_vm11, %v3194_v41, %v8411_v14  ;;  %v3292_v14 = vsel %vm2274_vm13, %v3260_v18, %v8447_v2  ;;  %v3038_v1 = vshll.u32 %v6185_v58, 16  ;;  %v10073_v2 = vld [vmem:[#allocation52_spill] sm:$0xff] }
 0x1cd   : > { %2841 = vrot.lane.b32.xlu0 %v2785_v3, %s7026_s13  ;;  %v3258_v0 = vsel %vm2241_vm12, %v3226_v27, %v8430_v50  ;;  %v10072_v50 = vld [vmem:[#allocation51_spill] sm:$0xff] }
 0x1ce   : > { %v2888_v9 = vpop.permute.xlu1 %2887  ;;  %v8556_v27 = vld [vmem:[#allocation3 + $0x78] sm:$0xf] }
 0x1cf   : > { %v2890_v36 = vpop.permute.xlu0 %2889  ;;  %v3320_v25 = vsel %vm2307_vm14, %v3288_v40, %v2888_v9  ;;  %v6158_v45 = vcombine.low %v8556_v27, %v954_v21 }
 0x1d0   : > { %2843 = vrot.lane.b32.xlu1 %v2792_v43, %s7026_s13  ;;  %v3031_v43 = vshll.u32 %v6184_v32, 16  ;;  %v3290_v32 = vsel %vm2274_vm13, %v3258_v0, %v8442_v12 }
 0x1d1   : > { %2869 = vrot.lane.b32.xlu0 %v10066_v55, %s7027_s17  ;;  %v6939_v55 = vld [vmem:[#allocation3 + $0x68] sm:$0xf]  ;;  %v3322_v31 = vsel %vm2307_vm14, %v3290_v32, %v2890_v36  ;;  %v2561_v32 = vshll.u32 %v6158_v45, 16 }
 0x1d2   : > { %v2892_v62 = vpop.permute.xlu1 %2891  ;;  %v3033_v60 = vrot.slane %v3031_v43, 1  ;;  %v6186_v24 = vcombine.low %v6939_v55, %v1076_v28  ;;  %v10074_v28 = vld [vmem:[#allocation53_spill] sm:$0xff] }
 0x1d3   : > { %v3078_v48 = vpop.permute.xlu0 %3077  ;;  %v3324_v17 = vsel %vm2307_vm14, %v3292_v14, %v2892_v62  ;;  %v3036_v62 = vshrl.u32 %v6185_v58, 16  ;;  %v10076_v14 = vld [vmem:[#allocation55_spill] sm:$0xff] }
 0x1d4   : > { %2871 = vrot.lane.b32.xlu1 %v10067_v54, %s7027_s17  ;;  %v3350_v11 = vsel %vm2340_vm15, %v3318_v10, %v3078_v48  ;;  %v948_v54 = vld [vmem:[#allocation3 + $0x64] sm:$0x1]  ;;  %v3045_v22 = vshll.u32 %v6186_v24, 16  ;;  %v3034_v36 = vor.u32 %v3033_v60, %v3029_v42  ;;  %v3043_v43 = vshrl.u32 %v6186_v24, 16 }
 0x1d5   : > { %2873 = vrot.lane.b32.xlu0 %v10068_v39, %s7027_s17  ;;  %v3040_v39 = vrot.slane %v3038_v1, 1 }
 0x1d6   : > { %v3080_v4 = vpop.permute.xlu1 %3079  ;;  %v3047_v19 = vrot.slane %v3045_v22, 1 }
 0x1d7   : > { %v3352_v3 = vsel %vm2340_vm15, %v3320_v25, %v3080_v4  ;;  %v8491_v9 = vpop.permute.xlu0 %2381  ;;  %v950_v25 = vld [vmem:[#allocation3 + $0x6c] sm:$0x1]  ;;  %v8532_v4 = vld [vmem:[#allocation3 + $0x60] sm:$0xf]  ;;  %v3041_v56 = vor.u32 %v3040_v39, %v3036_v62 }
 0x1d8   : > { %v6200_v49 = vcombine.low %v3350_v11, %v3352_v3  ;;  %2875 = vrot.lane.b32.xlu1 %v10069_v44, %s7027_s17  ;;  %v6155_v35 = vcombine.low %v8532_v4, %v948_v54  ;;  %v952_v3 = vld [vmem:[#allocation3 + $0x74] sm:$0x1] }
 0x1d9   : > { %2901 = vrot.lane.b32.xlu0 %v10070_v53, %s7028_s20  ;;  %v6157_v58 = vcombine.low %v8549_v47, %v952_v3  ;;  %v3048_v53 = vor.u32 %v3047_v19, %v3043_v43  ;;  %v1012_v3 = vld [vmem:[#allocation3 + $0x6c] sm:$0x1] }
 0x1da   : > { %v8505_v29 = vpop.permute.xlu1 %2383  ;;  %6508 = vmatprep.mubr.msk.bf16.mxu0 %vm3482_vm0, %v6200_v49  ;;  %v6156_v49 = vcombine.low %v8539_v46, %v950_v25  ;;  %v2540_v15 = vshll.u32 %v6155_v35, 16  ;;  %v2538_v55 = vshrl.u32 %v6155_v35, 16 }
 0x1db   : > { %v3082_v59 = vpop.permute.xlu0 %3081  ;;  %v2554_v0 = vshll.u32 %v6157_v58, 16 }
 0x1dc   : > { %2903 = vrot.lane.b32.xlu1 %v10071_v6, %s7028_s20  ;;  %v3354_v20 = vsel %vm2340_vm15, %v3322_v31, %v3082_v59  ;;  %v2547_v42 = vshll.u32 %v6156_v49, 16  ;;  %v2542_v24 = vrot.slane %v2540_v15, 1  ;;  %v2545_v59 = vshrl.u32 %v6156_v49, 16  ;;  %v1014_v15 = vld [vmem:[#allocation3 + $0x74] sm:$0x1] }
 0x1dd   : > { %2905 = vrot.lane.b32.xlu0 %v10072_v50, %s7028_s20  ;;  %v2556_v50 = vrot.slane %v2554_v0, 1 }
 0x1de   : > { %v3084_v48 = vpop.permute.xlu1 %3083  ;;  %v2549_v6 = vrot.slane %v2547_v42, 1  ;;  %v2543_v31 = vor.u32 %v2542_v24, %v2538_v55  ;;  %v10078_v24 = vld [vmem:[#allocation57_spill] sm:$0xff] }
 0x1df   : > { %v3356_v40 = vsel %vm2340_vm15, %v3324_v17, %v3084_v48  ;;  %v8528_v10 = vpop.permute.xlu0 %2385  ;;  %v2552_v17 = vshrl.u32 %v6157_v58, 16 }
 0x1e0   : > { %v6201_v12 = vcombine.low %v3354_v20, %v3356_v40  ;;  %2907 = vrot.lane.b32.xlu1 %v10073_v2, %s7028_s20  ;;  %v2550_v54 = vor.u32 %v2549_v6, %v2545_v59  ;;  %v2559_v20 = vshrl.u32 %v6158_v45, 16  ;;  %v2563_v40 = vrot.slane %v2561_v32, 1  ;;  %v1016_v59 = vld [vmem:[#allocation3 + $0x7c] sm:$0x1] }
 0x1e1   : > { %3093 = vrot.lane.b32.xlu0 %v3027_v7, %s7029_s18  ;;  %v10077_v7 = vld [vmem:[#allocation56_spill] sm:$0xff] }
 0x1e2   : > { %v8536_v11 = vpop.permute.xlu1 %2387  ;;  %6509 = vmatmul.mubr.msk.bf16.gmra.mrb[16].mxu0 %vm3482_vm0, %v6201_v12  ;;  %v2557_v12 = vor.u32 %v2556_v50, %v2552_v17 }
 0x1e3   : > { %v8542_v44 = vpop.permute.xlu0 %2573 }
 0x1e4   : > { %3095 = vrot.lane.b32.xlu1 %v3034_v36, %s7029_s18  ;;  %v2564_v36 = vor.u32 %v2563_v40, %v2559_v20  ;;  %v10079_v20 = vld [vmem:[#allocation58_spill] sm:$0xff]  ;;  %v1018_v40 = vld [vmem:[#allocation3 + $0x84] sm:$0x1] }
 0x1e5   : > { %2397 = vrot.lane.b32.xlu0 %v10074_v28, %s7022_s25 }
 0x1e6   : > { %v8547_v38 = vpop.permute.xlu1 %2575 }
 0x1e7   : > { %v8552_v41 = vpop.permute.xlu0 %2577 }
 0x1e8   : > { %2399 = vrot.lane.b32.xlu1 %v10075_v52, %s7022_s25 }
 0x1e9   : > { %3097 = vrot.lane.b32.xlu0 %v3041_v56, %s7029_s18 }
 0x1ea   : > { %v8560_v60 = vpop.permute.xlu1 %2579 }
 0x1eb   : > { %v8562_v18 = vpop.permute.xlu0 %2605 }
 0x1ec   : > { %3099 = vrot.lane.b32.xlu1 %v3048_v53, %s7029_s18  ;;  %v6944_v53 = vld [vmem:[#allocation3 + $0x68] sm:$0xf] }
 0x1ed   : > { %2401 = vrot.lane.b32.xlu0 %v10076_v14, %s7022_s25  ;;  %v6171_v42 = vcombine.low %v6944_v53, %v1012_v3  ;;  %v10080_v3 = vld [vmem:[#allocation59_spill] sm:$0xff] }
 0x1ee   : > { %v8567_v1 = vpop.permute.xlu1 %2607 }
 0x1ef   : > { %v8569_v48 = vpop.permute.xlu0 %2609 }
 0x1f0   : > { %2403 = vrot.lane.b32.xlu1 %v10077_v7, %s7022_s25 }
 0x1f1   : > { %2589 = vrot.lane.b32.xlu0 %v2543_v31, %s7024_s10  ;;  %v6945_v31 = vld [vmem:[#allocation3 + $0x70] sm:$0xf] }
 0x1f2   : > { %v8574_v22 = vpop.permute.xlu1 %2611  ;;  %v6172_v17 = vcombine.low %v6945_v31, %v1014_v15  ;;  %v10081_v15 = vld [vmem:[#allocation60_spill] sm:$0xff] }
 0x1f3   : > { %v8576_v2 = vpop.permute.xlu0 %2637 }
 0x1f4   : > { %2591 = vrot.lane.b32.xlu1 %v2550_v54, %s7024_s10 }
 0x1f5   : > { %v6498_v25 = vpop.f32.mrb[4].mxu0  ;;  %2593 = vrot.lane.b32.xlu0 %v2557_v12, %s7024_s10 }
 0x1f6   : > { %v3594_v62 = vadd.f32 %v6498_v25, %v8401_v51  ;;  %v8581_v39 = vpop.permute.xlu1 %2639  ;;  %v3585_v35 = vpop.f32.mrb[5].mxu0  ;;  %v6946_v25 = vld [vmem:[#allocation3 + $0x78] sm:$0xf] }
 0x1f7   : > { %v3586_v43 = vadd.f32 %v8401_v51, %v3585_v35  ;;  %v6499_v19 = vpop.f32.mrb[6].mxu0  ;;  %v8584_v21 = vpop.permute.xlu0 %2641 }
 0x1f8   : > { %vm3702_vm1 = vcmp.ge.f32.partialorder %v3594_v62, 0.0  ;;  %v3734_v49 = vmul.f32 0.1, %v3594_v62  ;;  %v3597_v28 = vadd.f32 %v6499_v19, %v8401_v51  ;;  %2595 = vrot.lane.b32.xlu1 %v2564_v36, %s7024_s10  ;;  %v3588_v56 = vpop.f32.mrb[7].mxu0  ;;  %v2796_v19 = vshll.u32 %v6171_v42, 16 }
 0x1f9   : > { %vm3700_vm3 = vcmp.ge.f32.partialorder %v3586_v43, 0.0  ;;  %v3732_v58 = vmul.f32 0.1, %v3586_v43  ;;  %v3589_v52 = vadd.f32 %v8401_v51, %v3588_v56  ;;  %2621 = vrot.lane.b32.xlu0 %v10078_v24, %s7025_s12 }
 0x1fa   : > { %v3766_v45 = vsel %vm3702_vm1, %v3594_v62, %v3734_v49  ;;  %vm3703_vm6 = vcmp.ge.f32.partialorder %v3597_v28, 0.0  ;;  %v3735_v55 = vmul.f32 0.1, %v3597_v28  ;;  %v8591_v0 = vpop.permute.xlu1 %2643  ;;  %v6173_v62 = vcombine.low %v6946_v25, %v1016_v59  ;;  %v6947_v49 = vld [vmem:[#allocation3 + $0x80] sm:$0xf] }
 0x1fb   : > { %v6406_v6 = vpack.c.bf16 %v3766_v45, %v3766_v45  ;;  %v3764_v32 = vsel %vm3700_vm3, %v3586_v43, %v3732_v58  ;;  %vm3701_vm7 = vcmp.ge.f32.partialorder %v3589_v52, 0.0  ;;  %v3733_v14 = vmul.f32 0.1, %v3589_v52  ;;  %v8593_v54 = vpop.permute.xlu0 %2829 }
 0x1fc   : > { %v6404_v50 = vpack.c.bf16 %v3764_v32, %v3764_v32  ;;  %v3767_v7 = vsel %vm3703_vm6, %v3597_v28, %v3735_v55  ;;  %2623 = vrot.lane.b32.xlu1 %v10079_v20, %s7025_s12  ;;  %v6174_v28 = vcombine.low %v6947_v49, %v1018_v40  ;;  %v2803_v58 = vshll.u32 %v6172_v17, 16 }
 0x1fd   : > { %3911 = vst.msk [vmem:[#allocation5 + $0x1c] sm:$0xf] %vm9967_vm4, %v6406_v6  ;;  %v6407_v12 = vpack.c.bf16 %v3767_v7, %v3767_v7  ;;  %v3765_v36 = vsel %vm3701_vm7, %v3589_v52, %v3733_v14  ;;  %2625 = vrot.lane.b32.xlu0 %v10080_v3, %s7025_s12  ;;  %v10082_v52 = vld [vmem:[#allocation61_spill] sm:$0xff]  ;;  %v2794_v45 = vshrl.u32 %v6171_v42, 16  ;;  %v2798_v55 = vrot.slane %v2796_v19, 1  ;;  %v10083_v6 = vld [vmem:[#allocation62_spill] sm:$0xff] }
 0x1fe   : > { %3909 = vst.msk [vmem:[#allocation5 + $0x14] sm:$0xf] %vm9967_vm4, %v6404_v50  ;;  %v6405_v35 = vpack.c.bf16 %v3765_v36, %v3765_v36  ;;  %v2832_v43 = vpop.permute.xlu1 %2831  ;;  %v2810_v24 = vshll.u32 %v6173_v62, 16  ;;  %v2801_v32 = vshrl.u32 %v6172_v17, 16  ;;  %v2805_v14 = vrot.slane %v2803_v58, 1  ;;  %v10084_v50 = vld [vmem:[#allocation63_spill] sm:$0xff] }
 0x1ff   : > { %3912 = vst.msk [vmem:[#allocation5 + $0x20] sm:$0xf] %vm9967_vm4, %v6407_v12  ;;  %v8603_v56 = vpop.permute.xlu0 %2833  ;;  %v2817_v31 = vshll.u32 %v6174_v28, 16  ;;  %v2799_v20 = vor.u32 %v2798_v55, %v2794_v45  ;;  %v2808_v40 = vshrl.u32 %v6173_v62, 16  ;;  %v10085_v42 = vld [vmem:[#allocation64_spill] sm:$0xff]  ;;  %v3123_v45 = vsel %vm2093_vm8, %v8200_v8, %v8491_v9 }
 0x200   : > { %3910 = vst.msk [vmem:[#allocation5 + $0x18] sm:$0xf] %vm9967_vm4, %v6405_v35  ;;  %2627 = vrot.lane.b32.xlu1 %v10081_v15, %s7025_s12  ;;  %v2812_v12 = vrot.slane %v2810_v24, 1  ;;  %v2806_v25 = vor.u32 %v2805_v14, %v2801_v32  ;;  %v2815_v35 = vshrl.u32 %v6174_v28, 16  ;;  %v1078_v58 = vld [vmem:[#allocation3 + $0x74] sm:$0x1]  ;;  %v3126_v28 = vsel %vm2093_vm8, %v8207_v37, %v8505_v29 }
 0x201   : > { %2653 = vrot.lane.b32.xlu0 %v10082_v52, %s7023_s26  ;;  %v2819_v3 = vrot.slane %v2817_v31, 1  ;;  %v1080_v52 = vld [vmem:[#allocation3 + $0x7c] sm:$0x1]  ;;  %v6948_v24 = vld [vmem:[#allocation3 + $0x70] sm:$0xf]  ;;  %v3166_v32 = vsel %vm2142_vm9, %v3123_v45, %v8542_v44  ;;  %v3168_v14 = vsel %vm2142_vm9, %v3126_v28, %v8547_v38  ;;  %vm9966_vm1 = vcmask 57344  }
 0x202   : > { %v8609_v53 = vpop.permute.xlu1 %2835  ;;  %v2813_v19 = vor.u32 %v2812_v12, %v2808_v40  ;;  %v3198_v31 = vsel %vm2175_vm10, %v3166_v32, %v8562_v18  ;;  %v3200_v8 = vsel %vm2175_vm10, %v3168_v14, %v8567_v1  ;;  %v6949_v9 = vld [vmem:[#allocation3 + $0x78] sm:$0xf]  ;;  %vm8705_vm3 = vmand %vm9966_vm1, %vm328_vm2 }
 0x203   : > { %v2862_v59 = vpop.permute.xlu0 %2861  ;;  %v2820_v15 = vor.u32 %v2819_v3, %v2815_v35  ;;  %v8643_v29 = vcombine.low %v6949_v9, %v1080_v52  ;;  %v3230_v44 = vsel %vm2208_vm11, %v3198_v31, %v8576_v2  ;;  %v3232_v38 = vsel %vm2208_vm11, %v3200_v8, %v8581_v39  ;;  %v6951_v3 = vld [vmem:[#allocation3 + $0x88] sm:$0xf]  ;;  %v449_v8 = vld [vmem:[#allocation4 + $0x4] sm:$0x1] }
 0x204   : > { %2655 = vrot.lane.b32.xlu1 %v10083_v6, %s7023_s26  ;;  %v6187_v6 = vcombine.low %v6948_v24, %v1078_v58  ;;  %v3262_v18 = vsel %vm2241_vm12, %v3230_v44, %v8593_v54  ;;  %v6953_v58 = vld [vmem:[#allocation3 + $0x38] sm:$0xf]  ;;  %v450_v44 = vsel %vm8705_vm3, 0, %v449_v8 }
 0x205   : > { %2657 = vrot.lane.b32.xlu0 %v10084_v50, %s7023_s26  ;;  %v1082_v50 = vld [vmem:[#allocation3 + $0x84] sm:$0x1]  ;;  %v3294_v40 = vsel %vm2274_vm13, %v3262_v18, %v2862_v59  ;;  %v3059_v59 = vshll.u32 %v8643_v29, 16  ;;  %451 = vst [vmem:[#allocation4 + $0x4] sm:$0x1] %v450_v44 }
 0x206   : > { %v2864_v7 = vpop.permute.xlu1 %2863  ;;  %v3050_v28 = vshrl.u32 %v6187_v6, 16  ;;  %v463_v44 = vld [vmem:[#allocation4 + $0x20] sm:$0x1] }
 0x207   : > { %v8615_v36 = vpop.permute.xlu0 %2865 }
 0x208   : > { %2659 = vrot.lane.b32.xlu1 %v10085_v42, %s7023_s26  ;;  %v3052_v42 = vshll.u32 %v6187_v6, 16  ;;  %v3061_v6 = vrot.slane %v3059_v59, 1  ;;  %v8750_v59 = vld [vmem:[#allocation5 + $0x10] ss:$0 sps:$4 sm:$0xff]  }
 0x209   : > { %2845 = vrot.lane.b32.xlu0 %v2799_v20, %s7026_s13  ;;  %v3264_v20 = vsel %vm2241_vm12, %v3232_v38, %v2832_v43 }
 0x20a   : > { %v8620_v17 = vpop.permute.xlu1 %2867  ;;  %v3296_v12 = vsel %vm2274_vm13, %v3264_v20, %v2864_v7  ;;  %v3054_v24 = vrot.slane %v3052_v42, 1 }
 0x20b   : > { %v2894_v49 = vpop.permute.xlu0 %2893 }
 0x20c   : > { %2847 = vrot.lane.b32.xlu1 %v2806_v25, %s7026_s13  ;;  %v6950_v25 = vld [vmem:[#allocation3 + $0x80] sm:$0xf]  ;;  %v3326_v39 = vsel %vm2307_vm14, %v3294_v40, %v2894_v49  ;;  %v3132_v49 = vsel %vm2093_vm8, %v6953_v58, %v8536_v11  ;;  %v3055_v9 = vor.u32 %v3054_v24, %v3050_v28 }
 0x20d   : > { %2849 = vrot.lane.b32.xlu0 %v2813_v19, %s7026_s13  ;;  %v8656_v2 = vcombine.low %v6950_v25, %v1082_v50  ;;  %v6952_v19 = vld [vmem:[#allocation3 + $0x30] sm:$0xf]  ;;  %v3172_v45 = vsel %vm2142_vm9, %v3132_v49, %v8560_v60 }
 0x20e   : > { %v2896_v62 = vpop.permute.xlu1 %2895  ;;  %v3204_v11 = vsel %vm2175_vm10, %v3172_v45, %v8574_v22 }
 0x20f   : > { %v8630_v55 = vpop.permute.xlu0 %2897  ;;  %v3328_v35 = vsel %vm2307_vm14, %v3296_v12, %v2896_v62  ;;  %v3236_v60 = vsel %vm2208_vm11, %v3204_v11, %v8591_v0  ;;  %v460_v12 = vld [vmem:[#allocation4 + $0x18] sm:$0x1]  ;;  %v4180_v11 = vld [vmem:[#allocation4 + $0x4] sm:$0x1] }
 0x210   : > { %2851 = vrot.lane.b32.xlu1 %v2820_v15, %s7026_s13  ;;  %v3129_v15 = vsel %vm2093_vm8, %v6952_v19, %v8528_v10  ;;  %v461_v42 = vsel %vm8705_vm3, 0, %v460_v12  ;;  %s7033_s13 = smov 64  }
 0x211   : > { %2877 = vrot.lane.b32.xlu0 %v7956_v26, %s7027_s17  ;;  %v1084_v26 = vld [vmem:[#allocation3 + $0x8c] sm:$0x1]  ;;  %462 = vst [vmem:[#allocation4 + $0x18] sm:$0x1] %v461_v42 }
 0x212   : > { %v2900_v37 = vpop.permute.xlu1 %2899  ;;  %v6190_v7 = vcombine.low %v6951_v3, %v1084_v26 }
 0x213   : > { %v3086_v1 = vpop.permute.xlu0 %3085 }
 0x214   : > { %2879 = vrot.lane.b32.xlu1 %v7968_v33, %s7027_s17  ;;  %v3358_v43 = vsel %vm2340_vm15, %v3326_v39, %v3086_v1  ;;  %v3073_v31 = vshll.u32 %v6190_v7, 16  ;;  %v6792_v39 = vld [vmem:[#allocation5] ss:$0 sps:$4 sm:$0xff]  }
 0x215   : > { %2881 = vrot.lane.b32.xlu0 %v7982_v57, %s7027_s17  ;;  %v3170_v57 = vsel %vm2142_vm9, %v3129_v15, %v8552_v41 }
 0x216   : > { %v3088_v54 = vpop.permute.xlu1 %3087  ;;  %v3202_v10 = vsel %vm2175_vm10, %v3170_v57, %v8569_v48  ;;  %v3057_v48 = vshrl.u32 %v8643_v29, 16  ;;  %v3064_v29 = vshrl.u32 %v8656_v2, 16  ;;  %v3075_v26 = vrot.slane %v3073_v31, 1 }
 0x217   : > { %v3360_v33 = vsel %vm2340_vm15, %v3328_v35, %v3088_v54  ;;  %v8669_v52 = vpop.permute.xlu0 %2389  ;;  %v3234_v41 = vsel %vm2208_vm11, %v3202_v10, %v8584_v21  ;;  %v4179_v10 = vld [vmem:[#allocation4] sm:$0xf] }
 0x218   : > { %v6202_v62 = vcombine.low %v3358_v43, %v3360_v33  ;;  %2883 = vrot.lane.b32.xlu1 %v7999_v30, %s7027_s17  ;;  %v3066_v30 = vshll.u32 %v8656_v2, 16  ;;  %v3266_v22 = vsel %vm2241_vm12, %v3234_v41, %v8603_v56  ;;  %v8744_v43 = vld [vmem:[#allocation5 + $0x8] ss:$0 sps:$4 sm:$0xff]   ;;  %v6267_v8 = vcombine.low %v4179_v10, %v4180_v11 }
 0x219   : > { %2909 = vrot.lane.b32.xlu0 %v8020_v16, %s7028_s20  ;;  %v3268_v16 = vsel %vm2241_vm12, %v3236_v60, %v8609_v53  ;;  %v3298_v21 = vsel %vm2274_vm13, %v3266_v22, %v8615_v36  ;;  %v10088_v53 = vmov 0   ;;  %v3135_v11 = vsel %vm2093_vm8, %v8358_v63, %v8669_v52 }
 0x21a   : > { %v8683_v32 = vpop.permute.xlu1 %2391  ;;  %6512 = vmatprep.mubr.msk.bf16.mxu0 %vm3482_vm0, %v6202_v62  ;;  %v3300_v0 = vsel %vm2274_vm13, %v3268_v16, %v8620_v17  ;;  %504 = vst.msk [vmem:[#allocation6 + $0x4] sm:$0x1] %vm9966_vm1, %v10088_v53  ;;  %507 = vst.msk [vmem:[#allocation6 + $0x4c] sm:$0x1] %vm9966_vm1, %v10088_v53  ;;  %v3068_v50 = vrot.slane %v3066_v30, 1  ;;  %v4311_v42 = vshrl.u32 %v6267_v8, 16 }
 0x21b   : > { %v3090_v14 = vpop.permute.xlu0 %3089  ;;  %v3332_v36 = vsel %vm2307_vm14, %v3300_v0, %v2900_v37  ;;  %v3071_v37 = vshrl.u32 %v6190_v7, 16  ;;  %v8756_v7 = vld [vmem:[#allocation5 + $0x18] ss:$0 sps:$4 sm:$0xff]  }
 0x21c   : > { %2911 = vrot.lane.b32.xlu1 %v8028_v61, %s7028_s20  ;;  %v3330_v61 = vsel %vm2307_vm14, %v3298_v21, %v8630_v55  ;;  %v3062_v55 = vor.u32 %v3061_v6, %v3057_v48  ;;  %v3069_v40 = vor.u32 %v3068_v50, %v3064_v29 }
 0x21d   : > { %2913 = vrot.lane.b32.xlu0 %v8039_v13, %s7028_s20  ;;  %v3362_v38 = vsel %vm2340_vm15, %v3330_v61, %v3090_v14  ;;  %v3076_v2 = vor.u32 %v3075_v26, %v3071_v37  ;;  %v4313_v37 = vshll.u32 %v6267_v8, 16 }
 0x21e   : > { %v3092_v17 = vpop.permute.xlu1 %3091 }
 0x21f   : > { %v3364_v18 = vsel %vm2340_vm15, %v3332_v36, %v3092_v17  ;;  %v8722_v1 = vpop.permute.xlu0 %2393  ;;  %v454_v36 = vld [vmem:[#allocation4 + $0x8] sm:$0x1] }
 0x220   : > { %v6203_v20 = vcombine.low %v3362_v38, %v3364_v18  ;;  %2915 = vrot.lane.b32.xlu1 %v8048_v23, %s7028_s20  ;;  %s7030_s20 = smov 40  }
 0x221   : > { %3101 = vrot.lane.b32.xlu0 %v3055_v9, %s7029_s18 }
 0x222   : > { %v8727_v13 = vpop.permute.xlu1 %2395  ;;  %6513 = vmatmul.mubr.msk.bf16.gmra.mrb[20].mxu0 %vm3482_vm0, %v6203_v20  ;;  %v464_v20 = vsel %vm8705_vm3, 0, %v463_v44 }
 0x223   : > { %v8732_v25 = vpop.permute.xlu0 %2581  ;;  %465 = vst [vmem:[#allocation4 + $0x20] sm:$0x1] %v464_v20 }
 0x224   : > { %3103 = vrot.lane.b32.xlu1 %v3062_v55, %s7029_s18  ;;  %v457_v55 = vld [vmem:[#allocation4 + $0x10] sm:$0x1] }
 0x225   : > { %3105 = vrot.lane.b32.xlu0 %v3069_v40, %s7029_s18  ;;  %v458_v26 = vsel %vm8705_vm3, 0, %v457_v55 }
 0x226   : > { %v8736_v23 = vpop.permute.xlu1 %2583  ;;  %459 = vst [vmem:[#allocation4 + $0x10] sm:$0x1] %v458_v26 }
 0x227   : > { %v8738_v35 = vpop.permute.xlu0 %2585 }
 0x228   : > { %3107 = vrot.lane.b32.xlu1 %v3076_v2, %s7029_s18  ;;  %v4315_v2 = vrot.slane %v4313_v37, 1 }
 0x229   : > { %4254 = vrot.lane.b32.xlu0 %v6792_v39, %s7024_s10 }
 0x22a   : > { %v8742_v54 = vpop.permute.xlu1 %2587 }
 0x22b   : > { %v8746_v33 = vpop.permute.xlu0 %2613 }
 0x22c   : > { %4256 = vrot.lane.b32.xlu1 %v8744_v43, %s7024_s10 }
 0x22d   : > { %4258 = vrot.lane.b32.xlu0 %v8750_v59, %s7024_s10 }
 0x22e   : > { %v8754_v3 = vpop.permute.xlu1 %2615 }
 0x22f   : > { %v8758_v19 = vpop.permute.xlu0 %2617 }
 0x230   : > { %4260 = vrot.lane.b32.xlu1 %v8756_v7, %s7024_s10 }
 0x232   : > { %v8762_v15 = vpop.permute.xlu1 %2619 }
 0x233   : > { %v8764_v58 = vpop.permute.xlu0 %2645 }
 0x235   : > { %v6502_v49 = vpop.f32.mrb[8].mxu0 }
 0x236   : > { %v3610_v62 = vadd.f32 %v6502_v49, %v8401_v51  ;;  %v8767_v57 = vpop.permute.xlu1 %2647  ;;  %v3601_v45 = vpop.f32.mrb[9].mxu0 }
 0x237   : > { %v3602_v28 = vadd.f32 %v8401_v51, %v3601_v45  ;;  %v6503_v24 = vpop.f32.mrb[10].mxu0  ;;  %v8770_v41 = vpop.permute.xlu0 %2649 }
 0x238   : > { %vm3706_vm2 = vcmp.ge.f32.partialorder %v3610_v62, 0.0  ;;  %v3738_v30 = vmul.f32 0.1, %v3610_v62  ;;  %v3613_v60 = vadd.f32 %v6503_v24, %v8401_v51  ;;  %v3604_v48 = vpop.f32.mrb[11].mxu0 }
 0x239   : > { %vm3704_vm6 = vcmp.ge.f32.partialorder %v3602_v28, 0.0  ;;  %v3736_v6 = vmul.f32 0.1, %v3602_v28  ;;  %v3605_v22 = vadd.f32 %v8401_v51, %v3604_v48  ;;  %v455_v51 = vsel %vm8705_vm3, 0, %v454_v36 }
 0x23a   : > { %v3770_v16 = vsel %vm3706_vm2, %v3610_v62, %v3738_v30  ;;  %vm3707_vm7 = vcmp.ge.f32.partialorder %v3613_v60, 0.0  ;;  %v3739_v14 = vmul.f32 0.1, %v3613_v60  ;;  %v8774_v31 = vpop.permute.xlu1 %2651  ;;  %456 = vst [vmem:[#allocation4 + $0x8] sm:$0x1] %v455_v51  ;;  %v4316_v62 = vor.u32 %v4315_v2, %v4311_v42 }
 0x23b   : > { %v6410_v21 = vpack.c.bf16 %v3770_v16, %v3770_v16  ;;  %v3768_v0 = vsel %vm3704_vm6, %v3602_v28, %v3736_v6  ;;  %vm3705_vm1 = vcmp.ge.f32.partialorder %v3605_v22, 0.0  ;;  %v3737_v9 = vmul.f32 0.1, %v3605_v22  ;;  %v2838_v61 = vpop.permute.xlu0 %2837 }
 0x23c   : > { %v6408_v29 = vpack.c.bf16 %v3768_v0, %v3768_v0  ;;  %v3771_v53 = vsel %vm3707_vm7, %v3613_v60, %v3739_v14  ;;  %4366 = vrot.lane.b32.xlu0 %v4316_v62, %s7023_s26  ;;  %v3138_v30 = vsel %vm2093_vm8, %v8364_v34, %v8683_v32  ;;  %v3174_v48 = vsel %vm2142_vm9, %v3135_v11, %v8732_v25 }
 0x23d   : > { %3915 = vst.msk [vmem:[#allocation5 + $0x2c] sm:$0xf] %vm9967_vm4, %v6410_v21  ;;  %v6411_v17 = vpack.c.bf16 %v3771_v53, %v3771_v53  ;;  %v3769_v50 = vsel %vm3705_vm1, %v3605_v22, %v3737_v9  ;;  %v3176_v6 = vsel %vm2142_vm9, %v3138_v30, %v8736_v23  ;;  %v3206_v22 = vsel %vm2175_vm10, %v3174_v48, %v8746_v33  ;;  %v6954_v9 = vld [vmem:[#allocation3 + $0x50] sm:$0xf] }
 0x23e   : > { %3913 = vst.msk [vmem:[#allocation5 + $0x24] sm:$0xf] %vm9967_vm4, %v6408_v29  ;;  %v6409_v38 = vpack.c.bf16 %v3769_v50, %v3769_v50  ;;  %v2840_v18 = vpop.permute.xlu1 %2839  ;;  %v3208_v16 = vsel %vm2175_vm10, %v3176_v6, %v8754_v3  ;;  %v3238_v63 = vsel %vm2208_vm11, %v3206_v22, %v8764_v58  ;;  %v3144_v29 = vsel %vm2093_vm8, %v8374_v5, %v8727_v13  ;;  %v472_v5 = vld [vmem:[#allocation4 + $0x38] sm:$0x1] }
 0x23f   : > { %3916 = vst.msk [vmem:[#allocation5 + $0x30] sm:$0xf] %vm9967_vm4, %v6411_v17  ;;  %v2842_v40 = vpop.permute.xlu0 %2841  ;;  %v3240_v34 = vsel %vm2208_vm11, %v3208_v16, %v8767_v57  ;;  %v3270_v52 = vsel %vm2241_vm12, %v3238_v63, %v2838_v61  ;;  %v3141_v57 = vsel %vm2093_vm8, %v6954_v9, %v8722_v1  ;;  %v3180_v17 = vsel %vm2142_vm9, %v3144_v29, %v8742_v54 }
 0x240   : > { %3914 = vst.msk [vmem:[#allocation5 + $0x28] sm:$0xf] %vm9967_vm4, %v6409_v38  ;;  %v3272_v32 = vsel %vm2241_vm12, %v3240_v34, %v2840_v18  ;;  %v3178_v36 = vsel %vm2142_vm9, %v3141_v57, %v8738_v35  ;;  %v3212_v51 = vsel %vm2175_vm10, %v3180_v17, %v8762_v15  ;;  %v473_v54 = vsel %vm8705_vm3, 0, %v472_v5  ;;  %v466_v17 = vld [vmem:[#allocation4 + $0x28] sm:$0x1] }
 0x241   : > { %v3210_v50 = vsel %vm2175_vm10, %v3178_v36, %v8758_v19  ;;  %v3244_v35 = vsel %vm2208_vm11, %v3212_v51, %v8774_v31  ;;  %474 = vst [vmem:[#allocation4 + $0x38] sm:$0x1] %v473_v54  ;;  %v475_v51 = vld [vmem:[#allocation4 + $0x40] sm:$0x1] }
 0x242   : > { %v2844_v12 = vpop.permute.xlu1 %2843  ;;  %v3242_v13 = vsel %vm2208_vm11, %v3210_v50, %v8770_v41  ;;  %v467_v50 = vsel %vm8705_vm3, 0, %v466_v17 }
 0x243   : > { %v2870_v39 = vpop.permute.xlu0 %2869  ;;  %v3274_v44 = vsel %vm2241_vm12, %v3242_v13, %v2842_v40  ;;  %v3276_v19 = vsel %vm2241_vm12, %v3244_v35, %v2844_v12  ;;  %468 = vst [vmem:[#allocation4 + $0x28] sm:$0x1] %v467_v50  ;;  %v476_v13 = vsel %vm8705_vm3, 0, %v475_v51  ;;  %v469_v35 = vld [vmem:[#allocation4 + $0x30] sm:$0x1] }
 0x244   : > { %v3302_v23 = vsel %vm2274_vm13, %v3270_v52, %v2870_v39  ;;  %477 = vst [vmem:[#allocation4 + $0x40] sm:$0x1] %v476_v13  ;;  %v470_v54 = vsel %vm8705_vm3, 0, %v469_v35 }
 0x245   : > { %471 = vst [vmem:[#allocation4 + $0x30] sm:$0x1] %v470_v54 }
 0x246   : > { %v2872_v49 = vpop.permute.xlu1 %2871 }
 0x247   : > { %v2874_v45 = vpop.permute.xlu0 %2873  ;;  %v3304_v8 = vsel %vm2274_vm13, %v3272_v32, %v2872_v49 }
 0x248   : > { %v3306_v15 = vsel %vm2274_vm13, %v3274_v44, %v2874_v45 }
 0x24a   : > { %v2876_v28 = vpop.permute.xlu1 %2875 }
 0x24b   : > { %v2902_v24 = vpop.permute.xlu0 %2901  ;;  %v3308_v18 = vsel %vm2274_vm13, %v3276_v19, %v2876_v28 }
 0x24c   : > { %v3334_v33 = vsel %vm2307_vm14, %v3302_v23, %v2902_v24 }
 0x24e   : > { %v2904_v10 = vpop.permute.xlu1 %2903 }
 0x24f   : > { %v2906_v60 = vpop.permute.xlu0 %2905  ;;  %v3336_v3 = vsel %vm2307_vm14, %v3304_v8, %v2904_v10  ;;  %v8863_v10 = vld [vmem:[%s9905_s5] ss:$0 sm:$0xff] }
 0x250   : > { %v3338_v20 = vsel %vm2307_vm14, %v3306_v15, %v2906_v60 }
 0x252   : > { %v2908_v14 = vpop.permute.xlu1 %2907 }
 0x253   : > { %v3094_v25 = vpop.permute.xlu0 %3093  ;;  %v3340_v41 = vsel %vm2307_vm14, %v3308_v18, %v2908_v14 }
 0x254   : > { %v3366_v0 = vsel %vm2340_vm15, %v3334_v33, %v3094_v25 }
 0x256   : > { %v3096_v21 = vpop.permute.xlu1 %3095 }
 0x257   : > { %v3368_v58 = vsel %vm2340_vm15, %v3336_v3, %v3096_v21  ;;  %v8818_v61 = vpop.permute.xlu0 %2397 }
 0x258   : > { %v6204_v53 = vcombine.low %v3366_v0, %v3368_v58 }
 0x25a   : > { %v8828_v1 = vpop.permute.xlu1 %2399  ;;  %6516 = vmatprep.mubr.msk.bf16.mxu0 %vm3482_vm0, %v6204_v53 }
 0x25b   : > { %v3098_v38 = vpop.permute.xlu0 %3097 }
 0x25c   : > { %v3370_v31 = vsel %vm2340_vm15, %v3338_v20, %v3098_v38 }
 0x25e   : > { %v3100_v55 = vpop.permute.xlu1 %3099 }
 0x25f   : > { %v3372_v37 = vsel %vm2340_vm15, %v3340_v41, %v3100_v55  ;;  %v8845_v42 = vpop.permute.xlu0 %2401 }
 0x260   : > { %v6205_v26 = vcombine.low %v3370_v31, %v3372_v37  ;;  %v3147_v31 = vsel %vm2093_vm8, %v8532_v4, %v8818_v61  ;;  %v3150_v37 = vsel %vm2093_vm8, %v8539_v46, %v8828_v1  ;;  %v3153_v46 = vsel %vm2093_vm8, %v8549_v47, %v8845_v42 }
 0x262   : > { %v8847_v40 = vpop.permute.xlu1 %2403  ;;  %6517 = vmatmul.mubr.msk.bf16.gmra.mrb[24].mxu0 %vm3482_vm0, %v6205_v26 }
 0x263   : > { %v8850_v12 = vpop.permute.xlu0 %2589  ;;  %v3156_v61 = vsel %vm2093_vm8, %v8556_v27, %v8847_v40 }
 0x266   : > { %v8852_v2 = vpop.permute.xlu1 %2591 }
 0x267   : > { %v8854_v39 = vpop.permute.xlu0 %2593 }
 0x26a   : > { %v8856_v49 = vpop.permute.xlu1 %2595 }
 0x26b   : > { %v2622_v62 = vpop.permute.xlu0 %2621 }
 0x26e   : > { %v2624_v45 = vpop.permute.xlu1 %2623 }
 0x26f   : > { %v8858_v28 = vpop.permute.xlu0 %2625 }
 0x271   : > { %v6506_v24 = vpop.f32.mrb[12].mxu0 }
 0x272   : > { %v3626_v11 = vadd.f32 %v8863_v10, %v6506_v24  ;;  %v8866_v30 = vpop.permute.xlu1 %2627  ;;  %v3617_v60 = vpop.f32.mrb[13].mxu0  ;;  %v3182_v24 = vsel %vm2142_vm9, %v3147_v31, %v8850_v12  ;;  %v478_v31 = vld [vmem:[#allocation4 + $0x48] sm:$0x1] }
 0x273   : > { %v3618_v48 = vadd.f32 %v8863_v10, %v3617_v60  ;;  %v6507_v6 = vpop.f32.mrb[14].mxu0  ;;  %v2654_v16 = vpop.permute.xlu0 %2653  ;;  %v3214_v60 = vsel %vm2175_vm10, %v3182_v24, %v2622_v62  ;;  %v3186_v62 = vsel %vm2142_vm9, %v3153_v46, %v8854_v39  ;;  %v481_v46 = vld [vmem:[#allocation4 + $0x50] sm:$0x1] }
 0x274   : > { %vm3710_vm1 = vcmp.ge.f32.partialorder %v3626_v11, 0.0  ;;  %v3742_v22 = vmul.f32 0.1, %v3626_v11  ;;  %v3629_v14 = vadd.f32 %v8863_v10, %v6507_v6  ;;  %v3620_v63 = vpop.f32.mrb[15].mxu0  ;;  %v3218_v47 = vsel %vm2175_vm10, %v3186_v62, %v8858_v28 }
 0x275   : > { %vm3708_vm2 = vcmp.ge.f32.partialorder %v3618_v48, 0.0  ;;  %v3740_v34 = vmul.f32 0.1, %v3618_v48  ;;  %v3621_v52 = vadd.f32 %v8863_v10, %v3620_v63 }
 0x276   : > { %v3774_v32 = vsel %vm3710_vm1, %v3626_v11, %v3742_v22  ;;  %vm3711_vm6 = vcmp.ge.f32.partialorder %v3629_v14, 0.0  ;;  %v3743_v25 = vmul.f32 0.1, %v3629_v14  ;;  %v2656_v23 = vpop.permute.xlu1 %2655  ;;  %v3184_v11 = vsel %vm2142_vm9, %v3150_v37, %v8852_v2 }
 0x277   : > { %v6414_v8 = vpack.c.bf16 %v3774_v32, %v3774_v32  ;;  %v3772_v33 = vsel %vm3708_vm2, %v3618_v48, %v3740_v34  ;;  %vm3709_vm7 = vcmp.ge.f32.partialorder %v3621_v52, 0.0  ;;  %v3741_v3 = vmul.f32 0.1, %v3621_v52  ;;  %v2658_v58 = vpop.permute.xlu0 %2657 }
 0x278   : > { %v6412_v21 = vpack.c.bf16 %v3772_v33, %v3772_v33  ;;  %v3775_v0 = vsel %vm3711_vm6, %v3629_v14, %v3743_v25  ;;  %v3216_v48 = vsel %vm2175_vm10, %v3184_v11, %v2624_v45  ;;  %v3246_v22 = vsel %vm2208_vm11, %v3214_v60, %v2654_v16  ;;  %v487_v11 = vld [vmem:[#allocation4 + $0x60] sm:$0x1]  ;;  %v4095_v60 = vld [vmem:[#allocation4 + $0x18] sm:$0xf] }
 0x279   : > { %3919 = vst.msk [vmem:[#allocation5 + $0x3c] sm:$0xf] %vm9967_vm4, %v6414_v8  ;;  %v6415_v9 = vpack.c.bf16 %v3775_v0, %v3775_v0  ;;  %v3773_v57 = vsel %vm3709_vm7, %v3621_v52, %v3741_v3  ;;  %v3248_v4 = vsel %vm2208_vm11, %v3216_v48, %v2656_v23  ;;  %v3188_v45 = vsel %vm2142_vm9, %v3156_v61, %v8856_v49  ;;  %v4098_v48 = vld [vmem:[#allocation4 + $0x1c] sm:$0x1] }
 0x27a   : > { %3917 = vst.msk [vmem:[#allocation5 + $0x34] sm:$0xf] %vm9967_vm4, %v6412_v21  ;;  %v6413_v29 = vpack.c.bf16 %v3773_v57, %v3773_v57  ;;  %v2660_v53 = vpop.permute.xlu1 %2659  ;;  %v3220_v27 = vsel %vm2175_vm10, %v3188_v45, %v8866_v30  ;;  %v3250_v39 = vsel %vm2208_vm11, %v3218_v47, %v2658_v58  ;;  %v484_v57 = vld [vmem:[#allocation4 + $0x58] sm:$0x1]  ;;  %v488_v62 = vsel %vm8705_vm3, 0, %v487_v11 }
 0x27b   : > { %3920 = vst.msk [vmem:[#allocation5 + $0x40] sm:$0xf] %vm9967_vm4, %v6415_v9  ;;  %v2846_v36 = vpop.permute.xlu0 %2845  ;;  %v3252_v34 = vsel %vm2208_vm11, %v3220_v27, %v2660_v53  ;;  %v4086_v47 = vld [vmem:[#allocation4 + $0xc] sm:$0x1]  ;;  %489 = vst [vmem:[#allocation4 + $0x60] sm:$0x1] %v488_v62 }
 0x27c   : > { %3918 = vst.msk [vmem:[#allocation5 + $0x38] sm:$0xf] %vm9967_vm4, %v6413_v29  ;;  %v3278_v1 = vsel %vm2241_vm12, %v3246_v22, %v2846_v36  ;;  %v485_v29 = vsel %vm8705_vm3, 0, %v484_v57 }
 0x27d   : > { %486 = vst [vmem:[#allocation4 + $0x58] sm:$0x1] %v485_v29 }
 0x27e   : > { %v2848_v5 = vpop.permute.xlu1 %2847 }
 0x27f   : > { %v2850_v44 = vpop.permute.xlu0 %2849  ;;  %v3280_v12 = vsel %vm2241_vm12, %v3248_v4, %v2848_v5  ;;  %v479_v4 = vsel %vm8705_vm3, 0, %v478_v31 }
 0x280   : > { %v3282_v32 = vsel %vm2241_vm12, %v3250_v39, %v2850_v44  ;;  %480 = vst [vmem:[#allocation4 + $0x48] sm:$0x1] %v479_v4 }
 0x282   : > { %v2852_v19 = vpop.permute.xlu1 %2851 }
 0x283   : > { %v2878_v38 = vpop.permute.xlu0 %2877  ;;  %v3284_v28 = vsel %vm2241_vm12, %v3252_v34, %v2852_v19 }
 0x284   : > { %v3310_v16 = vsel %vm2274_vm13, %v3278_v1, %v2878_v38 }
 0x286   : > { %v2880_v15 = vpop.permute.xlu1 %2879 }
 0x287   : > { %v2882_v18 = vpop.permute.xlu0 %2881  ;;  %v3312_v14 = vsel %vm2274_vm13, %v3280_v12, %v2880_v15  ;;  %v4083_v12 = vld [vmem:[#allocation4 + $0x8] sm:$0xf] }
 0x288   : > { %v3314_v30 = vsel %vm2274_vm13, %v3282_v32, %v2882_v18 }
 0x28a   : > { %v2884_v20 = vpop.permute.xlu1 %2883 }
 0x28b   : > { %v2910_v41 = vpop.permute.xlu0 %2909  ;;  %v3316_v8 = vsel %vm2274_vm13, %v3284_v28, %v2884_v20  ;;  %v4104_v28 = vld [vmem:[#allocation4 + $0x24] sm:$0x1] }
 0x28c   : > { %v3342_v42 = vsel %vm2307_vm14, %v3310_v16, %v2910_v41 }
 0x28e   : > { %v2912_v55 = vpop.permute.xlu1 %2911 }
 0x28f   : > { %v2914_v26 = vpop.permute.xlu0 %2913  ;;  %v3344_v40 = vsel %vm2307_vm14, %v3312_v14, %v2912_v55 }
 0x290   : > { %v3346_v33 = vsel %vm2307_vm14, %v3314_v30, %v2914_v26 }
 0x292   : > { %v2916_v6 = vpop.permute.xlu1 %2915 }
 0x293   : > { %v3102_v2 = vpop.permute.xlu0 %3101  ;;  %v3348_v3 = vsel %vm2307_vm14, %v3316_v8, %v2916_v6 }
 0x294   : > { %v3374_v49 = vsel %vm2340_vm15, %v3342_v42, %v3102_v2  ;;  %v482_v42 = vsel %vm8705_vm3, 0, %v481_v46 }
 0x295   : > { %483 = vst [vmem:[#allocation4 + $0x50] sm:$0x1] %v482_v42 }
 0x296   : > { %v3104_v63 = vpop.permute.xlu1 %3103 }
 0x297   : > { %v3376_v52 = vsel %vm2340_vm15, %v3344_v40, %v3104_v63  ;;  %v3106_v23 = vpop.permute.xlu0 %3105 }
 0x298   : > { %v6206_v25 = vcombine.low %v3374_v49, %v3376_v52  ;;  %v3378_v0 = vsel %vm2340_vm15, %v3346_v33, %v3106_v23  ;;  %v4101_v49 = vld [vmem:[#allocation4 + $0x20] sm:$0xf] }
 0x29a   : > { %v3108_v21 = vpop.permute.xlu1 %3107  ;;  %6520 = vmatprep.mubr.msk.bf16.mxu0 %vm3482_vm0, %v6206_v25 }
 0x29b   : > { %v3380_v58 = vsel %vm2340_vm15, %v3348_v3, %v3108_v21  ;;  %v4089_v21 = vld [vmem:[#allocation4 + $0x10] sm:$0xf] }
 0x29c   : > { %v6207_v9 = vcombine.low %v3378_v0, %v3380_v58  ;;  %v4092_v0 = vld [vmem:[#allocation4 + $0x14] sm:$0x1] }
 0x29e   : > { %6521 = vmatmul.mubr.msk.bf16.gmra.mrb[28].mxu0 %vm3482_vm0, %v6207_v9  ;;  %vm8941_vm0 = vmand %vm9967_vm4, %vm533_vm5 }
 0x2b5   : > { %v6510_v53 = vpop.f32.mrb[16].mxu0 }
 0x2b6   : > { %v3642_v36 = vadd.f32 %v8863_v10, %v6510_v53  ;;  %v3633_v17 = vpop.f32.mrb[17].mxu0 }
 0x2b7   : > { %v3634_v50 = vadd.f32 %v8863_v10, %v3633_v17  ;;  %v6511_v51 = vpop.f32.mrb[18].mxu0 }
 0x2b8   : > { %vm3714_vm8 = vcmp.ge.f32.partialorder %v3642_v36, 0.0  ;;  %v3746_v5 = vmul.f32 0.1, %v3642_v36  ;;  %v3645_v13 = vadd.f32 %v8863_v10, %v6511_v51  ;;  %v3636_v35 = vpop.f32.mrb[19].mxu0 }
 0x2b9   : > { %vm3712_vm10 = vcmp.ge.f32.partialorder %v3634_v50, 0.0  ;;  %v3744_v54 = vmul.f32 0.1, %v3634_v50  ;;  %v3637_v44 = vadd.f32 %v8863_v10, %v3636_v35 }
 0x2ba   : > { %v3778_v19 = vsel %vm3714_vm8, %v3642_v36, %v3746_v5  ;;  %vm3715_vm12 = vcmp.ge.f32.partialorder %v3645_v13, 0.0  ;;  %v3747_v38 = vmul.f32 0.1, %v3645_v13 }
 0x2bb   : > { %v6418_v15 = vpack.c.bf16 %v3778_v19, %v3778_v19  ;;  %v3776_v18 = vsel %vm3712_vm10, %v3634_v50, %v3744_v54  ;;  %vm3713_vm14 = vcmp.ge.f32.partialorder %v3637_v44, 0.0  ;;  %v3745_v20 = vmul.f32 0.1, %v3637_v44 }
 0x2bc   : > { %v6416_v41 = vpack.c.bf16 %v3776_v18, %v3776_v18  ;;  %v3779_v55 = vsel %vm3715_vm12, %v3645_v13, %v3747_v38 }
 0x2bd   : > { %v3938_v37 = vshrl.u32 %v6418_v15, 16  ;;  %v6419_v26 = vpack.c.bf16 %v3779_v55, %v3779_v55  ;;  %v3777_v24 = vsel %vm3713_vm14, %v3637_v44, %v3745_v20  ;;  %v3941_v1 = vshll.u32 %v6418_v15, 16 }
 0x2be   : > { %v3922_v6 = vshrl.u32 %v6416_v41, 16  ;;  %v6417_v22 = vpack.c.bf16 %v3777_v24, %v3777_v24  ;;  %v3925_v14 = vshll.u32 %v6416_v41, 16  ;;  %v496_v24 = vld [vmem:[#allocation4 + $0x78] sm:$0x1] }
 0x2bf   : > { %v3940_v61 = vrot.slane %v3938_v37, 7  ;;  %v3946_v2 = vshrl.u32 %v6419_v26, 16  ;;  %v3949_v34 = vshll.u32 %v6419_v26, 16  ;;  %v497_v11 = vsel %vm8705_vm3, 0, %v496_v24 }
 0x2c0   : > { %v3924_v16 = vrot.slane %v3922_v6, 7  ;;  %v3930_v27 = vshrl.u32 %v6417_v22, 16  ;;  %v3933_v23 = vshll.u32 %v6417_v22, 16  ;;  %498 = vst [vmem:[#allocation4 + $0x78] sm:$0x1] %v497_v11 }
 0x2c1   : > { %v3943_v40 = vor.u32 %v3941_v1, %v3940_v61  ;;  %v3944_v63 = vrot.slane %v3940_v61, 4  ;;  %v3948_v39 = vrot.slane %v3946_v2, 7  ;;  %v4113_v11 = vld [vmem:[#allocation4 + $0x30] sm:$0xf] }
 0x2c2   : > { %v3927_v52 = vor.u32 %v3925_v14, %v3924_v16  ;;  %v3928_v32 = vrot.slane %v3924_v16, 4  ;;  %v3932_v25 = vrot.slane %v3930_v27, 7  ;;  %v499_v14 = vld [vmem:[#allocation4 + $0x80] sm:$0x1] }
 0x2c3   : > { %v4096_v30 = vsel %vm8941_vm0, %v3943_v40, %v4095_v60  ;;  %v4099_v8 = vsel %vm8705_vm3, %v3944_v63, %v4098_v48  ;;  %v3951_v33 = vor.u32 %v3949_v34, %v3948_v39  ;;  %v3952_v3 = vrot.slane %v3948_v39, 4  ;;  %v493_v40 = vld [vmem:[#allocation4 + $0x70] sm:$0x1] }
 0x2c4   : > { %4097 = vst [vmem:[#allocation4 + $0x18] sm:$0xf] %v4096_v30  ;;  %4100 = vst [vmem:[#allocation4 + $0x1c] sm:$0x1] %v4099_v8  ;;  %v4084_v58 = vsel %vm8941_vm0, %v3927_v52, %v4083_v12  ;;  %v4087_v9 = vsel %vm8705_vm3, %v3928_v32, %v4086_v47  ;;  %v3935_v57 = vor.u32 %v3933_v23, %v3932_v25  ;;  %v3936_v29 = vrot.slane %v3932_v25, 4 }
 0x2c5   : > { %4085 = vst [vmem:[#allocation4 + $0x8] sm:$0xf] %v4084_v58  ;;  %4088 = vst [vmem:[#allocation4 + $0xc] sm:$0x1] %v4087_v9  ;;  %v4102_v53 = vsel %vm8941_vm0, %v3951_v33, %v4101_v49  ;;  %v4105_v36 = vsel %vm8705_vm3, %v3952_v3, %v4104_v28  ;;  %v490_v12 = vld [vmem:[#allocation4 + $0x68] sm:$0x1] }
 0x2c6   : > { %4103 = vst [vmem:[#allocation4 + $0x20] sm:$0xf] %v4102_v53  ;;  %4106 = vst [vmem:[#allocation4 + $0x24] sm:$0x1] %v4105_v36  ;;  %v4090_v17 = vsel %vm8941_vm0, %v3935_v57, %v4089_v21  ;;  %v4093_v50 = vsel %vm8705_vm3, %v3936_v29, %v4092_v0  ;;  %v491_v16 = vsel %vm8705_vm3, 0, %v490_v12  ;;  %v500_v42 = vsel %vm8705_vm3, 0, %v499_v14 }
 0x2c7   : > { %4091 = vst [vmem:[#allocation4 + $0x10] sm:$0xf] %v4090_v17  ;;  %4094 = vst [vmem:[#allocation4 + $0x14] sm:$0x1] %v4093_v50  ;;  %v494_v32 = vsel %vm8705_vm3, 0, %v493_v40 }
 0x2c8   : > { %492 = vst [vmem:[#allocation4 + $0x68] sm:$0x1] %v491_v16  ;;  %501 = vst [vmem:[#allocation4 + $0x80] sm:$0x1] %v500_v42  ;;  %v4119_v30 = vld [vmem:[#allocation4 + $0x38] sm:$0xf] }
 0x2c9   : > { %495 = vst [vmem:[#allocation4 + $0x70] sm:$0x1] %v494_v32  ;;  %v4122_v8 = vld [vmem:[#allocation4 + $0x3c] sm:$0x1]  ;;  %v4107_v58 = vld [vmem:[#allocation4 + $0x28] sm:$0xf] }
 0x2ca   : > { %v4110_v53 = vld [vmem:[#allocation4 + $0x2c] sm:$0x1] }
 0x2cc   : > { %v8973_v37 = vld [vmem:[#allocation4 + $0x8] sm:$0xf] }
 0x2cd   : > { %v8963_v51 = vld [vmem:[#allocation4 + $0x20] sm:$0xf]  ;;  %v4188_v5 = vld [vmem:[#allocation4 + $0x24] sm:$0x1]  ;;  %v6275_v26 = vcombine.low %v8973_v37, %v8973_v37 }
 0x2ce   : > { %v6269_v13 = vcombine.low %v8963_v51, %v4188_v5  ;;  %v8966_v35 = vld [vmem:[#allocation4 + $0x10] sm:$0xf]  ;;  %v4184_v54 = vld [vmem:[#allocation4 + $0x14] sm:$0x1] }
 0x2cf   : > { %v6268_v44 = vcombine.low %v8966_v35, %v4184_v54  ;;  %v4125_v54 = vld [vmem:[#allocation4 + $0x40] sm:$0xf] }
 0x2d0   : > { %v4327_v19 = vshll.u32 %v6269_v13, 16  ;;  %v4325_v15 = vshrl.u32 %v6269_v13, 16 }
 0x2d1   : > { %v4320_v38 = vshll.u32 %v6268_v44, 16  ;;  %v4318_v20 = vshrl.u32 %v6268_v44, 16 }
 0x2d2   : > { %v4329_v18 = vrot.slane %v4327_v19, 1 }
 0x2d3   : > { %v4322_v41 = vrot.slane %v4320_v38, 1  ;;  %v4128_v38 = vld [vmem:[#allocation4 + $0x44] sm:$0x1] }
 0x2d4   : > { %v8969_v55 = vor.u32 %v4329_v18, %v4325_v15 }
 0x2d5   : > { %v8971_v31 = vor.u32 %v4322_v41, %v4318_v20 }
 0x2d6   : > { %4370 = vrot.lane.b32.xlu0 %v8969_v55, %s7023_s26 }
 0x2d7   : > { %4368 = vrot.lane.b32.xlu1 %v8971_v31, %s7023_s26 }
 0x2da   : > { %4406 = vrot.lane.b32.xlu0 %v6275_v26, %s7027_s17 }
 0x2f5   : > { %v6514_v60 = vpop.f32.mrb[20].mxu0 }
 0x2f6   : > { %v3658_v48 = vadd.f32 %v8863_v10, %v6514_v60  ;;  %v3649_v6 = vpop.f32.mrb[21].mxu0  ;;  %v4116_v60 = vld [vmem:[#allocation4 + $0x34] sm:$0x1] }
 0x2f7   : > { %v3650_v22 = vadd.f32 %v8863_v10, %v3649_v6  ;;  %v6515_v4 = vpop.f32.mrb[22].mxu0 }
 0x2f8   : > { %vm3718_vm1 = vcmp.ge.f32.partialorder %v3658_v48, 0.0  ;;  %v3750_v46 = vmul.f32 0.1, %v3658_v48  ;;  %v3661_v61 = vadd.f32 %v8863_v10, %v6515_v4  ;;  %v3652_v1 = vpop.f32.mrb[23].mxu0 }
 0x2f9   : > { %vm3716_vm2 = vcmp.ge.f32.partialorder %v3650_v22, 0.0  ;;  %v3748_v2 = vmul.f32 0.1, %v3650_v22  ;;  %v3653_v62 = vadd.f32 %v8863_v10, %v3652_v1 }
 0x2fa   : > { %v3782_v47 = vsel %vm3718_vm1, %v3658_v48, %v3750_v46  ;;  %vm3719_vm6 = vcmp.ge.f32.partialorder %v3661_v61, 0.0  ;;  %v3751_v27 = vmul.f32 0.1, %v3661_v61  ;;  %vm4835_vm1 = vcmask 1043456  }
 0x2fb   : > { %v6422_v63 = vpack.c.bf16 %v3782_v47, %v3782_v47  ;;  %v3780_v39 = vsel %vm3716_vm2, %v3650_v22, %v3748_v2  ;;  %vm3717_vm7 = vcmp.ge.f32.partialorder %v3653_v62, 0.0  ;;  %v3749_v34 = vmul.f32 0.1, %v3653_v62  ;;  %v4182_v2 = vld [vmem:[#allocation4 + $0xc] sm:$0x1] }
 0x2fc   : > { %v6420_v49 = vpack.c.bf16 %v3780_v39, %v3780_v39  ;;  %v3783_v52 = vsel %vm3719_vm6, %v3661_v61, %v3751_v27  ;;  %v6291_v16 = vcombine.low %v8973_v37, %v4182_v2  ;;  %v6803_v39 = vld [vmem:[#allocation5 + $0x4] ss:$0 sps:$4 sm:$0xff]   ;;  %v6805_v37 = vld [vmem:[#allocation5 + $0x14] ss:$0 sps:$4 sm:$0xff]  }
 0x2fd   : > { %v3970_v28 = vshrl.u32 %v6422_v63, 16  ;;  %v6423_v25 = vpack.c.bf16 %v3783_v52, %v3783_v52  ;;  %v3781_v23 = vsel %vm3717_vm7, %v3653_v62, %v3749_v34  ;;  %v3973_v0 = vshll.u32 %v6422_v63, 16  ;;  %v6844_v2 = vld [vmem:[%s9903_s3 + $0x18] sm:$0xff]  }
 0x2fe   : > { %v3954_v33 = vshrl.u32 %v6420_v49, 16  ;;  %v6421_v3 = vpack.c.bf16 %v3781_v23, %v3781_v23  ;;  %v3957_v29 = vshll.u32 %v6420_v49, 16  ;;  %v4489_v49 = vshll.u32 %v6291_v16, 16 }
 0x2ff   : > { %v3972_v21 = vrot.slane %v3970_v28, 7  ;;  %v3978_v9 = vshrl.u32 %v6423_v25, 16  ;;  %v3981_v13 = vshll.u32 %v6423_v25, 16 }
 0x300   : > { %v3956_v57 = vrot.slane %v3954_v33, 7  ;;  %v3962_v36 = vshrl.u32 %v6421_v3, 16  ;;  %v3965_v18 = vshll.u32 %v6421_v3, 16  ;;  %v4491_v25 = vrot.slane %v4489_v49, 1 }
 0x301   : > { %v3975_v17 = vor.u32 %v3973_v0, %v3972_v21  ;;  %v3976_v50 = vrot.slane %v3972_v21, 4  ;;  %v3980_v5 = vrot.slane %v3978_v9, 7  ;;  %v4186_v0 = vld [vmem:[#allocation4 + $0x1c] sm:$0x1] }
 0x302   : > { %v3959_v44 = vor.u32 %v3957_v29, %v3956_v57  ;;  %v3960_v19 = vrot.slane %v3956_v57, 4  ;;  %v3964_v15 = vrot.slane %v3962_v36, 7 }
 0x303   : > { %v4120_v20 = vsel %vm8941_vm0, %v3975_v17, %v4119_v30  ;;  %v4123_v41 = vsel %vm8705_vm3, %v3976_v50, %v4122_v8  ;;  %v3983_v26 = vor.u32 %v3981_v13, %v3980_v5  ;;  %v3984_v24 = vrot.slane %v3980_v5, 4  ;;  %v4185_v30 = vld [vmem:[#allocation4 + $0x18] sm:$0xf]  ;;  %v6810_v50 = vld [vmem:[#allocation5 + $0xc] ss:$0 sps:$4 sm:$0xff]  }
 0x304   : > { %4121 = vst [vmem:[#allocation4 + $0x38] sm:$0xf] %v4120_v20  ;;  %4124 = vst [vmem:[#allocation4 + $0x3c] sm:$0x1] %v4123_v41  ;;  %v4108_v48 = vsel %vm8941_vm0, %v3959_v44, %v4107_v58  ;;  %v4111_v6 = vsel %vm8705_vm3, %v3960_v19, %v4110_v53  ;;  %v3967_v22 = vor.u32 %v3965_v18, %v3964_v15  ;;  %v3968_v4 = vrot.slane %v3964_v15, 4 }
 0x305   : > { %4109 = vst [vmem:[#allocation4 + $0x28] sm:$0xf] %v4108_v48  ;;  %4112 = vst [vmem:[#allocation4 + $0x2c] sm:$0x1] %v4111_v6  ;;  %v4126_v46 = vsel %vm8941_vm0, %v3983_v26, %v4125_v54  ;;  %v4129_v61 = vsel %vm8705_vm3, %v3984_v24, %v4128_v38  ;;  %v4487_v8 = vshrl.u32 %v6291_v16, 16  ;;  %v6276_v33 = vcombine.low %v4185_v30, %v4185_v30  ;;  %v6838_v26 = vld [vmem:[%s9903_s3] sm:$0xff]  }
 0x306   : > { %4127 = vst [vmem:[#allocation4 + $0x40] sm:$0xf] %v4126_v46  ;;  %4130 = vst [vmem:[#allocation4 + $0x44] sm:$0x1] %v4129_v61  ;;  %v4114_v1 = vsel %vm8941_vm0, %v3967_v22, %v4113_v11  ;;  %v4117_v12 = vsel %vm8705_vm3, %v3968_v4, %v4116_v60  ;;  %v6292_v57 = vcombine.low %v4185_v30, %v4186_v0  ;;  %v6812_v54 = vld [vmem:[#allocation5 + $0x1c] ss:$0 sps:$4 sm:$0xff]   ;;  %6524 = vmatprep.subr.bf16.mxu1 %v6838_v26 }
 0x307   : > { %4115 = vst [vmem:[#allocation4 + $0x30] sm:$0xf] %v4114_v1  ;;  %4118 = vst [vmem:[#allocation4 + $0x34] sm:$0x1] %v4117_v12  ;;  %v4492_v3 = vor.u32 %v4491_v25, %v4487_v8  ;;  %v6299_v5 = vcombine.low %v8966_v35, %v8966_v35  ;;  %6525 = vmatpush3.bf16.msra.mxu1 %v6838_v26  ;;  %v6840_v11 = vld [vmem:[%s9903_s3 + $0x8] sm:$0xff]  }
 0x308   : > { %v4496_v13 = vshll.u32 %v6292_v57, 16  ;;  %v4494_v15 = vshrl.u32 %v6292_v57, 16  ;;  %6526 = vmatprep.subr.bf16.mxu1 %v6840_v11  ;;  %v6816_v46 = vld [vmem:[#allocation5 + $0x20] ss:$0 sps:$4 sm:$0xff]   ;;  %v4149_v26 = vld [vmem:[#allocation4 + $0x60] sm:$0xf] }
 0x30a   : > { %v4498_v19 = vrot.slane %v4496_v13, 1 }
 0x30b   : > { %v4193_v58 = vld [vmem:[#allocation4 + $0x38] sm:$0xf]  ;;  %v4194_v36 = vld [vmem:[#allocation4 + $0x3c] sm:$0x1]  ;;  %6527 = vmatpush3.bf16.msra.mxu1 %v6840_v11 }
 0x30c   : > { %v4189_v62 = vld [vmem:[#allocation4 + $0x28] sm:$0xf]  ;;  %v4190_v47 = vld [vmem:[#allocation4 + $0x2c] sm:$0x1]  ;;  %v6278_v29 = vcombine.low %v4193_v58, %v4193_v58  ;;  %v6294_v17 = vcombine.low %v4193_v58, %v4194_v36  ;;  %v4499_v18 = vor.u32 %v4498_v19, %v4494_v15 }
 0x30d   : > { %v6277_v14 = vcombine.low %v4189_v62, %v4189_v62  ;;  %v6293_v63 = vcombine.low %v4189_v62, %v4190_v47  ;;  %v9047_v60 = vld [vmem:[#allocation4 + $0x40] sm:$0xf]  ;;  %v4196_v48 = vld [vmem:[#allocation4 + $0x44] sm:$0x1] }
 0x30e   : > { %v9011_v27 = vld [vmem:[#allocation4 + $0x30] sm:$0xf]  ;;  %v4192_v42 = vld [vmem:[#allocation4 + $0x34] sm:$0x1]  ;;  %v4510_v38 = vshll.u32 %v6294_v17, 16  ;;  %v4508_v41 = vshrl.u32 %v6294_v17, 16  ;;  %v6271_v6 = vcombine.low %v9047_v60, %v4196_v48  ;;  %v6302_v4 = vcombine.low %v9047_v60, %v9047_v60 }
 0x30f   : > { %4410 = vrot.lane.b32.xlu0 %v6277_v14, %s7027_s17  ;;  %v6270_v40 = vcombine.low %v9011_v27, %v4192_v42  ;;  %v4503_v23 = vshll.u32 %v6293_v63, 16  ;;  %v4501_v9 = vshrl.u32 %v6293_v63, 16  ;;  %v6301_v44 = vcombine.low %v9011_v27, %v9011_v27 }
 0x310   : > { %v4512_v20 = vrot.slane %v4510_v38, 1  ;;  %v4341_v47 = vshll.u32 %v6271_v6, 16 }
 0x311   : > { %v4334_v34 = vshll.u32 %v6270_v40, 16  ;;  %v4332_v52 = vshrl.u32 %v6270_v40, 16  ;;  %v4505_v21 = vrot.slane %v4503_v23, 1 }
 0x312   : > { %v4513_v24 = vor.u32 %v4512_v20, %v4508_v41  ;;  %v4343_v23 = vrot.slane %v4341_v47, 1 }
 0x313   : > { %4446 = vrot.lane.b32.xlu0 %v6803_v39, %s7029_s18  ;;  %v4336_v32 = vrot.slane %v4334_v34, 1  ;;  %v4506_v53 = vor.u32 %v4505_v21, %v4501_v9  ;;  %v4143_v21 = vld [vmem:[#allocation4 + $0x58] sm:$0xf] }
 0x315   : > { %v9016_v28 = vor.u32 %v4336_v32, %v4332_v52  ;;  %v6846_v32 = vld [vmem:[%s9903_s3 + $0x20] ss:$0 sps:$4 sm:$0xff]  }
 0x316   : > { %v4837_v36 = vsel %vm4835_vm1, %v6846_v32, 0 }
 0x317   : > { %4372 = vrot.lane.b32.xlu1 %v9016_v28, %s7023_s26  ;;  %4450 = vrot.lane.b32.xlu0 %v6805_v37, %s7029_s18 }
 0x31b   : > { %4408 = vrot.lane.b32.xlu1 %v6276_v33, %s7027_s17  ;;  %4542 = vrot.lane.b32.xlu0 %v4492_v3, %s7030_s20  ;;  %v9074_v3 = vld [vmem:[#allocation5 + $0x30] ss:$0 sps:$4 sm:$0xff]  }
 0x31f   : > { %4412 = vrot.lane.b32.xlu1 %v6278_v29, %s7027_s17  ;;  %4546 = vrot.lane.b32.xlu0 %v4506_v53, %s7030_s20  ;;  %v4134_v29 = vld [vmem:[#allocation4 + $0x4c] sm:$0x1] }
 0x323   : > { %4448 = vrot.lane.b32.xlu1 %v6810_v50, %s7029_s18  ;;  %4568 = vrot.lane.b32.xlu0 %v6299_v5, %s7031_s23  ;;  %v4131_v5 = vld [vmem:[#allocation4 + $0x48] sm:$0xf] }
 0x327   : > { %4452 = vrot.lane.b32.xlu1 %v6812_v54, %s7029_s18  ;;  %4572 = vrot.lane.b32.xlu0 %v6301_v44, %s7031_s23 }
 0x32b   : > { %4544 = vrot.lane.b32.xlu1 %v4499_v18, %s7030_s20  ;;  %4587 = vrot.lane.b32.xlu0 %v8744_v43, %s7032_s19  ;;  %v6300_v43 = vcombine.low %v8963_v51, %v8963_v51  ;;  %v4152_v18 = vld [vmem:[#allocation4 + $0x64] sm:$0x1] }
 0x32f   : > { %4548 = vrot.lane.b32.xlu1 %v4513_v24, %s7030_s20  ;;  %4591 = vrot.lane.b32.xlu0 %v8756_v7, %s7032_s19  ;;  %v6843_v7 = vld [vmem:[%s9903_s3 + $0x10] sm:$0xff]  }
 0x330   : > { %6528 = vmatprep.subr.bf16.mxu1 %v6843_v7 }
 0x331   : > { %6529 = vmatpush3.bf16.msra.mxu1 %v6843_v7 }
 0x332   : > { %6530 = vmatprep.subr.bf16.mxu1 %v6844_v2 }
 0x333   : > { %4570 = vrot.lane.b32.xlu1 %v6300_v43, %s7031_s23  ;;  %4613 = vrot.lane.b32.xlu0 %v8971_v31, %s7033_s13 }
 0x335   : > { %v6518_v22 = vpop.f32.mrb[24].mxu0  ;;  %6531 = vmatpush3.bf16.msra.mxu1 %v6844_v2  ;;  %v9096_v2 = vld [vmem:[#allocation5 + $0x28] ss:$0 sps:$4 sm:$0xff]  }
 0x336   : > { %v3674_v61 = vadd.f32 %v8863_v10, %v6518_v22  ;;  %v3665_v1 = vpop.f32.mrb[25].mxu0  ;;  %6561 = vmatprep.subr.msk.bf16.mxu1 %vm4835_vm1, %v6846_v32  ;;  %v4137_v22 = vld [vmem:[#allocation4 + $0x50] sm:$0xf] }
 0x337   : > { %v3666_v12 = vadd.f32 %v8863_v10, %v3665_v1  ;;  %4574 = vrot.lane.b32.xlu1 %v6302_v4, %s7031_s23  ;;  %4262 = vrot.lane.b32.xlu0 %v6816_v46, %s7024_s10  ;;  %v6519_v31 = vpop.f32.mrb[26].mxu0  ;;  %v4140_v4 = vld [vmem:[#allocation4 + $0x54] sm:$0x1] }
 0x338   : > { %vm3722_vm8 = vcmp.ge.f32.partialorder %v3674_v61, 0.0  ;;  %v3754_v62 = vmul.f32 0.1, %v3674_v61  ;;  %v3677_v16 = vadd.f32 %v8863_v10, %v6519_v31  ;;  %v3668_v14 = vpop.f32.mrb[27].mxu0 }
 0x339   : > { %vm3720_vm10 = vcmp.ge.f32.partialorder %v3666_v12, 0.0  ;;  %v3752_v42 = vmul.f32 0.1, %v3666_v12  ;;  %v3669_v40 = vadd.f32 %v8863_v10, %v3668_v14  ;;  %6533 = vmatpush3.bf16.msra.mxu1 %v4837_v36  ;;  %v9105_v14 = vld [vmem:[#allocation5 + $0x38] ss:$0 sps:$4 sm:$0xff]  }
 0x33a   : > { %v3786_v63 = vsel %vm3722_vm8, %v3674_v61, %v3754_v62  ;;  %vm3723_vm12 = vcmp.ge.f32.partialorder %v3677_v16, 0.0  ;;  %v3755_v39 = vmul.f32 0.1, %v3677_v16 }
 0x33b   : > { %v6426_v34 = vpack.c.bf16 %v3786_v63, %v3786_v63  ;;  %v3784_v49 = vsel %vm3720_vm10, %v3666_v12, %v3752_v42  ;;  %vm3721_vm14 = vcmp.ge.f32.partialorder %v3669_v40, 0.0  ;;  %v3753_v52 = vmul.f32 0.1, %v3669_v40  ;;  %4589 = vrot.lane.b32.xlu1 %v8750_v59, %s7032_s19  ;;  %4617 = vrot.lane.b32.xlu0 %v9016_v28, %s7033_s13  ;;  %v4146_v59 = vld [vmem:[#allocation4 + $0x5c] sm:$0x1] }
 0x33c   : > { %v6424_v37 = vpack.c.bf16 %v3784_v49, %v3784_v49  ;;  %v3787_v25 = vsel %vm3723_vm12, %v3677_v16, %v3755_v39  ;;  %v4339_v28 = vshrl.u32 %v6271_v6, 16  ;;  %vm4701_vm10 = vcmask 326656  }
 0x33d   : > { %v4002_v30 = vshrl.u32 %v6426_v34, 16  ;;  %v6427_v8 = vpack.c.bf16 %v3787_v25, %v3787_v25  ;;  %v3785_v33 = vsel %vm3721_vm14, %v3669_v40, %v3753_v52  ;;  %v4005_v57 = vshll.u32 %v6426_v34, 16 }
 0x33e   : > { %v3986_v0 = vshrl.u32 %v6424_v37, 16  ;;  %v6425_v58 = vpack.c.bf16 %v3785_v33, %v3785_v33  ;;  %v3989_v50 = vshll.u32 %v6424_v37, 16  ;;  %v4344_v54 = vor.u32 %v4343_v23, %v4339_v28 }
 0x33f   : > { %v4004_v9 = vrot.slane %v4002_v30, 7  ;;  %v4010_v53 = vshrl.u32 %v6427_v8, 16  ;;  %4593 = vrot.lane.b32.xlu1 %v6816_v46, %s7032_s19  ;;  %4266 = vrot.lane.b32.xlu0 %v9074_v3, %s7024_s10  ;;  %v4013_v15 = vshll.u32 %v6427_v8, 16  ;;  %vm4718_vm12 = vcmask 392192  }
 0x340   : > { %v3988_v17 = vrot.slane %v3986_v0, 7  ;;  %v3994_v13 = vshrl.u32 %v6425_v58, 16  ;;  %v3997_v11 = vshll.u32 %v6425_v58, 16  ;;  %vm4735_vm14 = vcmask 457728  }
 0x341   : > { %v4007_v44 = vor.u32 %v4005_v57, %v4004_v9  ;;  %v4008_v19 = vrot.slane %v4004_v9, 4  ;;  %v4012_v38 = vrot.slane %v4010_v53, 7 }
 0x342   : > { %v3991_v20 = vor.u32 %v3989_v50, %v3988_v17  ;;  %v3992_v41 = vrot.slane %v3988_v17, 4  ;;  %v3996_v24 = vrot.slane %v3994_v13, 7 }
 0x343   : > { %v4144_v43 = vsel %vm8941_vm0, %v4007_v44, %v4143_v21  ;;  %v4147_v48 = vsel %vm8705_vm3, %v4008_v19, %v4146_v59  ;;  %v4015_v7 = vor.u32 %v4013_v15, %v4012_v38  ;;  %v4016_v6 = vrot.slane %v4012_v38, 4  ;;  %4615 = vrot.lane.b32.xlu1 %v8969_v55, %s7033_s13  ;;  %4374 = vrot.lane.b32.xlu0 %v4344_v54, %s7023_s26  ;;  %v9128_v59 = vpop.permute.xlu0 %4254 }
 0x344   : > { %4145 = vst [vmem:[#allocation4 + $0x58] sm:$0xf] %v4144_v43  ;;  %4148 = vst [vmem:[#allocation4 + $0x5c] sm:$0x1] %v4147_v48  ;;  %v4132_v46 = vsel %vm8941_vm0, %v3991_v20, %v4131_v5  ;;  %v4135_v61 = vsel %vm8705_vm3, %v3992_v41, %v4134_v29  ;;  %v3999_v1 = vor.u32 %v3997_v11, %v3996_v24  ;;  %v4000_v12 = vrot.slane %v3996_v24, 4 }
 0x345   : > { %4133 = vst [vmem:[#allocation4 + $0x48] sm:$0xf] %v4132_v46  ;;  %4136 = vst [vmem:[#allocation4 + $0x4c] sm:$0x1] %v4135_v61  ;;  %v4150_v31 = vsel %vm8941_vm0, %v4015_v7, %v4149_v26  ;;  %v4153_v55 = vsel %vm8705_vm3, %v4016_v6, %v4152_v18  ;;  %v4167_v43 = vld [vmem:[#allocation4 + $0x78] sm:$0xf] }
 0x346   : > { %4151 = vst [vmem:[#allocation4 + $0x60] sm:$0xf] %v4150_v31  ;;  %4154 = vst [vmem:[#allocation4 + $0x64] sm:$0x1] %v4153_v55  ;;  %v4138_v62 = vsel %vm8941_vm0, %v3999_v1, %v4137_v22  ;;  %v4141_v16 = vsel %vm8705_vm3, %v4000_v12, %v4140_v4  ;;  %v4170_v48 = vld [vmem:[#allocation4 + $0x7c] sm:$0x1]  ;;  %v9140_v22 = vpop.permute.xlu1 %4256 }
 0x347   : > { %4139 = vst [vmem:[#allocation4 + $0x50] sm:$0xf] %v4138_v62  ;;  %4142 = vst [vmem:[#allocation4 + $0x54] sm:$0x1] %v4141_v16  ;;  %4264 = vrot.lane.b32.xlu1 %v9096_v2, %s7024_s10  ;;  %v9130_v0 = vpop.permute.xlu0 %4258  ;;  %v4155_v46 = vld [vmem:[#allocation4 + $0x68] sm:$0xf] }
 0x348   : > { %v4158_v31 = vld [vmem:[#allocation4 + $0x6c] sm:$0x1] }
 0x34b   : > { %4619 = vrot.lane.b32.xlu1 %v4344_v54, %s7033_s13  ;;  %v9132_v58 = vpop.permute.xlu0 %4366 }
 0x34c   : > { %v9119_v33 = vld [vmem:[#allocation4 + $0x48] sm:$0xf] }
 0x34d   : > { %v9107_v47 = vld [vmem:[#allocation4 + $0x60] sm:$0xf]  ;;  %v4204_v42 = vld [vmem:[#allocation4 + $0x64] sm:$0x1]  ;;  %v6279_v21 = vcombine.low %v9119_v33, %v9119_v33 }
 0x34e   : > { %v6273_v40 = vcombine.low %v9107_v47, %v4204_v42  ;;  %v9110_v63 = vld [vmem:[#allocation4 + $0x50] sm:$0xf]  ;;  %v4200_v39 = vld [vmem:[#allocation4 + $0x54] sm:$0x1] }
 0x34f   : > { %4268 = vrot.lane.b32.xlu1 %v9105_v14, %s7024_s10  ;;  %v6272_v34 = vcombine.low %v9110_v63, %v4200_v39  ;;  %v9138_v19 = vpop.permute.xlu0 %4370 }
 0x350   : > { %v4355_v49 = vshll.u32 %v6273_v40, 16  ;;  %v4353_v32 = vshrl.u32 %v6273_v40, 16 }
 0x351   : > { %v4348_v52 = vshll.u32 %v6272_v34, 16  ;;  %v4346_v25 = vshrl.u32 %v6272_v34, 16  ;;  %v4173_v34 = vld [vmem:[#allocation4 + $0x80] sm:$0xf] }
 0x352   : > { %v4357_v37 = vrot.slane %v4355_v49, 1 }
 0x353   : > { %v4350_v23 = vrot.slane %v4348_v52, 1  ;;  %v9142_v62 = vpop.permute.xlu0 %4406 }
 0x354   : > { %v9115_v30 = vor.u32 %v4357_v37, %v4353_v32  ;;  %v4176_v32 = vld [vmem:[#allocation4 + $0x84] sm:$0x1] }
 0x355   : > { %v9117_v8 = vor.u32 %v4350_v23, %v4346_v25 }
 0x356   : > { %4378 = vrot.lane.b32.xlu0 %v9115_v30, %s7023_s26 }
 0x357   : > { %4376 = vrot.lane.b32.xlu1 %v9117_v8, %s7023_s26 }
 0x35a   : > { %4414 = vrot.lane.b32.xlu0 %v6279_v21, %s7027_s17 }
 0x371   : > { %v6522_v28 = vpop.f32.mrb[28].mxu0 }
 0x372   : > { %v3690_v9 = vadd.f32 %v8863_v10, %v6522_v28  ;;  %v3681_v57 = vpop.f32.mrb[29].mxu0 }
 0x373   : > { %v3682_v29 = vadd.f32 %v8863_v10, %v3681_v57  ;;  %v6523_v53 = vpop.f32.mrb[30].mxu0  ;;  %v4161_v57 = vld [vmem:[#allocation4 + $0x70] sm:$0xf] }
 0x374   : > { %vm3726_vm2 = vcmp.ge.f32.partialorder %v3690_v9, 0.0  ;;  %v3758_v36 = vmul.f32 0.1, %v3690_v9  ;;  %v3693_v17 = vadd.f32 %v8863_v10, %v6523_v53  ;;  %v3684_v50 = vpop.f32.mrb[31].mxu0 }
 0x375   : > { %vm3724_vm6 = vcmp.ge.f32.partialorder %v3682_v29, 0.0  ;;  %v3756_v5 = vmul.f32 0.1, %v3682_v29  ;;  %v3685_v13 = vadd.f32 %v8863_v10, %v3684_v50 }
 0x376   : > { %v3790_v54 = vsel %vm3726_vm2, %v3690_v9, %v3758_v36  ;;  %vm3727_vm7 = vcmp.ge.f32.partialorder %v3693_v17, 0.0  ;;  %v3759_v44 = vmul.f32 0.1, %v3693_v17  ;;  %vm4752_vm2 = vcmask 523264  }
 0x377   : > { %v6430_v38 = vpack.c.bf16 %v3790_v54, %v3790_v54  ;;  %v3788_v15 = vsel %vm3724_vm6, %v3682_v29, %v3756_v5  ;;  %vm3725_vm8 = vcmp.ge.f32.partialorder %v3685_v13, 0.0  ;;  %v3757_v18 = vmul.f32 0.1, %v3685_v13  ;;  %v4164_v29 = vld [vmem:[#allocation4 + $0x74] sm:$0x1]  ;;  %v9152_v5 = vpop.permute.xlu1 %4260 }
 0x378   : > { %v6428_v20 = vpack.c.bf16 %v3788_v15, %v3788_v15  ;;  %v3791_v41 = vsel %vm3727_vm7, %v3693_v17, %v3759_v44  ;;  %vm9968_vm6 = vcmask 588800   ;;  %vm10091_vm7 = vcmask 57344  }
 0x379   : > { %v4034_v26 = vshrl.u32 %v6430_v38, 16  ;;  %v6431_v24 = vpack.c.bf16 %v3791_v41, %v3791_v41  ;;  %v3789_v11 = vsel %vm3725_vm8, %v3685_v13, %v3757_v18  ;;  %v4037_v4 = vshll.u32 %v6430_v38, 16  ;;  %v4198_v41 = vld [vmem:[#allocation4 + $0x4c] sm:$0x1]  ;;  %vm9281_vm8 = vmand %vm10091_vm7, %vm533_vm5 }
 0x37a   : > { %v4018_v7 = vshrl.u32 %v6428_v20, 16  ;;  %v6429_v6 = vpack.c.bf16 %v3789_v11, %v3789_v11  ;;  %v4021_v12 = vshll.u32 %v6428_v20, 16 }
 0x37b   : > { %v4036_v10 = vrot.slane %v4034_v26, 7  ;;  %v4042_v61 = vshrl.u32 %v6431_v24, 16  ;;  %v4045_v39 = vshll.u32 %v6431_v24, 16  ;;  %v9164_v18 = vpop.permute.xlu1 %4368  ;;  %v6295_v24 = vcombine.low %v9119_v33, %v4198_v41 }
 0x37c   : > { %v4020_v1 = vrot.slane %v4018_v7, 7  ;;  %v4026_v55 = vshrl.u32 %v6429_v6, 16  ;;  %v4029_v25 = vshll.u32 %v6429_v6, 16 }
 0x37d   : > { %v4039_v16 = vor.u32 %v4037_v4, %v4036_v10  ;;  %v4040_v42 = vrot.slane %v4036_v10, 4  ;;  %v4044_v40 = vrot.slane %v4042_v61, 7 }
 0x37e   : > { %v4023_v49 = vor.u32 %v4021_v12, %v4020_v1  ;;  %v4024_v52 = vrot.slane %v4020_v1, 4  ;;  %v4028_v37 = vrot.slane %v4026_v55, 7  ;;  %v6827_v12 = vld [vmem:[#allocation5 + $0x24] ss:$0 sps:$4 sm:$0xff]  }
 0x37f   : > { %v4168_v23 = vsel %vm8941_vm0, %v4039_v16, %v4167_v43  ;;  %v4171_v21 = vsel %vm8705_vm3, %v4040_v42, %v4170_v48  ;;  %v4047_v28 = vor.u32 %v4045_v39, %v4044_v40  ;;  %v4048_v9 = vrot.slane %v4044_v40, 4 }
 0x380   : > { %4169 = vst [vmem:[#allocation4 + $0x78] sm:$0xf] %v4168_v23  ;;  %4172 = vst [vmem:[#allocation4 + $0x7c] sm:$0x1] %v4171_v21  ;;  %v4156_v53 = vsel %vm8941_vm0, %v4023_v49, %v4155_v46  ;;  %v4159_v36 = vsel %vm8705_vm3, %v4024_v52, %v4158_v31  ;;  %v4031_v17 = vor.u32 %v4029_v25, %v4028_v37  ;;  %v4032_v50 = vrot.slane %v4028_v37, 4 }
 0x381   : > { %4157 = vst [vmem:[#allocation4 + $0x68] sm:$0xf] %v4156_v53  ;;  %4160 = vst [vmem:[#allocation4 + $0x6c] sm:$0x1] %v4159_v36  ;;  %v4174_v13 = vsel %vm8941_vm0, %v4047_v28, %v4173_v34  ;;  %v4177_v54 = vsel %vm8705_vm3, %v4048_v9, %v4176_v32  ;;  %v9158_v44 = vpop.permute.xlu0 %4410  ;;  %v4517_v31 = vshll.u32 %v6295_v24, 16  ;;  %v4515_v37 = vshrl.u32 %v6295_v24, 16 }
 0x382   : > { %4175 = vst [vmem:[#allocation4 + $0x80] sm:$0xf] %v4174_v13  ;;  %4178 = vst [vmem:[#allocation4 + $0x84] sm:$0x1] %v4177_v54  ;;  %v4162_v38 = vsel %vm8941_vm0, %v4031_v17, %v4161_v57  ;;  %v4165_v15 = vsel %vm8705_vm3, %v4032_v50, %v4164_v29  ;;  %v6829_v34 = vld [vmem:[#allocation5 + $0x34] ss:$0 sps:$4 sm:$0xff]   ;;  %v6303_v24 = vcombine.low %v9110_v63, %v9110_v63 }
 0x383   : > { %4163 = vst [vmem:[#allocation4 + $0x70] sm:$0xf] %v4162_v38  ;;  %4166 = vst [vmem:[#allocation4 + $0x74] sm:$0x1] %v4165_v15  ;;  %v4519_v49 = vrot.slane %v4517_v31, 1 }
 0x384   : > { %v4201_v32 = vld [vmem:[#allocation4 + $0x58] sm:$0xf]  ;;  %v4202_v9 = vld [vmem:[#allocation4 + $0x5c] sm:$0x1] }
 0x385   : > { %v9166_v20 = vpop.permute.xlu0 %4446  ;;  %v6280_v23 = vcombine.low %v4201_v32, %v4201_v32  ;;  %v4520_v21 = vor.u32 %v4519_v49, %v4515_v37  ;;  %v6296_v36 = vcombine.low %v4201_v32, %v4202_v9  ;;  %v6304_v9 = vcombine.low %v9107_v47, %v9107_v47 }
 0x387   : > { %v4209_v57 = vld [vmem:[#allocation4 + $0x78] sm:$0xf]  ;;  %v4210_v54 = vld [vmem:[#allocation4 + $0x7c] sm:$0x1]  ;;  %v4522_v31 = vshrl.u32 %v6296_v36, 16 }
 0x388   : > { %v4205_v26 = vld [vmem:[#allocation4 + $0x68] sm:$0xf]  ;;  %v4206_v7 = vld [vmem:[#allocation4 + $0x6c] sm:$0x1]  ;;  %v6282_v50 = vcombine.low %v4209_v57, %v4209_v57  ;;  %v6298_v15 = vcombine.low %v4209_v57, %v4210_v54 }
 0x389   : > { %v9169_v11 = vpop.permute.xlu1 %4372  ;;  %v9171_v43 = vpop.permute.xlu0 %4450  ;;  %v6281_v48 = vcombine.low %v4205_v26, %v4205_v26  ;;  %v6297_v46 = vcombine.low %v4205_v26, %v4206_v7  ;;  %v6834_v26 = vld [vmem:[#allocation5 + $0x2c] ss:$0 sps:$4 sm:$0xff]   ;;  %v4211_v57 = vld [vmem:[#allocation4 + $0x80] sm:$0xf] }
 0x38a   : > { %v9173_v6 = vld [vmem:[#allocation4 + $0x70] sm:$0xf]  ;;  %v4208_v10 = vld [vmem:[#allocation4 + $0x74] sm:$0x1]  ;;  %v4536_v49 = vshrl.u32 %v6298_v15, 16 }
 0x38b   : > { %4418 = vrot.lane.b32.xlu0 %v6281_v48, %s7027_s17  ;;  %v6274_v4 = vcombine.low %v9173_v6, %v4208_v10  ;;  %v4531_v52 = vshll.u32 %v6297_v46, 16  ;;  %v4529_v53 = vshrl.u32 %v6297_v46, 16  ;;  %v4524_v48 = vshll.u32 %v6296_v36, 16  ;;  %v6836_v10 = vld [vmem:[#allocation5 + $0x3c] ss:$0 sps:$4 sm:$0xff]  }
 0x38d   : > { %v9177_v61 = vpop.permute.xlu1 %4408  ;;  %v9179_v1 = vpop.permute.xlu0 %4542  ;;  %v4362_v33 = vshll.u32 %v6274_v4, 16  ;;  %v4360_v55 = vshrl.u32 %v6274_v4, 16  ;;  %v4533_v28 = vrot.slane %v4531_v52, 1  ;;  %v6305_v4 = vcombine.low %v9173_v6, %v9173_v6 }
 0x38e   : > { %v4526_v46 = vrot.slane %v4524_v48, 1 }
 0x38f   : > { %4454 = vrot.lane.b32.xlu0 %v6827_v12, %s7029_s18  ;;  %v4364_v16 = vrot.slane %v4362_v33, 1  ;;  %v4534_v13 = vor.u32 %v4533_v28, %v4529_v53  ;;  %v4538_v12 = vshll.u32 %v6298_v15, 16  ;;  %v4634_v53 = vsel %vm2142_vm9, %v8966_v35, %v9140_v22 }
 0x391   : > { %v9182_v42 = vpop.permute.xlu1 %4412  ;;  %v9184_v40 = vpop.permute.xlu0 %4546  ;;  %v9186_v39 = vor.u32 %v4364_v16, %v4360_v55  ;;  %v4527_v16 = vor.u32 %v4526_v46, %v4522_v31  ;;  %v6845_v46 = vld [vmem:[#allocation5 + $0x40] ss:$0 sps:$4 sm:$0xff]  }
 0x393   : > { %4380 = vrot.lane.b32.xlu1 %v9186_v39, %s7023_s26  ;;  %4458 = vrot.lane.b32.xlu0 %v6829_v34, %s7029_s18  ;;  %v4540_v34 = vrot.slane %v4538_v12, 1 }
 0x395   : > { %v9191_v25 = vpop.permute.xlu1 %4448  ;;  %v9193_v29 = vpop.permute.xlu0 %4568  ;;  %v4541_v37 = vor.u32 %v4540_v34, %v4536_v49 }
 0x397   : > { %4416 = vrot.lane.b32.xlu1 %v6280_v23, %s7027_s17  ;;  %4550 = vrot.lane.b32.xlu0 %v4520_v21, %s7030_s20  ;;  %v6956_v23 = vld [vmem:[#allocation4] sm:$0xf] }
 0x398   : > { %v4631_v21 = vsel %vm2142_vm9, %v6956_v23, %v9128_v59 }
 0x399   : > { %v9197_v17 = vpop.permute.xlu1 %4452  ;;  %v9201_v38 = vpop.permute.xlu0 %4572 }
 0x39b   : > { %4420 = vrot.lane.b32.xlu1 %v6282_v50, %s7027_s17  ;;  %4554 = vrot.lane.b32.xlu0 %v4534_v13, %s7030_s20  ;;  %v6306_v13 = vcombine.low %v4211_v57, %v4211_v57 }
 0x39d   : > { %v4545_v41 = vpop.permute.xlu1 %4544  ;;  %v4588_v33 = vpop.permute.xlu0 %4587 }
 0x39f   : > { %4456 = vrot.lane.b32.xlu1 %v6834_v26, %s7029_s18  ;;  %4576 = vrot.lane.b32.xlu0 %v6303_v24, %s7031_s23 }
 0x3a1   : > { %v9207_v7 = vpop.permute.xlu1 %4548  ;;  %v9216_v52 = vpop.permute.xlu0 %4591 }
 0x3a3   : > { %4460 = vrot.lane.b32.xlu1 %v6836_v10, %s7029_s18  ;;  %4580 = vrot.lane.b32.xlu0 %v6305_v4, %s7031_s23 }
 0x3a5   : > { %v4571_v55 = vpop.permute.xlu1 %4570  ;;  %v4614_v36 = vpop.permute.xlu0 %4613 }
 0x3a7   : > { %4552 = vrot.lane.b32.xlu1 %v4527_v16, %s7030_s20  ;;  %4595 = vrot.lane.b32.xlu0 %v9096_v2, %s7032_s19  ;;  %v4654_v2 = vsel %vm2208_vm11, %v4631_v21, %v9132_v58 }
 0x3a8   : > { %v4670_v59 = vsel %vm2274_vm13, %v4654_v2, %v9142_v62 }
 0x3a9   : > { %v9218_v32 = vpop.permute.xlu1 %4574  ;;  %v4686_v35 = vsel %vm2340_vm15, %v4670_v59, %v9166_v20 }
 0x3ab   : > { %4556 = vrot.lane.b32.xlu1 %v4541_v37, %s7030_s20  ;;  %4599 = vrot.lane.b32.xlu0 %v9105_v14, %s7032_s19  ;;  %v4656_v14 = vsel %vm2208_vm11, %v4634_v53, %v9164_v18  ;;  %v4703_v18 = vsel %vm4701_vm10, %v4686_v35, %v9179_v1 }
 0x3ac   : > { %v4672_v58 = vsel %vm2274_vm13, %v4656_v14, %v9177_v61  ;;  %v4720_v62 = vsel %vm4718_vm12, %v4703_v18, %v9193_v29  ;;  %v4640_v29 = vsel %vm2142_vm9, %v9011_v27, %v9152_v5  ;;  %v541_v5 = vld [vmem:[#allocation6 + $0x1c] sm:$0x1] }
 0x3ad   : > { %v4590_v28 = vpop.permute.xlu1 %4589  ;;  %v4688_v22 = vsel %vm2340_vm15, %v4672_v58, %v9191_v25  ;;  %v4737_v61 = vsel %vm4735_vm14, %v4720_v62, %v4588_v33  ;;  %v9255_v25 = vpop.permute.xlu0 %4262  ;;  %v4660_v4 = vsel %vm2208_vm11, %v4640_v29, %v9169_v11  ;;  %v542_v33 = vsel %vm9281_vm8, 0, %v541_v5 }
 0x3ae   : > { %v4705_v54 = vsel %vm4701_vm10, %v4688_v22, %v4545_v41  ;;  %v4754_v41 = vsel %vm4752_vm2, %v4737_v61, %v4614_v36  ;;  %543 = vst [vmem:[#allocation6 + $0x1c] sm:$0x1] %v542_v33  ;;  %v535_v61 = vld [vmem:[#allocation6 + $0xc] sm:$0x1] }
 0x3af   : > { %4578 = vrot.lane.b32.xlu1 %v6304_v9, %s7031_s23  ;;  %4621 = vrot.lane.b32.xlu0 %v9117_v8, %s7033_s13  ;;  %v4212_v8 = vld [vmem:[#allocation4 + $0x84] sm:$0x1]  ;;  %v4722_v20 = vsel %vm4718_vm12, %v4705_v54, %v4571_v55 }
 0x3b0   : > { %v4739_v15 = vsel %vm4735_vm14, %v4722_v20, %v4590_v28  ;;  %v6308_v1 = vcombine.low %v4211_v57, %v4212_v8  ;;  %v509_v20 = vld [vmem:[#allocation6 + $0x8] sm:$0x1] }
 0x3b1   : > { %v4594_v50 = vpop.permute.xlu1 %4593  ;;  %v4618_v16 = vpop.permute.xlu0 %4617 }
 0x3b2   : > { %v4609_v27 = vshll.u32 %v6308_v1, 16  ;;  %v4607_v28 = vshrl.u32 %v6308_v1, 16  ;;  %v510_v1 = vsel %vm8705_vm3, 0, %v509_v20 }
 0x3b3   : > { %4582 = vrot.lane.b32.xlu1 %v6306_v13, %s7031_s23  ;;  %4625 = vrot.lane.b32.xlu0 %v9186_v39, %s7033_s13  ;;  %v4637_v39 = vsel %vm2142_vm9, %v8963_v51, %v9130_v0  ;;  %v4676_v51 = vsel %vm2274_vm13, %v4660_v4, %v9182_v42  ;;  %511 = vst [vmem:[#allocation6 + $0x8] sm:$0x1] %v510_v1 }
 0x3b4   : > { %v4658_v10 = vsel %vm2208_vm11, %v4637_v39, %v9138_v19  ;;  %v4611_v37 = vrot.slane %v4609_v27, 1 }
 0x3b5   : > { %v4616_v26 = vpop.permute.xlu1 %4615  ;;  %v4674_v12 = vsel %vm2274_vm13, %v4658_v10, %v9158_v44  ;;  %v4692_v44 = vsel %vm2340_vm15, %v4676_v51, %v9197_v17  ;;  %v538_v10 = vld [vmem:[#allocation6 + $0x14] sm:$0x1]  ;;  %v5081_v51 = vld [vmem:[#allocation6 + $0x4] sm:$0x1] }
 0x3b6   : > { %v4756_v24 = vsel %vm4752_vm2, %v4739_v15, %v4616_v26  ;;  %v4690_v11 = vsel %vm2340_vm15, %v4674_v12, %v9171_v43  ;;  %v4709_v55 = vsel %vm4701_vm10, %v4692_v44, %v9207_v7  ;;  %v536_v26 = vsel %vm9281_vm8, 0, %v535_v61  ;;  %v9355_v12 = vld [vmem:[#allocation6] sm:$0xf]  ;;  %v5127_v44 = vld [vmem:[#allocation6 + $0x48] sm:$0xf] }
 0x3b7   : > { %4597 = vrot.lane.b32.xlu1 %v9074_v3, %s7032_s19  ;;  %v6310_v48 = vcombine.low %v4754_v41, %v4756_v24  ;;  %v515_v3 = vld [vmem:[#allocation6 + $0x18] sm:$0x1]  ;;  %v4707_v31 = vsel %vm4701_vm10, %v4690_v11, %v9184_v40  ;;  %v4726_v17 = vsel %vm4718_vm12, %v4709_v55, %v9218_v32  ;;  %v9311_v32 = vpop.permute.xlu0 %4266  ;;  %v518_v41 = vld [vmem:[#allocation6 + $0x20] sm:$0x1]  ;;  %v544_v24 = vld [vmem:[#allocation6 + $0x24] sm:$0x1]  ;;  %v6331_v27 = vcombine.low %v9355_v12, %v5081_v51 }
 0x3b8   : > { %v516_v42 = vsel %vm8705_vm3, 0, %v515_v3  ;;  %v4724_v43 = vsel %vm4718_vm12, %v4707_v31, %v9201_v38  ;;  %v4743_v49 = vsel %vm4735_vm14, %v4726_v17, %v4594_v50  ;;  %v4612_v38 = vor.u32 %v4611_v37, %v4607_v28  ;;  %537 = vst [vmem:[#allocation6 + $0xc] sm:$0x1] %v536_v26 }
 0x3b9   : > { %v9276_v0 = vpop.permute.xlu1 %4264  ;;  %6534 = vmatprep.mubr.msk.bf16.mxu1 %vm9968_vm6, %v6310_v48  ;;  %517 = vst [vmem:[#allocation6 + $0x18] sm:$0x1] %v516_v42  ;;  %v4741_v34 = vsel %vm4735_vm14, %v4724_v43, %v9216_v52  ;;  %v519_v39 = vsel %vm8705_vm3, 0, %v518_v41  ;;  %v545_v29 = vsel %vm9281_vm8, 0, %v544_v24  ;;  %v512_v48 = vld [vmem:[#allocation6 + $0x10] sm:$0x1]  ;;  %v6362_v43 = vcombine.low %v5127_v44, %v5127_v44 }
 0x3ba   : > { %v4758_v7 = vsel %vm4752_vm2, %v4741_v34, %v4618_v16  ;;  %520 = vst [vmem:[#allocation6 + $0x20] sm:$0x1] %v519_v39  ;;  %546 = vst [vmem:[#allocation6 + $0x24] sm:$0x1] %v545_v29  ;;  %v513_v4 = vsel %vm8705_vm3, 0, %v512_v48  ;;  %v5172_v11 = vshll.u32 %v6331_v27, 16  ;;  %v4646_v28 = vsel %vm2142_vm9, %v9110_v63, %v9276_v0 }
 0x3bb   : > { %4601 = vrot.lane.b32.xlu1 %v6845_v46, %s7032_s19  ;;  %v9313_v52 = vpop.permute.xlu0 %4374  ;;  %v539_v46 = vsel %vm9281_vm8, 0, %v538_v10  ;;  %514 = vst [vmem:[#allocation6 + $0x10] sm:$0x1] %v513_v4  ;;  %v5128_v42 = vld [vmem:[#allocation6 + $0x4c] sm:$0x1]  ;;  %v5170_v31 = vshrl.u32 %v6331_v27, 16 }
 0x3bc   : > { %540 = vst [vmem:[#allocation6 + $0x14] sm:$0x1] %v539_v46  ;;  %v9358_v33 = vcombine.low %v5127_v44, %v5128_v42  ;;  %v5174_v55 = vrot.slane %v5172_v11, 1  ;;  %v5241_v37 = vrot.slane %v6331_v27, 1  ;;  %v553_v27 = vld [vmem:[#allocation6 + $0x3c] sm:$0x1] }
 0x3bd   : > { %v4620_v40 = vpop.permute.xlu1 %4619 }
 0x3be   : > { %v4760_v23 = vsel %vm4752_vm2, %v4743_v49, %v4620_v40  ;;  %v5175_v17 = vor.u32 %v5174_v55, %v5170_v31  ;;  %v5539_v49 = vshrl.u32 %v9358_v33, 16  ;;  %v5541_v40 = vshll.u32 %v9358_v33, 16 }
 0x3bf   : > { %v6311_v21 = vcombine.low %v4758_v7, %v4760_v23  ;;  %4623 = vrot.lane.b32.xlu1 %v9115_v30, %s7033_s13 }
 0x3c0   : > { %5225 = vrot.lane.b32.xlu0 %v5175_v17, %s7024_s10  ;;  %v5543_v23 = vrot.slane %v5541_v40, 1 }
 0x3c1   : > { %6535 = vmatmul.mubr.msk.bf16.vlgmr.msra.gmra.mrb[0].mxu1 %vm9968_vm6, %v6311_v21  ;;  %v9319_v57 = vpop.permute.xlu1 %4268  ;;  %v4643_v21 = vsel %vm2142_vm9, %v9047_v60, %v9255_v25  ;;  %v4649_v25 = vsel %vm2142_vm9, %v9107_v47, %v9311_v32 }
 0x3c2   : > { %v4662_v20 = vsel %vm2208_vm11, %v4643_v21, %v9313_v52  ;;  %v4652_v0 = vsel %vm2142_vm9, %v9173_v6, %v9319_v57 }
 0x3c3   : > { %4627 = vrot.lane.b32.xlu1 %v4612_v38, %s7033_s13  ;;  %v5544_v38 = vor.u32 %v5543_v23, %v5539_v49 }
 0x3c4   : > { %5249 = vrot.lane.b32.xlu0 %v5241_v37, %s7023_s26 }
 0x3c7   : > { %5463 = vrot.lane.b32.xlu1 %v6362_v43, %s7031_s23 }
 0x3c8   : > { %v9315_v9 = vpop.permute.xlu0 %4378 }
 0x3c9   : > { %v4377_v36 = vpop.permute.xlu1 %4376 }
 0x3ca   : > { %v4664_v61 = vsel %vm2208_vm11, %v4646_v28, %v4377_v36  ;;  %v4666_v36 = vsel %vm2208_vm11, %v4649_v25, %v9315_v9  ;;  %v5047_v25 = vld [vmem:[#allocation6 + $0x1c] sm:$0x1] }
 0x3cb   : > { %5559 = vrot.lane.b32.xlu1 %v5544_v38, %s7032_s19 }
 0x3cc   : > { %v9317_v2 = vpop.permute.xlu0 %4414 }
 0x3cd   : > { %v4678_v1 = vsel %vm2274_vm13, %v4662_v20, %v9317_v2  ;;  %v521_v20 = vld [vmem:[#allocation6 + $0x28] sm:$0x1] }
 0x3fd   : > { %v9321_v53 = vpop.permute.xlu0 %4418 }
 0x3fe   : > { %v4682_v32 = vsel %vm2274_vm13, %v4666_v36, %v9321_v53  ;;  %v522_v36 = vsel %vm8705_vm3, 0, %v521_v20 }
 0x3ff   : > { %523 = vst [vmem:[#allocation6 + $0x28] sm:$0x1] %v522_v36 }
 0x401   : > { %v9323_v30 = vpop.permute.xlu0 %4454 }
 0x402   : > { %v4694_v60 = vsel %vm2340_vm15, %v4678_v1, %v9323_v30 }
 0x405   : > { %v9325_v14 = vpop.permute.xlu1 %4380  ;;  %v9327_v59 = vpop.permute.xlu0 %4458 }
 0x406   : > { %v4668_v30 = vsel %vm2208_vm11, %v4652_v0, %v9325_v14  ;;  %v4698_v9 = vsel %vm2340_vm15, %v4682_v32, %v9327_v59  ;;  %v5035_v32 = vld [vmem:[#allocation6 + $0xc] sm:$0x1] }
 0x409   : > { %v4417_v58 = vpop.permute.xlu1 %4416  ;;  %v9329_v50 = vpop.permute.xlu0 %4550 }
 0x40a   : > { %v4680_v26 = vsel %vm2274_vm13, %v4664_v61, %v4417_v58  ;;  %v4711_v52 = vsel %vm4701_vm10, %v4694_v60, %v9329_v50  ;;  %v547_v61 = vld [vmem:[#allocation6 + $0x2c] sm:$0x1]  ;;  %v530_v60 = vld [vmem:[#allocation6 + $0x40] sm:$0x1] }
 0x40d   : > { %v9331_v13 = vpop.permute.xlu1 %4420  ;;  %v9333_v35 = vpop.permute.xlu0 %4554 }
 0x40e   : > { %v4684_v6 = vsel %vm2274_vm13, %v4668_v30, %v9331_v13  ;;  %v4715_v53 = vsel %vm4701_vm10, %v4698_v9, %v9333_v35  ;;  %v556_v30 = vld [vmem:[#allocation6 + $0x44] sm:$0x1] }
 0x411   : > { %v4457_v22 = vpop.permute.xlu1 %4456  ;;  %v9335_v8 = vpop.permute.xlu0 %4576 }
 0x412   : > { %v4696_v63 = vsel %vm2340_vm15, %v4680_v26, %v4457_v22  ;;  %v4728_v58 = vsel %vm4718_vm12, %v4711_v52, %v9335_v8 }
 0x415   : > { %v9337_v18 = vpop.permute.xlu1 %4460  ;;  %v9339_v62 = vpop.permute.xlu0 %4580 }
 0x416   : > { %v4700_v14 = vsel %vm2340_vm15, %v4684_v6, %v9337_v18  ;;  %v4732_v48 = vsel %vm4718_vm12, %v4715_v53, %v9339_v62  ;;  %v531_v53 = vsel %vm8705_vm3, 0, %v530_v60 }
 0x417   : > { %532 = vst [vmem:[#allocation6 + $0x40] sm:$0x1] %v531_v53 }
 0x419   : > { %v4553_v54 = vpop.permute.xlu1 %4552  ;;  %v4596_v3 = vpop.permute.xlu0 %4595 }
 0x41a   : > { %v4713_v2 = vsel %vm4701_vm10, %v4696_v63, %v4553_v54  ;;  %v4745_v57 = vsel %vm4735_vm14, %v4728_v58, %v4596_v3  ;;  %v554_v3 = vsel %vm9281_vm8, 0, %v553_v27  ;;  %v5044_v63 = vld [vmem:[#allocation6 + $0x18] sm:$0xf] }
 0x41b   : > { %555 = vst [vmem:[#allocation6 + $0x3c] sm:$0x1] %v554_v3  ;;  %v5038_v3 = vld [vmem:[#allocation6 + $0x10] sm:$0xf] }
 0x41d   : > { %v9341_v15 = vpop.permute.xlu1 %4556  ;;  %v4600_v34 = vpop.permute.xlu0 %4599 }
 0x41e   : > { %v4717_v13 = vsel %vm4701_vm10, %v4700_v14, %v9341_v15  ;;  %v4749_v10 = vsel %vm4735_vm14, %v4732_v48, %v4600_v34  ;;  %v527_v15 = vld [vmem:[#allocation6 + $0x38] sm:$0x1]  ;;  %v5050_v14 = vld [vmem:[#allocation6 + $0x20] sm:$0xf]  ;;  %v5053_v48 = vld [vmem:[#allocation6 + $0x24] sm:$0x1] }
 0x41f   : > { %v528_v62 = vsel %vm8705_vm3, 0, %v527_v15 }
 0x420   : > { %529 = vst [vmem:[#allocation6 + $0x38] sm:$0x1] %v528_v62 }
 0x421   : > { %v4579_v5 = vpop.permute.xlu1 %4578  ;;  %v4622_v41 = vpop.permute.xlu0 %4621 }
 0x422   : > { %v4730_v47 = vsel %vm4718_vm12, %v4713_v2, %v4579_v5  ;;  %v4762_v8 = vsel %vm4752_vm2, %v4745_v57, %v4622_v41  ;;  %v9429_v5 = vld [vmem:[%s9906_s6] ss:$0 sm:$0xff] }
 0x425   : > { %v4583_v16 = vpop.permute.xlu1 %4582  ;;  %v4626_v39 = vpop.permute.xlu0 %4625 }
 0x426   : > { %v4734_v59 = vsel %vm4718_vm12, %v4717_v13, %v4583_v16  ;;  %v4766_v46 = vsel %vm4752_vm2, %v4749_v10, %v4626_v39 }
 0x429   : > { %v4598_v7 = vpop.permute.xlu1 %4597 }
 0x42a   : > { %v4747_v50 = vsel %vm4735_vm14, %v4730_v47, %v4598_v7  ;;  %v5032_v47 = vld [vmem:[#allocation6 + $0x8] sm:$0xf] }
 0x42d   : > { %v4602_v24 = vpop.permute.xlu1 %4601 }
 0x42e   : > { %v4751_v18 = vsel %vm4735_vm14, %v4734_v59, %v4602_v24  ;;  %v557_v59 = vsel %vm9281_vm8, 0, %v556_v30 }
 0x42f   : > { %558 = vst [vmem:[#allocation6 + $0x44] sm:$0x1] %v557_v59 }
 0x431   : > { %v4624_v22 = vpop.permute.xlu1 %4623 }
 0x432   : > { %v4764_v54 = vsel %vm4752_vm2, %v4747_v50, %v4624_v22  ;;  %v548_v50 = vsel %vm9281_vm8, 0, %v547_v61  ;;  %v524_v22 = vld [vmem:[#allocation6 + $0x30] sm:$0x1] }
 0x433   : > { %v6312_v29 = vcombine.low %v4762_v8, %v4764_v54  ;;  %549 = vst [vmem:[#allocation6 + $0x2c] sm:$0x1] %v548_v50 }
 0x435   : > { %v4628_v4 = vpop.permute.xlu1 %4627  ;;  %6538 = vmatprep.mubr.msk.bf16.mxu1 %vm9968_vm6, %v6312_v29 }
 0x436   : > { %v4768_v35 = vsel %vm4752_vm2, %v4751_v18, %v4628_v4 }
 0x437   : > { %v6313_v51 = vcombine.low %v4766_v46, %v4768_v35  ;;  %v525_v46 = vsel %vm8705_vm3, 0, %v524_v22  ;;  %v550_v35 = vld [vmem:[#allocation6 + $0x34] sm:$0x1] }
 0x438   : > { %526 = vst [vmem:[#allocation6 + $0x30] sm:$0x1] %v525_v46 }
 0x439   : > { %6539 = vmatmul.mubr.msk.bf16.gmra.mrb[4].mxu1 %vm9968_vm6, %v6313_v51 }
 0x494   : > { %v6536_v11 = vpop.f32.mrb[0].mxu1 }
 0x495   : > { %v4882_v44 = vadd.f32 %v6536_v11, %v9429_v5  ;;  %v4873_v42 = vpop.f32.mrb[1].mxu1  ;;  %v5041_v11 = vld [vmem:[#allocation6 + $0x14] sm:$0x1] }
 0x496   : > { %v4874_v31 = vadd.f32 %v9429_v5, %v4873_v42  ;;  %v6537_v55 = vpop.f32.mrb[2].mxu1 }
 0x497   : > { %vm4906_vm5 = vcmp.ge.f32.partialorder %v4882_v44, 0.0  ;;  %v4914_v16 = vmul.f32 0.1, %v4882_v44  ;;  %v4885_v43 = vadd.f32 %v6537_v55, %v9429_v5  ;;  %v4876_v17 = vpop.f32.mrb[3].mxu1 }
 0x498   : > { %vm4904_vm7 = vcmp.ge.f32.partialorder %v4874_v31, 0.0  ;;  %v4912_v34 = vmul.f32 0.1, %v4874_v31  ;;  %v4877_v49 = vadd.f32 %v9429_v5, %v4876_v17  ;;  %v551_v17 = vsel %vm9281_vm8, 0, %v550_v35 }
 0x499   : > { %v4922_v40 = vsel %vm4906_vm5, %v4882_v44, %v4914_v16  ;;  %vm4907_vm4 = vcmp.ge.f32.partialorder %v4885_v43, 0.0  ;;  %v4915_v37 = vmul.f32 0.1, %v4885_v43  ;;  %552 = vst [vmem:[#allocation6 + $0x34] sm:$0x1] %v551_v17 }
 0x49a   : > { %v6434_v7 = vpack.c.bf16 %v4922_v40, %v4922_v40  ;;  %v4920_v23 = vsel %vm4904_vm7, %v4874_v31, %v4912_v34  ;;  %vm4905_vm6 = vcmp.ge.f32.partialorder %v4877_v49, 0.0  ;;  %v4913_v21 = vmul.f32 0.1, %v4877_v49 }
 0x49b   : > { %v6432_v28 = vpack.c.bf16 %v4920_v23, %v4920_v23  ;;  %v4923_v38 = vsel %vm4907_vm4, %v4885_v43, %v4915_v37 }
 0x49c   : > { %v4969_v1 = vshrl.u32 %v6434_v7, 16  ;;  %v4972_v26 = vshll.u32 %v6434_v7, 16  ;;  %v6435_v41 = vpack.c.bf16 %v4923_v38, %v4923_v38  ;;  %v4921_v24 = vsel %vm4905_vm6, %v4877_v49, %v4913_v21 }
 0x49d   : > { %v4953_v0 = vshrl.u32 %v6432_v28, 16  ;;  %v4956_v52 = vshll.u32 %v6432_v28, 16  ;;  %v6433_v2 = vpack.c.bf16 %v4921_v24, %v4921_v24 }
 0x49e   : > { %v4971_v58 = vrot.slane %v4969_v1, 7  ;;  %v4977_v6 = vshrl.u32 %v6435_v41, 16  ;;  %v4980_v57 = vshll.u32 %v6435_v41, 16 }
 0x49f   : > { %v4955_v9 = vrot.slane %v4953_v0, 7  ;;  %v4961_v8 = vshrl.u32 %v6433_v2, 16  ;;  %v4964_v54 = vshll.u32 %v6433_v2, 16 }
 0x4a0   : > { %v4974_v13 = vor.u32 %v4972_v26, %v4971_v58  ;;  %v4975_v39 = vrot.slane %v4971_v58, 4  ;;  %v4979_v29 = vrot.slane %v4977_v6, 7 }
 0x4a1   : > { %v4958_v10 = vor.u32 %v4956_v52, %v4955_v9  ;;  %v4959_v18 = vrot.slane %v4955_v9, 4  ;;  %v4963_v4 = vrot.slane %v4961_v8, 7 }
 0x4a2   : > { %v5045_v51 = vsel %vm8941_vm0, %v4974_v13, %v5044_v63  ;;  %v5048_v15 = vsel %vm8705_vm3, %v4975_v39, %v5047_v25  ;;  %v4982_v27 = vor.u32 %v4980_v57, %v4979_v29  ;;  %v4983_v62 = vrot.slane %v4979_v29, 4 }
 0x4a3   : > { %5046 = vst [vmem:[#allocation6 + $0x18] sm:$0xf] %v5045_v51  ;;  %5049 = vst [vmem:[#allocation6 + $0x1c] sm:$0x1] %v5048_v15  ;;  %v5033_v44 = vsel %vm8941_vm0, %v4958_v10, %v5032_v47  ;;  %v5036_v42 = vsel %vm8705_vm3, %v4959_v18, %v5035_v32  ;;  %v4966_v31 = vor.u32 %v4964_v54, %v4963_v4  ;;  %v4967_v55 = vrot.slane %v4963_v4, 4 }
 0x4a4   : > { %5034 = vst [vmem:[#allocation6 + $0x8] sm:$0xf] %v5033_v44  ;;  %5037 = vst [vmem:[#allocation6 + $0xc] sm:$0x1] %v5036_v42  ;;  %v5051_v16 = vsel %vm8941_vm0, %v4982_v27, %v5050_v14  ;;  %v5054_v43 = vsel %vm8705_vm3, %v4983_v62, %v5053_v48 }
 0x4a5   : > { %5052 = vst [vmem:[#allocation6 + $0x20] sm:$0xf] %v5051_v16  ;;  %5055 = vst [vmem:[#allocation6 + $0x24] sm:$0x1] %v5054_v43  ;;  %v5039_v34 = vsel %vm8941_vm0, %v4966_v31, %v5038_v3  ;;  %v5042_v49 = vsel %vm8705_vm3, %v4967_v55, %v5041_v11 }
 0x4a6   : > { %5040 = vst [vmem:[#allocation6 + $0x10] sm:$0xf] %v5039_v34  ;;  %5043 = vst [vmem:[#allocation6 + $0x14] sm:$0x1] %v5042_v49 }
 0x4aa   : > { %v5115_v40 = vld [vmem:[#allocation6 + $0x18] sm:$0xf]  ;;  %v5087_v28 = vld [vmem:[#allocation6 + $0x1c] sm:$0x1] }
 0x4ab   : > { %v5100_v37 = vld [vmem:[#allocation6 + $0x18] sm:$0xf]  ;;  %v6356_v7 = vcombine.low %v5115_v40, %v5115_v40  ;;  %v5101_v19 = vld [vmem:[#allocation6 + $0x1c] sm:$0x1]  ;;  %v5096_v20 = vld [vmem:[#allocation6 + $0x8] sm:$0xf] }
 0x4ac   : > { %v6341_v23 = vcombine.low %v5100_v37, %v5100_v37  ;;  %v9463_v21 = vld [vmem:[#allocation6 + $0x18] sm:$0xf]  ;;  %v9470_v61 = vcombine.low %v5100_v37, %v5101_v19  ;;  %v6339_v26 = vcombine.low %v5096_v20, %v5096_v20  ;;  %v5116_v41 = vld [vmem:[#allocation6 + $0x1c] sm:$0x1]  ;;  %v5102_v24 = vld [vmem:[#allocation6 + $0x20] sm:$0xf] }
 0x4ad   : > { %v9466_v38 = vcombine.low %v9463_v21, %v5087_v28  ;;  %5451 = vrot.lane.b32.xlu1 %v6356_v7, %s7031_s23  ;;  %v9475_v60 = vcombine.low %v5115_v40, %v5116_v41  ;;  %v5097_v63 = vld [vmem:[#allocation6 + $0xc] sm:$0x1]  ;;  %v6342_v25 = vcombine.low %v5102_v24, %v5102_v24  ;;  %v5117_v52 = vld [vmem:[#allocation6 + $0x20] sm:$0xf]  ;;  %v9478_v2 = vld [vmem:[#allocation6 + $0x8] sm:$0xf] }
 0x4ae   : > { %5293 = vrot.lane.b32.xlu0 %v6341_v23, %s7027_s17  ;;  %v5403_v0 = vrot.slane %v9470_v61, 1  ;;  %v5083_v36 = vld [vmem:[#allocation6 + $0xc] sm:$0x1]  ;;  %v9482_v30 = vcombine.low %v5096_v20, %v5097_v63  ;;  %v6357_v47 = vcombine.low %v5117_v52, %v5117_v52  ;;  %v5103_v6 = vld [vmem:[#allocation6 + $0x24] sm:$0x1]  ;;  %v5346_v55 = vshll.u32 %v9470_v61, 16 }
 0x4af   : > { %v5244_v1 = vrot.slane %v9466_v38, 1  ;;  %v5562_v58 = vrot.slane %v9475_v60, 1  ;;  %v6332_v32 = vcombine.low %v9478_v2, %v5083_v36  ;;  %v5118_v22 = vld [vmem:[#allocation6 + $0x24] sm:$0x1]  ;;  %v5113_v9 = vld [vmem:[#allocation6 + $0x10] sm:$0xf]  ;;  %v6350_v8 = vcombine.low %v5102_v24, %v5103_v6 }
 0x4b0   : > { %v5401_v57 = vrot.slane %v9482_v30, 1  ;;  %v5098_v14 = vld [vmem:[#allocation6 + $0x10] sm:$0xf]  ;;  %v9491_v54 = vcombine.low %v5117_v52, %v5118_v22  ;;  %v6355_v53 = vcombine.low %v5113_v9, %v5113_v9  ;;  %v5099_v13 = vld [vmem:[#allocation6 + $0x14] sm:$0x1]  ;;  %v5193_v46 = vshll.u32 %v9466_v38, 16 }
 0x4b1   : > { %5255 = vrot.lane.b32.xlu1 %v5244_v1, %s7023_s26  ;;  %v5242_v50 = vrot.slane %v6332_v32, 1  ;;  %v6340_v39 = vcombine.low %v5098_v14, %v5098_v14  ;;  %v9493_v29 = vld [vmem:[#allocation6 + $0x20] sm:$0xf]  ;;  %v5089_v48 = vld [vmem:[#allocation6 + $0x24] sm:$0x1]  ;;  %v6348_v59 = vcombine.low %v5098_v14, %v5099_v13  ;;  %v5404_v18 = vrot.slane %v6350_v8, 1 }
 0x4b2   : > { %5289 = vrot.lane.b32.xlu0 %v6339_v26, %s7027_s17  ;;  %v5563_v10 = vrot.slane %v9491_v54, 1  ;;  %v6335_v4 = vcombine.low %v9493_v29, %v5089_v48  ;;  %v9500_v35 = vld [vmem:[#allocation6 + $0x10] sm:$0xf]  ;;  %v5085_v51 = vld [vmem:[#allocation6 + $0x14] sm:$0x1]  ;;  %v5195_v11 = vrot.slane %v5193_v46, 1 }
 0x4b3   : > { %v5402_v15 = vrot.slane %v6348_v59, 1  ;;  %v5114_v27 = vld [vmem:[#allocation6 + $0x14] sm:$0x1]  ;;  %v6333_v3 = vcombine.low %v9500_v35, %v5085_v51  ;;  %v5499_v44 = vshll.u32 %v9475_v60, 16  ;;  %v5191_v42 = vshrl.u32 %v9466_v38, 16 }
 0x4b4   : > { %v5245_v62 = vrot.slane %v6335_v4, 1  ;;  %v6363_v31 = vcombine.low %v5113_v9, %v5114_v27  ;;  %v5179_v34 = vshll.u32 %v6332_v32, 16  ;;  %v5497_v49 = vshrl.u32 %v9475_v60, 16 }
 0x4b5   : > { %5295 = vrot.lane.b32.xlu1 %v6342_v25, %s7027_s17  ;;  %v5243_v16 = vrot.slane %v6333_v3, 1  ;;  %v5196_v43 = vor.u32 %v5195_v11, %v5191_v42  ;;  %v5501_v17 = vrot.slane %v5499_v44, 1  ;;  %v5348_v40 = vrot.slane %v5346_v55, 1 }
 0x4b6   : > { %5413 = vrot.lane.b32.xlu0 %v5403_v0, %s7030_s20  ;;  %v5332_v37 = vshll.u32 %v9482_v30, 16  ;;  %v5561_v7 = vrot.slane %v6363_v31, 1  ;;  %v5181_v28 = vrot.slane %v5179_v34, 1  ;;  %v5353_v19 = vshll.u32 %v6350_v8, 16  ;;  %v9533_v34 = vpop.permute.xlu1 %5463 }
 0x4b7   : > { %v5502_v23 = vor.u32 %v5501_v17, %v5497_v49  ;;  %v5344_v38 = vshrl.u32 %v9470_v61, 16  ;;  %v5177_v20 = vshrl.u32 %v6332_v32, 16  ;;  %v5506_v60 = vshll.u32 %v9491_v54, 16  ;;  %v9535_v49 = vpop.permute.xlu0 %5225 }
 0x4b8   : > { %v5334_v26 = vrot.slane %v5332_v37, 1  ;;  %v5355_v24 = vrot.slane %v5353_v19, 1  ;;  %v5339_v63 = vshll.u32 %v6348_v59, 16  ;;  %v5330_v25 = vshrl.u32 %v9482_v30, 16 }
 0x4b9   : > { %5571 = vrot.lane.b32.xlu1 %v5562_v58, %s7033_s13  ;;  %v5349_v1 = vor.u32 %v5348_v40, %v5344_v38  ;;  %v5182_v41 = vor.u32 %v5181_v28, %v5177_v20  ;;  %v5351_v0 = vshrl.u32 %v6350_v8, 16  ;;  %v5508_v36 = vrot.slane %v5506_v60, 1  ;;  %v5071_v28 = vld [vmem:[#allocation6 + $0x3c] sm:$0x1]  ;;  %v5059_v60 = vld [vmem:[#allocation6 + $0x2c] sm:$0x1] }
 0x4ba   : > { %5453 = vrot.lane.b32.xlu0 %v6357_v47, %s7031_s23  ;;  %v5335_v61 = vor.u32 %v5334_v26, %v5330_v25  ;;  %v5341_v58 = vrot.slane %v5339_v63, 1  ;;  %v5200_v47 = vshll.u32 %v6335_v4, 16  ;;  %v5504_v32 = vshrl.u32 %v9491_v54, 16 }
 0x4bb   : > { %v5356_v52 = vor.u32 %v5355_v24, %v5351_v0  ;;  %v5337_v6 = vshrl.u32 %v6348_v59, 16  ;;  %v5186_v22 = vshll.u32 %v6333_v3, 16  ;;  %v5198_v9 = vshrl.u32 %v6335_v4, 16 }
 0x4bc   : > { %v5202_v30 = vrot.slane %v5200_v47, 1  ;;  %v5184_v13 = vshrl.u32 %v6333_v3, 16  ;;  %v5490_v54 = vshrl.u32 %v6363_v31, 16 }
 0x4bd   : > { %5251 = vrot.lane.b32.xlu1 %v5242_v50, %s7023_s26  ;;  %v5342_v50 = vor.u32 %v5341_v58, %v5337_v6  ;;  %v5188_v8 = vrot.slane %v5186_v22, 1 }
 0x4be   : > { %5409 = vrot.lane.b32.xlu0 %v5401_v57, %s7030_s20  ;;  %v5509_v57 = vor.u32 %v5508_v36, %v5504_v32  ;;  %v5203_v14 = vor.u32 %v5202_v30, %v5198_v9  ;;  %v5074_v36 = vld [vmem:[#allocation6 + $0x40] sm:$0xf]  ;;  %v5077_v32 = vld [vmem:[#allocation6 + $0x44] sm:$0x1]  ;;  %v9539_v30 = vpop.permute.xlu0 %5249 }
 0x4c1   : > { %5291 = vrot.lane.b32.xlu1 %v6340_v39, %s7027_s17  ;;  %v5189_v39 = vor.u32 %v5188_v8, %v5184_v13  ;;  %v5065_v13 = vld [vmem:[#allocation6 + $0x34] sm:$0x1] }
 0x4c2   : > { %5449 = vrot.lane.b32.xlu0 %v6355_v53, %s7031_s23  ;;  %v5492_v53 = vshll.u32 %v6363_v31, 16 }
 0x4c4   : > { %v5494_v48 = vrot.slane %v5492_v53, 1  ;;  %v5062_v53 = vld [vmem:[#allocation6 + $0x30] sm:$0xf] }
 0x4c5   : > { %5415 = vrot.lane.b32.xlu1 %v5404_v18, %s7030_s20 }
 0x4c6   : > { %5573 = vrot.lane.b32.xlu0 %v5563_v10, %s7033_s13  ;;  %v5495_v59 = vor.u32 %v5494_v48, %v5490_v54 }
 0x4c9   : > { %5411 = vrot.lane.b32.xlu1 %v5402_v15, %s7030_s20 }
 0x4ca   : > { %5257 = vrot.lane.b32.xlu0 %v5245_v62, %s7023_s26 }
 0x4cd   : > { %5231 = vrot.lane.b32.xlu1 %v5196_v43, %s7024_s10 }
 0x4ce   : > { %5253 = vrot.lane.b32.xlu0 %v5243_v16, %s7023_s26 }
 0x4d1   : > { %5547 = vrot.lane.b32.xlu1 %v5502_v23, %s7032_s19  ;;  %v5068_v23 = vld [vmem:[#allocation6 + $0x38] sm:$0xf] }
 0x4d2   : > { %5569 = vrot.lane.b32.xlu0 %v5561_v7, %s7033_s13 }
 0x4d5   : > { %5227 = vrot.lane.b32.xlu1 %v5182_v41, %s7024_s10 }
 0x4d6   : > { %5389 = vrot.lane.b32.xlu0 %v5349_v1, %s7029_s18  ;;  %v5056_v1 = vld [vmem:[#allocation6 + $0x28] sm:$0xf] }
 0x4d9   : > { %5391 = vrot.lane.b32.xlu1 %v5356_v52, %s7029_s18 }
 0x4da   : > { %5385 = vrot.lane.b32.xlu0 %v5335_v61, %s7029_s18 }
 0x4dd   : > { %5387 = vrot.lane.b32.xlu1 %v5342_v50, %s7029_s18  ;;  %v9537_v50 = vpop.permute.xlu1 %5559 }
 0x4de   : > { %5549 = vrot.lane.b32.xlu0 %v5509_v57, %s7032_s19 }
 0x4e2   : > { %5233 = vrot.lane.b32.xlu0 %v5203_v14, %s7024_s10 }
 0x4e6   : > { %5229 = vrot.lane.b32.xlu0 %v5189_v39, %s7024_s10 }
 0x4ea   : > { %5545 = vrot.lane.b32.xlu0 %v5495_v59, %s7032_s19 }
 0x50c   : > { %v6540_v10 = vpop.f32.mrb[4].mxu1 }
 0x50d   : > { %v4898_v18 = vadd.f32 %v6540_v10, %v9429_v5  ;;  %v4889_v46 = vpop.f32.mrb[5].mxu1 }
 0x50e   : > { %v4890_v4 = vadd.f32 %v9429_v5, %v4889_v46  ;;  %v6541_v51 = vpop.f32.mrb[6].mxu1 }
 0x50f   : > { %vm4910_vm4 = vcmp.ge.f32.partialorder %v4898_v18, 0.0  ;;  %v4918_v15 = vmul.f32 0.1, %v4898_v18  ;;  %v4901_v27 = vadd.f32 %v6541_v51, %v9429_v5  ;;  %v4892_v62 = vpop.f32.mrb[7].mxu1 }
 0x510   : > { %vm4908_vm6 = vcmp.ge.f32.partialorder %v4890_v4, 0.0  ;;  %v4916_v3 = vmul.f32 0.1, %v4890_v4  ;;  %v4893_v11 = vadd.f32 %v9429_v5, %v4892_v62 }
 0x511   : > { %v4926_v44 = vsel %vm4910_vm4, %v4898_v18, %v4918_v15  ;;  %vm4911_vm8 = vcmp.ge.f32.partialorder %v4901_v27, 0.0  ;;  %v4919_v42 = vmul.f32 0.1, %v4901_v27 }
 0x512   : > { %v6438_v31 = vpack.c.bf16 %v4926_v44, %v4926_v44  ;;  %v4924_v55 = vsel %vm4908_vm6, %v4890_v4, %v4916_v3  ;;  %vm4909_vm5 = vcmp.ge.f32.partialorder %v4893_v11, 0.0  ;;  %v4917_v16 = vmul.f32 0.1, %v4893_v11 }
 0x513   : > { %v6436_v43 = vpack.c.bf16 %v4924_v55, %v4924_v55  ;;  %v4927_v17 = vsel %vm4911_vm8, %v4901_v27, %v4919_v42 }
 0x514   : > { %v5001_v40 = vshrl.u32 %v6438_v31, 16  ;;  %v6439_v37 = vpack.c.bf16 %v4927_v17, %v4927_v17  ;;  %v4925_v7 = vsel %vm4909_vm5, %v4893_v11, %v4917_v16  ;;  %v5004_v20 = vshll.u32 %v6438_v31, 16 }
 0x515   : > { %v4985_v19 = vshrl.u32 %v6436_v43, 16  ;;  %v6437_v5 = vpack.c.bf16 %v4925_v7, %v4925_v7  ;;  %v4988_v24 = vshll.u32 %v6436_v43, 16 }
 0x516   : > { %v5003_v38 = vrot.slane %v5001_v40, 7  ;;  %v5009_v26 = vshrl.u32 %v6439_v37, 16  ;;  %v5012_v52 = vshll.u32 %v6439_v37, 16 }
 0x517   : > { %v4987_v41 = vrot.slane %v4985_v19, 7  ;;  %v4993_v63 = vshrl.u32 %v6437_v5, 16  ;;  %v4996_v57 = vshll.u32 %v6437_v5, 16 }
 0x518   : > { %v5006_v25 = vor.u32 %v5004_v20, %v5003_v38  ;;  %v5007_v0 = vrot.slane %v5003_v38, 4  ;;  %v5011_v61 = vrot.slane %v5009_v26, 7 }
 0x519   : > { %v4990_v58 = vor.u32 %v4988_v24, %v4987_v41  ;;  %v4991_v47 = vrot.slane %v4987_v41, 4  ;;  %v4995_v6 = vrot.slane %v4993_v63, 7 }
 0x51a   : > { %v5069_v22 = vsel %vm8941_vm0, %v5006_v25, %v5068_v23  ;;  %v5072_v9 = vsel %vm8705_vm3, %v5007_v0, %v5071_v28  ;;  %v5014_v14 = vor.u32 %v5012_v52, %v5011_v61  ;;  %v5015_v8 = vrot.slane %v5011_v61, 4 }
 0x51b   : > { %5070 = vst [vmem:[#allocation6 + $0x38] sm:$0xf] %v5069_v22  ;;  %5073 = vst [vmem:[#allocation6 + $0x3c] sm:$0x1] %v5072_v9  ;;  %v5057_v39 = vsel %vm8941_vm0, %v4990_v58, %v5056_v1  ;;  %v5060_v48 = vsel %vm8705_vm3, %v4991_v47, %v5059_v60  ;;  %v4998_v54 = vor.u32 %v4996_v57, %v4995_v6  ;;  %v4999_v59 = vrot.slane %v4995_v6, 4  ;;  %v6887_v22 = vld [vmem:[%s9904_s4] sm:$0xff]  }
 0x51c   : > { %5058 = vst [vmem:[#allocation6 + $0x28] sm:$0xf] %v5057_v39  ;;  %5061 = vst [vmem:[#allocation6 + $0x2c] sm:$0x1] %v5060_v48  ;;  %v5075_v10 = vsel %vm8941_vm0, %v5014_v14, %v5074_v36  ;;  %v5078_v18 = vsel %vm8705_vm3, %v5015_v8, %v5077_v32  ;;  %6542 = vmatprep.subr.bf16.mxu1 %v6887_v22 }
 0x51d   : > { %5076 = vst [vmem:[#allocation6 + $0x40] sm:$0xf] %v5075_v10  ;;  %5079 = vst [vmem:[#allocation6 + $0x44] sm:$0x1] %v5078_v18  ;;  %v5063_v46 = vsel %vm8941_vm0, %v4998_v54, %v5062_v53  ;;  %v5066_v4 = vsel %vm8705_vm3, %v4999_v59, %v5065_v13  ;;  %6543 = vmatpush3.bf16.msra.mxu1 %v6887_v22  ;;  %v6888_v10 = vld [vmem:[%s9904_s4 + $0x8] sm:$0xff]   ;;  %vm10094_vm3 = vcmask 588800  }
 0x51e   : > { %5064 = vst [vmem:[#allocation6 + $0x30] sm:$0xf] %v5063_v46  ;;  %5067 = vst [vmem:[#allocation6 + $0x34] sm:$0x1] %v5066_v4  ;;  %6544 = vmatprep.subr.bf16.mxu1 %v6888_v10 }
 0x51f   : > { %v9557_v51 = vpop.permute.xlu1 %5451  ;;  %vm10095_vm0 = vmmov %vm10094_vm3 }
 0x520   : > { %v9559_v15 = vpop.permute.xlu0 %5293 }
 0x521   : > { %6545 = vmatpush3.bf16.msra.mxu1 %v6888_v10 }
 0x522   : > { %v9561_v27 = vld [vmem:[#allocation6 + $0x38] sm:$0xf]  ;;  %v5109_v44 = vld [vmem:[#allocation6 + $0x3c] sm:$0x1] }
 0x523   : > { %v5108_v62 = vld [vmem:[#allocation6 + $0x38] sm:$0xf]  ;;  %v9563_v3 = vpop.permute.xlu1 %5255  ;;  %v6360_v45 = vcombine.low %v9561_v27, %v9561_v27  ;;  %v5119_v56 = vld [vmem:[#allocation6 + $0x28] sm:$0xf]  ;;  %v5095_v16 = vld [vmem:[#allocation6 + $0x3c] sm:$0x1] }
 0x524   : > { %v9565_v11 = vpop.permute.xlu0 %5289  ;;  %v6345_v42 = vcombine.low %v5108_v62, %v5108_v62  ;;  %v5104_v31 = vld [vmem:[#allocation6 + $0x28] sm:$0xf]  ;;  %v9569_v55 = vld [vmem:[#allocation6 + $0x38] sm:$0xf]  ;;  %v9573_v43 = vcombine.low %v5108_v62, %v5109_v44  ;;  %v6358_v37 = vcombine.low %v5119_v56, %v5119_v56  ;;  %v5120_v28 = vld [vmem:[#allocation6 + $0x2c] sm:$0x1] }
 0x525   : > { %5459 = vrot.lane.b32.xlu1 %v6360_v45, %s7031_s23  ;;  %v6343_v7 = vcombine.low %v5104_v31, %v5104_v31  ;;  %v9580_v23 = vcombine.low %v9569_v55, %v5095_v16  ;;  %v5105_v1 = vld [vmem:[#allocation6 + $0x2c] sm:$0x1]  ;;  %v5110_v26 = vld [vmem:[#allocation6 + $0x40] sm:$0xf]  ;;  %v9592_v24 = vcombine.low %v5119_v56, %v5120_v28  ;;  %v9600_v52 = vld [vmem:[#allocation6 + $0x28] sm:$0xf] }
 0x526   : > { %5301 = vrot.lane.b32.xlu0 %v6345_v42, %s7027_s17  ;;  %v5407_v20 = vrot.slane %v9573_v43, 1  ;;  %v5125_v41 = vld [vmem:[#allocation6 + $0x40] sm:$0xf]  ;;  %v9594_v60 = vcombine.low %v5104_v31, %v5105_v1  ;;  %v6346_v0 = vcombine.low %v5110_v26, %v5110_v26  ;;  %v5091_v36 = vld [vmem:[#allocation6 + $0x2c] sm:$0x1]  ;;  %v6889_v28 = vld [vmem:[%s9904_s4 + $0x10] sm:$0xff]  }
 0x527   : > { %v9575_v17 = vpop.permute.xlu1 %5295  ;;  %v5248_v38 = vrot.slane %v9580_v23, 1  ;;  %v6361_v61 = vcombine.low %v5125_v41, %v5125_v41  ;;  %v5564_v32 = vrot.slane %v9592_v24, 1  ;;  %v9611_v57 = vcombine.low %v9600_v52, %v5091_v36  ;;  %v5121_v9 = vld [vmem:[#allocation6 + $0x30] sm:$0xf]  ;;  %v5093_v8 = vld [vmem:[#allocation6 + $0x34] sm:$0x1]  ;;  %6546 = vmatprep.subr.bf16.mxu1 %v6889_v28 }
 0x528   : > { %v9577_v40 = vpop.permute.xlu0 %5413  ;;  %v5405_v6 = vrot.slane %v9594_v60, 1  ;;  %v9616_v14 = vld [vmem:[#allocation6 + $0x30] sm:$0xf]  ;;  %v5111_v53 = vld [vmem:[#allocation6 + $0x44] sm:$0x1]  ;;  %v6359_v48 = vcombine.low %v5121_v9, %v5121_v9  ;;  %v5221_v22 = vshll.u32 %v9580_v23, 16  ;;  %6547 = vmatpush3.bf16.msra.mxu1 %v6889_v28 }
 0x529   : > { %5455 = vrot.lane.b32.xlu1 %v6358_v37, %s7031_s23  ;;  %v5246_v54 = vrot.slane %v9611_v57, 1  ;;  %v9626_v59 = vcombine.low %v9616_v14, %v5093_v8  ;;  %v5122_v18 = vld [vmem:[#allocation6 + $0x34] sm:$0x1]  ;;  %v5106_v46 = vld [vmem:[#allocation6 + $0x30] sm:$0xf]  ;;  %v9633_v62 = vcombine.low %v5110_v26, %v5111_v53  ;;  %v5372_v8 = vshrl.u32 %v9573_v43, 16 }
 0x52a   : > { %5297 = vrot.lane.b32.xlu0 %v6343_v7, %s7027_s17  ;;  %v5124_v4 = vld [vmem:[#allocation6 + $0x3c] sm:$0x1]  ;;  %v5126_v45 = vld [vmem:[#allocation6 + $0x44] sm:$0x1]  ;;  %v9635_v44 = vcombine.low %v5121_v9, %v5122_v18  ;;  %v5107_v16 = vld [vmem:[#allocation6 + $0x34] sm:$0x1]  ;;  %v6344_v37 = vcombine.low %v5106_v46, %v5106_v46 }
 0x52b   : > { %v9584_v19 = vpop.permute.xlu1 %5571  ;;  %v5247_v31 = vrot.slane %v9626_v59, 1  ;;  %v5374_v7 = vshll.u32 %v9573_v43, 16  ;;  %v9653_v1 = vcombine.low %v5106_v46, %v5107_v16  ;;  %v5408_v26 = vrot.slane %v9633_v62, 1 }
 0x52c   : > { %v9586_v5 = vpop.permute.xlu0 %5453  ;;  %v5565_v36 = vrot.slane %v9635_v44, 1  ;;  %v5223_v46 = vrot.slane %v5221_v22, 1  ;;  %v5358_v43 = vshrl.u32 %v9594_v60, 16 }
 0x52d   : > { %5263 = vrot.lane.b32.xlu1 %v5248_v38, %s7023_s26  ;;  %v9649_v38 = vcombine.low %v9561_v27, %v5124_v4  ;;  %v6890_v27 = vld [vmem:[%s9904_s4 + $0x18] sm:$0xff]   ;;  %v5406_v53 = vrot.slane %v9653_v1, 1 }
 0x52e   : > { %5421 = vrot.lane.b32.xlu0 %v5407_v20, %s7030_s20  ;;  %v9651_v20 = vcombine.low %v5125_v41, %v5126_v45  ;;  %6548 = vmatprep.subr.bf16.mxu1 %v6890_v27 }
 0x52f   : > { %v9596_v63 = vpop.permute.xlu1 %5251  ;;  %v5527_v4 = vshll.u32 %v9649_v38, 16  ;;  %6549 = vmatpush3.bf16.msra.mxu1 %v6890_v27 }
 0x530   : > { %v9598_v25 = vpop.permute.xlu0 %5409 }
 0x531   : > { %5303 = vrot.lane.b32.xlu1 %v6346_v0, %s7027_s17 }
 0x532   : > { %5461 = vrot.lane.b32.xlu0 %v6361_v61, %s7031_s23 }
 0x533   : > { %v9604_v58 = vpop.permute.xlu1 %5291 }
 0x534   : > { %v9606_v47 = vpop.permute.xlu0 %5449 }
 0x535   : > { %5575 = vrot.lane.b32.xlu1 %v5564_v32, %s7033_s13  ;;  %v5376_v32 = vrot.slane %v5374_v7, 1 }
 0x536   : > { %5417 = vrot.lane.b32.xlu0 %v5405_v6, %s7030_s20  ;;  %v5360_v6 = vshll.u32 %v9594_v60, 16 }
 0x537   : > { %v9620_v13 = vpop.permute.xlu1 %5415  ;;  %v5377_v18 = vor.u32 %v5376_v32, %v5372_v8  ;;  %v5532_v32 = vshrl.u32 %v9651_v20, 16 }
 0x538   : > { %v9622_v39 = vpop.permute.xlu0 %5573 }
 0x539   : > { %5259 = vrot.lane.b32.xlu1 %v5246_v54, %s7023_s26  ;;  %v5534_v54 = vshll.u32 %v9651_v20, 16 }
 0x53a   : > { %5457 = vrot.lane.b32.xlu0 %v6359_v48, %s7031_s23  ;;  %s6448_s23 = sshll.u32 %s7101_s9, 9 }
 0x53b   : > { %v9637_v42 = vpop.permute.xlu1 %5411  ;;  %v5536_v45 = vrot.slane %v5534_v54, 1  ;;  %v5520_v54 = vshll.u32 %v9635_v44, 16  ;;  %s9846_s21 = scalar_lea.hbm %s9908_s8, %s6448_s23 }
 0x53c   : > { %v9639_v56 = vpop.permute.xlu0 %5257 }
 0x53d   : > { %5299 = vrot.lane.b32.xlu1 %v6344_v37, %s7027_s17  ;;  %v5537_v22 = vor.u32 %v5536_v45, %v5532_v32 }
 0x53e   : > { %5261 = vrot.lane.b32.xlu0 %v5247_v31, %s7023_s26  ;;  %v5214_v31 = vshll.u32 %v9626_v59, 16 }
 0x53f   : > { %v5232_v0 = vpop.permute.xlu1 %5231 }
 0x540   : > { %v9656_v61 = vpop.permute.xlu0 %5253  ;;  %v5596_v41 = vsel %vm2142_vm9, %v9463_v21, %v5232_v0  ;;  %v5513_v0 = vshll.u32 %v9592_v24, 16  ;;  %v5216_v27 = vrot.slane %v5214_v31, 1 }
 0x541   : > { %v5616_v9 = vsel %vm2208_vm11, %v5596_v41, %v9563_v3  ;;  %5423 = vrot.lane.b32.xlu1 %v5408_v26, %s7030_s20  ;;  %v5362_v3 = vrot.slane %v5360_v6, 1  ;;  %v5529_v26 = vrot.slane %v5527_v4, 1  ;;  %v5511_v4 = vshrl.u32 %v9592_v24, 16 }
 0x542   : > { %5577 = vrot.lane.b32.xlu0 %v5565_v36, %s7033_s13  ;;  %v5632_v48 = vsel %vm2274_vm13, %v5616_v9, %v9575_v17  ;;  %v5219_v17 = vshrl.u32 %v9580_v23, 16  ;;  %v6891_v36 = vld [vmem:[%s9904_s4 + $0x20] ss:$0 sps:$4 sm:$0xff]   ;;  %v5525_v23 = vshrl.u32 %v9649_v38, 16 }
 0x543   : > { %v9675_v10 = vpop.permute.xlu1 %5547  ;;  %v5363_v7 = vor.u32 %v5362_v3, %v5358_v43  ;;  %v5787_v60 = vsel %vm4835_vm1, %v6891_v36, 0  ;;  %6562 = vmatprep.subr.msk.bf16.mxu1 %vm4835_vm1, %v6891_v36 }
 0x544   : > { %v9677_v21 = vpop.permute.xlu0 %5569  ;;  %v5224_v28 = vor.u32 %v5223_v46, %v5219_v17  ;;  %v5530_v8 = vor.u32 %v5529_v26, %v5525_v23  ;;  %6551 = vmatpush3.bf16.msra.mxu1 %v5787_v60  ;;  %v5212_v46 = vshrl.u32 %v9626_v59, 16  ;;  %v5587_v17 = vsel %vm2142_vm9, %v9355_v12, %v9535_v49 }
 0x545   : > { %5419 = vrot.lane.b32.xlu1 %v5406_v53, %s7030_s20  ;;  %v5515_v53 = vrot.slane %v5513_v0, 1  ;;  %v5610_v24 = vsel %vm2208_vm11, %v5587_v17, %v9539_v30  ;;  %v5518_v12 = vshrl.u32 %v9635_v44, 16  ;;  %v5205_v49 = vshrl.u32 %v9611_v57, 16  ;;  %s311_s20 = sand.u32 1, %s7011_s28  }
 0x546   : > { %5397 = vrot.lane.b32.xlu0 %v5377_v18, %s7029_s18  ;;  %v5207_v18 = vshll.u32 %v9611_v57, 16  ;;  %v5367_v23 = vshll.u32 %v9653_v1, 16  ;;  %v5379_v57 = vshrl.u32 %v9633_v62, 16  ;;  %s9856_s9 = scalar_lea.sflag [#allocation8], %s311_s20 }
 0x547   : > { %v5228_v16 = vpop.permute.xlu1 %5227  ;;  %v5516_v31 = vor.u32 %v5515_v53, %v5511_v4 }
 0x548   : > { %v9685_v37 = vpop.permute.xlu0 %5389  ;;  %v5590_v6 = vsel %vm2142_vm9, %v9478_v2, %v5228_v16  ;;  %v5522_v16 = vrot.slane %v5520_v54, 1 }
 0x549   : > { %5239 = vrot.lane.b32.xlu1 %v5224_v28, %s7024_s10  ;;  %v5612_v2 = vsel %vm2208_vm11, %v5590_v6, %v9596_v63  ;;  %v5209_v63 = vrot.slane %v5207_v18, 1  ;;  %v5566_v18 = vrot.slane %v9649_v38, 1 }
 0x54a   : > { %5393 = vrot.lane.b32.xlu0 %v5363_v7, %s7029_s18  ;;  %v5381_v7 = vshll.u32 %v9633_v62, 16  ;;  %v5628_v28 = vsel %vm2274_vm13, %v5612_v2, %v9604_v58  ;;  %v5523_v0 = vor.u32 %v5522_v16, %v5518_v12  ;;  %v5626_v58 = vsel %vm2274_vm13, %v5610_v24, %v9565_v11 }
 0x54b   : > { %v5392_v41 = vpop.permute.xlu1 %5391  ;;  %v5210_v36 = vor.u32 %v5209_v63, %v5205_v49 }
 0x54c   : > { %v5386_v9 = vpop.permute.xlu0 %5385  ;;  %v5648_v3 = vsel %vm2340_vm15, %v5632_v48, %v5392_v41  ;;  %v5217_v48 = vor.u32 %v5216_v27, %v5212_v46  ;;  %v5383_v32 = vrot.slane %v5381_v7, 1 }
 0x54d   : > { %5555 = vrot.lane.b32.xlu1 %v5530_v8, %s7032_s19  ;;  %v9710_v43 = vsel %vm4701_vm10, %v5648_v3, %v9620_v13  ;;  %v5642_v6 = vsel %vm2340_vm15, %v5626_v58, %v5386_v9 }
 0x54e   : > { %5557 = vrot.lane.b32.xlu0 %v5537_v22, %s7032_s19  ;;  %v5384_v27 = vor.u32 %v5383_v32, %v5379_v57  ;;  %v5658_v41 = vsel %vm4701_vm10, %v5642_v6, %v9598_v25 }
 0x54f   : > { %v5388_v45 = vpop.permute.xlu1 %5387 }
 0x550   : > { %v5550_v59 = vpop.permute.xlu0 %5549  ;;  %v5644_v13 = vsel %vm2340_vm15, %v5628_v28, %v5388_v45 }
 0x551   : > { %5551 = vrot.lane.b32.xlu1 %v5516_v31, %s7032_s19  ;;  %v5660_v30 = vsel %vm4701_vm10, %v5644_v13, %v9637_v42  ;;  %v5567_v42 = vrot.slane %v9651_v20, 1 }
 0x552   : > { %5237 = vrot.lane.b32.xlu0 %v5217_v48, %s7024_s10  ;;  %v5676_v11 = vsel %vm4718_vm12, %v5660_v30, %v9557_v51  ;;  %v5365_v51 = vshrl.u32 %v9653_v1, 16 }
 0x553   : > { %v5692_v20 = vsel %vm4735_vm14, %v5676_v11, %v9675_v10 }
 0x554   : > { %v5234_v26 = vpop.permute.xlu0 %5233  ;;  %v5708_v1 = vsel %vm4752_vm2, %v5692_v20, %v9584_v19  ;;  %v5568_v19 = vrot.slane %v9358_v33, 1 }
 0x555   : > { %v5599_v60 = vsel %vm2142_vm9, %v9493_v29, %v5234_v26  ;;  %5235 = vrot.lane.b32.xlu1 %v5210_v36, %s7024_s10  ;;  %v5369_v29 = vrot.slane %v5367_v23, 1  ;;  %s7034_s10 = smov [#allocation7]  }
 0x556   : > { %5553 = vrot.lane.b32.xlu0 %v5523_v0, %s7032_s19  ;;  %v9738_v44 = vsel %vm2208_vm11, %v5599_v60, %v9639_v56  ;;  %s6010_s19 = sshll.u32 %s311_s20, 5 }
 0x557   : > { %s9827_s12 = scalar_lea.vmem [#allocation7], %s6010_s19 }
 0x558   : > { %v5230_v22 = vpop.permute.xlu0 %5229  ;;  %s5932_s22 = sshll.u32 %s9827_s12, 4  ;;  %s9848_s22 = int_to_ptr.vmem [resolvable:$true] %s5932_s22 }
 0x559   : > { %v5593_v9 = vsel %vm2142_vm9, %v9500_v35, %v5230_v22  ;;  %5399 = vrot.lane.b32.xlu1 %v5384_v27, %s7029_s18  ;;  %v5674_v35 = vsel %vm4718_vm12, %v5658_v41, %v9606_v47  ;;  %s6957_s24 = scalar_lea.vmem %s9848_s22, 512 }
 0x55a   : > { %v5614_v62 = vsel %vm2208_vm11, %v5593_v9, %v9656_v61  ;;  %5581 = vrot.lane.b32.xlu0 %v5567_v42, %s7033_s13  ;;  %v5370_v61 = vor.u32 %v5369_v29, %v5365_v51  ;;  %p6958_p11 = scmp.ne.s32.totalorder %s9848_s22, %s6957_s24 }
 0x55b   : > { %v5630_v56 = vsel %vm2274_vm13, %v5614_v62, %v9559_v15 }
 0x55c   : > { %v5646_v25 = vsel %vm2340_vm15, %v5630_v56, %v9685_v37  ;;  %v5546_v8 = vpop.permute.xlu0 %5545  ;;  %p6959_p12 = pnand %p6958_p11, %p7118_p5 }
 0x55d   : > { %v5662_v53 = vsel %vm4701_vm10, %v5646_v25, %v9577_v40  ;;  %v5690_v54 = vsel %vm4735_vm14, %v5674_v35, %v5546_v8  ;;  %5395 = vrot.lane.b32.xlu1 %v5370_v61, %s7029_s18  ;;  %s6961_s18 = sshll.u32 %s7034_s10, 4  ;;  %s6962_s18 = int_to_ptr.vmem [resolvable:$false] %s6961_s18 }
 0x55e   : > { %v5706_v15 = vsel %vm4752_vm2, %v5690_v54, %v9677_v21  ;;  %v5678_v10 = vsel %vm4718_vm12, %v5662_v53, %v9586_v5  ;;  %p6960_p13 = pneg %p6959_p12  ;;  %s6963_s19 = scalar_lea.vmem %s6962_s18, 1024 }
 0x55f   : > { %v6372_v37 = vcombine.low %v5706_v15, %v5708_v1  ;;  %v5694_v47 = vsel %vm4735_vm14, %v5678_v10, %v5550_v59  ;;  %p6964_p0 = scmp.lt.s32.totalorder %s9848_s22, %s6962_s18  ;;  %p6965_p1 = scmp.lt.s32.totalorder %s6963_s19, %s6957_s24 }
 0x560   : > { %v5710_v40 = vsel %vm4752_vm2, %v5694_v47, %v9622_v39 }
 0x561   : > { %6552 = vmatprep.mubr.msk.bf16.mxu1 %vm10094_vm3, %v6372_v37  ;;  %5579 = vrot.lane.b32.xlu1 %v5566_v18, %s7033_s13  ;;  %p6966_p2 = por %p6965_p1, %p6964_p0 }
 0x563   : > { %p6967_p3 = pnand %p6966_p2, %p6960_p13 }
 0x565   : > { %5583 = vrot.lane.b32.xlu1 %v5568_v19, %s7033_s13 }
 0x597   : > { %v5460_v21 = vpop.permute.xlu1 %5459 }
 0x598   : > { %v5302_v3 = vpop.permute.xlu0 %5301 }
 0x59b   : > { %v5456_v46 = vpop.permute.xlu1 %5455 }
 0x59c   : > { %v5298_v5 = vpop.permute.xlu0 %5297  ;;  %v5680_v26 = vsel %vm4718_vm12, %v9710_v43, %v5456_v46 }
 0x59d   : > { %v5634_v43 = vsel %vm2274_vm13, %v9738_v44, %v5298_v5 }
 0x59f   : > { %v5264_v2 = vpop.permute.xlu1 %5263 }
 0x5a0   : > { %v5422_v4 = vpop.permute.xlu0 %5421 }
 0x5a3   : > { %v5304_v17 = vpop.permute.xlu1 %5303 }
 0x5a4   : > { %v5462_v48 = vpop.permute.xlu0 %5461 }
 0x5a7   : > { %v5576_v38 = vpop.permute.xlu1 %5575 }
 0x5a8   : > { %v5418_v45 = vpop.permute.xlu0 %5417 }
 0x5ab   : > { %v5260_v59 = vpop.permute.xlu1 %5259 }
 0x5ac   : > { %v5458_v39 = vpop.permute.xlu0 %5457 }
 0x5af   : > { %v5300_v31 = vpop.permute.xlu1 %5299 }
 0x5b0   : > { %v5262_v16 = vpop.permute.xlu0 %5261 }
 0x5b3   : > { %v5424_v63 = vpop.permute.xlu1 %5423 }
 0x5b4   : > { %v5578_v7 = vpop.permute.xlu0 %5577 }
 0x5b7   : > { %v5420_v28 = vpop.permute.xlu1 %5419 }
 0x5b8   : > { %v5398_v33 = vpop.permute.xlu0 %5397 }
 0x5bb   : > { %v5240_v24 = vpop.permute.xlu1 %5239 }
 0x5bc   : > { %v5394_v13 = vpop.permute.xlu0 %5393  ;;  %v5608_v6 = vsel %vm2142_vm9, %v9569_v55, %v5240_v24 }
 0x5bd   : > { %v5650_v42 = vsel %vm2340_vm15, %v5634_v43, %v5394_v13 }
 0x5be   : > { %v5666_v41 = vsel %vm4701_vm10, %v5650_v42, %v5418_v45 }
 0x5bf   : > { %v5556_v12 = vpop.permute.xlu1 %5555  ;;  %v5682_v20 = vsel %vm4718_vm12, %v5666_v41, %v5458_v39 }
 0x5c0   : > { %v5558_v49 = vpop.permute.xlu0 %5557 }
 0x5c3   : > { %v5552_v0 = vpop.permute.xlu1 %5551 }
 0x5c4   : > { %v5238_v36 = vpop.permute.xlu0 %5237  ;;  %v5696_v32 = vsel %vm4735_vm14, %v5680_v26, %v5552_v0 }
 0x5c5   : > { %v5605_v23 = vsel %vm2142_vm9, %v9616_v14, %v5238_v36  ;;  %v5712_v58 = vsel %vm4752_vm2, %v5696_v32, %v5576_v38  ;;  %v5624_v14 = vsel %vm2208_vm11, %v5608_v6, %v5264_v2 }
 0x5c6   : > { %v6373_v30 = vcombine.low %v5710_v40, %v5712_v58  ;;  %v5622_v60 = vsel %vm2208_vm11, %v5605_v23, %v5262_v16  ;;  %v5640_v9 = vsel %vm2274_vm13, %v5624_v14, %v5304_v17 }
 0x5c7   : > { %v5236_v57 = vpop.permute.xlu1 %5235  ;;  %v5638_v11 = vsel %vm2274_vm13, %v5622_v60, %v5302_v3 }
 0x5c8   : > { %6553 = vmatmul.mubr.msk.bf16.vlgmr.msra.gmra.mrb[8].mxu1 %vm10095_vm0, %v6373_v30  ;;  %v5602_v22 = vsel %vm2142_vm9, %v9600_v52, %v5236_v57  ;;  %v5654_v29 = vsel %vm2340_vm15, %v5638_v11, %v5398_v33  ;;  %v5554_v62 = vpop.permute.xlu0 %5553  ;;  %vm10096_vm9 = vmmov %vm10095_vm0 }
 0x5c9   : > { %v5620_v55 = vsel %vm2208_vm11, %v5602_v22, %v5260_v59  ;;  %v5670_v51 = vsel %vm4701_vm10, %v5654_v29, %v5422_v4  ;;  %v5698_v35 = vsel %vm4735_vm14, %v5682_v20, %v5554_v62  ;;  %vm10097_vm11 = vmmov %vm10095_vm0 }
 0x5ca   : > { %v5636_v52 = vsel %vm2274_vm13, %v5620_v55, %v5300_v31  ;;  %v5686_v53 = vsel %vm4718_vm12, %v5670_v51, %v5462_v48  ;;  %v5714_v10 = vsel %vm4752_vm2, %v5698_v35, %v5578_v7 }
 0x5cb   : > { %v5400_v27 = vpop.permute.xlu1 %5399  ;;  %v5702_v18 = vsel %vm4735_vm14, %v5686_v53, %v5558_v49 }
 0x5cc   : > { %v5656_v44 = vsel %vm2340_vm15, %v5640_v9, %v5400_v27  ;;  %v5582_v40 = vpop.permute.xlu0 %5581 }
 0x5cd   : > { %v5672_v8 = vsel %vm4701_vm10, %v5656_v44, %v5424_v63  ;;  %v5718_v46 = vsel %vm4752_vm2, %v5702_v18, %v5582_v40 }
 0x5ce   : > { %v5688_v47 = vsel %vm4718_vm12, %v5672_v8, %v9533_v34  ;;  %v6371_v34 = vld [vmem:[%s9907_s7] ss:$0 sm:$0xff] }
 0x5cf   : > { %v5396_v56 = vpop.permute.xlu1 %5395  ;;  %v5704_v3 = vsel %vm4735_vm14, %v5688_v47, %v9537_v50 }
 0x5d0   : > { %v5652_v25 = vsel %vm2340_vm15, %v5636_v52, %v5396_v56 }
 0x5d1   : > { %v5668_v61 = vsel %vm4701_vm10, %v5652_v25, %v5420_v28 }
 0x5d2   : > { %v5684_v54 = vsel %vm4718_vm12, %v5668_v61, %v5460_v21  ;;  %vm10098_vm12 = vcmask 60416  }
 0x5d3   : > { %v5700_v1 = vsel %vm4735_vm14, %v5684_v54, %v5556_v12  ;;  %v5580_v15 = vpop.permute.xlu1 %5579  ;;  %vm10099_vm14 = vmmov %vm10098_vm12 }
 0x5d4   : > { %v5716_v37 = vsel %vm4752_vm2, %v5700_v1, %v5580_v15 }
 0x5d5   : > { %v6374_v19 = vcombine.low %v5714_v10, %v5716_v37 }
 0x5d7   : > { %v5584_v21 = vpop.permute.xlu1 %5583  ;;  %6556 = vmatprep.mubr.msk.bf16.mxu1 %vm10096_vm9, %v6374_v19 }
 0x5d8   : > { %v5720_v5 = vsel %vm4752_vm2, %v5704_v3, %v5584_v21  ;;  %vm10100_vm2 = vmmov %vm10098_vm12 }
 0x5d9   : > { %v6375_v2 = vcombine.low %v5718_v46, %v5720_v5  ;;  %vm10101_vm7 = vmmov %vm10100_vm2 }
 0x5da   : > { %vm10102_vm3 = vmmov %vm10100_vm2 }
 0x5db   : > { %6557 = vmatmul.mubr.msk.bf16.gmra.mrb[12].mxu1 %vm10097_vm11, %v6375_v2  ;;  %vm10103_vm0 = vmmov %vm10100_vm2 }
 0x5dc   : > { %vm10104_vm9 = vmmov %vm10103_vm0 }
 0x5dd   : > { %vm10105_vm11 = vmmov %vm10103_vm0 }
 0x69b   : > { %v6554_v4 = vpop.f32.mrb[8].mxu1 }
 0x69c   : > { %v5832_v17 = vadd.f32 %v6554_v4, %v6371_v34  ;;  %v5823_v48 = vpop.f32.mrb[9].mxu1 }
 0x69d   : > { %v5824_v50 = vadd.f32 %v6371_v34, %v5823_v48  ;;  %v6555_v38 = vpop.f32.mrb[10].mxu1 }
 0x69e   : > { %vm5856_vm13 = vcmp.ge.f32.partialorder %v5832_v17, 0.0  ;;  %v5864_v45 = vmul.f32 0.1, %v5832_v17  ;;  %v5835_v59 = vadd.f32 %v6555_v38, %v6371_v34  ;;  %v5826_v39 = vpop.f32.mrb[11].mxu1 }
 0x69f   : > { %vm5854_vm15 = vcmp.ge.f32.partialorder %v5824_v50, 0.0  ;;  %v5862_v31 = vmul.f32 0.1, %v5824_v50  ;;  %v5827_v16 = vadd.f32 %v6371_v34, %v5826_v39 }
 0x6a0   : > { %v5872_v63 = vsel %vm5856_vm13, %v5832_v17, %v5864_v45  ;;  %vm5857_vm1 = vcmp.ge.f32.partialorder %v5835_v59, 0.0  ;;  %v5865_v7 = vmul.f32 0.1, %v5835_v59 }
 0x6a1   : > { %v6442_v28 = vpack.c.bf16 %v5872_v63, %v5872_v63  ;;  %v5870_v33 = vsel %vm5854_vm15, %v5824_v50, %v5862_v31  ;;  %vm5855_vm10 = vcmp.ge.f32.partialorder %v5827_v16, 0.0  ;;  %v5863_v24 = vmul.f32 0.1, %v5827_v16 }
 0x6a2   : > { %v6440_v13 = vpack.c.bf16 %v5870_v33, %v5870_v33  ;;  %v5873_v12 = vsel %vm5857_vm1, %v5835_v59, %v5865_v7 }
 0x6a3   : > { %5912 = vst.msk [vmem:[%s9827_s12 + $0x8] sm:$0xf] %vm10098_vm12, %v6442_v28  ;;  %v6443_v49 = vpack.c.bf16 %v5873_v12, %v5873_v12  ;;  %v5871_v26 = vsel %vm5855_vm10, %v5827_v16, %v5863_v24 }
 0x6a4   : > { %5910 = vst.msk [vmem:[%s9827_s12] sm:$0xf] %vm10099_vm14, %v6440_v13  ;;  %v6441_v0 = vpack.c.bf16 %v5871_v26, %v5871_v26 }
 0x6a5   : > { %5913 = vst.msk [vmem:[%s9827_s12 + $0xc] sm:$0xf] %vm10100_vm2, %v6443_v49 }
 0x6a6   : > { %5911 = vst.msk [vmem:[%s9827_s12 + $0x4] sm:$0xf] %vm10101_vm7, %v6441_v0 }
 0x6ae   : > { %v6558_v36 = vpop.f32.mrb[12].mxu1 }
 0x6af   : > { %v5848_v32 = vadd.f32 %v6558_v36, %v6371_v34  ;;  %v5839_v23 = vpop.f32.mrb[13].mxu1 }
 0x6b0   : > { %v5840_v58 = vadd.f32 %v6371_v34, %v5839_v23  ;;  %v6559_v30 = vpop.f32.mrb[14].mxu1 }
 0x6b1   : > { %vm5860_vm4 = vcmp.ge.f32.partialorder %v5848_v32, 0.0  ;;  %v5868_v60 = vmul.f32 0.1, %v5848_v32  ;;  %v5851_v6 = vadd.f32 %v6559_v30, %v6371_v34  ;;  %v5842_v57 = vpop.f32.mrb[15].mxu1 }
 0x6b2   : > { %vm5858_vm6 = vcmp.ge.f32.partialorder %v5840_v58, 0.0  ;;  %v5866_v43 = vmul.f32 0.1, %v5840_v58  ;;  %v5843_v11 = vadd.f32 %v6371_v34, %v5842_v57 }
 0x6b3   : > { %v5876_v22 = vsel %vm5860_vm4, %v5848_v32, %v5868_v60  ;;  %vm5861_vm8 = vcmp.ge.f32.partialorder %v5851_v6, 0.0  ;;  %v5869_v14 = vmul.f32 0.1, %v5851_v6 }
 0x6b4   : > { %v6446_v42 = vpack.c.bf16 %v5876_v22, %v5876_v22  ;;  %v5874_v27 = vsel %vm5858_vm6, %v5840_v58, %v5866_v43  ;;  %vm5859_vm5 = vcmp.ge.f32.partialorder %v5843_v11, 0.0  ;;  %v5867_v29 = vmul.f32 0.1, %v5843_v11 }
 0x6b5   : > { %v6444_v55 = vpack.c.bf16 %v5874_v27, %v5874_v27  ;;  %v5877_v41 = vsel %vm5861_vm8, %v5851_v6, %v5869_v14 }
 0x6b6   : > { %5916 = vst.msk [vmem:[%s9827_s12 + $0x18] sm:$0xf] %vm10102_vm3, %v6446_v42  ;;  %v6447_v9 = vpack.c.bf16 %v5877_v41, %v5877_v41  ;;  %v5875_v62 = vsel %vm5859_vm5, %v5843_v11, %v5867_v29 }
 0x6b7   : > { %5914 = vst.msk [vmem:[%s9827_s12 + $0x10] sm:$0xf] %vm10103_vm0, %v6444_v55  ;;  %v6445_v44 = vpack.c.bf16 %v5875_v62, %v5875_v62 }
 0x6b8   : > { %5917 = vst.msk [vmem:[%s9827_s12 + $0x1c] sm:$0xf] %vm10104_vm9, %v6447_v9 }
 0x6b9   : > { %5915 = vst.msk [vmem:[%s9827_s12 + $0x14] sm:$0xf] %vm10105_vm11, %v6445_v44 }
 0x6ba   : > { %6970 = shalt.err (!%p6967_p3)
}
 0x6bb   : > { %s6971_s20 = scalar_lea.hbm %s9846_s21, 512  ;;  %s6975_s26 = scalar_lea.hbm %s9908_s8, 1024 }
 0x6bc   : > { %p6972_p4 = scmp.ne.s32.totalorder %s9846_s21, %s6971_s20  ;;  %p6976_p9 = scmp.lt.u32.totalorder %s9846_s21, %s9908_s8 }
 0x6bd   : > { %p6977_p10 = scmp.lt.u32.totalorder %s6975_s26, %s6971_s20  ;;  %p6979_p12 = scmp.lt.u32.totalorder %s6971_s20, %s9846_s21 }
 0x6be   : > { %p6973_p7 = pnand %p6972_p4, %p7118_p5 }
 0x6bf   : > { %p6978_p11 = por %p6977_p10, %p6976_p9 }
 0x6c0   : > { %p6974_p8 = pneg %p6973_p7 }
 0x6c1   : > { %p6980_p13 = por %p6979_p12, %p6978_p11 }
 0x6c3   : > { %p6981_p0 = pnand %p6980_p13, %p6974_p8 }
 0x6c5   : > { %6984 = shalt.err (!%p6981_p0)
}
 0x6c6   : > { %6563 = dma.vmem_to_hbm [thread:$0]  (%p7118_p5), %s9848_s22, 512, %s9846_s21, %s9856_s9, %s7033_s13, %s7033_s13, %s7022_s25  }
 0x6c7 PF: > { %p6569_p1 = scmp.ge.s32.totalorder %s7019_s30, 2  ;;  %s5947_s24 = sand.u32 1, %s7007_s27  }
 0x6c8   : > { %s5948_s18 = scalar_lea.sflag [#allocation8], %s5947_s24 }
 0x6c9   : > { %p6566_p2 = pnand %p6569_p1, %p7122_p6 }
 0x6cb   : > { %7002 = dma.done.wait (!%p6566_p2), %s5948_s18, 512  }
 0x6cc   : > { %7004 = vsyncadd (!%p6566_p2), %s5948_s18, 4294966784  ;;  %p18_p3 = scmp.ge.s32.totalorder %s7105_s11, 4   ;;  %s10106_s27 = smov %s7011_s28 }
 0x6cd   : > { %s10107_s28 = smov %s7015_s29  ;;  %s10108_s29 = smov %s7116_s14 }
 0x6ce   : > { %s10109_s30 = smov %s7105_s11  ;;  %20 = sbr.rel (!%p18_p3) target bundleno = 3 (0x3), region = 101 }
 0x6d5   :  { %5953 = vsyncpa [#allocation8], 1 }
 0x6d6   :  { %5955 = vsyncpa [#allocation8 + $0x1], 1 }

</bundles_post_ra>
